<compile_context>
chip_gen: v6e
topology: v6e:2x2x1
jax: 0.10.0
libtpu: 0.0.40
codegen_flags: <defaults>
</compile_context>

<pallas_src>
import functools

import jax
import jax.numpy as jnp
from jax import lax
from jax.experimental import pallas as pl
from jax.experimental.pallas import tpu as pltpu


# ---------------------------------------------------------------------------
# Single fused kernel: propagation (all layers) + gathers + losses
# ---------------------------------------------------------------------------

def _make_fused_kernel(num_layers, temperature, batch, eps=1e-8):
    inv_t = 1.0 / float(temperature)
    inv_b = 1.0 / float(batch)
    bf16 = jnp.bfloat16
    f32 = jnp.float32

    def kernel(user_idx_ref, item_idx_ref, pos_idx_ref, neg_idx_ref,   # SMEM prefetch
               adj_ref, adj_t_ref, v_t_ref, u_sig_ref, u_t_ref, v_sig_ref,
               user0_ref, item0_ref,                                   # VMEM inputs
               cl_ref, bpr_ref, reg_ref,                               # outputs
               user_sum_ref, item_sum_ref, usvd_sum_ref, isvd_sum_ref  # scratch
               ):
        u0 = user0_ref[...]                     # (U, D) f32
        i0 = item0_ref[...]                     # (P, D) f32

        adj = adj_ref[...]                      # (U, P) bf16
        adj_t = adj_t_ref[...]                  # (P, U) bf16
        v_t = v_t_ref[...]                      # (q, P) bf16
        u_sig = u_sig_ref[...]                  # (U, q) bf16
        u_t = u_t_ref[...]                      # (q, U) bf16
        v_sig = v_sig_ref[...]                  # (P, q) bf16

        # layer-0 entries of every aggregation list are the base embeddings
        cur_u = u0.astype(bf16)
        cur_i = i0.astype(bf16)
        user_sum, item_sum = u0, i0
        usvd_sum, isvd_sum = u0, i0

        # Unrolled layer loop: bf16 MXU inputs, f32 accumulation, everything
        # (incl. the rank-q intermediates) stays resident on-chip.
        for _ in range(num_layers):
            new_u = jnp.dot(adj, cur_i, preferred_element_type=f32)      # (U, D)
            new_i = jnp.dot(adj_t, cur_u, preferred_element_type=f32)    # (P, D)

            vt_i = jnp.dot(v_t, cur_i, preferred_element_type=f32)       # (q, D)
            u_svd = jnp.dot(u_sig, vt_i.astype(bf16),
                            preferred_element_type=f32)                  # (U, D)
            ut_u = jnp.dot(u_t, cur_u, preferred_element_type=f32)       # (q, D)
            i_svd = jnp.dot(v_sig, ut_u.astype(bf16),
                            preferred_element_type=f32)                  # (P, D)

            user_sum = user_sum + new_u
            item_sum = item_sum + new_i
            usvd_sum = usvd_sum + u_svd
            isvd_sum = isvd_sum + i_svd
            cur_u = new_u.astype(bf16)
            cur_i = new_i.astype(bf16)

        # Stage the final aggregates in VMEM scratch so the 8-row gathers can
        # use dynamic pl.ds sublane loads (no HBM round trip, no XLA gathers).
        user_sum_ref[...] = user_sum
        item_sum_ref[...] = item_sum
        usvd_sum_ref[...] = usvd_sum
        isvd_sum_ref[...] = isvd_sum

        def gather(src_ref, idx_ref):
            rows = [src_ref[pl.ds(idx_ref[b], 1), :] for b in range(batch)]
            return jnp.concatenate(rows, axis=0)            # (B, D) f32

        ug_svd = gather(usvd_sum_ref, user_idx_ref)
        ig_svd = gather(isvd_sum_ref, item_idx_ref)
        ug_emb = gather(user_sum_ref, user_idx_ref)
        ig_emb = gather(item_sum_ref, item_idx_ref)
        pos_emb = gather(item_sum_ref, pos_idx_ref)
        neg_emb = gather(item_sum_ref, neg_idx_ref)

        def neg_pos(g_svd, emb_all, g_emb):
            # (B, N) = g_svd @ emb_all^T  (bf16 MXU inputs, f32 accumulation)
            s = lax.dot_general(
                g_svd.astype(bf16), emb_all.astype(bf16),
                dimension_numbers=(((1,), (1,)), ((), ())),
                preferred_element_type=f32) * inv_t
            m = jnp.max(s, axis=1, keepdims=True)                          # per-row max
            row = jnp.log(jnp.sum(jnp.exp(s - m), axis=1, keepdims=True) + eps) + m
            neg = jnp.sum(row, axis=0, keepdims=True) * inv_b              # (1, 1)

            pr = jnp.sum(g_svd * g_emb, axis=1, keepdims=True) * inv_t     # (B, 1)
            pr = jnp.clip(pr, -5.0, 5.0)
            pos = jnp.sum(pr, axis=0, keepdims=True) * inv_b               # (1, 1)
            return neg, pos

        u_neg, u_pos = neg_pos(ug_svd, user_sum, ug_emb)
        i_neg, i_pos = neg_pos(ig_svd, item_sum, ig_emb)
        contrastive = -(u_pos + i_pos) + (u_neg + i_neg)                   # (1, 1)

        # BPR with numerically stable log-sigmoid (== sigmoid().log())
        d = jnp.sum(ug_emb * (pos_emb - neg_emb), axis=1, keepdims=True)   # (B, 1)
        log_sig = jnp.minimum(d, 0.0) - jnp.log(1.0 + jnp.exp(-jnp.abs(d)))
        bpr = -jnp.sum(log_sig, axis=0, keepdims=True) * inv_b             # (1, 1)

        # L2 regularization: sum of squared 2-norms of the trainable params
        reg = (jnp.sum(u0 * u0, keepdims=True)
               + jnp.sum(i0 * i0, keepdims=True))                          # (1, 1)

        cl_ref[...] = jnp.broadcast_to(contrastive, cl_ref.shape)
        bpr_ref[...] = jnp.broadcast_to(bpr, bpr_ref.shape)
        reg_ref[...] = jnp.broadcast_to(reg, reg_ref.shape)

    return kernel


def lightgcl_fused(adj, adj_t, v_mat_t, u_times_sigma, u_mat_t, v_times_sigma,
                   user_emb_0, item_emb_0, user, item, pos, neg,
                   *, num_layers, temperature):
    U, P = adj.shape
    D = user_emb_0.shape[1]
    q = u_mat_t.shape[0]
    B = user.shape[0]
    f32 = jnp.float32
    bf16 = jnp.bfloat16

    kernel = _make_fused_kernel(num_layers, temperature, B)

    def full(shape):
        return pl.BlockSpec(shape, lambda i, *_: (0, 0))

    cl, bpr, reg = pl.pallas_call(
        kernel,
        out_shape=(jax.ShapeDtypeStruct((1, 128), f32),
                   jax.ShapeDtypeStruct((1, 128), f32),
                   jax.ShapeDtypeStruct((1, 128), f32)),
        grid_spec=pltpu.PrefetchScalarGridSpec(
            num_scalar_prefetch=4,
            grid=(1,),
            in_specs=[
                full((U, P)), full((P, U)), full((q, P)), full((U, q)),
                full((q, U)), full((P, q)), full((U, D)), full((P, D)),
            ],
            out_specs=[full((1, 128)), full((1, 128)), full((1, 128))],
            scratch_shapes=[
                pltpu.VMEM((U, D), f32), pltpu.VMEM((P, D), f32),
                pltpu.VMEM((U, D), f32), pltpu.VMEM((P, D), f32),
            ],
        ),
        compiler_params=pltpu.CompilerParams(
            dimension_semantics=("arbitrary",)),
    )(user.astype(jnp.int32), item.astype(jnp.int32),
      pos.astype(jnp.int32), neg.astype(jnp.int32),
      adj.astype(bf16), adj_t.astype(bf16), v_mat_t.astype(bf16),
      u_times_sigma.astype(bf16), u_mat_t.astype(bf16), v_times_sigma.astype(bf16),
      user_emb_0.astype(f32), item_emb_0.astype(f32))
    return cl[0, 0], bpr[0, 0], reg[0, 0]


# ---------------------------------------------------------------------------
# LightGCL forward (thin JAX glue: one kernel call + two scalar ops)
# ---------------------------------------------------------------------------

def lightgcl_forward(user_emb_0, item_emb_0, adj, adj_t,
                     u_mat_t, v_mat_t, u_times_sigma, v_times_sigma,
                     user, item, pos, neg,
                     *, num_layers, temperature, cl_loss_weight, l2_reg_weight):
    # TODO(synk): sparse_dropout omitted (dropout_rate=0.0 -> identity); stochastic
    # per-nonzero dropout of the sparse adjacency has no clean deterministic
    # Pallas equivalent here.
    contrastive_loss, bpr_loss, regularization_loss = lightgcl_fused(
        adj, adj_t, v_mat_t, u_times_sigma, u_mat_t, v_times_sigma,
        user_emb_0, item_emb_0, user, item, pos, neg,
        num_layers=num_layers, temperature=temperature)

    total_loss = (bpr_loss
                  + contrastive_loss * cl_loss_weight
                  + regularization_loss * l2_reg_weight)
    return total_loss, contrastive_loss, bpr_loss, regularization_loss


# ---------------------------------------------------------------------------
# Deterministic setup + run
# ---------------------------------------------------------------------------

def xavier_uniform(key, shape):
    fan_in, fan_out = shape[0], shape[1]
    bound = (6.0 / (fan_in + fan_out)) ** 0.5
    return jax.random.uniform(key, shape, jnp.float32, -bound, bound)


if __name__ == "__main__":
    # config (small, MXU/VPU friendly shapes)
    num_device = 256
    num_product = 384
    embed_size = 128
    num_layers = 2
    svd_q = 16
    temperature = 0.2
    cl_loss_weight = 0.2
    l2_reg_weight = 1e-4
    batch = 8

    key = jax.random.PRNGKey(0)
    k_adj, k_u, k_i, k_user, k_item, k_pos, k_neg = jax.random.split(key, 7)

    # sparse-ish interaction matrix; degree-normalized here as example-input
    # preprocessing (keeps propagation magnitudes / toy losses in range).
    raw = (jax.random.uniform(k_adj, (num_device, num_product)) < 0.05
           ).astype(jnp.float32)
    deg_u = jnp.maximum(raw.sum(axis=1, keepdims=True), 1.0)
    deg_i = jnp.maximum(raw.sum(axis=0, keepdims=True), 1.0)
    adj = raw / jnp.sqrt(deg_u * deg_i)

    # loop-invariant transposes hoisted out of the forward pass
    adj_t = adj.T

    user_emb_0 = xavier_uniform(k_u, (num_device, embed_size))
    item_emb_0 = xavier_uniform(k_i, (num_product, embed_size))

    # low-rank SVD (torch.svd_lowrank equivalent, done once at init)
    u_full, s_full, vt_full = jnp.linalg.svd(adj, full_matrices=False)
    u_matrix = u_full[:, :svd_q]                       # (U, q)
    sigma = s_full[:svd_q]                             # (q,)
    v_matrix = vt_full[:svd_q, :].T                    # (P, q)
    u_times_sigma = u_matrix * sigma[None, :]          # (U, q)
    v_times_sigma = v_matrix * sigma[None, :]          # (P, q)
    u_mat_t = u_matrix.T                               # (q, U)
    v_mat_t = v_matrix.T                               # (q, P)

    user = jax.random.randint(k_user, (batch,), 0, num_device)
    item = jax.random.randint(k_item, (batch,), 0, num_product)
    pos = jax.random.randint(k_pos, (batch,), 0, num_product)
    neg = jax.random.randint(k_neg, (batch,), 0, num_product)

    fwd = jax.jit(functools.partial(
        lightgcl_forward, num_layers=num_layers, temperature=temperature,
        cl_loss_weight=cl_loss_weight, l2_reg_weight=l2_reg_weight))

    total, cl, bpr, reg = fwd(user_emb_0, item_emb_0, adj, adj_t,
                              u_mat_t, v_mat_t, u_times_sigma, v_times_sigma,
                              user, item, pos, neg)
    jax.block_until_ready(total)

    ok = (bool(jnp.isfinite(total)) and bool(jnp.isfinite(cl))
          and bool(jnp.isfinite(bpr)) and bool(jnp.isfinite(reg)))
    assert ok, (total, cl, bpr, reg)
    print("KERNEL_OK")
</pallas_src>

<mosaic_0001>
module attributes {stable_mosaic.version = 11 : i64} {
  func.func @kernel(%arg0: i32, %arg1: memref<8xi32, #tpu.memory_space<smem>>, %arg2: memref<8xi32, #tpu.memory_space<smem>>, %arg3: memref<8xi32, #tpu.memory_space<smem>>, %arg4: memref<8xi32, #tpu.memory_space<smem>>, %arg5: memref<256x384xbf16, #tpu.memory_space<vmem>>, %arg6: memref<384x256xbf16, #tpu.memory_space<vmem>>, %arg7: memref<16x384xbf16, #tpu.memory_space<vmem>>, %arg8: memref<256x16xbf16, #tpu.memory_space<vmem>>, %arg9: memref<16x256xbf16, #tpu.memory_space<vmem>>, %arg10: memref<384x16xbf16, #tpu.memory_space<vmem>>, %arg11: memref<256x128xf32, #tpu.memory_space<vmem>>, %arg12: memref<384x128xf32, #tpu.memory_space<vmem>>, %arg13: memref<1x128xf32, #tpu.memory_space<vmem>>, %arg14: memref<1x128xf32, #tpu.memory_space<vmem>>, %arg15: memref<1x128xf32, #tpu.memory_space<vmem>>, %arg16: memref<256x128xf32, #tpu.memory_space<vmem>>, %arg17: memref<384x128xf32, #tpu.memory_space<vmem>>, %arg18: memref<256x128xf32, #tpu.memory_space<vmem>>, %arg19: memref<384x128xf32, #tpu.memory_space<vmem>>) attributes {dimension_semantics = [#tpu.dimension_semantics<arbitrary>], iteration_bounds = array<i64: 1>, scalar_prefetch = 4 : i64, scratch_operands = 4 : i64, tpu.core_type = #tpu.core_type<tc>, window_params = [{pipeline_mode = #tpu.pipeline_mode<synchronous>, transform_indices = @transform_0, window_bounds = array<i64: 256, 384>}, {pipeline_mode = #tpu.pipeline_mode<synchronous>, transform_indices = @transform_1, window_bounds = array<i64: 384, 256>}, {pipeline_mode = #tpu.pipeline_mode<synchronous>, transform_indices = @transform_2, window_bounds = array<i64: 16, 384>}, {pipeline_mode = #tpu.pipeline_mode<synchronous>, transform_indices = @transform_3, window_bounds = array<i64: 256, 16>}, {pipeline_mode = #tpu.pipeline_mode<synchronous>, transform_indices = @transform_4, window_bounds = array<i64: 16, 256>}, {pipeline_mode = #tpu.pipeline_mode<synchronous>, transform_indices = @transform_5, window_bounds = array<i64: 384, 16>}, {pipeline_mode = #tpu.pipeline_mode<synchronous>, transform_indices = @transform_6, window_bounds = array<i64: 256, 128>}, {pipeline_mode = #tpu.pipeline_mode<synchronous>, transform_indices = @transform_7, window_bounds = array<i64: 384, 128>}, {pipeline_mode = #tpu.pipeline_mode<synchronous>, transform_indices = @transform_8, window_bounds = array<i64: 1, 128>}, {pipeline_mode = #tpu.pipeline_mode<synchronous>, transform_indices = @transform_9, window_bounds = array<i64: 1, 128>}, {pipeline_mode = #tpu.pipeline_mode<synchronous>, transform_indices = @transform_10, window_bounds = array<i64: 1, 128>}]} {
    %c0 = arith.constant 0 : index
    %c0_0 = arith.constant 0 : index
    %0 = vector.load %arg11[%c0, %c0_0] : memref<256x128xf32, #tpu.memory_space<vmem>>, vector<256x128xf32>
    %c0_1 = arith.constant 0 : index
    %c0_2 = arith.constant 0 : index
    %1 = vector.load %arg12[%c0_1, %c0_2] : memref<384x128xf32, #tpu.memory_space<vmem>>, vector<384x128xf32>
    %c0_3 = arith.constant 0 : index
    %c0_4 = arith.constant 0 : index
    %2 = vector.load %arg5[%c0_3, %c0_4] : memref<256x384xbf16, #tpu.memory_space<vmem>>, vector<256x384xbf16>
    %c0_5 = arith.constant 0 : index
    %c0_6 = arith.constant 0 : index
    %3 = vector.load %arg6[%c0_5, %c0_6] : memref<384x256xbf16, #tpu.memory_space<vmem>>, vector<384x256xbf16>
    %c0_7 = arith.constant 0 : index
    %c0_8 = arith.constant 0 : index
    %4 = vector.load %arg7[%c0_7, %c0_8] : memref<16x384xbf16, #tpu.memory_space<vmem>>, vector<16x384xbf16>
    %c0_9 = arith.constant 0 : index
    %c0_10 = arith.constant 0 : index
    %5 = vector.load %arg8[%c0_9, %c0_10] : memref<256x16xbf16, #tpu.memory_space<vmem>>, vector<256x16xbf16>
    %c0_11 = arith.constant 0 : index
    %c0_12 = arith.constant 0 : index
    %6 = vector.load %arg9[%c0_11, %c0_12] : memref<16x256xbf16, #tpu.memory_space<vmem>>, vector<16x256xbf16>
    %c0_13 = arith.constant 0 : index
    %c0_14 = arith.constant 0 : index
    %7 = vector.load %arg10[%c0_13, %c0_14] : memref<384x16xbf16, #tpu.memory_space<vmem>>, vector<384x16xbf16>
    %8 = arith.truncf %0 : vector<256x128xf32> to vector<256x128xbf16>
    %9 = arith.truncf %1 : vector<384x128xf32> to vector<384x128xbf16>
    %cst = arith.constant dense<0.000000e+00> : vector<256x128xf32>
    %10 = tpu.matmul %2, %9, %cst {dimension_numbers = #tpu.dot_dimension_numbers<[1], [0], [0], [1], [0, 0, 1, 1], [], []>} : vector<256x384xbf16>, vector<384x128xbf16>, vector<256x128xf32> -> vector<256x128xf32>
    %cst_15 = arith.constant dense<0.000000e+00> : vector<384x128xf32>
    %11 = tpu.matmul %3, %8, %cst_15 {dimension_numbers = #tpu.dot_dimension_numbers<[1], [0], [0], [1], [0, 0, 1, 1], [], []>} : vector<384x256xbf16>, vector<256x128xbf16>, vector<384x128xf32> -> vector<384x128xf32>
    %cst_16 = arith.constant dense<0.000000e+00> : vector<16x128xf32>
    %12 = tpu.matmul %4, %9, %cst_16 {dimension_numbers = #tpu.dot_dimension_numbers<[1], [0], [0], [1], [0, 0, 1, 1], [], []>} : vector<16x384xbf16>, vector<384x128xbf16>, vector<16x128xf32> -> vector<16x128xf32>
    %13 = arith.truncf %12 : vector<16x128xf32> to vector<16x128xbf16>
    %cst_17 = arith.constant dense<0.000000e+00> : vector<256x128xf32>
    %14 = tpu.matmul %5, %13, %cst_17 {dimension_numbers = #tpu.dot_dimension_numbers<[1], [0], [0], [1], [0, 0, 1, 1], [], []>} : vector<256x16xbf16>, vector<16x128xbf16>, vector<256x128xf32> -> vector<256x128xf32>
    %cst_18 = arith.constant dense<0.000000e+00> : vector<16x128xf32>
    %15 = tpu.matmul %6, %8, %cst_18 {dimension_numbers = #tpu.dot_dimension_numbers<[1], [0], [0], [1], [0, 0, 1, 1], [], []>} : vector<16x256xbf16>, vector<256x128xbf16>, vector<16x128xf32> -> vector<16x128xf32>
    %16 = arith.truncf %15 : vector<16x128xf32> to vector<16x128xbf16>
    %cst_19 = arith.constant dense<0.000000e+00> : vector<384x128xf32>
    %17 = tpu.matmul %7, %16, %cst_19 {dimension_numbers = #tpu.dot_dimension_numbers<[1], [0], [0], [1], [0, 0, 1, 1], [], []>} : vector<384x16xbf16>, vector<16x128xbf16>, vector<384x128xf32> -> vector<384x128xf32>
    %18 = arith.addf %0, %10 : vector<256x128xf32>
    %19 = arith.addf %1, %11 : vector<384x128xf32>
    %20 = arith.addf %0, %14 : vector<256x128xf32>
    %21 = arith.addf %1, %17 : vector<384x128xf32>
    %22 = arith.truncf %10 : vector<256x128xf32> to vector<256x128xbf16>
    %23 = arith.truncf %11 : vector<384x128xf32> to vector<384x128xbf16>
    %cst_20 = arith.constant dense<0.000000e+00> : vector<256x128xf32>
    %24 = tpu.matmul %2, %23, %cst_20 {dimension_numbers = #tpu.dot_dimension_numbers<[1], [0], [0], [1], [0, 0, 1, 1], [], []>} : vector<256x384xbf16>, vector<384x128xbf16>, vector<256x128xf32> -> vector<256x128xf32>
    %cst_21 = arith.constant dense<0.000000e+00> : vector<384x128xf32>
    %25 = tpu.matmul %3, %22, %cst_21 {dimension_numbers = #tpu.dot_dimension_numbers<[1], [0], [0], [1], [0, 0, 1, 1], [], []>} : vector<384x256xbf16>, vector<256x128xbf16>, vector<384x128xf32> -> vector<384x128xf32>
    %cst_22 = arith.constant dense<0.000000e+00> : vector<16x128xf32>
    %26 = tpu.matmul %4, %23, %cst_22 {dimension_numbers = #tpu.dot_dimension_numbers<[1], [0], [0], [1], [0, 0, 1, 1], [], []>} : vector<16x384xbf16>, vector<384x128xbf16>, vector<16x128xf32> -> vector<16x128xf32>
    %27 = arith.truncf %26 : vector<16x128xf32> to vector<16x128xbf16>
    %cst_23 = arith.constant dense<0.000000e+00> : vector<256x128xf32>
    %28 = tpu.matmul %5, %27, %cst_23 {dimension_numbers = #tpu.dot_dimension_numbers<[1], [0], [0], [1], [0, 0, 1, 1], [], []>} : vector<256x16xbf16>, vector<16x128xbf16>, vector<256x128xf32> -> vector<256x128xf32>
    %cst_24 = arith.constant dense<0.000000e+00> : vector<16x128xf32>
    %29 = tpu.matmul %6, %22, %cst_24 {dimension_numbers = #tpu.dot_dimension_numbers<[1], [0], [0], [1], [0, 0, 1, 1], [], []>} : vector<16x256xbf16>, vector<256x128xbf16>, vector<16x128xf32> -> vector<16x128xf32>
    %30 = arith.truncf %29 : vector<16x128xf32> to vector<16x128xbf16>
    %cst_25 = arith.constant dense<0.000000e+00> : vector<384x128xf32>
    %31 = tpu.matmul %7, %30, %cst_25 {dimension_numbers = #tpu.dot_dimension_numbers<[1], [0], [0], [1], [0, 0, 1, 1], [], []>} : vector<384x16xbf16>, vector<16x128xbf16>, vector<384x128xf32> -> vector<384x128xf32>
    %32 = arith.addf %18, %24 : vector<256x128xf32>
    %33 = arith.addf %19, %25 : vector<384x128xf32>
    %34 = arith.addf %20, %28 : vector<256x128xf32>
    %35 = arith.addf %21, %31 : vector<384x128xf32>
    %c0_26 = arith.constant 0 : index
    %c0_27 = arith.constant 0 : index
    %36 = vector.load %arg16[%c0_26, %c0_27] : memref<256x128xf32, #tpu.memory_space<vmem>>, vector<256x128xf32>
    tpu.vector_store %arg16[%c0_26, %c0_27], %32 {strides = array<i32>} : memref<256x128xf32, #tpu.memory_space<vmem>>, vector<256x128xf32>,
    %c0_28 = arith.constant 0 : index
    %c0_29 = arith.constant 0 : index
    %37 = vector.load %arg17[%c0_28, %c0_29] : memref<384x128xf32, #tpu.memory_space<vmem>>, vector<384x128xf32>
    tpu.vector_store %arg17[%c0_28, %c0_29], %33 {strides = array<i32>} : memref<384x128xf32, #tpu.memory_space<vmem>>, vector<384x128xf32>,
    %c0_30 = arith.constant 0 : index
    %c0_31 = arith.constant 0 : index
    %38 = vector.load %arg18[%c0_30, %c0_31] : memref<256x128xf32, #tpu.memory_space<vmem>>, vector<256x128xf32>
    tpu.vector_store %arg18[%c0_30, %c0_31], %34 {strides = array<i32>} : memref<256x128xf32, #tpu.memory_space<vmem>>, vector<256x128xf32>,
    %c0_32 = arith.constant 0 : index
    %c0_33 = arith.constant 0 : index
    %39 = vector.load %arg19[%c0_32, %c0_33] : memref<384x128xf32, #tpu.memory_space<vmem>>, vector<384x128xf32>
    tpu.vector_store %arg19[%c0_32, %c0_33], %35 {strides = array<i32>} : memref<384x128xf32, #tpu.memory_space<vmem>>, vector<384x128xf32>,
    %c0_34 = arith.constant 0 : index
    %40 = memref.load %arg1[%c0_34] : memref<8xi32, #tpu.memory_space<smem>>
    %41 = arith.index_cast %40 : i32 to index
    %c0_35 = arith.constant 0 : index
    %42 = vector.load %arg18[%41, %c0_35] : memref<256x128xf32, #tpu.memory_space<vmem>>, vector<1x128xf32>
    %c1 = arith.constant 1 : index
    %43 = memref.load %arg1[%c1] : memref<8xi32, #tpu.memory_space<smem>>
    %44 = arith.index_cast %43 : i32 to index
    %c0_36 = arith.constant 0 : index
    %45 = vector.load %arg18[%44, %c0_36] : memref<256x128xf32, #tpu.memory_space<vmem>>, vector<1x128xf32>
    %c2 = arith.constant 2 : index
    %46 = memref.load %arg1[%c2] : memref<8xi32, #tpu.memory_space<smem>>
    %47 = arith.index_cast %46 : i32 to index
    %c0_37 = arith.constant 0 : index
    %48 = vector.load %arg18[%47, %c0_37] : memref<256x128xf32, #tpu.memory_space<vmem>>, vector<1x128xf32>
    %c3 = arith.constant 3 : index
    %49 = memref.load %arg1[%c3] : memref<8xi32, #tpu.memory_space<smem>>
    %50 = arith.index_cast %49 : i32 to index
    %c0_38 = arith.constant 0 : index
    %51 = vector.load %arg18[%50, %c0_38] : memref<256x128xf32, #tpu.memory_space<vmem>>, vector<1x128xf32>
    %c4 = arith.constant 4 : index
    %52 = memref.load %arg1[%c4] : memref<8xi32, #tpu.memory_space<smem>>
    %53 = arith.index_cast %52 : i32 to index
    %c0_39 = arith.constant 0 : index
    %54 = vector.load %arg18[%53, %c0_39] : memref<256x128xf32, #tpu.memory_space<vmem>>, vector<1x128xf32>
    %c5 = arith.constant 5 : index
    %55 = memref.load %arg1[%c5] : memref<8xi32, #tpu.memory_space<smem>>
    %56 = arith.index_cast %55 : i32 to index
    %c0_40 = arith.constant 0 : index
    %57 = vector.load %arg18[%56, %c0_40] : memref<256x128xf32, #tpu.memory_space<vmem>>, vector<1x128xf32>
    %c6 = arith.constant 6 : index
    %58 = memref.load %arg1[%c6] : memref<8xi32, #tpu.memory_space<smem>>
    %59 = arith.index_cast %58 : i32 to index
    %c0_41 = arith.constant 0 : index
    %60 = vector.load %arg18[%59, %c0_41] : memref<256x128xf32, #tpu.memory_space<vmem>>, vector<1x128xf32>
    %c7 = arith.constant 7 : index
    %61 = memref.load %arg1[%c7] : memref<8xi32, #tpu.memory_space<smem>>
    %62 = arith.index_cast %61 : i32 to index
    %c0_42 = arith.constant 0 : index
    %63 = vector.load %arg18[%62, %c0_42] : memref<256x128xf32, #tpu.memory_space<vmem>>, vector<1x128xf32>
    %64 = tpu.concatenate %42, %45, %48, %51, %54, %57, %60, %63 in 0 : vector<1x128xf32>, vector<1x128xf32>, vector<1x128xf32>, vector<1x128xf32>, vector<1x128xf32>, vector<1x128xf32>, vector<1x128xf32>, vector<1x128xf32> -> vector<8x128xf32>
    %c0_43 = arith.constant 0 : index
    %65 = memref.load %arg2[%c0_43] : memref<8xi32, #tpu.memory_space<smem>>
    %66 = arith.index_cast %65 : i32 to index
    %c0_44 = arith.constant 0 : index
    %67 = vector.load %arg19[%66, %c0_44] : memref<384x128xf32, #tpu.memory_space<vmem>>, vector<1x128xf32>
    %c1_45 = arith.constant 1 : index
    %68 = memref.load %arg2[%c1_45] : memref<8xi32, #tpu.memory_space<smem>>
    %69 = arith.index_cast %68 : i32 to index
    %c0_46 = arith.constant 0 : index
    %70 = vector.load %arg19[%69, %c0_46] : memref<384x128xf32, #tpu.memory_space<vmem>>, vector<1x128xf32>
    %c2_47 = arith.constant 2 : index
    %71 = memref.load %arg2[%c2_47] : memref<8xi32, #tpu.memory_space<smem>>
    %72 = arith.index_cast %71 : i32 to index
    %c0_48 = arith.constant 0 : index
    %73 = vector.load %arg19[%72, %c0_48] : memref<384x128xf32, #tpu.memory_space<vmem>>, vector<1x128xf32>
    %c3_49 = arith.constant 3 : index
    %74 = memref.load %arg2[%c3_49] : memref<8xi32, #tpu.memory_space<smem>>
    %75 = arith.index_cast %74 : i32 to index
    %c0_50 = arith.constant 0 : index
    %76 = vector.load %arg19[%75, %c0_50] : memref<384x128xf32, #tpu.memory_space<vmem>>, vector<1x128xf32>
    %c4_51 = arith.constant 4 : index
    %77 = memref.load %arg2[%c4_51] : memref<8xi32, #tpu.memory_space<smem>>
    %78 = arith.index_cast %77 : i32 to index
    %c0_52 = arith.constant 0 : index
    %79 = vector.load %arg19[%78, %c0_52] : memref<384x128xf32, #tpu.memory_space<vmem>>, vector<1x128xf32>
    %c5_53 = arith.constant 5 : index
    %80 = memref.load %arg2[%c5_53] : memref<8xi32, #tpu.memory_space<smem>>
    %81 = arith.index_cast %80 : i32 to index
    %c0_54 = arith.constant 0 : index
    %82 = vector.load %arg19[%81, %c0_54] : memref<384x128xf32, #tpu.memory_space<vmem>>, vector<1x128xf32>
    %c6_55 = arith.constant 6 : index
    %83 = memref.load %arg2[%c6_55] : memref<8xi32, #tpu.memory_space<smem>>
    %84 = arith.index_cast %83 : i32 to index
    %c0_56 = arith.constant 0 : index
    %85 = vector.load %arg19[%84, %c0_56] : memref<384x128xf32, #tpu.memory_space<vmem>>, vector<1x128xf32>
    %c7_57 = arith.constant 7 : index
    %86 = memref.load %arg2[%c7_57] : memref<8xi32, #tpu.memory_space<smem>>
    %87 = arith.index_cast %86 : i32 to index
    %c0_58 = arith.constant 0 : index
    %88 = vector.load %arg19[%87, %c0_58] : memref<384x128xf32, #tpu.memory_space<vmem>>, vector<1x128xf32>
    %89 = tpu.concatenate %67, %70, %73, %76, %79, %82, %85, %88 in 0 : vector<1x128xf32>, vector<1x128xf32>, vector<1x128xf32>, vector<1x128xf32>, vector<1x128xf32>, vector<1x128xf32>, vector<1x128xf32>, vector<1x128xf32> -> vector<8x128xf32>
    %c0_59 = arith.constant 0 : index
    %90 = memref.load %arg1[%c0_59] : memref<8xi32, #tpu.memory_space<smem>>
    %91 = arith.index_cast %90 : i32 to index
    %c0_60 = arith.constant 0 : index
    %92 = vector.load %arg16[%91, %c0_60] : memref<256x128xf32, #tpu.memory_space<vmem>>, vector<1x128xf32>
    %c1_61 = arith.constant 1 : index
    %93 = memref.load %arg1[%c1_61] : memref<8xi32, #tpu.memory_space<smem>>
    %94 = arith.index_cast %93 : i32 to index
    %c0_62 = arith.constant 0 : index
    %95 = vector.load %arg16[%94, %c0_62] : memref<256x128xf32, #tpu.memory_space<vmem>>, vector<1x128xf32>
    %c2_63 = arith.constant 2 : index
    %96 = memref.load %arg1[%c2_63] : memref<8xi32, #tpu.memory_space<smem>>
    %97 = arith.index_cast %96 : i32 to index
    %c0_64 = arith.constant 0 : index
    %98 = vector.load %arg16[%97, %c0_64] : memref<256x128xf32, #tpu.memory_space<vmem>>, vector<1x128xf32>
    %c3_65 = arith.constant 3 : index
    %99 = memref.load %arg1[%c3_65] : memref<8xi32, #tpu.memory_space<smem>>
    %100 = arith.index_cast %99 : i32 to index
    %c0_66 = arith.constant 0 : index
    %101 = vector.load %arg16[%100, %c0_66] : memref<256x128xf32, #tpu.memory_space<vmem>>, vector<1x128xf32>
    %c4_67 = arith.constant 4 : index
    %102 = memref.load %arg1[%c4_67] : memref<8xi32, #tpu.memory_space<smem>>
    %103 = arith.index_cast %102 : i32 to index
    %c0_68 = arith.constant 0 : index
    %104 = vector.load %arg16[%103, %c0_68] : memref<256x128xf32, #tpu.memory_space<vmem>>, vector<1x128xf32>
    %c5_69 = arith.constant 5 : index
    %105 = memref.load %arg1[%c5_69] : memref<8xi32, #tpu.memory_space<smem>>
    %106 = arith.index_cast %105 : i32 to index
    %c0_70 = arith.constant 0 : index
    %107 = vector.load %arg16[%106, %c0_70] : memref<256x128xf32, #tpu.memory_space<vmem>>, vector<1x128xf32>
    %c6_71 = arith.constant 6 : index
    %108 = memref.load %arg1[%c6_71] : memref<8xi32, #tpu.memory_space<smem>>
    %109 = arith.index_cast %108 : i32 to index
    %c0_72 = arith.constant 0 : index
    %110 = vector.load %arg16[%109, %c0_72] : memref<256x128xf32, #tpu.memory_space<vmem>>, vector<1x128xf32>
    %c7_73 = arith.constant 7 : index
    %111 = memref.load %arg1[%c7_73] : memref<8xi32, #tpu.memory_space<smem>>
    %112 = arith.index_cast %111 : i32 to index
    %c0_74 = arith.constant 0 : index
    %113 = vector.load %arg16[%112, %c0_74] : memref<256x128xf32, #tpu.memory_space<vmem>>, vector<1x128xf32>
    %114 = tpu.concatenate %92, %95, %98, %101, %104, %107, %110, %113 in 0 : vector<1x128xf32>, vector<1x128xf32>, vector<1x128xf32>, vector<1x128xf32>, vector<1x128xf32>, vector<1x128xf32>, vector<1x128xf32>, vector<1x128xf32> -> vector<8x128xf32>
    %c0_75 = arith.constant 0 : index
    %115 = memref.load %arg2[%c0_75] : memref<8xi32, #tpu.memory_space<smem>>
    %116 = arith.index_cast %115 : i32 to index
    %c0_76 = arith.constant 0 : index
    %117 = vector.load %arg17[%116, %c0_76] : memref<384x128xf32, #tpu.memory_space<vmem>>, vector<1x128xf32>
    %c1_77 = arith.constant 1 : index
    %118 = memref.load %arg2[%c1_77] : memref<8xi32, #tpu.memory_space<smem>>
    %119 = arith.index_cast %118 : i32 to index
    %c0_78 = arith.constant 0 : index
    %120 = vector.load %arg17[%119, %c0_78] : memref<384x128xf32, #tpu.memory_space<vmem>>, vector<1x128xf32>
    %c2_79 = arith.constant 2 : index
    %121 = memref.load %arg2[%c2_79] : memref<8xi32, #tpu.memory_space<smem>>
    %122 = arith.index_cast %121 : i32 to index
    %c0_80 = arith.constant 0 : index
    %123 = vector.load %arg17[%122, %c0_80] : memref<384x128xf32, #tpu.memory_space<vmem>>, vector<1x128xf32>
    %c3_81 = arith.constant 3 : index
    %124 = memref.load %arg2[%c3_81] : memref<8xi32, #tpu.memory_space<smem>>
    %125 = arith.index_cast %124 : i32 to index
    %c0_82 = arith.constant 0 : index
    %126 = vector.load %arg17[%125, %c0_82] : memref<384x128xf32, #tpu.memory_space<vmem>>, vector<1x128xf32>
    %c4_83 = arith.constant 4 : index
    %127 = memref.load %arg2[%c4_83] : memref<8xi32, #tpu.memory_space<smem>>
    %128 = arith.index_cast %127 : i32 to index
    %c0_84 = arith.constant 0 : index
    %129 = vector.load %arg17[%128, %c0_84] : memref<384x128xf32, #tpu.memory_space<vmem>>, vector<1x128xf32>
    %c5_85 = arith.constant 5 : index
    %130 = memref.load %arg2[%c5_85] : memref<8xi32, #tpu.memory_space<smem>>
    %131 = arith.index_cast %130 : i32 to index
    %c0_86 = arith.constant 0 : index
    %132 = vector.load %arg17[%131, %c0_86] : memref<384x128xf32, #tpu.memory_space<vmem>>, vector<1x128xf32>
    %c6_87 = arith.constant 6 : index
    %133 = memref.load %arg2[%c6_87] : memref<8xi32, #tpu.memory_space<smem>>
    %134 = arith.index_cast %133 : i32 to index
    %c0_88 = arith.constant 0 : index
    %135 = vector.load %arg17[%134, %c0_88] : memref<384x128xf32, #tpu.memory_space<vmem>>, vector<1x128xf32>
    %c7_89 = arith.constant 7 : index
    %136 = memref.load %arg2[%c7_89] : memref<8xi32, #tpu.memory_space<smem>>
    %137 = arith.index_cast %136 : i32 to index
    %c0_90 = arith.constant 0 : index
    %138 = vector.load %arg17[%137, %c0_90] : memref<384x128xf32, #tpu.memory_space<vmem>>, vector<1x128xf32>
    %139 = tpu.concatenate %117, %120, %123, %126, %129, %132, %135, %138 in 0 : vector<1x128xf32>, vector<1x128xf32>, vector<1x128xf32>, vector<1x128xf32>, vector<1x128xf32>, vector<1x128xf32>, vector<1x128xf32>, vector<1x128xf32> -> vector<8x128xf32>
    %c0_91 = arith.constant 0 : index
    %140 = memref.load %arg3[%c0_91] : memref<8xi32, #tpu.memory_space<smem>>
    %141 = arith.index_cast %140 : i32 to index
    %c0_92 = arith.constant 0 : index
    %142 = vector.load %arg17[%141, %c0_92] : memref<384x128xf32, #tpu.memory_space<vmem>>, vector<1x128xf32>
    %c1_93 = arith.constant 1 : index
    %143 = memref.load %arg3[%c1_93] : memref<8xi32, #tpu.memory_space<smem>>
    %144 = arith.index_cast %143 : i32 to index
    %c0_94 = arith.constant 0 : index
    %145 = vector.load %arg17[%144, %c0_94] : memref<384x128xf32, #tpu.memory_space<vmem>>, vector<1x128xf32>
    %c2_95 = arith.constant 2 : index
    %146 = memref.load %arg3[%c2_95] : memref<8xi32, #tpu.memory_space<smem>>
    %147 = arith.index_cast %146 : i32 to index
    %c0_96 = arith.constant 0 : index
    %148 = vector.load %arg17[%147, %c0_96] : memref<384x128xf32, #tpu.memory_space<vmem>>, vector<1x128xf32>
    %c3_97 = arith.constant 3 : index
    %149 = memref.load %arg3[%c3_97] : memref<8xi32, #tpu.memory_space<smem>>
    %150 = arith.index_cast %149 : i32 to index
    %c0_98 = arith.constant 0 : index
    %151 = vector.load %arg17[%150, %c0_98] : memref<384x128xf32, #tpu.memory_space<vmem>>, vector<1x128xf32>
    %c4_99 = arith.constant 4 : index
    %152 = memref.load %arg3[%c4_99] : memref<8xi32, #tpu.memory_space<smem>>
    %153 = arith.index_cast %152 : i32 to index
    %c0_100 = arith.constant 0 : index
    %154 = vector.load %arg17[%153, %c0_100] : memref<384x128xf32, #tpu.memory_space<vmem>>, vector<1x128xf32>
    %c5_101 = arith.constant 5 : index
    %155 = memref.load %arg3[%c5_101] : memref<8xi32, #tpu.memory_space<smem>>
    %156 = arith.index_cast %155 : i32 to index
    %c0_102 = arith.constant 0 : index
    %157 = vector.load %arg17[%156, %c0_102] : memref<384x128xf32, #tpu.memory_space<vmem>>, vector<1x128xf32>
    %c6_103 = arith.constant 6 : index
    %158 = memref.load %arg3[%c6_103] : memref<8xi32, #tpu.memory_space<smem>>
    %159 = arith.index_cast %158 : i32 to index
    %c0_104 = arith.constant 0 : index
    %160 = vector.load %arg17[%159, %c0_104] : memref<384x128xf32, #tpu.memory_space<vmem>>, vector<1x128xf32>
    %c7_105 = arith.constant 7 : index
    %161 = memref.load %arg3[%c7_105] : memref<8xi32, #tpu.memory_space<smem>>
    %162 = arith.index_cast %161 : i32 to index
    %c0_106 = arith.constant 0 : index
    %163 = vector.load %arg17[%162, %c0_106] : memref<384x128xf32, #tpu.memory_space<vmem>>, vector<1x128xf32>
    %164 = tpu.concatenate %142, %145, %148, %151, %154, %157, %160, %163 in 0 : vector<1x128xf32>, vector<1x128xf32>, vector<1x128xf32>, vector<1x128xf32>, vector<1x128xf32>, vector<1x128xf32>, vector<1x128xf32>, vector<1x128xf32> -> vector<8x128xf32>
    %c0_107 = arith.constant 0 : index
    %165 = memref.load %arg4[%c0_107] : memref<8xi32, #tpu.memory_space<smem>>
    %166 = arith.index_cast %165 : i32 to index
    %c0_108 = arith.constant 0 : index
    %167 = vector.load %arg17[%166, %c0_108] : memref<384x128xf32, #tpu.memory_space<vmem>>, vector<1x128xf32>
    %c1_109 = arith.constant 1 : index
    %168 = memref.load %arg4[%c1_109] : memref<8xi32, #tpu.memory_space<smem>>
    %169 = arith.index_cast %168 : i32 to index
    %c0_110 = arith.constant 0 : index
    %170 = vector.load %arg17[%169, %c0_110] : memref<384x128xf32, #tpu.memory_space<vmem>>, vector<1x128xf32>
    %c2_111 = arith.constant 2 : index
    %171 = memref.load %arg4[%c2_111] : memref<8xi32, #tpu.memory_space<smem>>
    %172 = arith.index_cast %171 : i32 to index
    %c0_112 = arith.constant 0 : index
    %173 = vector.load %arg17[%172, %c0_112] : memref<384x128xf32, #tpu.memory_space<vmem>>, vector<1x128xf32>
    %c3_113 = arith.constant 3 : index
    %174 = memref.load %arg4[%c3_113] : memref<8xi32, #tpu.memory_space<smem>>
    %175 = arith.index_cast %174 : i32 to index
    %c0_114 = arith.constant 0 : index
    %176 = vector.load %arg17[%175, %c0_114] : memref<384x128xf32, #tpu.memory_space<vmem>>, vector<1x128xf32>
    %c4_115 = arith.constant 4 : index
    %177 = memref.load %arg4[%c4_115] : memref<8xi32, #tpu.memory_space<smem>>
    %178 = arith.index_cast %177 : i32 to index
    %c0_116 = arith.constant 0 : index
    %179 = vector.load %arg17[%178, %c0_116] : memref<384x128xf32, #tpu.memory_space<vmem>>, vector<1x128xf32>
    %c5_117 = arith.constant 5 : index
    %180 = memref.load %arg4[%c5_117] : memref<8xi32, #tpu.memory_space<smem>>
    %181 = arith.index_cast %180 : i32 to index
    %c0_118 = arith.constant 0 : index
    %182 = vector.load %arg17[%181, %c0_118] : memref<384x128xf32, #tpu.memory_space<vmem>>, vector<1x128xf32>
    %c6_119 = arith.constant 6 : index
    %183 = memref.load %arg4[%c6_119] : memref<8xi32, #tpu.memory_space<smem>>
    %184 = arith.index_cast %183 : i32 to index
    %c0_120 = arith.constant 0 : index
    %185 = vector.load %arg17[%184, %c0_120] : memref<384x128xf32, #tpu.memory_space<vmem>>, vector<1x128xf32>
    %c7_121 = arith.constant 7 : index
    %186 = memref.load %arg4[%c7_121] : memref<8xi32, #tpu.memory_space<smem>>
    %187 = arith.index_cast %186 : i32 to index
    %c0_122 = arith.constant 0 : index
    %188 = vector.load %arg17[%187, %c0_122] : memref<384x128xf32, #tpu.memory_space<vmem>>, vector<1x128xf32>
    %189 = tpu.concatenate %167, %170, %173, %176, %179, %182, %185, %188 in 0 : vector<1x128xf32>, vector<1x128xf32>, vector<1x128xf32>, vector<1x128xf32>, vector<1x128xf32>, vector<1x128xf32>, vector<1x128xf32>, vector<1x128xf32> -> vector<8x128xf32>
    %190 = arith.truncf %64 : vector<8x128xf32> to vector<8x128xbf16>
    %191 = arith.truncf %32 : vector<256x128xf32> to vector<256x128xbf16>
    %cst_123 = arith.constant dense<0.000000e+00> : vector<8x256xf32>
    %192 = tpu.matmul %190, %191, %cst_123 {dimension_numbers = #tpu.dot_dimension_numbers<[1], [1], [0], [0], [0, 0, 1, 0], [], []>} : vector<8x128xbf16>, vector<256x128xbf16>, vector<8x256xf32> -> vector<8x256xf32>
    %cst_124 = arith.constant 5.000000e+00 : f32
    %193 = vector.broadcast %cst_124 : f32 to vector<8x256xf32>
    %194 = arith.mulf %192, %193 : vector<8x256xf32>
    %cst_125 = arith.constant dense<0xFF800000> : vector<8xf32>
    %195 = vector.multi_reduction <maximumf>, %194, %cst_125 [1] : vector<8x256xf32> to vector<8xf32>
    %196 = vector.shape_cast %195 : vector<8xf32> to vector<8x1xf32>
    %197 = vector.broadcast %196 : vector<8x1xf32> to vector<8x256xf32>
    %198 = arith.subf %194, %197 : vector<8x256xf32>
    %199 = math.exp %198 : vector<8x256xf32>
    %cst_126 = arith.constant dense<0.000000e+00> : vector<8xf32>
    %200 = vector.multi_reduction <add>, %199, %cst_126 [1] : vector<8x256xf32> to vector<8xf32>
    %201 = vector.shape_cast %200 : vector<8xf32> to vector<8x1xf32>
    %cst_127 = arith.constant 9.99999993E-9 : f32
    %202 = vector.broadcast %cst_127 : f32 to vector<8x1xf32>
    %203 = arith.addf %201, %202 : vector<8x1xf32>
    %204 = math.log %203 : vector<8x1xf32>
    %205 = arith.addf %204, %196 : vector<8x1xf32>
    %cst_128 = arith.constant dense<0.000000e+00> : vector<1xf32>
    %206 = vector.multi_reduction <add>, %205, %cst_128 [0] : vector<8x1xf32> to vector<1xf32>
    %207 = vector.shape_cast %206 : vector<1xf32> to vector<1x1xf32>
    %cst_129 = arith.constant 1.250000e-01 : f32
    %208 = vector.broadcast %cst_129 : f32 to vector<1x1xf32>
    %209 = arith.mulf %207, %208 : vector<1x1xf32>
    %210 = arith.mulf %64, %114 : vector<8x128xf32>
    %cst_130 = arith.constant dense<0.000000e+00> : vector<8xf32>
    %211 = vector.multi_reduction <add>, %210, %cst_130 [1] : vector<8x128xf32> to vector<8xf32>
    %212 = vector.shape_cast %211 : vector<8xf32> to vector<8x1xf32>
    %cst_131 = arith.constant 5.000000e+00 : f32
    %213 = vector.broadcast %cst_131 : f32 to vector<8x1xf32>
    %214 = arith.mulf %212, %213 : vector<8x1xf32>
    %cst_132 = arith.constant -5.000000e+00 : f32
    %cst_133 = arith.constant 5.000000e+00 : f32
    %215 = vector.broadcast %cst_132 : f32 to vector<8x1xf32>
    %216 = arith.maximumf %215, %214 : vector<8x1xf32>
    %217 = vector.broadcast %cst_133 : f32 to vector<8x1xf32>
    %218 = arith.minimumf %217, %216 : vector<8x1xf32>
    %cst_134 = arith.constant dense<0.000000e+00> : vector<1xf32>
    %219 = vector.multi_reduction <add>, %218, %cst_134 [0] : vector<8x1xf32> to vector<1xf32>
    %220 = vector.shape_cast %219 : vector<1xf32> to vector<1x1xf32>
    %cst_135 = arith.constant 1.250000e-01 : f32
    %221 = vector.broadcast %cst_135 : f32 to vector<1x1xf32>
    %222 = arith.mulf %220, %221 : vector<1x1xf32>
    %223 = arith.truncf %89 : vector<8x128xf32> to vector<8x128xbf16>
    %224 = arith.truncf %33 : vector<384x128xf32> to vector<384x128xbf16>
    %cst_136 = arith.constant dense<0.000000e+00> : vector<8x384xf32>
    %225 = tpu.matmul %223, %224, %cst_136 {dimension_numbers = #tpu.dot_dimension_numbers<[1], [1], [0], [0], [0, 0, 1, 0], [], []>} : vector<8x128xbf16>, vector<384x128xbf16>, vector<8x384xf32> -> vector<8x384xf32>
    %cst_137 = arith.constant 5.000000e+00 : f32
    %226 = vector.broadcast %cst_137 : f32 to vector<8x384xf32>
    %227 = arith.mulf %225, %226 : vector<8x384xf32>
    %cst_138 = arith.constant dense<0xFF800000> : vector<8xf32>
    %228 = vector.multi_reduction <maximumf>, %227, %cst_138 [1] : vector<8x384xf32> to vector<8xf32>
    %229 = vector.shape_cast %228 : vector<8xf32> to vector<8x1xf32>
    %230 = vector.broadcast %229 : vector<8x1xf32> to vector<8x384xf32>
    %231 = arith.subf %227, %230 : vector<8x384xf32>
    %232 = math.exp %231 : vector<8x384xf32>
    %cst_139 = arith.constant dense<0.000000e+00> : vector<8xf32>
    %233 = vector.multi_reduction <add>, %232, %cst_139 [1] : vector<8x384xf32> to vector<8xf32>
    %234 = vector.shape_cast %233 : vector<8xf32> to vector<8x1xf32>
    %cst_140 = arith.constant 9.99999993E-9 : f32
    %235 = vector.broadcast %cst_140 : f32 to vector<8x1xf32>
    %236 = arith.addf %234, %235 : vector<8x1xf32>
    %237 = math.log %236 : vector<8x1xf32>
    %238 = arith.addf %237, %229 : vector<8x1xf32>
    %cst_141 = arith.constant dense<0.000000e+00> : vector<1xf32>
    %239 = vector.multi_reduction <add>, %238, %cst_141 [0] : vector<8x1xf32> to vector<1xf32>
    %240 = vector.shape_cast %239 : vector<1xf32> to vector<1x1xf32>
    %cst_142 = arith.constant 1.250000e-01 : f32
    %241 = vector.broadcast %cst_142 : f32 to vector<1x1xf32>
    %242 = arith.mulf %240, %241 : vector<1x1xf32>
    %243 = arith.mulf %89, %139 : vector<8x128xf32>
    %cst_143 = arith.constant dense<0.000000e+00> : vector<8xf32>
    %244 = vector.multi_reduction <add>, %243, %cst_143 [1] : vector<8x128xf32> to vector<8xf32>
    %245 = vector.shape_cast %244 : vector<8xf32> to vector<8x1xf32>
    %cst_144 = arith.constant 5.000000e+00 : f32
    %246 = vector.broadcast %cst_144 : f32 to vector<8x1xf32>
    %247 = arith.mulf %245, %246 : vector<8x1xf32>
    %cst_145 = arith.constant -5.000000e+00 : f32
    %cst_146 = arith.constant 5.000000e+00 : f32
    %248 = vector.broadcast %cst_145 : f32 to vector<8x1xf32>
    %249 = arith.maximumf %248, %247 : vector<8x1xf32>
    %250 = vector.broadcast %cst_146 : f32 to vector<8x1xf32>
    %251 = arith.minimumf %250, %249 : vector<8x1xf32>
    %cst_147 = arith.constant dense<0.000000e+00> : vector<1xf32>
    %252 = vector.multi_reduction <add>, %251, %cst_147 [0] : vector<8x1xf32> to vector<1xf32>
    %253 = vector.shape_cast %252 : vector<1xf32> to vector<1x1xf32>
    %cst_148 = arith.constant 1.250000e-01 : f32
    %254 = vector.broadcast %cst_148 : f32 to vector<1x1xf32>
    %255 = arith.mulf %253, %254 : vector<1x1xf32>
    %256 = arith.addf %222, %255 : vector<1x1xf32>
    %cst_149 = arith.constant 0.000000e+00 : f32
    %257 = vector.broadcast %cst_149 : f32 to vector<1x1xf32>
    %258 = arith.subf %257, %256 : vector<1x1xf32>
    %259 = arith.addf %209, %242 : vector<1x1xf32>
    %260 = arith.addf %258, %259 : vector<1x1xf32>
    %261 = arith.subf %164, %189 : vector<8x128xf32>
    %262 = arith.mulf %114, %261 : vector<8x128xf32>
    %cst_150 = arith.constant dense<0.000000e+00> : vector<8xf32>
    %263 = vector.multi_reduction <add>, %262, %cst_150 [1] : vector<8x128xf32> to vector<8xf32>
    %264 = vector.shape_cast %263 : vector<8xf32> to vector<8x1xf32>
    %cst_151 = arith.constant 0.000000e+00 : f32
    %265 = vector.broadcast %cst_151 : f32 to vector<8x1xf32>
    %266 = arith.minimumf %264, %265 : vector<8x1xf32>
    %267 = math.absf %264 : vector<8x1xf32>
    %cst_152 = arith.constant 0.000000e+00 : f32
    %268 = vector.broadcast %cst_152 : f32 to vector<8x1xf32>
    %269 = arith.subf %268, %267 : vector<8x1xf32>
    %270 = math.exp %269 : vector<8x1xf32>
    %cst_153 = arith.constant 1.000000e+00 : f32
    %271 = vector.broadcast %cst_153 : f32 to vector<8x1xf32>
    %272 = arith.addf %271, %270 : vector<8x1xf32>
    %273 = math.log %272 : vector<8x1xf32>
    %274 = arith.subf %266, %273 : vector<8x1xf32>
    %cst_154 = arith.constant dense<0.000000e+00> : vector<1xf32>
    %275 = vector.multi_reduction <add>, %274, %cst_154 [0] : vector<8x1xf32> to vector<1xf32>
    %276 = vector.shape_cast %275 : vector<1xf32> to vector<1x1xf32>
    %cst_155 = arith.constant 0.000000e+00 : f32
    %277 = vector.broadcast %cst_155 : f32 to vector<1x1xf32>
    %278 = arith.subf %277, %276 : vector<1x1xf32>
    %cst_156 = arith.constant 1.250000e-01 : f32
    %279 = vector.broadcast %cst_156 : f32 to vector<1x1xf32>
    %280 = arith.mulf %278, %279 : vector<1x1xf32>
    %281 = arith.mulf %0, %0 : vector<256x128xf32>
    %282 = vector.shape_cast %281 : vector<256x128xf32> to vector<1x256x128xf32>
    %cst_157 = arith.constant dense<0.000000e+00> : vector<1xf32>
    %283 = vector.multi_reduction <add>, %282, %cst_157 [1, 2] : vector<1x256x128xf32> to vector<1xf32>
    %284 = vector.shape_cast %283 : vector<1xf32> to vector<1x1x1xf32>
    %285 = vector.extract %284[0, 0, 0] : f32 from vector<1x1x1xf32>
    %286 = vector.broadcast %285 : f32 to vector<1x1xf32>
    %287 = arith.mulf %1, %1 : vector<384x128xf32>
    %288 = vector.shape_cast %287 : vector<384x128xf32> to vector<1x384x128xf32>
    %cst_158 = arith.constant dense<0.000000e+00> : vector<1xf32>
    %289 = vector.multi_reduction <add>, %288, %cst_158 [1, 2] : vector<1x384x128xf32> to vector<1xf32>
    %290 = vector.shape_cast %289 : vector<1xf32> to vector<1x1x1xf32>
    %291 = vector.extract %290[0, 0, 0] : f32 from vector<1x1x1xf32>
    %292 = vector.broadcast %291 : f32 to vector<1x1xf32>
    %293 = arith.addf %286, %292 : vector<1x1xf32>
    %294 = vector.shape_cast %260 : vector<1x1xf32> to vector<1x1xf32>
    %295 = vector.broadcast %294 : vector<1x1xf32> to vector<1x128xf32>
    %c0_159 = arith.constant 0 : index
    %c0_160 = arith.constant 0 : index
    %296 = vector.load %arg13[%c0_159, %c0_160] : memref<1x128xf32, #tpu.memory_space<vmem>>, vector<1x128xf32>
    tpu.vector_store %arg13[%c0_159, %c0_160], %295 {strides = array<i32>} : memref<1x128xf32, #tpu.memory_space<vmem>>, vector<1x128xf32>,
    %297 = vector.shape_cast %280 : vector<1x1xf32> to vector<1x1xf32>
    %298 = vector.broadcast %297 : vector<1x1xf32> to vector<1x128xf32>
    %c0_161 = arith.constant 0 : index
    %c0_162 = arith.constant 0 : index
    %299 = vector.load %arg14[%c0_161, %c0_162] : memref<1x128xf32, #tpu.memory_space<vmem>>, vector<1x128xf32>
    tpu.vector_store %arg14[%c0_161, %c0_162], %298 {strides = array<i32>} : memref<1x128xf32, #tpu.memory_space<vmem>>, vector<1x128xf32>,
    %300 = vector.shape_cast %293 : vector<1x1xf32> to vector<1x1xf32>
    %301 = vector.broadcast %300 : vector<1x1xf32> to vector<1x128xf32>
    %c0_163 = arith.constant 0 : index
    %c0_164 = arith.constant 0 : index
    %302 = vector.load %arg15[%c0_163, %c0_164] : memref<1x128xf32, #tpu.memory_space<vmem>>, vector<1x128xf32>
    tpu.vector_store %arg15[%c0_163, %c0_164], %301 {strides = array<i32>} : memref<1x128xf32, #tpu.memory_space<vmem>>, vector<1x128xf32>,
    return
  }
  func.func @transform_0(%arg0: i32, %arg1: memref<8xi32, #tpu.memory_space<smem>>, %arg2: memref<8xi32, #tpu.memory_space<smem>>, %arg3: memref<8xi32, #tpu.memory_space<smem>>, %arg4: memref<8xi32, #tpu.memory_space<smem>>) -> (i32, i32) {
    %c0_i32 = arith.constant 0 : i32
    %c0_i32_0 = arith.constant 0 : i32
    %c0_i32_1 = arith.constant 0 : i32
    return %c0_i32, %c0_i32_0 : i32, i32
  }
  func.func @transform_1(%arg0: i32, %arg1: memref<8xi32, #tpu.memory_space<smem>>, %arg2: memref<8xi32, #tpu.memory_space<smem>>, %arg3: memref<8xi32, #tpu.memory_space<smem>>, %arg4: memref<8xi32, #tpu.memory_space<smem>>) -> (i32, i32) {
    %c0_i32 = arith.constant 0 : i32
    %c0_i32_0 = arith.constant 0 : i32
    %c0_i32_1 = arith.constant 0 : i32
    return %c0_i32, %c0_i32_0 : i32, i32
  }
  func.func @transform_2(%arg0: i32, %arg1: memref<8xi32, #tpu.memory_space<smem>>, %arg2: memref<8xi32, #tpu.memory_space<smem>>, %arg3: memref<8xi32, #tpu.memory_space<smem>>, %arg4: memref<8xi32, #tpu.memory_space<smem>>) -> (i32, i32) {
    %c0_i32 = arith.constant 0 : i32
    %c0_i32_0 = arith.constant 0 : i32
    %c0_i32_1 = arith.constant 0 : i32
    return %c0_i32, %c0_i32_0 : i32, i32
  }
  func.func @transform_3(%arg0: i32, %arg1: memref<8xi32, #tpu.memory_space<smem>>, %arg2: memref<8xi32, #tpu.memory_space<smem>>, %arg3: memref<8xi32, #tpu.memory_space<smem>>, %arg4: memref<8xi32, #tpu.memory_space<smem>>) -> (i32, i32) {
    %c0_i32 = arith.constant 0 : i32
    %c0_i32_0 = arith.constant 0 : i32
    %c0_i32_1 = arith.constant 0 : i32
    return %c0_i32, %c0_i32_0 : i32, i32
  }
  func.func @transform_4(%arg0: i32, %arg1: memref<8xi32, #tpu.memory_space<smem>>, %arg2: memref<8xi32, #tpu.memory_space<smem>>, %arg3: memref<8xi32, #tpu.memory_space<smem>>, %arg4: memref<8xi32, #tpu.memory_space<smem>>) -> (i32, i32) {
    %c0_i32 = arith.constant 0 : i32
    %c0_i32_0 = arith.constant 0 : i32
    %c0_i32_1 = arith.constant 0 : i32
    return %c0_i32, %c0_i32_0 : i32, i32
  }
  func.func @transform_5(%arg0: i32, %arg1: memref<8xi32, #tpu.memory_space<smem>>, %arg2: memref<8xi32, #tpu.memory_space<smem>>, %arg3: memref<8xi32, #tpu.memory_space<smem>>, %arg4: memref<8xi32, #tpu.memory_space<smem>>) -> (i32, i32) {
    %c0_i32 = arith.constant 0 : i32
    %c0_i32_0 = arith.constant 0 : i32
    %c0_i32_1 = arith.constant 0 : i32
    return %c0_i32, %c0_i32_0 : i32, i32
  }
  func.func @transform_6(%arg0: i32, %arg1: memref<8xi32, #tpu.memory_space<smem>>, %arg2: memref<8xi32, #tpu.memory_space<smem>>, %arg3: memref<8xi32, #tpu.memory_space<smem>>, %arg4: memref<8xi32, #tpu.memory_space<smem>>) -> (i32, i32) {
    %c0_i32 = arith.constant 0 : i32
    %c0_i32_0 = arith.constant 0 : i32
    %c0_i32_1 = arith.constant 0 : i32
    return %c0_i32, %c0_i32_0 : i32, i32
  }
  func.func @transform_7(%arg0: i32, %arg1: memref<8xi32, #tpu.memory_space<smem>>, %arg2: memref<8xi32, #tpu.memory_space<smem>>, %arg3: memref<8xi32, #tpu.memory_space<smem>>, %arg4: memref<8xi32, #tpu.memory_space<smem>>) -> (i32, i32) {
    %c0_i32 = arith.constant 0 : i32
    %c0_i32_0 = arith.constant 0 : i32
    %c0_i32_1 = arith.constant 0 : i32
    return %c0_i32, %c0_i32_0 : i32, i32
  }
  func.func @transform_8(%arg0: i32, %arg1: memref<8xi32, #tpu.memory_space<smem>>, %arg2: memref<8xi32, #tpu.memory_space<smem>>, %arg3: memref<8xi32, #tpu.memory_space<smem>>, %arg4: memref<8xi32, #tpu.memory_space<smem>>) -> (i32, i32) {
    %c0_i32 = arith.constant 0 : i32
    %c0_i32_0 = arith.constant 0 : i32
    %c0_i32_1 = arith.constant 0 : i32
    return %c0_i32, %c0_i32_0 : i32, i32
  }
  func.func @transform_9(%arg0: i32, %arg1: memref<8xi32, #tpu.memory_space<smem>>, %arg2: memref<8xi32, #tpu.memory_space<smem>>, %arg3: memref<8xi32, #tpu.memory_space<smem>>, %arg4: memref<8xi32, #tpu.memory_space<smem>>) -> (i32, i32) {
    %c0_i32 = arith.constant 0 : i32
    %c0_i32_0 = arith.constant 0 : i32
    %c0_i32_1 = arith.constant 0 : i32
    return %c0_i32, %c0_i32_0 : i32, i32
  }
  func.func @transform_10(%arg0: i32, %arg1: memref<8xi32, #tpu.memory_space<smem>>, %arg2: memref<8xi32, #tpu.memory_space<smem>>, %arg3: memref<8xi32, #tpu.memory_space<smem>>, %arg4: memref<8xi32, #tpu.memory_space<smem>>) -> (i32, i32) {
    %c0_i32 = arith.constant 0 : i32
    %c0_i32_0 = arith.constant 0 : i32
    %c0_i32_1 = arith.constant 0 : i32
    return %c0_i32, %c0_i32_0 : i32, i32
  }
}

</mosaic_0001>

<bundles_post_ra>
// kernel: lightgcl_forward.1
= control target key start
LH: loop header
LB: loop body
LE: loop exit
PB: predicated region body
PF: predicated region fallthrough
CT: control target
= control target key end

     0   :  { %s10112_s0 = inlined_call_operand.vmem [shape: s32[8], index: 0, kind: input, shape index: {}]   ;;  %s10113_s4 = inlined_call_operand.vmem [shape: bf16[256,384], index: 4, kind: input, shape index: {}]   ;;  %s10114_s5 = inlined_call_operand.vmem [shape: bf16[384,256], index: 5, kind: input, shape index: {}]   ;;  %s10115_s6 = inlined_call_operand.vmem [shape: bf16[16,384], index: 6, kind: input, shape index: {}]   ;;  %s10116_s7 = inlined_call_operand.vmem [shape: bf16[256,16], index: 7, kind: input, shape index: {}]   ;;  %s10117_s8 = inlined_call_operand.vmem [shape: bf16[16,256], index: 8, kind: input, shape index: {}]   ;;  %s10118_s9 = inlined_call_operand.vmem [shape: bf16[384,16], index: 9, kind: input, shape index: {}]   ;;  %s10119_s10 = inlined_call_operand.vmem [shape: f32[256,128], index: 10, kind: input, shape index: {}]   ;;  %s10120_s11 = inlined_call_operand.vmem [shape: f32[384,128], index: 11, kind: input, shape index: {}]   ;;  %s10121_s12 = inlined_call_operand.vmem [shape: f32[1,128], index: 12, kind: output, shape index: {0}]   ;;  %s10122_s13 = inlined_call_operand.vmem [shape: f32[1,128], index: 13, kind: output, shape index: {1}]   ;;  %s10123_s14 = inlined_call_operand.vmem [shape: f32[1,128], index: 14, kind: output, shape index: {2}]   ;;  %s10124_s1 = inlined_call_operand.vmem [shape: s32[8], index: 1, kind: input, shape index: {}]   ;;  %s10125_s2 = inlined_call_operand.vmem [shape: s32[8], index: 2, kind: input, shape index: {}]   ;;  %s10126_s3 = inlined_call_operand.vmem [shape: s32[8], index: 3, kind: input, shape index: {}]  }
   0x1   :  { %10268 = sst [smem:[#allocation218_spill]] %s10121_s12  ;;  %s20_s15 = sshll.u32 %s10112_s0, 4  ;;  %s21_s15 = int_to_ptr.vmem [resolvable:$true] %s20_s15 }
   0x2   :  { %10269 = sst [smem:[#allocation219_spill]] %s10122_s13  ;;  %s24_s18 = sshll.u32 %s10124_s1, 4  ;;  %s25_s18 = int_to_ptr.vmem [resolvable:$true] %s24_s18 }
   0x3   :  { %10270 = sst [smem:[#allocation220_spill]] %s10123_s14  ;;  %s6263_s19 = scalar_lea.vmem %s21_s15, 16 }
   0x4   :  { %p6264_p0 = scmp.ne.s32.totalorder %s21_s15, %s6263_s19  ;;  %p6268_p1 = scmp.lt.s32.totalorder %s21_s15, %s21_s15 }
   0x5   :  { %p6269_p2 = scmp.lt.s32.totalorder %s6263_s19, %s6263_s19 }
   0x7   :  { %p6270_p3 = por %p6269_p2, %p6268_p1 }
   0x9   :  { %p6271_p4 = pnand %p6270_p3, %p6264_p0 }
   0xb   :  { %6274 = shalt.err (!%p6271_p4)  }
   0xc   :  { %s6313_s20 = smov [#allocation7]   ;;  %s6275_s21 = scalar_lea.vmem %s25_s18, 16 }
   0xd   :  { %23 = dma.vmem_to_smem %s21_s15, 16, %s6313_s20, [#allocation6] }
   0xe   :  { %p6276_p5 = scmp.ne.s32.totalorder %s25_s18, %s6275_s21  ;;  %p6280_p6 = scmp.lt.s32.totalorder %s25_s18, %s25_s18 }
   0xf   :  { %p6281_p7 = scmp.lt.s32.totalorder %s6275_s21, %s6275_s21 }
  0x11   :  { %p6282_p8 = por %p6281_p7, %p6280_p6 }
  0x13   :  { %p6283_p9 = pnand %p6282_p8, %p6276_p5 }
  0x15   :  { %6286 = shalt.err (!%p6283_p9)  }
  0x16   :  { %s6314_s0 = smov [#allocation8]   ;;  %s28_s23 = sshll.u32 %s10125_s2, 4  ;;  %s29_s23 = int_to_ptr.vmem [resolvable:$true] %s28_s23 }
  0x17   :  { %27 = dma.vmem_to_smem %s25_s18, 16, %s6314_s0, [#allocation6] }
  0x18   :  { %s32_s26 = sshll.u32 %s10126_s3, 4  ;;  %s6287_s27 = scalar_lea.vmem %s29_s23, 16  ;;  %s33_s26 = int_to_ptr.vmem [resolvable:$true] %s32_s26 }
  0x19   :  { %p6288_p10 = scmp.ne.s32.totalorder %s29_s23, %s6287_s27  ;;  %p6292_p11 = scmp.lt.s32.totalorder %s29_s23, %s29_s23 }
  0x1a   :  { %p6293_p12 = scmp.lt.s32.totalorder %s6287_s27, %s6287_s27 }
  0x1c   :  { %p6294_p13 = por %p6293_p12, %p6292_p11 }
  0x1e   :  { %p6295_p0 = pnand %p6294_p13, %p6288_p10 }
  0x20   :  { %6298 = shalt.err (!%p6295_p0)  }
  0x21   :  { %s6315_s28 = smov [#allocation9]   ;;  %s6299_s29 = scalar_lea.vmem %s33_s26, 16 }
  0x22   :  { %31 = dma.vmem_to_smem %s29_s23, 16, %s6315_s28, [#allocation6] }
  0x23   :  { %p6300_p1 = scmp.ne.s32.totalorder %s33_s26, %s6299_s29  ;;  %p6304_p2 = scmp.lt.s32.totalorder %s33_s26, %s33_s26 }
  0x24   :  { %p6305_p3 = scmp.lt.s32.totalorder %s6299_s29, %s6299_s29 }
  0x26   :  { %p6306_p4 = por %p6305_p3, %p6304_p2 }
  0x28   :  { %p6307_p5 = pnand %p6306_p4, %p6300_p1 }
  0x2a   :  { %6310 = shalt.err (!%p6307_p5)  }
  0x2b   :  { %s6316_s2 = smov [#allocation10]  }
  0x2c   :  { %35 = dma.vmem_to_smem %s33_s26, 16, %s6316_s2, [#allocation6] }
  0x2d   :  { %6311 = dma.done.wait [#allocation6], 64 }
  0x2e   :  { %6312 = vsyncadd [#allocation6], 4294967232 }
  0x2f   :  { %37 = sfence }
  0x30   :  { %v117_v0 = vld [vmem:[%s10120_s11 + $0xf0] sm:$0xff]  ;;  %v118_v1 = vld [vmem:[%s10120_s11 + $0xf8] sm:$0xff]  ;;  %v115_v9 = vld [vmem:[%s10120_s11 + $0xe0] sm:$0xff]  ;;  %vm6319_vm0 = vmmov 0   ;;  %vm1595_vm1 = vcmask 130048   ;;  %s9231_s23 = sld [smem:[#allocation7 + $0x2]] }
  0x31   :  { %v133_v2 = vld [vmem:[%s10120_s11 + $0x170] sm:$0xff]  ;;  %v6416_v3 = vpack.c.bf16 %v118_v1, %v117_v0  ;;  %v134_v4 = vld [vmem:[%s10120_s11 + $0x178] sm:$0xff]  ;;  %v116_v10 = vld [vmem:[%s10120_s11 + $0xe8] sm:$0xff]  ;;  %s9233_s24 = sld [smem:[#allocation7 + $0x3]]  ;;  %vm3897_vm2 = vcmask 1040384   ;;  %vm3899_vm3 = vcmask 1041408  }
  0x32   :  { %v101_v5 = vld [vmem:[%s10120_s11 + $0x70] sm:$0xff]  ;;  %v102_v6 = vld [vmem:[%s10120_s11 + $0x78] sm:$0xff]  ;;  %v6427_v7 = vpack.c.bf16 %v134_v4, %v133_v2  ;;  %v131_v11 = vld [vmem:[%s10120_s11 + $0x160] sm:$0xff]  ;;  %v6441_v12 = vpack.c.bf16 %v116_v10, %v115_v9  ;;  %s9235_s25 = sld [smem:[#allocation7 + $0x4]]  ;;  %vm3901_vm4 = vcmask 1042432   ;;  %vm3903_vm5 = vcmask 1043456  }
  0x33   :  { %v6429_v8 = vpack.c.bf16 %v102_v6, %v101_v5  ;;  %4919 = vmatprep.subr.bf16.mxu0 %v6416_v3  ;;  %v132_v13 = vld [vmem:[%s10120_s11 + $0x168] sm:$0xff]  ;;  %v99_v14 = vld [vmem:[%s10120_s11 + $0x60] sm:$0xff]  ;;  %v113_v18 = vld [vmem:[%s10120_s11 + $0xd0] sm:$0xff]  ;;  %s9237_s26 = sld [smem:[#allocation7 + $0x5]]  ;;  %vm3905_vm6 = vcmask 1044480   ;;  %vm3907_vm7 = vcmask 1045504  }
  0x34   :  { %v100_v15 = vld [vmem:[%s10120_s11 + $0x68] sm:$0xff]  ;;  %5426 = vmatprep.subr.bf16.mxu1 %v6427_v7  ;;  %v6454_v16 = vpack.c.bf16 %v132_v13, %v131_v11  ;;  %v114_v19 = vld [vmem:[%s10120_s11 + $0xd8] sm:$0xff]  ;;  %v129_v20 = vld [vmem:[%s10120_s11 + $0x150] sm:$0xff]  ;;  %s9239_s27 = sld [smem:[#allocation7 + $0x6]]  ;;  %vm3909_vm8 = vcmask 1046528  }
  0x35   :  { %4920 = vmatpush3.bf16.msra.mxu0 %v6429_v8  ;;  %v6456_v17 = vpack.c.bf16 %v100_v15, %v99_v14  ;;  %5427 = vmatpush3.bf16.msra.mxu1 %v6427_v7  ;;  %v6469_v21 = vpack.c.bf16 %v114_v19, %v113_v18  ;;  %v130_v22 = vld [vmem:[%s10120_s11 + $0x158] sm:$0xff]  ;;  %v97_v23 = vld [vmem:[%s10120_s11 + $0x50] sm:$0xff]  ;;  %v111_v26 = vld [vmem:[%s10120_s11 + $0xc0] sm:$0xff]  ;;  %s9241_s28 = sld [smem:[#allocation7 + $0x7]] }
  0x36   :  { %4921 = vmatprep.subr.bf16.mxu0 %v6441_v12  ;;  %v98_v24 = vld [vmem:[%s10120_s11 + $0x58] sm:$0xff]  ;;  %5428 = vmatprep.subr.bf16.mxu1 %v6454_v16  ;;  %v6481_v25 = vpack.c.bf16 %v130_v22, %v129_v20  ;;  %v112_v27 = vld [vmem:[%s10120_s11 + $0xc8] sm:$0xff]  ;;  %v127_v28 = vld [vmem:[%s10120_s11 + $0x140] sm:$0xff]  ;;  %s3859_s2 = scalar_lea.vmem [#allocation4], %s9231_s23  ;;  %s9775_s18 = sld [smem:[#allocation8]] }
  0x37   :  { %v128_v29 = vld [vmem:[%s10120_s11 + $0x148] sm:$0xff]  ;;  %v6496_v30 = vpack.c.bf16 %v98_v24, %v97_v23  ;;  %v6500_v31 = vpack.c.bf16 %v112_v27, %v111_v26  ;;  %v95_v32 = vld [vmem:[%s10120_s11 + $0x40] sm:$0xff]  ;;  %v109_v35 = vld [vmem:[%s10120_s11 + $0xb0] sm:$0xff]  ;;  %v10129_v24 = vmov 0   ;;  %s3862_s3 = scalar_lea.vmem [#allocation4], %s9233_s24  ;;  %s9779_s19 = sld [smem:[#allocation8 + $0x2]] }
  0x38   :  { %v96_v33 = vld [vmem:[%s10120_s11 + $0x48] sm:$0xff]  ;;  %v6509_v34 = vpack.c.bf16 %v128_v29, %v127_v28  ;;  %v110_v36 = vld [vmem:[%s10120_s11 + $0xb8] sm:$0xff]  ;;  %v125_v37 = vld [vmem:[%s10120_s11 + $0x130] sm:$0xff]  ;;  %s3865_s30 = scalar_lea.vmem [#allocation4], %s9235_s25  ;;  %s9781_s20 = sld [smem:[#allocation8 + $0x3]] }
  0x39   :  { %4922 = vmatpush3.bf16.msra.mxu0 %v6456_v17  ;;  %5429 = vmatpush3.bf16.msra.mxu1 %v6454_v16  ;;  %v126_v38 = vld [vmem:[%s10120_s11 + $0x138] sm:$0xff]  ;;  %v6524_v39 = vpack.c.bf16 %v96_v33, %v95_v32  ;;  %v6528_v40 = vpack.c.bf16 %v110_v36, %v109_v35  ;;  %v93_v41 = vld [vmem:[%s10120_s11 + $0x30] sm:$0xff]  ;;  %v107_v44 = vld [vmem:[%s10120_s11 + $0xa0] sm:$0xff]  ;;  %s9787_s21 = sld [smem:[#allocation8 + $0x6]] }
  0x3a   :  { %4923 = vmatprep.subr.bf16.mxu0 %v6469_v21  ;;  %5430 = vmatprep.subr.bf16.mxu1 %v6481_v25  ;;  %v94_v42 = vld [vmem:[%s10120_s11 + $0x38] sm:$0xff]  ;;  %v6537_v43 = vpack.c.bf16 %v126_v38, %v125_v37  ;;  %v108_v45 = vld [vmem:[%s10120_s11 + $0xa8] sm:$0xff]  ;;  %v123_v46 = vld [vmem:[%s10120_s11 + $0x120] sm:$0xff]  ;;  %s3871_s16 = scalar_lea.vmem [#allocation4], %s9239_s27  ;;  %s9789_s0 = sld [smem:[#allocation8 + $0x7]] }
  0x3b   :  { %v124_v47 = vld [vmem:[%s10120_s11 + $0x128] sm:$0xff]  ;;  %v91_v48 = vld [vmem:[%s10120_s11 + $0x20] sm:$0xff]  ;;  %v6558_v50 = vpack.c.bf16 %v94_v42, %v93_v41  ;;  %v105_v51 = vld [vmem:[%s10120_s11 + $0x90] sm:$0xff]  ;;  %v6568_v53 = vpack.c.bf16 %v108_v45, %v107_v44  ;;  %s3874_s17 = scalar_lea.vmem [#allocation4], %s9241_s28  ;;  %s10012_s14 = sld [smem:[#allocation10 + $0x4]] }
  0x3c   :  { %v92_v49 = vld [vmem:[%s10120_s11 + $0x28] sm:$0xff]  ;;  %v106_v52 = vld [vmem:[%s10120_s11 + $0x98] sm:$0xff]  ;;  %v5763_v54 = vld [vmem:[%s10113_s4 + $0x4] ss:$12 sps:$4 sm:$0xff]   ;;  %v6574_v55 = vpack.c.bf16 %v124_v47, %v123_v46  ;;  %s10014_s13 = sld [smem:[#allocation9 + $0x7]] }
  0x3d   :  { %4924 = vmatpush3.bf16.msra.mxu0 %v6496_v30  ;;  %5431 = vmatpush3.bf16.msra.mxu1 %v6481_v25  ;;  %v5764_v56 = vld [vmem:[%s10113_s4 + $0x8] ss:$12 sps:$4 sm:$0xff]   ;;  %v122_v58 = vld [vmem:[%s10120_s11 + $0x118] sm:$0xff]  ;;  %v6586_v59 = vpack.c.bf16 %v92_v49, %v91_v48  ;;  %v6596_v62 = vpack.c.bf16 %v106_v52, %v105_v51  ;;  %v103_v63 = vld [vmem:[%s10120_s11 + $0x80] sm:$0xff]  ;;  %s3918_s22 = scalar_lea.vmem [#allocation5], %s9779_s19 }
  0x3e   :  { %4925 = vmatprep.subr.bf16.mxu0 %v6500_v31  ;;  %5432 = vmatprep.subr.bf16.mxu1 %v6509_v34  ;;  %v121_v57 = vld [vmem:[%s10120_s11 + $0x110] sm:$0xff]  ;;  %v90_v61 = vld [vmem:[%s10120_s11 + $0x18] sm:$0xff]  ;;  %v104_v1 = vld [vmem:[%s10120_s11 + $0x88] sm:$0xff] }
  0x3f   :  { %661 = vmatprep.mubr.bf16.mxu0 %v5763_v54  ;;  %v89_v60 = vld [vmem:[%s10120_s11 + $0x10] sm:$0xff]  ;;  %5442 = vmatprep.mubr.bf16.mxu1 %v5764_v56  ;;  %v6602_v0 = vpack.c.bf16 %v122_v58, %v121_v57  ;;  %v119_v2 = vld [vmem:[%s10120_s11 + $0x100] sm:$0xff]  ;;  %v120_v4 = vld [vmem:[%s10120_s11 + $0x108] sm:$0xff]  ;;  %v6621_v9 = vpack.c.bf16 %v104_v1, %v103_v63  ;;  %10787 = sst [smem:[#allocation216_spill]] %s9787_s21 }
  0x40   :  { %v6614_v5 = vpack.c.bf16 %v90_v61, %v89_v60  ;;  %v87_v6 = vld [vmem:[%s10120_s11] sm:$0xff]  ;;  %v88_v10 = vld [vmem:[%s10120_s11 + $0x8] sm:$0xff]  ;;  %v6627_v11 = vpack.c.bf16 %v120_v4, %v119_v2  ;;  %v69_v14 = vld [vmem:[%s10119_s10 + $0x70] sm:$0xff]  ;;  %10788 = sst [smem:[#allocation217_spill]] %s9789_s0 }
  0x41   :  { %4926 = vmatpush3.bf16.msra.mxu0 %v6524_v39  ;;  %5433 = vmatpush3.bf16.msra.mxu1 %v6509_v34  ;;  %v6630_v13 = vpack.c.bf16 %v88_v10, %v87_v6  ;;  %v70_v15 = vld [vmem:[%s10119_s10 + $0x78] sm:$0xff]  ;;  %v5761_v18 = vld [vmem:[%s10113_s4] ss:$12 sps:$4 sm:$0xff]   ;;  %v65_v29 = vld [vmem:[%s10119_s10 + $0x50] sm:$0xff] }
  0x42   :  { %4927 = vmatprep.subr.bf16.mxu0 %v6528_v40  ;;  %5434 = vmatprep.subr.bf16.mxu1 %v6537_v43  ;;  %v5765_v19 = vld [vmem:[%s10113_s4 + $0x20] ss:$12 sps:$4 sm:$0xff]   ;;  %v6649_v20 = vpack.c.bf16 %v70_v15, %v69_v14  ;;  %v5766_v23 = vld [vmem:[%s10113_s4 + $0x1c] ss:$12 sps:$4 sm:$0xff]   ;;  %v5768_v27 = vld [vmem:[%s10113_s4 + $0x38] ss:$12 sps:$4 sm:$0xff]  }
  0x43   :  { %v67_v22 = vld [vmem:[%s10119_s10 + $0x60] sm:$0xff]  ;;  %v68_v26 = vld [vmem:[%s10119_s10 + $0x68] sm:$0xff]  ;;  %v5770_v32 = vld [vmem:[%s10113_s4 + $0x50] ss:$12 sps:$4 sm:$0xff]   ;;  %v10127_v14 = vmov 0.0  }
  0x44   :  { %v5769_v28 = vld [vmem:[%s10113_s4 + $0x18] ss:$12 sps:$4 sm:$0xff]   ;;  %v5771_v33 = vld [vmem:[%s10113_s4 + $0x34] ss:$12 sps:$4 sm:$0xff]   ;;  %v5774_v41 = vld [vmem:[%s10113_s4 + $0x30] ss:$12 sps:$4 sm:$0xff]  }
  0x45   :  { %4928 = vmatpush3.bf16.msra.mxu0 %v6558_v50  ;;  %5435 = vmatpush3.bf16.msra.mxu1 %v6537_v43  ;;  %v5773_v36 = vld [vmem:[%s10113_s4 + $0x68] ss:$12 sps:$4 sm:$0xff]   ;;  %v62_v38 = vld [vmem:[%s10119_s10 + $0x38] sm:$0xff]  ;;  %v5775_v42 = vld [vmem:[%s10113_s4 + $0x80] ss:$12 sps:$4 sm:$0xff]  }
  0x46   :  { %4929 = vmatprep.subr.bf16.mxu0 %v6568_v53  ;;  %5436 = vmatprep.subr.bf16.mxu1 %v6574_v55  ;;  %v5776_v44 = vld [vmem:[%s10113_s4 + $0x4c] ss:$12 sps:$4 sm:$0xff]   ;;  %v57_v48 = vld [vmem:[%s10119_s10 + $0x10] sm:$0xff]  ;;  %v5786_v63 = vld [vmem:[%s10113_s4 + $0x7c] ss:$12 sps:$4 sm:$0xff]  }
  0x47   :  { %v60_v46 = vld [vmem:[%s10119_s10 + $0x28] sm:$0xff]  ;;  %v5780_v49 = vld [vmem:[%s10113_s4 + $0xb0] ss:$12 sps:$4 sm:$0xff]   ;;  %v83_v2 = vld [vmem:[%s10119_s10 + $0xe0] sm:$0xff] }
  0x48   :  { %v5781_v51 = vld [vmem:[%s10113_s4 + $0x64] ss:$12 sps:$4 sm:$0xff]   ;;  %v5783_v54 = vld [vmem:[%s10113_s4 + $0xc8] ss:$12 sps:$4 sm:$0xff]   ;;  %v86_v58 = vld [vmem:[%s10119_s10 + $0xf8] sm:$0xff] }
  0x49   :  { %4930 = vmatpush3.bf16.msra.mxu0 %v6586_v59  ;;  %5437 = vmatpush3.bf16.msra.mxu1 %v6574_v55  ;;  %v56_v56 = vld [vmem:[%s10119_s10 + $0x8] sm:$0xff]  ;;  %v85_v57 = vld [vmem:[%s10119_s10 + $0xf0] sm:$0xff] }
  0x4a   :  { %4931 = vmatprep.subr.bf16.mxu0 %v6596_v62  ;;  %5438 = vmatprep.subr.bf16.mxu1 %v6602_v0  ;;  %v5784_v60 = vld [vmem:[%s10113_s4 + $0x60] ss:$12 sps:$4 sm:$0xff]   ;;  %v6793_v1 = vpack.c.bf16 %v86_v58, %v85_v57  ;;  %v81_v6 = vld [vmem:[%s10119_s10 + $0xd0] sm:$0xff] }
  0x4b   :  { %v5785_v61 = vld [vmem:[%s10113_s4 + $0xe0] ss:$12 sps:$4 sm:$0xff]   ;;  %v5790_v10 = vld [vmem:[%s10113_s4 + $0x110] ss:$12 sps:$4 sm:$0xff]  }
  0x4c   :  { %v5791_v15 = vld [vmem:[%s10113_s4 + $0x94] ss:$12 sps:$4 sm:$0xff]   ;;  %v5815_v58 = vld [vmem:[%s10114_s5 + $0x24] ss:$8 sps:$4 sm:$0xff]  }
  0x4d   :  { %4932 = vmatpush3.bf16.msra.mxu0 %v6614_v5  ;;  %5439 = vmatpush3.bf16.msra.mxu1 %v6602_v0  ;;  %v5813_v57 = vld [vmem:[%s10113_s4 + $0xf4] ss:$12 sps:$4 sm:$0xff]  }
  0x4e   :  { %4933 = vmatprep.subr.bf16.mxu0 %v6621_v9  ;;  %5440 = vmatprep.subr.bf16.mxu1 %v6627_v11 }
  0x51   :  { %4934 = vmatpush3.bf16.msra.mxu0 %v6630_v13  ;;  %5441 = vmatpush3.bf16.msra.mxu1 %v6627_v11 }
  0x52   :  { %5055 = vmatprep.subr.bf16.mxu0 %v6416_v3  ;;  %1191 = vmatprep.subr.bf16.mxu1 %v10129_v24  ;;  %v6667_v3 = vpack.c.bf16 %v68_v26, %v67_v22  ;;  %v80_v22 = vld [vmem:[%s10119_s10 + $0xc8] sm:$0xff]  ;;  %v77_v26 = vld [vmem:[%s10119_s10 + $0xb0] sm:$0xff] }
  0x54   :  { %662 = vmatmul.mubr.bf16.vlgmr.msra.gmra.mxu0 %v5761_v18  ;;  %5443 = vmatmul.mubr.bf16.vlgmr.msra.gmra.mxu1 %v5765_v19  ;;  %v79_v19 = vld [vmem:[%s10119_s10 + $0xc0] sm:$0xff] }
  0x55   :  { %5056 = vmatpush3.bf16.msra.mxu0 %v6429_v8  ;;  %1192 = vmatpush1.bf16.msra.mxu1 %v6649_v20  ;;  %v66_v8 = vld [vmem:[%s10119_s10 + $0x58] sm:$0xff] }
  0x56   :  { %669 = vmatprep.mubr.bf16.mxu0 %v5766_v23  ;;  %1193 = vmatprep.subr.bf16.mxu1 %v10129_v24  ;;  %v6688_v35 = vpack.c.bf16 %v66_v8, %v65_v29  ;;  %v6842_v23 = vpack.c.bf16 %v80_v22, %v79_v19  ;;  %v5795_v29 = vld [vmem:[%s10113_s4 + $0x140] ss:$12 sps:$4 sm:$0xff]   ;;  %v5835_v19 = vld [vmem:[%s10113_s4 + $0x138] ss:$12 sps:$4 sm:$0xff]  }
  0x57   :  { %5446 = vmatprep.mubr.bf16.mxu1 %v5768_v27  ;;  %5057 = vmatprep.subr.bf16.mxu0 %v6441_v12  ;;  %v63_v12 = vld [vmem:[%s10119_s10 + $0x40] sm:$0xff]  ;;  %v78_v27 = vld [vmem:[%s10119_s10 + $0xb8] sm:$0xff] }
  0x58   :  { %v75_v8 = vld [vmem:[%s10119_s10 + $0xa0] sm:$0xff]  ;;  %v5836_v22 = vld [vmem:[%s10114_s5 + $0x50] ss:$8 sps:$4 sm:$0xff]  }
  0x59   :  { %5058 = vmatpush3.bf16.msra.mxu0 %v6456_v17  ;;  %1194 = vmatpush1.bf16.msra.mxu1 %v6667_v3  ;;  %v64_v17 = vld [vmem:[%s10119_s10 + $0x48] sm:$0xff] }
  0x5a   :  { %5059 = vmatprep.subr.bf16.mxu0 %v6469_v21  ;;  %1195 = vmatprep.subr.bf16.mxu1 %v10129_v24  ;;  %v6702_v37 = vpack.c.bf16 %v64_v17, %v63_v12  ;;  %v61_v21 = vld [vmem:[%s10119_s10 + $0x30] sm:$0xff]  ;;  %v76_v12 = vld [vmem:[%s10119_s10 + $0xa8] sm:$0xff] }
  0x5b   :  { %v6723_v45 = vpack.c.bf16 %v62_v38, %v61_v21  ;;  %v6874_v17 = vpack.c.bf16 %v76_v12, %v75_v8  ;;  %v5799_v21 = vld [vmem:[%s10113_s4 + $0xa8] ss:$12 sps:$4 sm:$0xff]   ;;  %v5843_v8 = vld [vmem:[%s10113_s4 + $0x16c] ss:$12 sps:$4 sm:$0xff]  }
  0x5c   :  { %670 = vmatmul.mubr.bf16.gmra.mxu0 %v5769_v28  ;;  %5447 = vmatmul.mubr.bf16.gmra.mxu1 %v5770_v32  ;;  %v5794_v28 = vld [vmem:[%s10113_s4 + $0x90] ss:$12 sps:$4 sm:$0xff]   ;;  %v5796_v32 = vld [vmem:[%s10113_s4 + $0xac] ss:$12 sps:$4 sm:$0xff]  }
  0x5d   :  { %677 = vmatprep.mubr.bf16.mxu0 %v5771_v33  ;;  %1196 = vmatpush1.bf16.msra.mxu1 %v6688_v35  ;;  %v6864_v33 = vpack.c.bf16 %v78_v27, %v77_v26  ;;  %v73_v38 = vld [vmem:[%s10119_s10 + $0x90] sm:$0xff]  ;;  %v5839_v27 = vld [vmem:[%s10114_s5 + $0x64] ss:$8 sps:$4 sm:$0xff]  }
  0x5e   :  { %5450 = vmatprep.mubr.bf16.mxu1 %v5773_v36  ;;  %1197 = vmatprep.subr.bf16.mxu1 %v10129_v24  ;;  %v5798_v36 = vld [vmem:[%s10113_s4 + $0x158] ss:$12 sps:$4 sm:$0xff]   ;;  %v5837_v26 = vld [vmem:[%s10113_s4 + $0x154] ss:$12 sps:$4 sm:$0xff]  }
  0x5f   :  { %5060 = vmatpush3.bf16.msra.mxu0 %v6496_v30  ;;  %v5778_v30 = vld [vmem:[%s10113_s4 + $0x98] ss:$12 sps:$4 sm:$0xff]  }
  0x60   :  { %5061 = vmatprep.subr.bf16.mxu0 %v6500_v31  ;;  %v59_v31 = vld [vmem:[%s10119_s10 + $0x20] sm:$0xff]  ;;  %v5848_v12 = vld [vmem:[%s10114_s5 + $0x70] ss:$8 sps:$4 sm:$0xff]  }
  0x61   :  { %1198 = vmatpush1.bf16.msra.mxu1 %v6702_v37  ;;  %v6738_v47 = vpack.c.bf16 %v60_v46, %v59_v31  ;;  %v71_v31 = vld [vmem:[%s10119_s10 + $0x80] sm:$0xff]  ;;  %v72_v46 = vld [vmem:[%s10119_s10 + $0x88] sm:$0xff] }
  0x62   :  { %1199 = vmatprep.subr.bf16.mxu1 %v10129_v24 }
  0x63   :  { %5062 = vmatpush3.bf16.msra.mxu0 %v6524_v39  ;;  %v58_v39 = vld [vmem:[%s10119_s10 + $0x18] sm:$0xff] }
  0x64   :  { %678 = vmatmul.mubr.bf16.gmra.mxu0 %v5774_v41  ;;  %5063 = vmatprep.subr.bf16.mxu0 %v6528_v40  ;;  %v5779_v40 = vld [vmem:[%s10113_s4 + $0x48] ss:$12 sps:$4 sm:$0xff]   ;;  %v6759_v52 = vpack.c.bf16 %v58_v39, %v57_v48  ;;  %v5800_v41 = vld [vmem:[%s10113_s4 + $0x170] ss:$12 sps:$4 sm:$0xff]   ;;  %v6906_v39 = vpack.c.bf16 %v72_v46, %v71_v31  ;;  %v5858_v31 = vld [vmem:[%s10114_s5 + $0xa4] ss:$8 sps:$4 sm:$0xff]  }
  0x65   :  { %5451 = vmatmul.mubr.bf16.gmra.mxu1 %v5775_v42  ;;  %685 = vmatprep.mubr.bf16.mxu0 %v5776_v44  ;;  %v74_v42 = vld [vmem:[%s10119_s10 + $0x98] sm:$0xff]  ;;  %v5801_v44 = vld [vmem:[%s10113_s4 + $0xc4] ss:$12 sps:$4 sm:$0xff]  }
  0x66   :  { %1200 = vmatpush1.bf16.msra.mxu1 %v6723_v45  ;;  %5454 = vmatprep.mubr.bf16.mxu1 %v5778_v30  ;;  %v5805_v30 = vld [vmem:[%s10114_s5 + $0x4] ss:$8 sps:$4 sm:$0xff]   ;;  %v6902_v48 = vpack.c.bf16 %v74_v42, %v73_v38  ;;  %v5854_v42 = vld [vmem:[%s10114_s5 + $0x80] ss:$8 sps:$4 sm:$0xff]   ;;  %v5868_v46 = vld [vmem:[%s10114_s5 + $0xd4] ss:$8 sps:$4 sm:$0xff]  }
  0x67   :  { %1201 = vmatprep.subr.bf16.mxu1 %v10129_v24  ;;  %5064 = vmatpush3.bf16.msra.mxu0 %v6558_v50  ;;  %v55_v50 = vld [vmem:[%s10119_s10] sm:$0xff] }
  0x68   :  { %5065 = vmatprep.subr.bf16.mxu0 %v6568_v53  ;;  %v6772_v53 = vpack.c.bf16 %v56_v56, %v55_v50  ;;  %v5811_v50 = vld [vmem:[%s10113_s4 + $0xd8] ss:$12 sps:$4 sm:$0xff]  }
  0x69   :  { %v5812_v56 = vld [vmem:[%s10114_s5 + $0x10] ss:$8 sps:$4 sm:$0xff]   ;;  %v5849_v38 = vld [vmem:[%s10114_s5 + $0x84] ss:$8 sps:$4 sm:$0xff]  }
  0x6a   :  { %1202 = vmatpush1.bf16.msra.mxu1 %v6738_v47 }
  0x6b   :  { %1203 = vmatprep.subr.bf16.mxu1 %v10129_v24  ;;  %5066 = vmatpush3.bf16.msra.mxu0 %v6586_v59  ;;  %v5788_v59 = vld [vmem:[%s10113_s4 + $0xf8] ss:$12 sps:$4 sm:$0xff]  }
  0x6c   :  { %686 = vmatmul.mubr.bf16.gmra.mxu0 %v5779_v40  ;;  %5067 = vmatprep.subr.bf16.mxu0 %v6596_v62  ;;  %v84_v62 = vld [vmem:[%s10119_s10 + $0xe8] sm:$0xff] }
  0x6d   :  { %5455 = vmatmul.mubr.bf16.gmra.mxu1 %v5780_v49  ;;  %693 = vmatprep.mubr.bf16.mxu0 %v5781_v51  ;;  %v6808_v4 = vpack.c.bf16 %v84_v62, %v83_v2  ;;  %v5806_v40 = vld [vmem:[%s10113_s4 + $0xc0] ss:$12 sps:$4 sm:$0xff]   ;;  %v5807_v51 = vld [vmem:[%s10113_s4 + $0xdc] ss:$12 sps:$4 sm:$0xff]   ;;  %v5824_v62 = vld [vmem:[%s10114_s5 + $0x30] ss:$8 sps:$4 sm:$0xff]  }
  0x6e   :  { %1204 = vmatpush1.bf16.msra.mxu1 %v6759_v52  ;;  %5458 = vmatprep.mubr.bf16.mxu1 %v5783_v54  ;;  %v5803_v49 = vld [vmem:[%s10114_s5] ss:$8 sps:$4 sm:$0xff]   ;;  %v5809_v54 = vld [vmem:[%s10114_s5 + $0x14] ss:$8 sps:$4 sm:$0xff]  }
  0x6f   :  { %1205 = vmatprep.subr.bf16.mxu1 %v10129_v24  ;;  %5068 = vmatpush3.bf16.msra.mxu0 %v6614_v5  ;;  %v82_v5 = vld [vmem:[%s10119_s10 + $0xd8] sm:$0xff]  ;;  %v5823_v2 = vld [vmem:[%s10113_s4 + $0x108] ss:$12 sps:$4 sm:$0xff]  }
  0x70   :  { %5069 = vmatprep.subr.bf16.mxu0 %v6621_v9  ;;  %v5789_v9 = vld [vmem:[%s10113_s4 + $0x78] ss:$12 sps:$4 sm:$0xff]   ;;  %v6829_v18 = vpack.c.bf16 %v82_v5, %v81_v6 }
  0x71   :  { %v5825_v6 = vld [vmem:[%s10113_s4 + $0x124] ss:$12 sps:$4 sm:$0xff]  }
  0x72   :  { %1206 = vmatpush1.bf16.msra.mxu1 %v6772_v53  ;;  %v5827_v5 = vld [vmem:[%s10114_s5 + $0x44] ss:$8 sps:$4 sm:$0xff]  }
  0x73   :  { %1207 = vmatprep.subr.bf16.mxu1 %v10129_v24  ;;  %5070 = vmatpush3.bf16.msra.mxu0 %v6630_v13  ;;  %v5793_v13 = vld [vmem:[%s10113_s4 + $0x128] ss:$12 sps:$4 sm:$0xff]  }
  0x74   :  { %694 = vmatmul.mubr.bf16.gmra.mxu0 %v5784_v60  ;;  %5474 = vmatprep.subr.bf16.mxu0 %v10127_v14  ;;  %v5817_v60 = vld [vmem:[%s10113_s4 + $0xf0] ss:$12 sps:$4 sm:$0xff]  }
  0x75   :  { %5459 = vmatmul.mubr.bf16.gmra.mxu1 %v5785_v61  ;;  %701 = vmatprep.mubr.bf16.mxu0 %v5786_v63  ;;  %v5818_v61 = vld [vmem:[%s10114_s5 + $0x20] ss:$8 sps:$4 sm:$0xff]   ;;  %v5819_v63 = vld [vmem:[%s10113_s4 + $0x10c] ss:$12 sps:$4 sm:$0xff]  }
  0x76   :  { %1208 = vmatpush2.bf16.msra.mxu1 %v6793_v1  ;;  %5462 = vmatprep.mubr.bf16.mxu1 %v5788_v59  ;;  %v5821_v59 = vld [vmem:[%s10114_s5 + $0x34] ss:$8 sps:$4 sm:$0xff]  }
  0x77   :  { %1209 = vmatprep.subr.bf16.mxu1 %v10129_v24 }
  0x7a   :  { %1210 = vmatpush2.bf16.msra.mxu1 %v6808_v4 }
  0x7b   :  { %1211 = vmatprep.subr.bf16.mxu1 %v10129_v24 }
  0x7c   :  { %702 = vmatmul.mubr.bf16.gmra.mxu0 %v5789_v9  ;;  %v5829_v9 = vld [vmem:[%s10113_s4 + $0x120] ss:$12 sps:$4 sm:$0xff]  }
  0x7d   :  { %5463 = vmatmul.mubr.bf16.gmra.mxu1 %v5790_v10  ;;  %709 = vmatprep.mubr.bf16.mxu0 %v5791_v15  ;;  %v5830_v10 = vld [vmem:[%s10114_s5 + $0x40] ss:$8 sps:$4 sm:$0xff]  }
  0x7e   :  { %1212 = vmatpush2.bf16.msra.mxu1 %v6829_v18  ;;  %5466 = vmatprep.mubr.bf16.mxu1 %v5793_v13  ;;  %v5831_v15 = vld [vmem:[%s10113_s4 + $0x13c] ss:$12 sps:$4 sm:$0xff]  }
  0x7f   :  { %1213 = vmatprep.subr.bf16.mxu1 %v10129_v24  ;;  %v5833_v13 = vld [vmem:[%s10114_s5 + $0x54] ss:$8 sps:$4 sm:$0xff]  }
  0x82   :  { %1214 = vmatpush2.bf16.msra.mxu1 %v6842_v23 }
  0x83   :  { %1215 = vmatprep.subr.bf16.mxu1 %v10129_v24 }
  0x84   :  { %710 = vmatmul.mubr.bf16.gmra.mxu0 %v5794_v28  ;;  %v5841_v28 = vld [vmem:[%s10113_s4 + $0x150] ss:$12 sps:$4 sm:$0xff]  }
  0x85   :  { %5467 = vmatmul.mubr.bf16.gmra.mxu1 %v5795_v29  ;;  %717 = vmatprep.mubr.bf16.mxu0 %v5796_v32  ;;  %v5842_v29 = vld [vmem:[%s10114_s5 + $0x60] ss:$8 sps:$4 sm:$0xff]   ;;  %v5845_v32 = vld [vmem:[%s10114_s5 + $0x74] ss:$8 sps:$4 sm:$0xff]  }
  0x86   :  { %1216 = vmatpush2.bf16.msra.mxu1 %v6864_v33  ;;  %5470 = vmatprep.mubr.bf16.mxu1 %v5798_v36  ;;  %v5847_v36 = vld [vmem:[%s10113_s4 + $0x168] ss:$12 sps:$4 sm:$0xff]  }
  0x87   :  { %1217 = vmatprep.subr.bf16.mxu1 %v10129_v24 }
  0x8a   :  { %1218 = vmatpush2.bf16.msra.mxu1 %v6874_v17 }
  0x8b   :  { %1219 = vmatprep.subr.bf16.mxu1 %v10129_v24 }
  0x8c   :  { %718 = vmatmul.mubr.bf16.gmra.mxu0 %v5799_v21  ;;  %v5853_v21 = vld [vmem:[%s10115_s6 + $0x4] ss:$12 sps:$4 sm:$0xff]  }
  0x8d   :  { %5471 = vmatmul.mubr.bf16.gmra.mxu1 %v5800_v41  ;;  %725 = vmatprep.mubr.bf16.mxu0 %v5801_v44  ;;  %v5851_v41 = vld [vmem:[%s10115_s6] ss:$12 sps:$4 sm:$0xff]   ;;  %v5855_v44 = vld [vmem:[%s10114_s5 + $0x94] ss:$8 sps:$4 sm:$0xff]  }
  0x8e   :  { %1220 = vmatpush2.bf16.msra.mxu1 %v6902_v48  ;;  %1223 = vmatprep.mubr.bf16.mxu1 %v5805_v30  ;;  %v5857_v30 = vld [vmem:[%s10114_s5 + $0x90] ss:$8 sps:$4 sm:$0xff]  }
  0x8f   :  { %1221 = vmatprep.subr.bf16.mxu1 %v10129_v24 }
  0x92   :  { %1222 = vmatpush2.bf16.msra.mxu1 %v6906_v39 }
  0x94   :  { %726 = vmatmul.mubr.bf16.gmra.mxu0 %v5806_v40  ;;  %v5871_v40 = vld [vmem:[%s10114_s5 + $0xe4] ss:$8 sps:$4 sm:$0xff]  }
  0x95   :  { %1224 = vmatmul.mubr.bf16.vlgmr.msra.gmra.mxu1 %v5803_v49  ;;  %733 = vmatprep.mubr.bf16.mxu0 %v5807_v51  ;;  %v5874_v49 = vld [vmem:[%s10114_s5 + $0xf4] ss:$8 sps:$4 sm:$0xff]   ;;  %v5876_v51 = vld [vmem:[%s10114_s5 + $0xf0] ss:$8 sps:$4 sm:$0xff]  }
  0x96   :  { %1231 = vmatprep.mubr.bf16.mxu1 %v5809_v54 }
  0x9c   :  { %734 = vmatmul.mubr.bf16.gmra.mxu0 %v5811_v50 }
  0x9d   :  { %1232 = vmatmul.mubr.bf16.gmra.mxu1 %v5812_v56  ;;  %741 = vmatprep.mubr.bf16.mxu0 %v5813_v57 }
  0x9e   :  { %1239 = vmatprep.mubr.bf16.mxu1 %v5815_v58 }
  0xa4   :  { %742 = vmatmul.mubr.bf16.gmra.mxu0 %v5817_v60 }
  0xa5   :  { %1240 = vmatmul.mubr.bf16.gmra.mxu1 %v5818_v61  ;;  %749 = vmatprep.mubr.bf16.mxu0 %v5819_v63 }
  0xa6   :  { %1247 = vmatprep.mubr.bf16.mxu1 %v5821_v59 }
  0xac   :  { %750 = vmatmul.mubr.bf16.gmra.mxu0 %v5823_v2 }
  0xad   :  { %1248 = vmatmul.mubr.bf16.gmra.mxu1 %v5824_v62  ;;  %757 = vmatprep.mubr.bf16.mxu0 %v5825_v6 }
  0xae   :  { %1255 = vmatprep.mubr.bf16.mxu1 %v5827_v5 }
  0xb4   :  { %758 = vmatmul.mubr.bf16.gmra.mxu0 %v5829_v9 }
  0xb5   :  { %1256 = vmatmul.mubr.bf16.gmra.mxu1 %v5830_v10  ;;  %765 = vmatprep.mubr.bf16.mxu0 %v5831_v15 }
  0xb6   :  { %1263 = vmatprep.mubr.bf16.mxu1 %v5833_v13 }
  0xbc   :  { %766 = vmatmul.mubr.bf16.gmra.mxu0 %v5835_v19 }
  0xbd   :  { %1264 = vmatmul.mubr.bf16.gmra.mxu1 %v5836_v22  ;;  %773 = vmatprep.mubr.bf16.mxu0 %v5837_v26 }
  0xbe   :  { %1271 = vmatprep.mubr.bf16.mxu1 %v5839_v27 }
  0xc4   :  { %774 = vmatmul.mubr.bf16.gmra.mxu0 %v5841_v28 }
  0xc5   :  { %1272 = vmatmul.mubr.bf16.gmra.mxu1 %v5842_v29  ;;  %781 = vmatprep.mubr.bf16.mxu0 %v5843_v8 }
  0xc6   :  { %1279 = vmatprep.mubr.bf16.mxu1 %v5845_v32 }
  0xcc   :  { %782 = vmatmul.mubr.bf16.gmra.mxu0 %v5847_v36 }
  0xcd   :  { %1280 = vmatmul.mubr.bf16.gmra.mxu1 %v5848_v12  ;;  %1464 = vmatprep.mubr.bf16.mxu0 %v5853_v21 }
  0xce   :  { %1287 = vmatprep.mubr.bf16.mxu1 %v5849_v38 }
  0xd4   :  { %1465 = vmatmul.mubr.bf16.vlgmr.msra.gmra.mxu0 %v5851_v41 }
  0xd5   :  { %1288 = vmatmul.mubr.bf16.gmra.mxu1 %v5854_v42  ;;  %5475 = vmatpush3.bf16.msra.mxu0 %v6427_v7  ;;  %v5860_v7 = vld [vmem:[%s10114_s5 + $0xa0] ss:$8 sps:$4 sm:$0xff]  }
  0xd6   :  { %5476 = vmatprep.subr.bf16.mxu0 %v10127_v14  ;;  %1295 = vmatprep.mubr.bf16.mxu1 %v5855_v44 }
  0xd7   :  { %5490 = vmatprep.mubr.msk.bf16.mxu0 %vm6319_vm0, %v10127_v14 }
  0xd9   :  { %5477 = vmatpush3.bf16.msra.mxu0 %v6454_v16  ;;  %v5861_v16 = vld [vmem:[%s10114_s5 + $0xb4] ss:$8 sps:$4 sm:$0xff]  }
  0xda   :  { %5478 = vmatprep.subr.bf16.mxu0 %v10127_v14 }
  0xdd   :  { %1296 = vmatmul.mubr.bf16.gmra.mxu1 %v5857_v30  ;;  %5479 = vmatpush3.bf16.msra.mxu0 %v6481_v25  ;;  %v5863_v25 = vld [vmem:[%s10114_s5 + $0xb0] ss:$8 sps:$4 sm:$0xff]  }
  0xde   :  { %5480 = vmatprep.subr.bf16.mxu0 %v10127_v14  ;;  %1303 = vmatprep.mubr.bf16.mxu1 %v5858_v31 }
  0xe1   :  { %5481 = vmatpush3.bf16.msra.mxu0 %v6509_v34  ;;  %v5864_v34 = vld [vmem:[%s10114_s5 + $0xc4] ss:$8 sps:$4 sm:$0xff]  }
  0xe2   :  { %5482 = vmatprep.subr.bf16.mxu0 %v10127_v14 }
  0xe5   :  { %1304 = vmatmul.mubr.bf16.gmra.mxu1 %v5860_v7  ;;  %5483 = vmatpush3.bf16.msra.mxu0 %v6537_v43  ;;  %v5866_v43 = vld [vmem:[%s10115_s6 + $0x8] ss:$12 sps:$4 sm:$0xff]  }
  0xe6   :  { %5484 = vmatprep.subr.bf16.mxu0 %v10127_v14  ;;  %1311 = vmatprep.mubr.bf16.mxu1 %v5861_v16 }
  0xe9   :  { %5485 = vmatpush3.bf16.msra.mxu0 %v6574_v55  ;;  %v5867_v55 = vld [vmem:[%s10114_s5 + $0xc0] ss:$8 sps:$4 sm:$0xff]  }
  0xea   :  { %5486 = vmatprep.subr.bf16.mxu0 %v10127_v14 }
  0xed   :  { %1312 = vmatmul.mubr.bf16.gmra.mxu1 %v5863_v25  ;;  %5487 = vmatpush3.bf16.msra.mxu0 %v6602_v0  ;;  %v5870_v0 = vld [vmem:[%s10114_s5 + $0xd0] ss:$8 sps:$4 sm:$0xff]  }
  0xee   :  { %5488 = vmatprep.subr.bf16.mxu0 %v10127_v14  ;;  %1319 = vmatprep.mubr.bf16.mxu1 %v5864_v34 }
  0xf1   :  { %5489 = vmatpush3.bf16.msra.mxu0 %v6627_v11  ;;  %v5873_v11 = vld [vmem:[%s10114_s5 + $0xe0] ss:$8 sps:$4 sm:$0xff]  }
  0xf4   :  { %5491 = vmatmul.mubr.bf16.vlgmr.msra.gmra.mxu0 %v5866_v43 }
  0xf5   :  { %1320 = vmatmul.mubr.bf16.gmra.mxu1 %v5867_v55 }
  0xf6   :  { %1327 = vmatprep.mubr.bf16.mxu1 %v5868_v46 }
  0xfd   :  { %1328 = vmatmul.mubr.bf16.gmra.mxu1 %v5870_v0 }
  0xfe   :  { %1335 = vmatprep.mubr.bf16.mxu1 %v5871_v40 }
 0x105   :  { %1336 = vmatmul.mubr.bf16.gmra.mxu1 %v5873_v11 }
 0x106   :  { %1343 = vmatprep.mubr.bf16.mxu1 %v5874_v49 }
 0x10d   :  { %1344 = vmatmul.mubr.bf16.gmra.mxu1 %v5876_v51 }
 0x114   :  { %v4935_v54 = vpop.f32.mrf.mxu0  ;;  %v5444_v50 = vpop.f32.mrf.mxu1 }
 0x116   :  { %v4936_v56 = vpop.f32.mrf.mxu0  ;;  %v824_v58 = vpop.f32.mrf.mxu1 }
 0x117   :  { %v4937_v57 = vadd.f32 %v4936_v56, %v4935_v54 }
 0x118   :  { %v4938_v60 = vpop.f32.mrf.mxu0  ;;  %v5445_v63 = vpop.f32.mrf.mxu1 }
 0x119   :  { %v7074_v61 = vadd.f32 %v4937_v57, %v824_v58  ;;  %v5879_v57 = vld [vmem:[%s10114_s5 + $0x100] ss:$8 sps:$4 sm:$0xff]  }
 0x11a   :  { %v4939_v59 = vpop.f32.mrf.mxu0  ;;  %v827_v62 = vpop.f32.mrf.mxu1 }
 0x11b   :  { %10271 = vst [vmem:[#allocation12_spill] sm:$0xff] %v7074_v61  ;;  %v4940_v2 = vadd.f32 %v4939_v59, %v4938_v60 }
 0x11c   :  { %v4941_v6 = vpop.f32.mrf.mxu0  ;;  %v5448_v9 = vpop.f32.mrf.mxu1 }
 0x11d   :  { %v7076_v5 = vadd.f32 %v4940_v2, %v827_v62 }
 0x11e   :  { %v4942_v10 = vpop.f32.mrf.mxu0  ;;  %v840_v19 = vpop.f32.mrf.mxu1 }
 0x11f   :  { %10272 = vst [vmem:[#allocation13_spill] sm:$0xff] %v7076_v5  ;;  %v7080_v15 = vpack.c.bf16 %v7076_v5, %v7074_v61  ;;  %v4943_v13 = vadd.f32 %v4942_v10, %v4941_v6 }
 0x120   :  { %v4944_v22 = vpop.f32.mrf.mxu0  ;;  %v5449_v27 = vpop.f32.mrf.mxu1 }
 0x121   :  { %10273 = vst [vmem:[#allocation14_spill] sm:$0xff] %v7080_v15  ;;  %v7082_v26 = vadd.f32 %v5444_v50, %v4943_v13  ;;  %v5877_v50 = vld [vmem:[%s10114_s5 + $0x104] ss:$8 sps:$4 sm:$0xff]  }
 0x122   :  { %v4945_v28 = vpop.f32.mrf.mxu0  ;;  %v843_v8 = vpop.f32.mrf.mxu1  ;;  %1351 = vmatprep.mubr.bf16.mxu1 %v5877_v50  ;;  %v5885_v50 = vld [vmem:[%s10114_s5 + $0x124] ss:$8 sps:$4 sm:$0xff]  }
 0x123   :  { %10274 = vst [vmem:[#allocation15_spill] sm:$0xff] %v7082_v26  ;;  %v4946_v29 = vadd.f32 %v4945_v28, %v4944_v22  ;;  %1352 = vmatmul.mubr.bf16.gmra.mxu1 %v5879_v57  ;;  %v5887_v57 = vld [vmem:[%s10114_s5 + $0x120] ss:$8 sps:$4 sm:$0xff]  }
 0x124   :  { %v4947_v32 = vpop.f32.mrf.mxu0 }
 0x125   :  { %v7084_v36 = vadd.f32 %v5445_v63, %v4946_v29  ;;  %v5452_v12 = vpop.f32.mrf.mxu1  ;;  %v5882_v29 = vld [vmem:[%s10114_s5 + $0x110] ss:$8 sps:$4 sm:$0xff]  }
 0x126   :  { %v4948_v21 = vpop.f32.mrf.mxu0 }
 0x127   :  { %10275 = vst [vmem:[#allocation16_spill] sm:$0xff] %v7084_v36  ;;  %v7088_v38 = vpack.c.bf16 %v7084_v36, %v7082_v26  ;;  %v4949_v41 = vadd.f32 %v4948_v21, %v4947_v32  ;;  %v856_v42 = vpop.f32.mrf.mxu1 }
 0x128   :  { %v4950_v44 = vpop.f32.mrf.mxu0 }
 0x129   :  { %10276 = vst [vmem:[#allocation17_spill] sm:$0xff] %v7088_v38  ;;  %v7090_v30 = vadd.f32 %v4949_v41, %v840_v19  ;;  %v5453_v31 = vpop.f32.mrf.mxu1 }
 0x12a   :  { %v4951_v7 = vpop.f32.mrf.mxu0 }
 0x12b   :  { %10277 = vst [vmem:[#allocation18_spill] sm:$0xff] %v7090_v30  ;;  %v4952_v16 = vadd.f32 %v4951_v7, %v4950_v44  ;;  %v859_v25 = vpop.f32.mrf.mxu1  ;;  %v5883_v7 = vld [vmem:[%s10116_s7] sm:$0xff]  }
 0x12c   :  { %v4953_v34 = vpop.f32.mrf.mxu0  ;;  %5496 = vmatprep.mubr.msk.bf16.mxu0 %vm1595_vm1, %v5883_v7 }
 0x12d   :  { %v7092_v43 = vadd.f32 %v4952_v16, %v843_v8  ;;  %v7094_v55 = vpop.f32.mrf.mxu1 }
 0x12e   :  { %v4954_v46 = vpop.f32.mrf.mxu0 }
 0x12f   :  { %10278 = vst [vmem:[#allocation19_spill] sm:$0xff] %v7092_v43  ;;  %v7098_v0 = vpack.c.bf16 %v7092_v43, %v7090_v30  ;;  %v4955_v40 = vadd.f32 %v4954_v46, %v4953_v34  ;;  %v872_v11 = vpop.f32.mrf.mxu1 }
 0x130   :  { %v4956_v49 = vpop.f32.mrf.mxu0 }
 0x131   :  { %10279 = vst [vmem:[#allocation20_spill] sm:$0xff] %v7098_v0  ;;  %v7100_v51 = vadd.f32 %v5448_v9, %v4955_v40  ;;  %v7102_v54 = vpop.f32.mrf.mxu1 }
 0x132   :  { %v4957_v56 = vpop.f32.mrf.mxu0 }
 0x133   :  { %10280 = vst [vmem:[#allocation21_spill] sm:$0xff] %v7100_v51  ;;  %v4958_v58 = vadd.f32 %v4957_v56, %v4956_v49  ;;  %v875_v60 = vpop.f32.mrf.mxu1 }
 0x134   :  { %v4959_v63 = vpop.f32.mrf.mxu0 }
 0x135   :  { %v7110_v59 = vadd.f32 %v5449_v27, %v4958_v58  ;;  %v7112_v2 = vpop.f32.mrf.mxu1  ;;  %v5880_v27 = vld [vmem:[%s10114_s5 + $0x114] ss:$8 sps:$4 sm:$0xff]  }
 0x136   :  { %v4960_v62 = vpop.f32.mrf.mxu0  ;;  %1359 = vmatprep.mubr.bf16.mxu1 %v5880_v27 }
 0x137   :  { %10281 = vst [vmem:[#allocation22_spill] sm:$0xff] %v7110_v59  ;;  %v7116_v6 = vpack.c.bf16 %v7110_v59, %v7100_v51  ;;  %v4961_v9 = vadd.f32 %v4960_v62, %v4959_v63  ;;  %v7118_v10 = vpop.f32.mrf.mxu1  ;;  %1360 = vmatmul.mubr.bf16.gmra.mxu1 %v5882_v29 }
 0x138   :  { %v4962_v13 = vpop.f32.mrf.mxu0  ;;  %1367 = vmatprep.mubr.bf16.mxu1 %v5885_v50 }
 0x139   :  { %10282 = vst [vmem:[#allocation23_spill] sm:$0xff] %v7116_v6  ;;  %v7120_v19 = vadd.f32 %v4961_v9, %v856_v42  ;;  %v7122_v22 = vpop.f32.mrf.mxu1 }
 0x13a   :  { %v4963_v28 = vpop.f32.mrf.mxu0 }
 0x13b   :  { %10283 = vst [vmem:[#allocation24_spill] sm:$0xff] %v7120_v19  ;;  %v4964_v8 = vadd.f32 %v4963_v28, %v4962_v13  ;;  %v7130_v32 = vpop.f32.mrf.mxu1 }
 0x13c   :  { %v4965_v21 = vpop.f32.mrf.mxu0 }
 0x13d   :  { %v7132_v41 = vadd.f32 %v4964_v8, %v859_v25  ;;  %v7134_v42 = vpop.f32.mrf.mxu1 }
 0x13e   :  { %v4966_v44 = vpop.f32.mrf.mxu0 }
 0x13f   :  { %10284 = vst [vmem:[#allocation25_spill] sm:$0xff] %v7132_v41  ;;  %v7141_v16 = vpack.c.bf16 %v7132_v41, %v7120_v19  ;;  %v4967_v34 = vadd.f32 %v4966_v44, %v4965_v21  ;;  %v7143_v46 = vpop.f32.mrf.mxu1  ;;  %1368 = vmatmul.mubr.bf16.gmra.mxu1 %v5887_v57 }
 0x140   :  { %v4968_v40 = vpop.f32.mrf.mxu0 }
 0x141   :  { %10285 = vst [vmem:[#allocation26_spill] sm:$0xff] %v7141_v16  ;;  %v7146_v25 = vadd.f32 %v5452_v12, %v4967_v34  ;;  %v7148_v49 = vpop.f32.mrf.mxu1  ;;  %v5892_v34 = vld [vmem:[%s10114_s5 + $0x130] ss:$8 sps:$4 sm:$0xff]  }
 0x142   :  { %v4969_v56 = vpop.f32.mrf.mxu0 }
 0x143   :  { %10286 = vst [vmem:[#allocation27_spill] sm:$0xff] %v7146_v25  ;;  %v4970_v58 = vadd.f32 %v4969_v56, %v4968_v40  ;;  %v7156_v63 = vpop.f32.mrf.mxu1 }
 0x144   :  { %v4971_v62 = vpop.f32.mrf.mxu0 }
 0x145   :  { %v7158_v9 = vadd.f32 %v5453_v31, %v4970_v58  ;;  %v7160_v12 = vpop.f32.mrf.mxu1  ;;  %v5890_v31 = vld [vmem:[%s10114_s5 + $0x134] ss:$8 sps:$4 sm:$0xff]  }
 0x146   :  { %v4972_v13 = vpop.f32.mrf.mxu0  ;;  %1375 = vmatprep.mubr.bf16.mxu1 %v5890_v31 }
 0x147   :  { %10287 = vst [vmem:[#allocation28_spill] sm:$0xff] %v7158_v9  ;;  %v7164_v27 = vpack.c.bf16 %v7158_v9, %v7146_v25  ;;  %v4973_v28 = vadd.f32 %v4972_v13, %v4971_v62  ;;  %v7166_v29 = vpop.f32.mrf.mxu1  ;;  %1376 = vmatmul.mubr.bf16.gmra.mxu1 %v5892_v34  ;;  %v5895_v34 = vld [vmem:[%s10114_s5 + $0x140] ss:$8 sps:$4 sm:$0xff]  }
 0x148   :  { %v4974_v8 = vpop.f32.mrf.mxu0 }
 0x149   :  { %10288 = vst [vmem:[#allocation29_spill] sm:$0xff] %v7164_v27  ;;  %v7168_v21 = vadd.f32 %v4973_v28, %v872_v11  ;;  %v7170_v44 = vpop.f32.mrf.mxu1 }
 0x14a   :  { %v4975_v7 = vpop.f32.mrf.mxu0 }
 0x14b   :  { %10289 = vst [vmem:[#allocation30_spill] sm:$0xff] %v7168_v21  ;;  %v4976_v40 = vadd.f32 %v4975_v7, %v4974_v8  ;;  %v7178_v50 = vpop.f32.mrf.mxu1 }
 0x14c   :  { %v4977_v56 = vpop.f32.mrf.mxu0 }
 0x14d   :  { %v7180_v57 = vadd.f32 %v4976_v40, %v875_v60  ;;  %v7182_v11 = vpop.f32.mrf.mxu1  ;;  %v5897_v60 = vld [vmem:[%s10114_s5 + $0x144] ss:$8 sps:$4 sm:$0xff]  }
 0x14e   :  { %v4978_v58 = vpop.f32.mrf.mxu0  ;;  %1383 = vmatprep.mubr.bf16.mxu1 %v5897_v60  ;;  %v5902_v60 = vld [vmem:[%s10114_s5 + $0x154] ss:$8 sps:$4 sm:$0xff]  }
 0x14f   :  { %10290 = vst [vmem:[#allocation31_spill] sm:$0xff] %v7180_v57  ;;  %v7186_v62 = vpack.c.bf16 %v7180_v57, %v7168_v21  ;;  %v4979_v13 = vadd.f32 %v4978_v58, %v4977_v56  ;;  %v7188_v28 = vpop.f32.mrf.mxu1  ;;  %1384 = vmatmul.mubr.bf16.gmra.mxu1 %v5895_v34 }
 0x150   :  { %v4980_v14 = vpop.f32.mrf.mxu0  ;;  %1391 = vmatprep.mubr.bf16.mxu1 %v5902_v60 }
 0x151   :  { %10291 = vst [vmem:[#allocation32_spill] sm:$0xff] %v7186_v62  ;;  %v7191_v8 = vadd.f32 %v7094_v55, %v4979_v13  ;;  %v7193_v7 = vpop.f32.mrf.mxu1 }
 0x152   :  { %v4981_v31 = vpop.f32.mrf.mxu0 }
 0x153   :  { %10292 = vst [vmem:[#allocation33_spill] sm:$0xff] %v7191_v8  ;;  %v4982_v40 = vadd.f32 %v4981_v31, %v4980_v14  ;;  %v7201_v24 = vpop.f32.mrf.mxu1 }
 0x154   :  { %v4983_v56 = vpop.f32.mrf.mxu0 }
 0x155   :  { %v7204_v55 = vadd.f32 %v7102_v54, %v4982_v40  ;;  %v7206_v58 = vpop.f32.mrf.mxu1  ;;  %v5900_v54 = vld [vmem:[%s10114_s5 + $0x150] ss:$8 sps:$4 sm:$0xff]  }
 0x156   :  { %10294 = vst [vmem:[#allocation35_spill] sm:$0xff] %v7206_v58  ;;  %v4984_v13 = vpop.f32.mrf.mxu0 }
 0x157   :  { %10293 = vst [vmem:[#allocation34_spill] sm:$0xff] %v7204_v55  ;;  %v7210_v57 = vpack.c.bf16 %v7204_v55, %v7191_v8  ;;  %v4985_v21 = vadd.f32 %v4984_v13, %v4983_v56  ;;  %v1227_v41 = vpop.f32.mrf.mxu1  ;;  %1392 = vmatmul.mubr.bf16.gmra.mxu1 %v5900_v54  ;;  %v5907_v54 = vld [vmem:[%s10114_s5 + $0x164] ss:$8 sps:$4 sm:$0xff]  }
 0x158   :  { %v4986_v9 = vpop.f32.mrf.mxu0  ;;  %1399 = vmatprep.mubr.bf16.mxu1 %v5907_v54 }
 0x159   :  { %10295 = vst [vmem:[#allocation36_spill] sm:$0xff] %v7210_v57  ;;  %v7213_v14 = vadd.f32 %v4985_v21, %v7118_v10  ;;  %v7215_v31 = vpop.f32.mrf.mxu1 }
 0x15a   :  { %10297 = vst [vmem:[#allocation38_spill] sm:$0xff] %v7215_v31  ;;  %v7225_v34 = vpack.c.bf16 %v7215_v31, %v7206_v58  ;;  %v4987_v40 = vpop.f32.mrf.mxu0 }
 0x15b   :  { %10296 = vst [vmem:[#allocation37_spill] sm:$0xff] %v7213_v14  ;;  %v4988_v41 = vadd.f32 %v4987_v40, %v4986_v9  ;;  %v1230_v56 = vpop.f32.mrf.mxu1 }
 0x15c   :  { %v4989_v10 = vpop.f32.mrf.mxu0 }
 0x15d   :  { %v7228_v21 = vadd.f32 %v4988_v41, %v7130_v32  ;;  %v7230_v13 = vpop.f32.mrf.mxu1  ;;  %v5905_v32 = vld [vmem:[%s10114_s5 + $0x160] ss:$8 sps:$4 sm:$0xff]  }
 0x15e   :  { %10299 = vst [vmem:[#allocation40_spill] sm:$0xff] %v7230_v13  ;;  %v4990_v55 = vpop.f32.mrf.mxu0 }
 0x15f   :  { %10298 = vst [vmem:[#allocation39_spill] sm:$0xff] %v7228_v21  ;;  %v7234_v8 = vpack.c.bf16 %v7228_v21, %v7213_v14  ;;  %v4991_v19 = vadd.f32 %v4990_v55, %v4989_v10  ;;  %v1235_v25 = vpop.f32.mrf.mxu1  ;;  %1400 = vmatmul.mubr.bf16.gmra.mxu1 %v5905_v32  ;;  %v5912_v32 = vld [vmem:[%s10114_s5 + $0x174] ss:$8 sps:$4 sm:$0xff]  }
 0x160   :  { %v4992_v43 = vpop.f32.mrf.mxu0  ;;  %1407 = vmatprep.mubr.bf16.mxu1 %v5912_v32 }
 0x161   :  { %10300 = vst [vmem:[#allocation41_spill] sm:$0xff] %v7234_v8  ;;  %v7237_v59 = vadd.f32 %v7112_v2, %v4991_v19  ;;  %v7239_v9 = vpop.f32.mrf.mxu1 }
 0x162   :  { %10302 = vst [vmem:[#allocation43_spill] sm:$0xff] %v7239_v9  ;;  %v7249_v60 = vpack.c.bf16 %v7239_v9, %v7230_v13  ;;  %v4993_v55 = vpop.f32.mrf.mxu0 }
 0x163   :  { %10301 = vst [vmem:[#allocation42_spill] sm:$0xff] %v7237_v59  ;;  %v4994_v25 = vadd.f32 %v4993_v55, %v4992_v43  ;;  %v1238_v40 = vpop.f32.mrf.mxu1 }
 0x164   :  { %v4995_v2 = vpop.f32.mrf.mxu0 }
 0x165   :  { %v7252_v19 = vadd.f32 %v7122_v22, %v4994_v25  ;;  %v7254_v41 = vpop.f32.mrf.mxu1  ;;  %v5910_v22 = vld [vmem:[%s10114_s5 + $0x170] ss:$8 sps:$4 sm:$0xff]  }
 0x166   :  { %10304 = vst [vmem:[#allocation45_spill] sm:$0xff] %v7254_v41  ;;  %v4996_v56 = vpop.f32.mrf.mxu0 }
 0x167   :  { %10303 = vst [vmem:[#allocation44_spill] sm:$0xff] %v7252_v19  ;;  %v7258_v10 = vpack.c.bf16 %v7252_v19, %v7237_v59  ;;  %v4997_v21 = vadd.f32 %v4996_v56, %v4995_v2  ;;  %v1243_v14 = vpop.f32.mrf.mxu1  ;;  %1408 = vmatmul.mubr.bf16.gmra.mxu1 %v5910_v22  ;;  %v5962_v2 = vld [vmem:[%s10113_s4 + $0x4] ss:$12 sps:$4 sm:$0xff]  }
 0x168   :  { %v4998_v30 = vpop.f32.mrf.mxu0  ;;  %2506 = vmatprep.mubr.bf16.mxu1 %v5962_v2 }
 0x169   :  { %10305 = vst [vmem:[#allocation46_spill] sm:$0xff] %v7258_v10  ;;  %v7261_v51 = vadd.f32 %v4997_v21, %v7143_v46  ;;  %v7263_v43 = vpop.f32.mrf.mxu1 }
 0x16a   :  { %10307 = vst [vmem:[#allocation48_spill] sm:$0xff] %v7263_v43  ;;  %v7273_v54 = vpack.c.bf16 %v7263_v43, %v7254_v41  ;;  %v4999_v55 = vpop.f32.mrf.mxu0 }
 0x16b   :  { %10306 = vst [vmem:[#allocation47_spill] sm:$0xff] %v7261_v51  ;;  %v5000_v14 = vadd.f32 %v4999_v55, %v4998_v30  ;;  %v1246_v25 = vpop.f32.mrf.mxu1 }
 0x16c   :  { %v5001_v46 = vpop.f32.mrf.mxu0 }
 0x16d   :  { %v7276_v21 = vadd.f32 %v5000_v14, %v7156_v63  ;;  %v7278_v40 = vpop.f32.mrf.mxu1 }
 0x16e   :  { %10309 = vst [vmem:[#allocation50_spill] sm:$0xff] %v7278_v40  ;;  %v5002_v56 = vpop.f32.mrf.mxu0 }
 0x16f   :  { %10308 = vst [vmem:[#allocation49_spill] sm:$0xff] %v7276_v21  ;;  %v7285_v19 = vpack.c.bf16 %v7276_v21, %v7261_v51  ;;  %v5003_v30 = vadd.f32 %v5002_v56, %v5001_v46  ;;  %v1251_v55 = vpop.f32.mrf.mxu1 }
 0x170   :  { %v5004_v32 = vpop.f32.mrf.mxu0 }
 0x171   :  { %10310 = vst [vmem:[#allocation51_spill] sm:$0xff] %v7285_v19  ;;  %v7288_v22 = vadd.f32 %v7134_v42, %v5003_v30  ;;  %v7290_v63 = vpop.f32.mrf.mxu1 }
 0x172   :  { %10312 = vst [vmem:[#allocation53_spill] sm:$0xff] %v7290_v63  ;;  %v7294_v14 = vpack.c.bf16 %v7290_v63, %v7278_v40  ;;  %v5005_v25 = vpop.f32.mrf.mxu0 }
 0x173   :  { %10311 = vst [vmem:[#allocation52_spill] sm:$0xff] %v7288_v22  ;;  %v5006_v59 = vadd.f32 %v5005_v25, %v5004_v32  ;;  %v1254_v2 = vpop.f32.mrf.mxu1 }
 0x174   :  { %v5007_v5 = vpop.f32.mrf.mxu0 }
 0x175   :  { %v7297_v36 = vadd.f32 %v7148_v49, %v5006_v59  ;;  %v7299_v21 = vpop.f32.mrf.mxu1 }
 0x176   :  { %10314 = vst [vmem:[#allocation55_spill] sm:$0xff] %v7299_v21  ;;  %v5008_v46 = vpop.f32.mrf.mxu0 }
 0x177   :  { %10313 = vst [vmem:[#allocation54_spill] sm:$0xff] %v7297_v36  ;;  %v7303_v42 = vpack.c.bf16 %v7297_v36, %v7288_v22  ;;  %v5009_v56 = vadd.f32 %v5008_v46, %v5007_v5  ;;  %v1259_v30 = vpop.f32.mrf.mxu1 }
 0x178   :  { %v5010_v55 = vpop.f32.mrf.mxu0 }
 0x179   :  { %10315 = vst [vmem:[#allocation56_spill] sm:$0xff] %v7303_v42  ;;  %v7306_v51 = vadd.f32 %v5009_v56, %v7166_v29  ;;  %v7308_v61 = vpop.f32.mrf.mxu1 }
 0x17a   :  { %10317 = vst [vmem:[#allocation58_spill] sm:$0xff] %v7308_v61  ;;  %v7312_v32 = vpack.c.bf16 %v7308_v61, %v7299_v21  ;;  %v5011_v59 = vpop.f32.mrf.mxu0 }
 0x17b   :  { %10316 = vst [vmem:[#allocation57_spill] sm:$0xff] %v7306_v51  ;;  %v5012_v49 = vadd.f32 %v5011_v59, %v5010_v55  ;;  %v1262_v25 = vpop.f32.mrf.mxu1 }
 0x17c   :  { %v5013_v2 = vpop.f32.mrf.mxu0 }
 0x17d   :  { %v7315_v26 = vadd.f32 %v5012_v49, %v7178_v50  ;;  %v7317_v36 = vpop.f32.mrf.mxu1 }
 0x17e   :  { %10319 = vst [vmem:[#allocation60_spill] sm:$0xff] %v7317_v36  ;;  %v5014_v5 = vpop.f32.mrf.mxu0 }
 0x17f   :  { %10318 = vst [vmem:[#allocation59_spill] sm:$0xff] %v7315_v26  ;;  %v7321_v29 = vpack.c.bf16 %v7315_v26, %v7306_v51  ;;  %v5015_v46 = vadd.f32 %v5014_v5, %v5013_v2  ;;  %v1267_v56 = vpop.f32.mrf.mxu1 }
 0x180   :  { %v5016_v30 = vpop.f32.mrf.mxu0 }
 0x181   :  { %10320 = vst [vmem:[#allocation61_spill] sm:$0xff] %v7321_v29  ;;  %v7324_v22 = vadd.f32 %v7160_v12, %v5015_v46  ;;  %v7326_v61 = vpop.f32.mrf.mxu1 }
 0x182   :  { %10322 = vst [vmem:[#allocation63_spill] sm:$0xff] %v7326_v61  ;;  %v7330_v55 = vpack.c.bf16 %v7326_v61, %v7317_v36  ;;  %v5017_v50 = vpop.f32.mrf.mxu0 }
 0x183   :  { %10321 = vst [vmem:[#allocation62_spill] sm:$0xff] %v7324_v22  ;;  %v5018_v59 = vadd.f32 %v5017_v50, %v5016_v30  ;;  %v1270_v49 = vpop.f32.mrf.mxu1 }
 0x184   :  { %v5019_v25 = vpop.f32.mrf.mxu0 }
 0x185   :  { %v7333_v21 = vadd.f32 %v7170_v44, %v5018_v59  ;;  %v7335_v26 = vpop.f32.mrf.mxu1 }
 0x186   :  { %10324 = vst [vmem:[#allocation65_spill] sm:$0xff] %v7335_v26  ;;  %v5020_v2 = vpop.f32.mrf.mxu0 }
 0x187   :  { %10323 = vst [vmem:[#allocation64_spill] sm:$0xff] %v7333_v21  ;;  %v7339_v12 = vpack.c.bf16 %v7333_v21, %v7324_v22  ;;  %v5021_v5 = vadd.f32 %v5020_v2, %v5019_v25  ;;  %v1275_v46 = vpop.f32.mrf.mxu1 }
 0x188   :  { %v5022_v56 = vpop.f32.mrf.mxu0 }
 0x189   :  { %10325 = vst [vmem:[#allocation66_spill] sm:$0xff] %v7339_v12  ;;  %v7342_v51 = vadd.f32 %v5021_v5, %v7188_v28  ;;  %v7344_v61 = vpop.f32.mrf.mxu1 }
 0x18a   :  { %10327 = vst [vmem:[#allocation68_spill] sm:$0xff] %v7344_v61  ;;  %v7348_v30 = vpack.c.bf16 %v7344_v61, %v7335_v26  ;;  %v5023_v44 = vpop.f32.mrf.mxu0 }
 0x18b   :  { %10326 = vst [vmem:[#allocation67_spill] sm:$0xff] %v7342_v51  ;;  %v5024_v50 = vadd.f32 %v5023_v44, %v5022_v56  ;;  %v1278_v59 = vpop.f32.mrf.mxu1 }
 0x18c   :  { %v5025_v49 = vpop.f32.mrf.mxu0 }
 0x18d   :  { %v7351_v36 = vadd.f32 %v5024_v50, %v7201_v24  ;;  %v7353_v21 = vpop.f32.mrf.mxu1 }
 0x18e   :  { %10329 = vst [vmem:[#allocation70_spill] sm:$0xff] %v7353_v21  ;;  %v5026_v25 = vpop.f32.mrf.mxu0 }
 0x18f   :  { %10328 = vst [vmem:[#allocation69_spill] sm:$0xff] %v7351_v36  ;;  %v7357_v28 = vpack.c.bf16 %v7351_v36, %v7342_v51  ;;  %v5027_v2 = vadd.f32 %v5026_v25, %v5025_v49  ;;  %v1283_v5 = vpop.f32.mrf.mxu1 }
 0x190   :  { %v5028_v46 = vpop.f32.mrf.mxu0 }
 0x191   :  { %10330 = vst [vmem:[#allocation71_spill] sm:$0xff] %v7357_v28  ;;  %v7359_v22 = vpop.f32.mrf.mxu1  ;;  %v7366_v50 = vadd.f32 %v7182_v11, %v5027_v2 }
 0x192   :  { %10331 = vst [vmem:[#allocation72_spill] sm:$0xff] %v7359_v22  ;;  %v7363_v56 = vpack.c.bf16 %v7359_v22, %v7353_v21  ;;  %v5029_v44 = vpop.f32.mrf.mxu0 }
 0x193   :  { %v5030_v59 = vadd.f32 %v5029_v44, %v5028_v46  ;;  %v1286_v24 = vpop.f32.mrf.mxu1  ;;  %10332 = vst [vmem:[#allocation73_spill] sm:$0xff] %v7366_v50 }
 0x195   :  { %v7369_v61 = vadd.f32 %v7193_v7, %v5030_v59  ;;  %v7371_v36 = vpop.f32.mrf.mxu1 }
 0x196   :  { %10334 = vst [vmem:[#allocation75_spill] sm:$0xff] %v7371_v36 }
 0x197   :  { %10333 = vst [vmem:[#allocation74_spill] sm:$0xff] %v7369_v61  ;;  %v7375_v49 = vpack.c.bf16 %v7369_v61, %v7366_v50  ;;  %v1291_v25 = vpop.f32.mrf.mxu1 }
 0x198   :  { %v5071_v25 = vpop.f32.mrf.mxu0 }
 0x199   :  { %10335 = vst [vmem:[#allocation76_spill] sm:$0xff] %v7375_v49  ;;  %v7377_v5 = vpop.f32.mrf.mxu1 }
 0x19a   :  { %10336 = vst [vmem:[#allocation77_spill] sm:$0xff] %v7377_v5  ;;  %v7381_v51 = vpack.c.bf16 %v7377_v5, %v7371_v36  ;;  %v5072_v22 = vpop.f32.mrf.mxu0 }
 0x19b   :  { %v1294_v46 = vpop.f32.mrf.mxu1 }
 0x19c   :  { %v5074_v46 = vpop.f32.mrf.mxu0 }
 0x19d   :  { %v7383_v44 = vpop.f32.mrf.mxu1 }
 0x19e   :  { %10337 = vst [vmem:[#allocation78_spill] sm:$0xff] %v7383_v44  ;;  %v5075_v26 = vpop.f32.mrf.mxu0 }
 0x19f   :  { %v1299_v11 = vpop.f32.mrf.mxu1  ;;  %v5076_v43 = vadd.f32 %v5075_v26, %v5074_v46  ;;  %v5888_v26 = vld [vmem:[%s10116_s7 + $0x10] sm:$0xff]  }
 0x1a0   :  { %v5908_v46 = vld [vmem:[%s10116_s7 + $0x50] sm:$0xff]  }
 0x1a1   :  { %v7385_v2 = vpop.f32.mrf.mxu1 }
 0x1a2   :  { %10338 = vst [vmem:[#allocation79_spill] sm:$0xff] %v7385_v2  ;;  %v7389_v7 = vpack.c.bf16 %v7385_v2, %v7383_v44  ;;  %v5073_v44 = vadd.f32 %v5072_v22, %v5071_v25 }
 0x1a3   :  { %v1302_v59 = vpop.f32.mrf.mxu1 }
 0x1a5   :  { %v7391_v24 = vpop.f32.mrf.mxu1 }
 0x1a7   :  { %v1307_v61 = vpop.f32.mrf.mxu1 }
 0x1a9   :  { %v7393_v50 = vpop.f32.mrf.mxu1 }
 0x1ab   :  { %v1310_v5 = vpop.f32.mrf.mxu1 }
 0x1ad   :  { %v7395_v36 = vpop.f32.mrf.mxu1 }
 0x1af   :  { %v1315_v21 = vpop.f32.mrf.mxu1 }
 0x1b1   :  { %v7397_v11 = vpop.f32.mrf.mxu1 }
 0x1b3   :  { %v1318_v63 = vpop.f32.mrf.mxu1 }
 0x1b4   :  { %v1507_v40 = vpop.f32.mrf.mxu0  ;;  %v5884_v63 = vld [vmem:[%s10116_s7 + $0x8] sm:$0xff]  }
 0x1b5   :  { %v7399_v2 = vpop.f32.mrf.mxu1  ;;  %v1508_v9 = vadd.f32 %v5073_v44, %v1507_v40 }
 0x1b6   :  { %v5492_v59 = vpop.f32.mrf.mxu0 }
 0x1b7   :  { %v1323_v41 = vpop.f32.mrf.mxu1  ;;  %v5914_v59 = vld [vmem:[%s10116_s7 + $0x68] sm:$0xff]  }
 0x1b8   :  { %v1510_v61 = vpop.f32.mrf.mxu0 }
 0x1b9   :  { %v1511_v13 = vadd.f32 %v5076_v43, %v1510_v61  ;;  %v7401_v31 = vpop.f32.mrf.mxu1  ;;  %v5915_v61 = vld [vmem:[%s10116_s7 + $0x70] sm:$0xff]  }
 0x1ba   :  { %v5493_v5 = vpop.f32.mrf.mxu0 }
 0x1bb   :  { %v1514_v58 = vpack.c.bf16 %v1511_v13, %v1508_v9  ;;  %v1326_v8 = vpop.f32.mrf.mxu1  ;;  %v10339_v5 = vmov 0  }
 0x1bd   :  { %v7403_v21 = vpop.f32.mrf.mxu1  ;;  %5494 = vmatprep.subr.bf16.mxu0 %v1514_v58 }
 0x1be   :  { %5495 = vmatpush3.bf16.msra.mxu0 %v1514_v58  ;;  %v5889_v58 = vld [vmem:[%s10116_s7 + $0x18] sm:$0xff]  }
 0x1bf   :  { %v1331_v41 = vpop.f32.mrf.mxu1  ;;  %5103 = vmatprep.subr.bf16.mxu0 %v6793_v1  ;;  %v5893_v1 = vld [vmem:[%s10116_s7 + $0x20] sm:$0xff]  }
 0x1c0   :  { %v5916_v41 = vld [vmem:[%s10116_s7 + $0x78] sm:$0xff]  }
 0x1c1   :  { %v7412_v43 = vpop.f32.mrf.mxu1  ;;  %5497 = vmatmul.mubr.msk.bf16.vlgmr.msra.gmra.mxu0 %vm1595_vm1, %v5884_v63  ;;  %v5963_v63 = vld [vmem:[%s10113_s4] ss:$12 sps:$4 sm:$0xff]  }
 0x1c2   :  { %5104 = vmatpush3.bf16.msra.mxu0 %v6649_v20  ;;  %5500 = vmatprep.mubr.msk.bf16.mxu0 %vm1595_vm1, %v5888_v26  ;;  %v7465_v25 = vpack.c.bf16 %v7412_v43, %v7403_v21 }
 0x1c3   :  { %v1334_v8 = vpop.f32.mrf.mxu1  ;;  %5105 = vmatprep.subr.bf16.mxu0 %v6808_v4 }
 0x1c4   :  { %v5964_v8 = vld [vmem:[%s10113_s4 + $0x1c] ss:$12 sps:$4 sm:$0xff]  }
 0x1c5   :  { %v7418_v13 = vpop.f32.mrf.mxu1 }
 0x1c6   :  { %5106 = vmatpush3.bf16.msra.mxu0 %v6667_v3  ;;  %v5894_v3 = vld [vmem:[%s10116_s7 + $0x28] sm:$0xff]  }
 0x1c7   :  { %v1339_v9 = vpop.f32.mrf.mxu1  ;;  %5107 = vmatprep.subr.bf16.mxu0 %v6829_v18  ;;  %v5898_v18 = vld [vmem:[%s10116_s7 + $0x30] sm:$0xff]  }
 0x1c9   :  { %v7428_v20 = vpop.f32.mrf.mxu1  ;;  %5501 = vmatmul.mubr.msk.bf16.gmra.mxu0 %vm1595_vm1, %v5889_v58  ;;  %v5919_v58 = vld [vmem:[%s10117_s8 + $0x4] ss:$8 sps:$4 sm:$0xff]  }
 0x1ca   :  { %5504 = vmatprep.mubr.msk.bf16.mxu0 %vm1595_vm1, %v5893_v1  ;;  %5108 = vmatpush3.bf16.msra.mxu0 %v6688_v35  ;;  %v7449_v35 = vpack.c.bf16 %v7428_v20, %v7418_v13 }
 0x1cb   :  { %v1342_v4 = vpop.f32.mrf.mxu1  ;;  %5109 = vmatprep.subr.bf16.mxu0 %v6842_v23 }
 0x1cd   :  { %v7434_v40 = vpop.f32.mrf.mxu1 }
 0x1ce   :  { %5110 = vmatpush3.bf16.msra.mxu0 %v6702_v37 }
 0x1cf   :  { %v1347_v22 = vpop.f32.mrf.mxu1  ;;  %5111 = vmatprep.subr.bf16.mxu0 %v6864_v33  ;;  %v5899_v33 = vld [vmem:[%s10116_s7 + $0x38] sm:$0xff]  }
 0x1d1   :  { %v7444_v44 = vpop.f32.mrf.mxu1  ;;  %5505 = vmatmul.mubr.msk.bf16.gmra.mxu0 %vm1595_vm1, %v5894_v3 }
 0x1d2   :  { %v7453_v23 = vpack.c.bf16 %v7444_v44, %v7434_v40  ;;  %5508 = vmatprep.mubr.msk.bf16.mxu0 %vm1595_vm1, %v5898_v18  ;;  %5112 = vmatpush3.bf16.msra.mxu0 %v6723_v45  ;;  %v5903_v45 = vld [vmem:[%s10116_s7 + $0x40] sm:$0xff]  }
 0x1d3   :  { %5113 = vmatprep.subr.bf16.mxu0 %v6874_v17  ;;  %v1350_v37 = vpop.f32.mrf.mxu1  ;;  %v7477_v17 = vpack.c.bf16 %v7401_v31, %v7399_v2  ;;  %v5965_v18 = vld [vmem:[%s10113_s4 + $0x18] ss:$12 sps:$4 sm:$0xff]  }
 0x1d4   :  { %5150 = vmatprep.subr.bf16.mxu1 %v7453_v23  ;;  %v5917_v37 = vld [vmem:[%s10117_s8] ss:$8 sps:$4 sm:$0xff]  }
 0x1d5   :  { %5151 = vmatpush3.bf16.msra.mxu1 %v7363_v56 }
 0x1d6   :  { %5152 = vmatprep.subr.bf16.mxu1 %v7449_v35  ;;  %5114 = vmatpush3.bf16.msra.mxu0 %v6738_v47  ;;  %v5904_v47 = vld [vmem:[%s10116_s7 + $0x48] sm:$0xff]  }
 0x1d7   :  { %5115 = vmatprep.subr.bf16.mxu0 %v6902_v48  ;;  %v7489_v48 = vpack.c.bf16 %v7397_v11, %v7395_v36 }
 0x1d9   :  { %5509 = vmatmul.mubr.msk.bf16.gmra.mxu0 %vm1595_vm1, %v5899_v33  ;;  %5153 = vmatpush3.bf16.msra.mxu1 %v7348_v30  ;;  %v5966_v33 = vld [vmem:[%s10113_s4 + $0x34] ss:$12 sps:$4 sm:$0xff]  }
 0x1da   :  { %5154 = vmatprep.subr.bf16.mxu1 %v7465_v25  ;;  %5512 = vmatprep.mubr.msk.bf16.mxu0 %vm1595_vm1, %v5903_v45 }
 0x1db   :  { %5116 = vmatpush3.bf16.msra.mxu0 %v6759_v52  ;;  %v7500_v52 = vpack.c.bf16 %v7393_v50, %v7391_v24 }
 0x1dc   :  { %5117 = vmatprep.subr.bf16.mxu0 %v6906_v39  ;;  %v5909_v39 = vld [vmem:[%s10116_s7 + $0x58] sm:$0xff]  }
 0x1dd   :  { %5155 = vmatpush3.bf16.msra.mxu1 %v7330_v55 }
 0x1de   :  { %5156 = vmatprep.subr.bf16.mxu1 %v7477_v17 }
 0x1df   :  { %5118 = vmatpush3.bf16.msra.mxu0 %v6772_v53  ;;  %v5913_v53 = vld [vmem:[%s10116_s7 + $0x60] sm:$0xff]  }
 0x1e1   :  { %5513 = vmatmul.mubr.msk.bf16.gmra.mxu0 %vm1595_vm1, %v5904_v47  ;;  %5157 = vmatpush3.bf16.msra.mxu1 %v7312_v32 }
 0x1e2   :  { %5158 = vmatprep.subr.bf16.mxu1 %v7489_v48  ;;  %5516 = vmatprep.mubr.msk.bf16.mxu0 %vm1595_vm1, %v5908_v46 }
 0x1e3   :  { %v7531_v26 = vpop.f32.mrf.mxu1 }
 0x1e5   :  { %5159 = vmatpush3.bf16.msra.mxu1 %v7294_v14  ;;  %v1355_v1 = vpop.f32.mrf.mxu1 }
 0x1e6   :  { %5160 = vmatprep.subr.bf16.mxu1 %v7500_v52  ;;  %v5969_v1 = vld [vmem:[%s10113_s4 + $0x48] ss:$12 sps:$4 sm:$0xff]  }
 0x1e7   :  { %v7544_v9 = vpop.f32.mrf.mxu1 }
 0x1e8   :  { %v7550_v4 = vpack.c.bf16 %v7544_v9, %v7531_v26 }
 0x1e9   :  { %5517 = vmatmul.mubr.msk.bf16.gmra.mxu0 %vm1595_vm1, %v5909_v39  ;;  %5161 = vmatpush3.bf16.msra.mxu1 %v7273_v54  ;;  %v1358_v3 = vpop.f32.mrf.mxu1 }
 0x1ea   :  { %5162 = vmatprep.subr.bf16.mxu1 %v7389_v7  ;;  %5520 = vmatprep.mubr.msk.bf16.mxu0 %vm1595_vm1, %v5913_v53  ;;  %v5967_v53 = vld [vmem:[%s10113_s4 + $0x30] ss:$12 sps:$4 sm:$0xff]  }
 0x1ed   :  { %5163 = vmatpush3.bf16.msra.mxu1 %v7249_v60 }
 0x1ee   :  { %5164 = vmatprep.subr.bf16.mxu1 %v7381_v51 }
 0x1f1   :  { %5521 = vmatmul.mubr.msk.bf16.gmra.mxu0 %vm1595_vm1, %v5914_v59  ;;  %5165 = vmatpush3.bf16.msra.mxu1 %v7225_v34 }
 0x1f2   :  { %2796 = vmatprep.subr.bf16.mxu1 %v10339_v5  ;;  %5524 = vmatprep.mubr.msk.bf16.mxu0 %vm1595_vm1, %v5915_v61  ;;  %v5968_v61 = vld [vmem:[%s10113_s4 + $0x4c] ss:$12 sps:$4 sm:$0xff]  }
 0x1f4   :  { %2507 = vmatmul.mubr.bf16.vlgmr.msra.gmra.mxu1 %v5963_v63 }
 0x1f5   :  { %2797 = vmatpush1.bf16.msra.mxu1 %v7210_v57  ;;  %2514 = vmatprep.mubr.bf16.mxu1 %v5964_v8 }
 0x1f6   :  { %2798 = vmatprep.subr.bf16.mxu1 %v10339_v5 }
 0x1f7   :  { %v7556_v22 = vpop.f32.mrf.mxu1 }
 0x1f9   :  { %5525 = vmatmul.mubr.msk.bf16.gmra.mxu0 %vm1595_vm1, %v5916_v41  ;;  %2799 = vmatpush1.bf16.msra.mxu1 %v7186_v62  ;;  %v1363_v45 = vpop.f32.mrf.mxu1 }
 0x1fa   :  { %2800 = vmatprep.subr.bf16.mxu1 %v10339_v5  ;;  %1847 = vmatprep.mubr.bf16.mxu0 %v5919_v58 }
 0x1fb   :  { %v7566_v47 = vpop.f32.mrf.mxu1 }
 0x1fc   :  { %2515 = vmatmul.mubr.bf16.gmra.mxu1 %v5965_v18  ;;  %v7571_v46 = vpack.c.bf16 %v7566_v47, %v7556_v22  ;;  %v5970_v18 = vld [vmem:[%s10113_s4 + $0x64] ss:$12 sps:$4 sm:$0xff]  }
 0x1fd   :  { %2801 = vmatpush1.bf16.msra.mxu1 %v7164_v27  ;;  %2522 = vmatprep.mubr.bf16.mxu1 %v5966_v33  ;;  %v1366_v39 = vpop.f32.mrf.mxu1 }
 0x1fe   :  { %2802 = vmatprep.subr.bf16.mxu1 %v10339_v5 }
 0x1ff   :  { %v7577_v59 = vpop.f32.mrf.mxu1 }
 0x201   :  { %1848 = vmatmul.mubr.bf16.vlgmr.msra.gmra.mxu0 %v5917_v37  ;;  %2803 = vmatpush1.bf16.msra.mxu1 %v7141_v16  ;;  %v1371_v63 = vpop.f32.mrf.mxu1 }
 0x202   :  { %2804 = vmatprep.subr.bf16.mxu1 %v10339_v5  ;;  %v5972_v63 = vld [vmem:[%s10113_s4 + $0x7c] ss:$12 sps:$4 sm:$0xff]  }
 0x203   :  { %v7584_v41 = vpop.f32.mrf.mxu1 }
 0x204   :  { %2523 = vmatmul.mubr.bf16.gmra.mxu1 %v5967_v53  ;;  %v7589_v8 = vpack.c.bf16 %v7584_v41, %v7577_v59  ;;  %v5971_v53 = vld [vmem:[%s10113_s4 + $0x60] ss:$12 sps:$4 sm:$0xff]  }
 0x205   :  { %2805 = vmatpush1.bf16.msra.mxu1 %v7116_v6  ;;  %2530 = vmatprep.mubr.bf16.mxu1 %v5968_v61  ;;  %v1374_v58 = vpop.f32.mrf.mxu1 }
 0x206   :  { %2806 = vmatprep.subr.bf16.mxu1 %v10339_v5 }
 0x207   :  { %v7595_v3 = vpop.f32.mrf.mxu1 }
 0x209   :  { %2807 = vmatpush1.bf16.msra.mxu1 %v7098_v0  ;;  %v1379_v37 = vpop.f32.mrf.mxu1 }
 0x20a   :  { %2808 = vmatprep.subr.bf16.mxu1 %v10339_v5 }
 0x20b   :  { %v7602_v33 = vpop.f32.mrf.mxu1 }
 0x20c   :  { %2531 = vmatmul.mubr.bf16.gmra.mxu1 %v5969_v1  ;;  %v7607_v45 = vpack.c.bf16 %v7602_v33, %v7595_v3 }
 0x20d   :  { %2809 = vmatpush1.bf16.msra.mxu1 %v7088_v38  ;;  %2538 = vmatprep.mubr.bf16.mxu1 %v5970_v18  ;;  %v1382_v39 = vpop.f32.mrf.mxu1  ;;  %v5975_v38 = vld [vmem:[%s10113_s4 + $0x90] ss:$12 sps:$4 sm:$0xff]  }
 0x20e   :  { %2810 = vmatprep.subr.bf16.mxu1 %v10339_v5  ;;  %v5973_v39 = vld [vmem:[%s10113_s4 + $0x78] ss:$12 sps:$4 sm:$0xff]  }
 0x20f   :  { %v7613_v61 = vpop.f32.mrf.mxu1 }
 0x211   :  { %2811 = vmatpush1.bf16.msra.mxu1 %v7080_v15  ;;  %v1387_v58 = vpop.f32.mrf.mxu1 }
 0x212   :  { %2812 = vmatprep.subr.bf16.mxu1 %v10339_v5 }
 0x213   :  { %v7620_v1 = vpop.f32.mrf.mxu1 }
 0x214   :  { %2539 = vmatmul.mubr.bf16.gmra.mxu1 %v5971_v53  ;;  %v7625_v18 = vpack.c.bf16 %v7620_v1, %v7613_v61 }
 0x215   :  { %2813 = vmatpush2.bf16.msra.mxu1 %v7375_v49  ;;  %2546 = vmatprep.mubr.bf16.mxu1 %v5972_v63  ;;  %v1390_v37 = vpop.f32.mrf.mxu1  ;;  %v5974_v63 = vld [vmem:[%s10113_s4 + $0x94] ss:$12 sps:$4 sm:$0xff]  }
 0x216   :  { %2814 = vmatprep.subr.bf16.mxu1 %v10339_v5 }
 0x217   :  { %v7631_v53 = vpop.f32.mrf.mxu1 }
 0x219   :  { %2815 = vmatpush2.bf16.msra.mxu1 %v7357_v28  ;;  %v1395_v58 = vpop.f32.mrf.mxu1 }
 0x21a   :  { %2816 = vmatprep.subr.bf16.mxu1 %v10339_v5  ;;  %v5976_v58 = vld [vmem:[%s10113_s4 + $0xac] ss:$12 sps:$4 sm:$0xff]  }
 0x21b   :  { %v7638_v15 = vpop.f32.mrf.mxu1 }
 0x21c   :  { %2547 = vmatmul.mubr.bf16.gmra.mxu1 %v5973_v39  ;;  %v7643_v37 = vpack.c.bf16 %v7638_v15, %v7631_v53 }
 0x21d   :  { %2817 = vmatpush2.bf16.msra.mxu1 %v7339_v12  ;;  %2554 = vmatprep.mubr.bf16.mxu1 %v5974_v63  ;;  %v1398_v39 = vpop.f32.mrf.mxu1 }
 0x21e   :  { %2818 = vmatprep.subr.bf16.mxu1 %v10339_v5 }
 0x21f   :  { %v7649_v63 = vpop.f32.mrf.mxu1 }
 0x220   :  { %10340 = vst [vmem:[#allocation80_spill] sm:$0xff] %v7649_v63 }
 0x221   :  { %2819 = vmatpush2.bf16.msra.mxu1 %v7321_v29  ;;  %v1403_v0 = vpop.f32.mrf.mxu1 }
 0x222   :  { %2820 = vmatprep.subr.bf16.mxu1 %v10339_v5  ;;  %v5978_v0 = vld [vmem:[%s10113_s4 + $0xc4] ss:$12 sps:$4 sm:$0xff]  }
 0x223   :  { %v7656_v6 = vpop.f32.mrf.mxu1 }
 0x224   :  { %2555 = vmatmul.mubr.bf16.gmra.mxu1 %v5975_v38  ;;  %10341 = vst [vmem:[#allocation81_spill] sm:$0xff] %v7656_v6  ;;  %v7661_v39 = vpack.c.bf16 %v7656_v6, %v7649_v63 }
 0x225   :  { %2821 = vmatpush2.bf16.msra.mxu1 %v7303_v42  ;;  %2562 = vmatprep.mubr.bf16.mxu1 %v5976_v58  ;;  %v1406_v38 = vpop.f32.mrf.mxu1  ;;  %v5977_v42 = vld [vmem:[%s10113_s4 + $0xa8] ss:$12 sps:$4 sm:$0xff]  }
 0x226   :  { %2822 = vmatprep.subr.bf16.mxu1 %v10339_v5  ;;  %v10344_v38 = vld [vmem:[#allocation41_spill] sm:$0xff] }
 0x227   :  { %v7667_v58 = vpop.f32.mrf.mxu1 }
 0x228   :  { %10342 = vst [vmem:[#allocation82_spill] sm:$0xff] %v7667_v58 }
 0x229   :  { %2823 = vmatpush2.bf16.msra.mxu1 %v7285_v19  ;;  %v1411_v19 = vpop.f32.mrf.mxu1 }
 0x22a   :  { %2824 = vmatprep.subr.bf16.mxu1 %v10339_v5  ;;  %v5981_v19 = vld [vmem:[%s10113_s4 + $0xd8] ss:$12 sps:$4 sm:$0xff]  }
 0x22b   :  { %v7674_v16 = vpop.f32.mrf.mxu1 }
 0x22c   :  { %2563 = vmatmul.mubr.bf16.gmra.mxu1 %v5977_v42  ;;  %10343 = vst [vmem:[#allocation83_spill] sm:$0xff] %v7674_v16  ;;  %v7679_v29 = vpack.c.bf16 %v7674_v16, %v7667_v58 }
 0x22d   :  { %2825 = vmatpush2.bf16.msra.mxu1 %v7258_v10  ;;  %2570 = vmatprep.mubr.bf16.mxu1 %v5978_v0  ;;  %v1414_v42 = vpop.f32.mrf.mxu1  ;;  %v5979_v10 = vld [vmem:[%s10113_s4 + $0xc0] ss:$12 sps:$4 sm:$0xff]   ;;  %v5980_v0 = vld [vmem:[%s10113_s4 + $0xdc] ss:$12 sps:$4 sm:$0xff]  }
 0x22e   :  { %2826 = vmatprep.subr.bf16.mxu1 %v10339_v5  ;;  %v5982_v5 = vld [vmem:[%s10113_s4 + $0xf4] ss:$12 sps:$4 sm:$0xff]   ;;  %v5983_v42 = vld [vmem:[%s10113_s4 + $0xf0] ss:$12 sps:$4 sm:$0xff]  }
 0x231   :  { %2827 = vmatpush2.bf16.msra.mxu1 %v10344_v38 }
 0x234   :  { %2571 = vmatmul.mubr.bf16.gmra.mxu1 %v5979_v10  ;;  %v5984_v10 = vld [vmem:[%s10113_s4 + $0x10c] ss:$12 sps:$4 sm:$0xff]  }
 0x235   :  { %2578 = vmatprep.mubr.bf16.mxu1 %v5980_v0  ;;  %v5985_v0 = vld [vmem:[%s10113_s4 + $0x108] ss:$12 sps:$4 sm:$0xff]  }
 0x23c   :  { %2579 = vmatmul.mubr.bf16.gmra.mxu1 %v5981_v19  ;;  %v5986_v19 = vld [vmem:[%s10113_s4 + $0x124] ss:$12 sps:$4 sm:$0xff]  }
 0x23d   :  { %2586 = vmatprep.mubr.bf16.mxu1 %v5982_v5  ;;  %v5920_v5 = vld [vmem:[%s10118_s9] sm:$0xff]  }
 0x23e   :  { %5530 = vmatprep.mubr.msk.bf16.mxu0 %vm1595_vm1, %v5920_v5  ;;  %v5991_v5 = vld [vmem:[%s10113_s4 + $0x150] ss:$12 sps:$4 sm:$0xff]  }
 0x244   :  { %2587 = vmatmul.mubr.bf16.gmra.mxu1 %v5983_v42  ;;  %v5987_v42 = vld [vmem:[%s10113_s4 + $0x120] ss:$12 sps:$4 sm:$0xff]  }
 0x245   :  { %2594 = vmatprep.mubr.bf16.mxu1 %v5984_v10  ;;  %v5988_v10 = vld [vmem:[%s10113_s4 + $0x13c] ss:$12 sps:$4 sm:$0xff]  }
 0x24c   :  { %2595 = vmatmul.mubr.bf16.gmra.mxu1 %v5985_v0  ;;  %v5989_v0 = vld [vmem:[%s10113_s4 + $0x138] ss:$12 sps:$4 sm:$0xff]  }
 0x24d   :  { %2602 = vmatprep.mubr.bf16.mxu1 %v5986_v19  ;;  %v5990_v19 = vld [vmem:[%s10113_s4 + $0x154] ss:$12 sps:$4 sm:$0xff]  }
 0x254   :  { %2603 = vmatmul.mubr.bf16.gmra.mxu1 %v5987_v42  ;;  %v5992_v42 = vld [vmem:[%s10113_s4 + $0x16c] ss:$12 sps:$4 sm:$0xff]  }
 0x255   :  { %2610 = vmatprep.mubr.bf16.mxu1 %v5988_v10  ;;  %v5993_v10 = vld [vmem:[%s10113_s4 + $0x168] ss:$12 sps:$4 sm:$0xff]  }
 0x25c   :  { %2611 = vmatmul.mubr.bf16.gmra.mxu1 %v5989_v0  ;;  %v5994_v0 = vld [vmem:[%s10114_s5 + $0x4] ss:$8 sps:$4 sm:$0xff]  }
 0x25d   :  { %2618 = vmatprep.mubr.bf16.mxu1 %v5990_v19  ;;  %v5995_v19 = vld [vmem:[%s10114_s5] ss:$8 sps:$4 sm:$0xff]  }
 0x264   :  { %2619 = vmatmul.mubr.bf16.gmra.mxu1 %v5991_v5  ;;  %v5996_v5 = vld [vmem:[%s10114_s5 + $0x14] ss:$8 sps:$4 sm:$0xff]  }
 0x265   :  { %2626 = vmatprep.mubr.bf16.mxu1 %v5992_v42  ;;  %v5997_v42 = vld [vmem:[%s10114_s5 + $0x10] ss:$8 sps:$4 sm:$0xff]  }
 0x26c   :  { %2627 = vmatmul.mubr.bf16.gmra.mxu1 %v5993_v10  ;;  %v5998_v10 = vld [vmem:[%s10114_s5 + $0x24] ss:$8 sps:$4 sm:$0xff]  }
 0x26d   :  { %2828 = vmatprep.mubr.bf16.mxu1 %v5994_v0 }
 0x274   :  { %2829 = vmatmul.mubr.bf16.vlgmr.msra.gmra.mxu1 %v5995_v19  ;;  %v5999_v19 = vld [vmem:[%s10114_s5 + $0x20] ss:$8 sps:$4 sm:$0xff]  }
 0x275   :  { %2836 = vmatprep.mubr.bf16.mxu1 %v5996_v5 }
 0x27c   :  { %2837 = vmatmul.mubr.bf16.gmra.mxu1 %v5997_v42  ;;  %v6000_v42 = vld [vmem:[%s10114_s5 + $0x34] ss:$8 sps:$4 sm:$0xff]  }
 0x27d   :  { %2844 = vmatprep.mubr.bf16.mxu1 %v5998_v10 }
 0x281   :  { %v7745_v0 = vpop.f32.mrf.mxu0 }
 0x282   :  { %10345 = vst [vmem:[#allocation84_spill] sm:$0xff] %v7745_v0 }
 0x283   :  { %v7747_v38 = vpop.f32.mrf.mxu0 }
 0x284   :  { %10346 = vst [vmem:[#allocation85_spill] sm:$0xff] %v7747_v38  ;;  %2845 = vmatmul.mubr.bf16.gmra.mxu1 %v5999_v19  ;;  %v6001_v38 = vld [vmem:[%s10114_s5 + $0x30] ss:$8 sps:$4 sm:$0xff]   ;;  %v6002_v19 = vld [vmem:[%s10114_s5 + $0x44] ss:$8 sps:$4 sm:$0xff]  }
 0x285   :  { %v7752_v5 = vpop.f32.mrf.mxu0  ;;  %2852 = vmatprep.mubr.bf16.mxu1 %v6000_v42 }
 0x286   :  { %10347 = vst [vmem:[#allocation86_spill] sm:$0xff] %v7752_v5 }
 0x287   :  { %v7757_v27 = vpop.f32.mrf.mxu0 }
 0x288   :  { %10348 = vst [vmem:[#allocation87_spill] sm:$0xff] %v7757_v27 }
 0x289   :  { %v7759_v12 = vpop.f32.mrf.mxu0 }
 0x28a   :  { %10349 = vst [vmem:[#allocation88_spill] sm:$0xff] %v7759_v12 }
 0x28b   :  { %v7761_v10 = vpop.f32.mrf.mxu0 }
 0x28c   :  { %10350 = vst [vmem:[#allocation89_spill] sm:$0xff] %v7761_v10  ;;  %2853 = vmatmul.mubr.bf16.gmra.mxu1 %v6001_v38  ;;  %v6003_v10 = vld [vmem:[%s10114_s5 + $0x40] ss:$8 sps:$4 sm:$0xff]   ;;  %v6004_v38 = vld [vmem:[%s10114_s5 + $0x54] ss:$8 sps:$4 sm:$0xff]  }
 0x28d   :  { %v7766_v0 = vpop.f32.mrf.mxu0  ;;  %2860 = vmatprep.mubr.bf16.mxu1 %v6002_v19 }
 0x28e   :  { %10351 = vst [vmem:[#allocation90_spill] sm:$0xff] %v7766_v0 }
 0x28f   :  { %v7771_v5 = vpop.f32.mrf.mxu0 }
 0x290   :  { %10352 = vst [vmem:[#allocation91_spill] sm:$0xff] %v7771_v5 }
 0x291   :  { %v7773_v42 = vpop.f32.mrf.mxu0 }
 0x292   :  { %10353 = vst [vmem:[#allocation92_spill] sm:$0xff] %v7773_v42 }
 0x293   :  { %v7775_v27 = vpop.f32.mrf.mxu0 }
 0x294   :  { %10354 = vst [vmem:[#allocation93_spill] sm:$0xff] %v7775_v27  ;;  %2861 = vmatmul.mubr.bf16.gmra.mxu1 %v6003_v10  ;;  %v6005_v27 = vld [vmem:[%s10114_s5 + $0x50] ss:$8 sps:$4 sm:$0xff]   ;;  %v6006_v10 = vld [vmem:[%s10114_s5 + $0x64] ss:$8 sps:$4 sm:$0xff]  }
 0x295   :  { %v7780_v12 = vpop.f32.mrf.mxu0  ;;  %2868 = vmatprep.mubr.bf16.mxu1 %v6004_v38 }
 0x296   :  { %10355 = vst [vmem:[#allocation94_spill] sm:$0xff] %v7780_v12 }
 0x297   :  { %v7785_v0 = vpop.f32.mrf.mxu0 }
 0x298   :  { %10356 = vst [vmem:[#allocation95_spill] sm:$0xff] %v7785_v0 }
 0x299   :  { %v7787_v19 = vpop.f32.mrf.mxu0 }
 0x29a   :  { %10357 = vst [vmem:[#allocation96_spill] sm:$0xff] %v7787_v19 }
 0x29b   :  { %v7789_v5 = vpop.f32.mrf.mxu0 }
 0x29c   :  { %10358 = vst [vmem:[#allocation97_spill] sm:$0xff] %v7789_v5  ;;  %2869 = vmatmul.mubr.bf16.gmra.mxu1 %v6005_v27  ;;  %v6007_v5 = vld [vmem:[%s10114_s5 + $0x60] ss:$8 sps:$4 sm:$0xff]   ;;  %v6008_v27 = vld [vmem:[%s10114_s5 + $0x74] ss:$8 sps:$4 sm:$0xff]  }
 0x29d   :  { %v7794_v42 = vpop.f32.mrf.mxu0  ;;  %2876 = vmatprep.mubr.bf16.mxu1 %v6006_v10 }
 0x29e   :  { %10359 = vst [vmem:[#allocation98_spill] sm:$0xff] %v7794_v42 }
 0x29f   :  { %v7799_v12 = vpop.f32.mrf.mxu0 }
 0x2a0   :  { %10360 = vst [vmem:[#allocation99_spill] sm:$0xff] %v7799_v12 }
 0x2a1   :  { %v7801_v38 = vpop.f32.mrf.mxu0 }
 0x2a2   :  { %10361 = vst [vmem:[#allocation100_spill] sm:$0xff] %v7801_v38 }
 0x2a3   :  { %v7803_v0 = vpop.f32.mrf.mxu0 }
 0x2a4   :  { %10362 = vst [vmem:[#allocation101_spill] sm:$0xff] %v7803_v0  ;;  %2877 = vmatmul.mubr.bf16.gmra.mxu1 %v6007_v5  ;;  %v6009_v0 = vld [vmem:[%s10114_s5 + $0x70] ss:$8 sps:$4 sm:$0xff]   ;;  %v6010_v5 = vld [vmem:[%s10114_s5 + $0x84] ss:$8 sps:$4 sm:$0xff]  }
 0x2a5   :  { %v7808_v19 = vpop.f32.mrf.mxu0  ;;  %2884 = vmatprep.mubr.bf16.mxu1 %v6008_v27 }
 0x2a6   :  { %10363 = vst [vmem:[#allocation102_spill] sm:$0xff] %v7808_v19 }
 0x2a7   :  { %v7813_v42 = vpop.f32.mrf.mxu0 }
 0x2a8   :  { %10364 = vst [vmem:[#allocation103_spill] sm:$0xff] %v7813_v42 }
 0x2a9   :  { %v7815_v10 = vpop.f32.mrf.mxu0 }
 0x2aa   :  { %10365 = vst [vmem:[#allocation104_spill] sm:$0xff] %v7815_v10 }
 0x2ab   :  { %v7817_v12 = vpop.f32.mrf.mxu0 }
 0x2ac   :  { %10366 = vst [vmem:[#allocation105_spill] sm:$0xff] %v7817_v12  ;;  %2885 = vmatmul.mubr.bf16.gmra.mxu1 %v6009_v0  ;;  %v6011_v12 = vld [vmem:[%s10114_s5 + $0x80] ss:$8 sps:$4 sm:$0xff]  }
 0x2ad   :  { %v7822_v38 = vpop.f32.mrf.mxu0  ;;  %2892 = vmatprep.mubr.bf16.mxu1 %v6010_v5 }
 0x2ae   :  { %10367 = vst [vmem:[#allocation106_spill] sm:$0xff] %v7822_v38  ;;  %v6012_v38 = vld [vmem:[%s10114_s5 + $0x94] ss:$8 sps:$4 sm:$0xff]  }
 0x2af   :  { %v7827_v19 = vpop.f32.mrf.mxu0 }
 0x2b0   :  { %10368 = vst [vmem:[#allocation107_spill] sm:$0xff] %v7827_v19 }
 0x2b1   :  { %v7829_v27 = vpop.f32.mrf.mxu0 }
 0x2b2   :  { %10369 = vst [vmem:[#allocation108_spill] sm:$0xff] %v7829_v27 }
 0x2b3   :  { %v7831_v42 = vpop.f32.mrf.mxu0 }
 0x2b4   :  { %10370 = vst [vmem:[#allocation109_spill] sm:$0xff] %v7831_v42  ;;  %v5166_v10 = vpop.f32.mrf.mxu1  ;;  %2893 = vmatmul.mubr.bf16.gmra.mxu1 %v6011_v12 }
 0x2b5   :  { %v7836_v0 = vpop.f32.mrf.mxu0  ;;  %2900 = vmatprep.mubr.bf16.mxu1 %v6012_v38 }
 0x2b6   :  { %10371 = vst [vmem:[#allocation110_spill] sm:$0xff] %v7836_v0  ;;  %v5167_v5 = vpop.f32.mrf.mxu1  ;;  %v6013_v0 = vld [vmem:[%s10114_s5 + $0x90] ss:$8 sps:$4 sm:$0xff]  }
 0x2b7   :  { %v7841_v62 = vadd.f32 %v5167_v5, %v5166_v10  ;;  %v7843_v19 = vpop.f32.mrf.mxu0  ;;  %v6014_v10 = vld [vmem:[%s10114_s5 + $0xa4] ss:$8 sps:$4 sm:$0xff]  }
 0x2b8   :  { %10373 = vst [vmem:[#allocation112_spill] sm:$0xff] %v7843_v19  ;;  %v5169_v27 = vpop.f32.mrf.mxu1 }
 0x2b9   :  { %10372 = vst [vmem:[#allocation111_spill] sm:$0xff] %v7841_v62  ;;  %v7845_v42 = vpop.f32.mrf.mxu0 }
 0x2ba   :  { %10374 = vst [vmem:[#allocation113_spill] sm:$0xff] %v7845_v42  ;;  %v5170_v28 = vpop.f32.mrf.mxu1 }
 0x2bb   :  { %v7847_v57 = vadd.f32 %v5170_v28, %v5169_v27  ;;  %v7849_v49 = vpop.f32.mrf.mxu0 }
 0x2bc   :  { %10376 = vst [vmem:[#allocation115_spill] sm:$0xff] %v7849_v49  ;;  %v5172_v12 = vpop.f32.mrf.mxu1  ;;  %2901 = vmatmul.mubr.bf16.gmra.mxu1 %v6013_v0  ;;  %v6015_v0 = vld [vmem:[%s10114_s5 + $0xa0] ss:$8 sps:$4 sm:$0xff]  }
 0x2bd   :  { %10375 = vst [vmem:[#allocation114_spill] sm:$0xff] %v7847_v57  ;;  %v7854_v38 = vpop.f32.mrf.mxu0  ;;  %2908 = vmatprep.mubr.bf16.mxu1 %v6014_v10 }
 0x2be   :  { %10377 = vst [vmem:[#allocation116_spill] sm:$0xff] %v7854_v38  ;;  %v5173_v5 = vpop.f32.mrf.mxu1 }
 0x2bf   :  { %v7859_v42 = vadd.f32 %v5173_v5, %v5172_v12  ;;  %v7861_v28 = vpop.f32.mrf.mxu0  ;;  %v6016_v12 = vld [vmem:[%s10114_s5 + $0xb4] ss:$8 sps:$4 sm:$0xff]  }
 0x2c0   :  { %10379 = vst [vmem:[#allocation118_spill] sm:$0xff] %v7861_v28  ;;  %v5175_v27 = vpop.f32.mrf.mxu1 }
 0x2c1   :  { %10378 = vst [vmem:[#allocation117_spill] sm:$0xff] %v7859_v42  ;;  %v5119_v49 = vpop.f32.mrf.mxu0 }
 0x2c2   :  { %v5176_v19 = vpop.f32.mrf.mxu1 }
 0x2c3   :  { %v7863_v57 = vadd.f32 %v5176_v19, %v5175_v27  ;;  %v5120_v62 = vpop.f32.mrf.mxu0 }
 0x2c4   :  { %v5178_v16 = vpop.f32.mrf.mxu1  ;;  %2909 = vmatmul.mubr.bf16.gmra.mxu1 %v6015_v0  ;;  %v5121_v42 = vadd.f32 %v5120_v62, %v5119_v49  ;;  %v6017_v0 = vld [vmem:[%s10114_s5 + $0xb0] ss:$8 sps:$4 sm:$0xff]   ;;  %v6018_v62 = vld [vmem:[%s10114_s5 + $0xc4] ss:$8 sps:$4 sm:$0xff]  }
 0x2c5   :  { %10380 = vst [vmem:[#allocation119_spill] sm:$0xff] %v7863_v57  ;;  %v5122_v38 = vpop.f32.mrf.mxu0  ;;  %2916 = vmatprep.mubr.bf16.mxu1 %v6016_v12  ;;  %v5922_v49 = vld [vmem:[%s10118_s9 + $0x10] sm:$0xff]  }
 0x2c6   :  { %v5179_v10 = vpop.f32.mrf.mxu1 }
 0x2c7   :  { %v7871_v5 = vadd.f32 %v5179_v10, %v5178_v16  ;;  %v5123_v28 = vpop.f32.mrf.mxu0  ;;  %v5921_v16 = vld [vmem:[%s10118_s9 + $0x8] sm:$0xff]  }
 0x2c8   :  { %v5124_v19 = vadd.f32 %v5123_v28, %v5122_v38  ;;  %v5181_v27 = vpop.f32.mrf.mxu1  ;;  %v6019_v10 = vld [vmem:[%s10114_s5 + $0xc0] ss:$8 sps:$4 sm:$0xff]  }
 0x2ca   :  { %v1856_v57 = vpack.c.bf16 %v5124_v19, %v5121_v42  ;;  %v5182_v58 = vpop.f32.mrf.mxu1  ;;  %v6020_v19 = vld [vmem:[%s10114_s5 + $0xd4] ss:$8 sps:$4 sm:$0xff]  }
 0x2cb   :  { %v7873_v6 = vadd.f32 %v5182_v58, %v5181_v27  ;;  %v5924_v27 = vld [vmem:[%s10118_s9 + $0x20] sm:$0xff]  }
 0x2cc   :  { %5528 = vmatprep.subr.bf16.mxu0 %v1856_v57  ;;  %v5184_v63 = vpop.f32.mrf.mxu1  ;;  %2917 = vmatmul.mubr.bf16.gmra.mxu1 %v6017_v0 }
 0x2cd   :  { %5529 = vmatpush3.bf16.msra.mxu0 %v1856_v57  ;;  %2924 = vmatprep.mubr.bf16.mxu1 %v6018_v62 }
 0x2ce   :  { %v5185_v58 = vpop.f32.mrf.mxu1  ;;  %5578 = vmatprep.subr.bf16.mxu0 %v7679_v29 }
 0x2cf   :  { %v7888_v42 = vadd.f32 %v5185_v58, %v5184_v63  ;;  %v5923_v63 = vld [vmem:[%s10118_s9 + $0x18] sm:$0xff]  }
 0x2d0   :  { %5531 = vmatmul.mubr.msk.bf16.vlgmr.msra.gmra.mxu0 %vm1595_vm1, %v5921_v16  ;;  %v5187_v38 = vpop.f32.mrf.mxu1 }
 0x2d1   :  { %5579 = vmatpush3.bf16.msra.mxu0 %v7679_v29  ;;  %5534 = vmatprep.mubr.msk.bf16.mxu0 %vm1595_vm1, %v5922_v49 }
 0x2d2   :  { %v5188_v57 = vpop.f32.mrf.mxu1  ;;  %5580 = vmatprep.subr.bf16.mxu0 %v7661_v39 }
 0x2d3   :  { %v7894_v28 = vadd.f32 %v5188_v57, %v5187_v38  ;;  %v6021_v57 = vld [vmem:[%s10114_s5 + $0xd0] ss:$8 sps:$4 sm:$0xff]  }
 0x2d4   :  { %v5190_v12 = vpop.f32.mrf.mxu1  ;;  %2925 = vmatmul.mubr.bf16.gmra.mxu1 %v6019_v10  ;;  %v6022_v10 = vld [vmem:[%s10114_s5 + $0xe4] ss:$8 sps:$4 sm:$0xff]  }
 0x2d5   :  { %5581 = vmatpush3.bf16.msra.mxu0 %v7661_v39  ;;  %2932 = vmatprep.mubr.bf16.mxu1 %v6020_v19 }
 0x2d6   :  { %v5191_v0 = vpop.f32.mrf.mxu1  ;;  %5582 = vmatprep.subr.bf16.mxu0 %v7643_v37 }
 0x2d7   :  { %v7910_v16 = vadd.f32 %v5191_v0, %v5190_v12  ;;  %v5925_v12 = vld [vmem:[%s10118_s9 + $0x28] sm:$0xff]  }
 0x2d8   :  { %5535 = vmatmul.mubr.msk.bf16.gmra.mxu0 %vm1595_vm1, %v5923_v63  ;;  %v5193_v62 = vpop.f32.mrf.mxu1  ;;  %v5926_v63 = vld [vmem:[%s10118_s9 + $0x30] sm:$0xff]  }
 0x2d9   :  { %5583 = vmatpush3.bf16.msra.mxu0 %v7643_v37  ;;  %5538 = vmatprep.mubr.msk.bf16.mxu0 %vm1595_vm1, %v5924_v27 }
 0x2da   :  { %v5194_v49 = vpop.f32.mrf.mxu1  ;;  %5584 = vmatprep.subr.bf16.mxu0 %v7625_v18 }
 0x2db   :  { %v7916_v58 = vadd.f32 %v5194_v49, %v5193_v62 }
 0x2dc   :  { %v5196_v38 = vpop.f32.mrf.mxu1  ;;  %2933 = vmatmul.mubr.bf16.gmra.mxu1 %v6021_v57 }
 0x2dd   :  { %10381 = vst [vmem:[#allocation120_spill] sm:$0xff] %v7916_v58  ;;  %5585 = vmatpush3.bf16.msra.mxu0 %v7625_v18  ;;  %2940 = vmatprep.mubr.bf16.mxu1 %v6022_v10  ;;  %v6023_v10 = vld [vmem:[%s10114_s5 + $0xe0] ss:$8 sps:$4 sm:$0xff]  }
 0x2de   :  { %v5197_v19 = vpop.f32.mrf.mxu1  ;;  %5586 = vmatprep.subr.bf16.mxu0 %v7607_v45 }
 0x2df   :  { %v7932_v27 = vadd.f32 %v5197_v19, %v5196_v38  ;;  %v5927_v38 = vld [vmem:[%s10118_s9 + $0x38] sm:$0xff]  }
 0x2e0   :  { %5539 = vmatmul.mubr.msk.bf16.gmra.mxu0 %vm1595_vm1, %v5925_v12  ;;  %v5199_v0 = vpop.f32.mrf.mxu1  ;;  %v6024_v12 = vld [vmem:[%s10114_s5 + $0xf4] ss:$8 sps:$4 sm:$0xff]  }
 0x2e1   :  { %5587 = vmatpush3.bf16.msra.mxu0 %v7607_v45  ;;  %5542 = vmatprep.mubr.msk.bf16.mxu0 %vm1595_vm1, %v5926_v63  ;;  %v5928_v63 = vld [vmem:[%s10118_s9 + $0x40] sm:$0xff]  }
 0x2e2   :  { %v5200_v62 = vpop.f32.mrf.mxu1  ;;  %5588 = vmatprep.subr.bf16.mxu0 %v7589_v8 }
 0x2e3   :  { %v7938_v49 = vadd.f32 %v5200_v62, %v5199_v0 }
 0x2e4   :  { %v5202_v57 = vpop.f32.mrf.mxu1  ;;  %2941 = vmatmul.mubr.bf16.gmra.mxu1 %v6023_v10 }
 0x2e5   :  { %10382 = vst [vmem:[#allocation121_spill] sm:$0xff] %v7938_v49  ;;  %5589 = vmatpush3.bf16.msra.mxu0 %v7589_v8  ;;  %2948 = vmatprep.mubr.bf16.mxu1 %v6024_v12  ;;  %v6025_v49 = vld [vmem:[%s10114_s5 + $0xf0] ss:$8 sps:$4 sm:$0xff]  }
 0x2e6   :  { %v5203_v19 = vpop.f32.mrf.mxu1  ;;  %5590 = vmatprep.subr.bf16.mxu0 %v7571_v46 }
 0x2e7   :  { %v7954_v0 = vadd.f32 %v5203_v19, %v5202_v57  ;;  %v5929_v57 = vld [vmem:[%s10118_s9 + $0x48] sm:$0xff]  }
 0x2e8   :  { %5543 = vmatmul.mubr.msk.bf16.gmra.mxu0 %vm1595_vm1, %v5927_v38  ;;  %v5205_v62 = vpop.f32.mrf.mxu1  ;;  %v6026_v38 = vld [vmem:[%s10114_s5 + $0x104] ss:$8 sps:$4 sm:$0xff]  }
 0x2e9   :  { %10383 = vst [vmem:[#allocation122_spill] sm:$0xff] %v7954_v0  ;;  %5591 = vmatpush3.bf16.msra.mxu0 %v7571_v46  ;;  %5546 = vmatprep.mubr.msk.bf16.mxu0 %vm1595_vm1, %v5928_v63  ;;  %v5930_v63 = vld [vmem:[%s10118_s9 + $0x50] sm:$0xff]  }
 0x2ea   :  { %v5206_v10 = vpop.f32.mrf.mxu1  ;;  %5592 = vmatprep.subr.bf16.mxu0 %v7550_v4 }
 0x2eb   :  { %v7960_v12 = vadd.f32 %v5206_v10, %v5205_v62 }
 0x2ec   :  { %v5208_v58 = vpop.f32.mrf.mxu1  ;;  %2949 = vmatmul.mubr.bf16.gmra.mxu1 %v6025_v49 }
 0x2ed   :  { %10384 = vst [vmem:[#allocation123_spill] sm:$0xff] %v7960_v12  ;;  %5593 = vmatpush3.bf16.msra.mxu0 %v7550_v4  ;;  %2956 = vmatprep.mubr.bf16.mxu1 %v6026_v38  ;;  %v6027_v38 = vld [vmem:[%s10114_s5 + $0x100] ss:$8 sps:$4 sm:$0xff]  }
 0x2ee   :  { %v5209_v19 = vpop.f32.mrf.mxu1  ;;  %5286 = vmatprep.subr.bf16.mxu0 %v7453_v23  ;;  %v5931_v23 = vld [vmem:[%s10118_s9 + $0x58] sm:$0xff]  }
 0x2ef   :  { %v7976_v62 = vadd.f32 %v5209_v19, %v5208_v58  ;;  %v6028_v58 = vld [vmem:[%s10114_s5 + $0x114] ss:$8 sps:$4 sm:$0xff]  }
 0x2f0   :  { %5547 = vmatmul.mubr.msk.bf16.gmra.mxu0 %vm1595_vm1, %v5929_v57  ;;  %v5211_v49 = vpop.f32.mrf.mxu1  ;;  %v5932_v57 = vld [vmem:[%s10118_s9 + $0x60] sm:$0xff]  }
 0x2f1   :  { %10385 = vst [vmem:[#allocation124_spill] sm:$0xff] %v7976_v62  ;;  %5550 = vmatprep.mubr.msk.bf16.mxu0 %vm1595_vm1, %v5930_v63  ;;  %v5933_v62 = vld [vmem:[%s10118_s9 + $0x68] sm:$0xff]  }
 0x2f2   :  { %v5212_v10 = vpop.f32.mrf.mxu1 }
 0x2f3   :  { %v7980_v12 = vadd.f32 %v5212_v10, %v5211_v49 }
 0x2f4   :  { %v5214_v0 = vpop.f32.mrf.mxu1  ;;  %2957 = vmatmul.mubr.bf16.gmra.mxu1 %v6027_v38 }
 0x2f5   :  { %10386 = vst [vmem:[#allocation125_spill] sm:$0xff] %v7980_v12  ;;  %2964 = vmatprep.mubr.bf16.mxu1 %v6028_v58  ;;  %v6029_v58 = vld [vmem:[%s10114_s5 + $0x110] ss:$8 sps:$4 sm:$0xff]  }
 0x2f6   :  { %v5215_v63 = vpop.f32.mrf.mxu1 }
 0x2f7   :  { %v7994_v19 = vadd.f32 %v5215_v63, %v5214_v0  ;;  %v6030_v0 = vld [vmem:[%s10114_s5 + $0x124] ss:$8 sps:$4 sm:$0xff]  }
 0x2f8   :  { %5551 = vmatmul.mubr.msk.bf16.gmra.mxu0 %vm1595_vm1, %v5931_v23  ;;  %v5217_v49 = vpop.f32.mrf.mxu1  ;;  %v5934_v23 = vld [vmem:[%s10118_s9 + $0x70] sm:$0xff]  }
 0x2f9   :  { %10387 = vst [vmem:[#allocation126_spill] sm:$0xff] %v7994_v19  ;;  %5554 = vmatprep.mubr.msk.bf16.mxu0 %vm1595_vm1, %v5932_v57  ;;  %v5935_v19 = vld [vmem:[%s10118_s9 + $0x78] sm:$0xff]  }
 0x2fa   :  { %v5218_v10 = vpop.f32.mrf.mxu1 }
 0x2fb   :  { %v7998_v38 = vadd.f32 %v5218_v10, %v5217_v49 }
 0x2fc   :  { %v5220_v12 = vpop.f32.mrf.mxu1  ;;  %2965 = vmatmul.mubr.bf16.gmra.mxu1 %v6029_v58 }
 0x2fd   :  { %10388 = vst [vmem:[#allocation127_spill] sm:$0xff] %v7998_v38  ;;  %2972 = vmatprep.mubr.bf16.mxu1 %v6030_v0  ;;  %v6031_v0 = vld [vmem:[%s10114_s5 + $0x120] ss:$8 sps:$4 sm:$0xff]  }
 0x2fe   :  { %v5221_v57 = vpop.f32.mrf.mxu1 }
 0x2ff   :  { %v8012_v63 = vadd.f32 %v5221_v57, %v5220_v12  ;;  %v6032_v12 = vld [vmem:[%s10114_s5 + $0x134] ss:$8 sps:$4 sm:$0xff]  }
 0x300   :  { %5555 = vmatmul.mubr.msk.bf16.gmra.mxu0 %vm1595_vm1, %v5933_v62  ;;  %v5223_v49 = vpop.f32.mrf.mxu1  ;;  %v5936_v62 = vld [vmem:[%s10118_s9 + $0x80] sm:$0xff]  }
 0x301   :  { %10389 = vst [vmem:[#allocation128_spill] sm:$0xff] %v8012_v63  ;;  %5558 = vmatprep.mubr.msk.bf16.mxu0 %vm1595_vm1, %v5934_v23  ;;  %v5937_v63 = vld [vmem:[%s10118_s9 + $0x88] sm:$0xff]  }
 0x302   :  { %v5224_v10 = vpop.f32.mrf.mxu1 }
 0x303   :  { %v8016_v58 = vadd.f32 %v5224_v10, %v5223_v49 }
 0x304   :  { %v5226_v38 = vpop.f32.mrf.mxu1  ;;  %2973 = vmatmul.mubr.bf16.gmra.mxu1 %v6031_v0 }
 0x305   :  { %10390 = vst [vmem:[#allocation129_spill] sm:$0xff] %v8016_v58  ;;  %2980 = vmatprep.mubr.bf16.mxu1 %v6032_v12  ;;  %v6033_v12 = vld [vmem:[%s10114_s5 + $0x130] ss:$8 sps:$4 sm:$0xff]  }
 0x306   :  { %v5227_v23 = vpop.f32.mrf.mxu1 }
 0x307   :  { %v8030_v57 = vadd.f32 %v5227_v23, %v5226_v38  ;;  %v5938_v38 = vld [vmem:[%s10118_s9 + $0x90] sm:$0xff]  }
 0x308   :  { %5559 = vmatmul.mubr.msk.bf16.gmra.mxu0 %vm1595_vm1, %v5935_v19  ;;  %v5229_v49 = vpop.f32.mrf.mxu1  ;;  %v6034_v19 = vld [vmem:[%s10114_s5 + $0x144] ss:$8 sps:$4 sm:$0xff]  }
 0x309   :  { %10391 = vst [vmem:[#allocation130_spill] sm:$0xff] %v8030_v57  ;;  %5562 = vmatprep.mubr.msk.bf16.mxu0 %vm1595_vm1, %v5936_v62  ;;  %v5939_v57 = vld [vmem:[%s10118_s9 + $0x98] sm:$0xff]  }
 0x30a   :  { %v5230_v10 = vpop.f32.mrf.mxu1 }
 0x30b   :  { %v8034_v0 = vadd.f32 %v5230_v10, %v5229_v49 }
 0x30c   :  { %v5232_v58 = vpop.f32.mrf.mxu1  ;;  %2981 = vmatmul.mubr.bf16.gmra.mxu1 %v6033_v12 }
 0x30d   :  { %10392 = vst [vmem:[#allocation131_spill] sm:$0xff] %v8034_v0  ;;  %2988 = vmatprep.mubr.bf16.mxu1 %v6034_v19  ;;  %v6035_v19 = vld [vmem:[%s10114_s5 + $0x140] ss:$8 sps:$4 sm:$0xff]  }
 0x30e   :  { %v5233_v62 = vpop.f32.mrf.mxu1 }
 0x30f   :  { %v8048_v23 = vadd.f32 %v5233_v62, %v5232_v58  ;;  %v5940_v58 = vld [vmem:[%s10118_s9 + $0xa0] sm:$0xff]  }
 0x310   :  { %5563 = vmatmul.mubr.msk.bf16.gmra.mxu0 %vm1595_vm1, %v5937_v63  ;;  %v5235_v49 = vpop.f32.mrf.mxu1  ;;  %v6036_v63 = vld [vmem:[%s10114_s5 + $0x154] ss:$8 sps:$4 sm:$0xff]  }
 0x311   :  { %10393 = vst [vmem:[#allocation132_spill] sm:$0xff] %v8048_v23  ;;  %5566 = vmatprep.mubr.msk.bf16.mxu0 %vm1595_vm1, %v5938_v38  ;;  %v6042_v23 = vld [vmem:[%s10114_s5 + $0x170] ss:$8 sps:$4 sm:$0xff]  }
 0x312   :  { %v5236_v10 = vpop.f32.mrf.mxu1 }
 0x313   :  { %v8052_v12 = vadd.f32 %v5236_v10, %v5235_v49 }
 0x314   :  { %v5238_v0 = vpop.f32.mrf.mxu1  ;;  %2989 = vmatmul.mubr.bf16.gmra.mxu1 %v6035_v19 }
 0x315   :  { %10394 = vst [vmem:[#allocation133_spill] sm:$0xff] %v8052_v12  ;;  %2996 = vmatprep.mubr.bf16.mxu1 %v6036_v63  ;;  %v6037_v63 = vld [vmem:[%s10114_s5 + $0x150] ss:$8 sps:$4 sm:$0xff]   ;;  %v5941_v12 = vld [vmem:[%s10118_s9 + $0xa8] sm:$0xff]  }
 0x316   :  { %v5239_v38 = vpop.f32.mrf.mxu1 }
 0x317   :  { %v8066_v62 = vadd.f32 %v5239_v38, %v5238_v0  ;;  %v5942_v0 = vld [vmem:[%s10118_s9 + $0xb0] sm:$0xff]  }
 0x318   :  { %5567 = vmatmul.mubr.msk.bf16.gmra.mxu0 %vm1595_vm1, %v5939_v57  ;;  %v8069_v49 = vpop.f32.mrf.mxu1  ;;  %v6038_v57 = vld [vmem:[%s10114_s5 + $0x164] ss:$8 sps:$4 sm:$0xff]  }
 0x319   :  { %10395 = vst [vmem:[#allocation134_spill] sm:$0xff] %v8066_v62  ;;  %10396 = vst [vmem:[#allocation135_spill] sm:$0xff] %v8069_v49  ;;  %5570 = vmatprep.mubr.msk.bf16.mxu0 %vm1595_vm1, %v5940_v58  ;;  %v5943_v49 = vld [vmem:[%s10118_s9 + $0xb8] sm:$0xff]  }
 0x31a   :  { %v8072_v10 = vpop.f32.mrf.mxu1 }
 0x31b   :  { %10397 = vst [vmem:[#allocation136_spill] sm:$0xff] %v8072_v10 }
 0x31c   :  { %v5244_v19 = vpop.f32.mrf.mxu1  ;;  %2997 = vmatmul.mubr.bf16.gmra.mxu1 %v6037_v63 }
 0x31d   :  { %3004 = vmatprep.mubr.bf16.mxu1 %v6038_v57  ;;  %v6039_v57 = vld [vmem:[%s10114_s5 + $0x160] ss:$8 sps:$4 sm:$0xff]  }
 0x31e   :  { %v5245_v58 = vpop.f32.mrf.mxu1 }
 0x31f   :  { %v8086_v38 = vadd.f32 %v5245_v58, %v5244_v19 }
 0x320   :  { %5571 = vmatmul.mubr.msk.bf16.gmra.mxu0 %vm1595_vm1, %v5941_v12  ;;  %v8089_v62 = vpop.f32.mrf.mxu1  ;;  %v6040_v12 = vld [vmem:[%s10114_s5 + $0x174] ss:$8 sps:$4 sm:$0xff]   ;;  %s9785_s5 = sld [smem:[#allocation8 + $0x5]] }
 0x321   :  { %10398 = vst [vmem:[#allocation137_spill] sm:$0xff] %v8086_v38  ;;  %10399 = vst [vmem:[#allocation138_spill] sm:$0xff] %v8089_v62  ;;  %5574 = vmatprep.mubr.msk.bf16.mxu0 %vm1595_vm1, %v5942_v0  ;;  %v6041_v38 = vld [vmem:[%s10113_s4 + $0x8] ss:$12 sps:$4 sm:$0xff]  }
 0x322   :  { %v8092_v63 = vpop.f32.mrf.mxu1 }
 0x323   :  { %10400 = vst [vmem:[#allocation139_spill] sm:$0xff] %v8092_v63 }
 0x324   :  { %v5250_v10 = vpop.f32.mrf.mxu1  ;;  %3005 = vmatmul.mubr.bf16.gmra.mxu1 %v6039_v57 }
 0x325   :  { %3012 = vmatprep.mubr.bf16.mxu1 %v6040_v12 }
 0x326   :  { %v5251_v19 = vpop.f32.mrf.mxu1  ;;  %10786 = sst [smem:[#allocation215_spill]] %s9785_s5 }
 0x327   :  { %v8103_v58 = vadd.f32 %v5251_v19, %v5250_v10 }
 0x328   :  { %5575 = vmatmul.mubr.msk.bf16.gmra.mxu0 %vm1595_vm1, %v5943_v49  ;;  %v5253_v0 = vpop.f32.mrf.mxu1  ;;  %v6043_v49 = vld [vmem:[%s10113_s4 + $0x20] ss:$12 sps:$4 sm:$0xff]  }
 0x329   :  { %10401 = vst [vmem:[#allocation140_spill] sm:$0xff] %v8103_v58  ;;  %5594 = vmatprep.mubr.bf16.mxu0 %v6041_v38  ;;  %v6044_v38 = vld [vmem:[%s10113_s4 + $0x38] ss:$12 sps:$4 sm:$0xff]  }
 0x32a   :  { %v5254_v57 = vpop.f32.mrf.mxu1 }
 0x32b   :  { %v8109_v63 = vadd.f32 %v5254_v57, %v5253_v0 }
 0x32c   :  { %v5256_v62 = vpop.f32.mrf.mxu1  ;;  %3013 = vmatmul.mubr.bf16.gmra.mxu1 %v6042_v23  ;;  %v6045_v23 = vld [vmem:[%s10120_s11] sm:$0xff] }
 0x32d   :  { %10402 = vst [vmem:[#allocation141_spill] sm:$0xff] %v8109_v63 }
 0x32e   :  { %v5257_v12 = vpop.f32.mrf.mxu1 }
 0x32f   :  { %v8114_v10 = vadd.f32 %v5257_v12, %v5256_v62  ;;  %v10403_v62 = vld [vmem:[#allocation35_spill] sm:$0xff] }
 0x330   :  { %v5259_v19 = vpop.f32.mrf.mxu1  ;;  %5595 = vmatmul.mubr.bf16.vlgmr.msra.gmra.mxu0 %v6043_v49  ;;  %v2306_v57 = vadd.f32 %v6045_v23, %v10403_v62  ;;  %v6049_v23 = vld [vmem:[%s10120_s11 + $0x10] sm:$0xff]  ;;  %v10407_v62 = vld [vmem:[#allocation40_spill] sm:$0xff] }
 0x331   :  { %5287 = vmatpush3.bf16.msra.mxu0 %v7363_v56  ;;  %5598 = vmatprep.mubr.bf16.mxu0 %v6044_v38  ;;  %v10405_v38 = vld [vmem:[#allocation38_spill] sm:$0xff] }
 0x332   :  { %5288 = vmatprep.subr.bf16.mxu0 %v7449_v35  ;;  %v5260_v0 = vpop.f32.mrf.mxu1  ;;  %v6046_v35 = vld [vmem:[%s10120_s11 + $0x8] sm:$0xff] }
 0x333   :  { %v8128_v12 = vadd.f32 %v5260_v0, %v5259_v19  ;;  %v2307_v58 = vadd.f32 %v6046_v35, %v10405_v38  ;;  %v6047_v19 = vld [vmem:[%s10113_s4 + $0x50] ss:$12 sps:$4 sm:$0xff]  }
 0x334   :  { %v2830_v63 = vpop.f32.mrf.mxu1  ;;  %v6050_v35 = vld [vmem:[%s10120_s11 + $0x18] sm:$0xff] }
 0x335   :  { %v8130_v49 = vadd.f32 %v2830_v63, %v2306_v57  ;;  %5289 = vmatpush3.bf16.msra.mxu0 %v7348_v30  ;;  %v6048_v30 = vld [vmem:[%s10113_s4 + $0x68] ss:$12 sps:$4 sm:$0xff]   ;;  %v2308_v57 = vadd.f32 %v6049_v23, %v10407_v62  ;;  %v10409_v38 = vld [vmem:[#allocation43_spill] sm:$0xff]  ;;  %v6053_v23 = vld [vmem:[%s10120_s11 + $0x20] sm:$0xff] }
 0x336   :  { %5290 = vmatprep.subr.bf16.mxu0 %v7465_v25  ;;  %v2832_v56 = vpop.f32.mrf.mxu1  ;;  %v10411_v62 = vld [vmem:[#allocation45_spill] sm:$0xff] }
 0x337   :  { %10404 = vst [vmem:[#allocation35_spill] sm:$0xff] %v8130_v49  ;;  %3724 = vst [vmem:[#allocation3] sm:$0xff] %v8130_v49 }
 0x338   :  { %5599 = vmatmul.mubr.bf16.gmra.mxu0 %v6047_v19  ;;  %v2833_v63 = vpop.f32.mrf.mxu1  ;;  %v2309_v19 = vadd.f32 %v6050_v35, %v10409_v38  ;;  %v6054_v35 = vld [vmem:[%s10120_s11 + $0x28] sm:$0xff]  ;;  %v10413_v38 = vld [vmem:[#allocation48_spill] sm:$0xff] }
 0x339   :  { %v8142_v0 = vadd.f32 %v2833_v63, %v2307_v58  ;;  %5291 = vmatpush3.bf16.msra.mxu0 %v7330_v55  ;;  %5602 = vmatprep.mubr.bf16.mxu0 %v6048_v30  ;;  %v6051_v63 = vld [vmem:[%s10113_s4 + $0x80] ss:$12 sps:$4 sm:$0xff]  }
 0x33a   :  { %5292 = vmatprep.subr.bf16.mxu0 %v7477_v17  ;;  %v2835_v25 = vpop.f32.mrf.mxu1 }
 0x33b   :  { %10406 = vst [vmem:[#allocation38_spill] sm:$0xff] %v8142_v0  ;;  %3725 = vst [vmem:[#allocation3 + $0x8] sm:$0xff] %v8142_v0 }
 0x33c   :  { %v2838_v55 = vpop.f32.mrf.mxu1 }
 0x33d   :  { %v8156_v56 = vadd.f32 %v2838_v55, %v2308_v57  ;;  %5293 = vmatpush3.bf16.msra.mxu0 %v7312_v32  ;;  %v6052_v32 = vld [vmem:[%s10113_s4 + $0x98] ss:$12 sps:$4 sm:$0xff]   ;;  %v2310_v57 = vadd.f32 %v6053_v23, %v10411_v62  ;;  %v10415_v23 = vld [vmem:[#allocation50_spill] sm:$0xff] }
 0x33e   :  { %5294 = vmatprep.subr.bf16.mxu0 %v7489_v48  ;;  %v2840_v17 = vpop.f32.mrf.mxu1 }
 0x33f   :  { %10408 = vst [vmem:[#allocation40_spill] sm:$0xff] %v8156_v56  ;;  %3726 = vst [vmem:[#allocation3 + $0x10] sm:$0xff] %v8156_v56 }
 0x340   :  { %5603 = vmatmul.mubr.bf16.gmra.mxu0 %v6051_v63  ;;  %v2841_v30 = vpop.f32.mrf.mxu1  ;;  %v6055_v63 = vld [vmem:[%s10113_s4 + $0xb0] ss:$12 sps:$4 sm:$0xff]  }
 0x341   :  { %v8168_v25 = vadd.f32 %v2841_v30, %v2309_v19  ;;  %5295 = vmatpush3.bf16.msra.mxu0 %v7294_v14  ;;  %5606 = vmatprep.mubr.bf16.mxu0 %v6052_v32  ;;  %v2311_v19 = vadd.f32 %v6054_v35, %v10413_v38  ;;  %v10417_v35 = vmov 0.0   ;;  %v10418_v38 = vld [vmem:[#allocation53_spill] sm:$0xff] }
 0x342   :  { %5296 = vmatprep.subr.bf16.mxu0 %v7500_v52  ;;  %v2843_v48 = vpop.f32.mrf.mxu1 }
 0x343   :  { %10410 = vst [vmem:[#allocation43_spill] sm:$0xff] %v8168_v25  ;;  %3727 = vst [vmem:[#allocation3 + $0x18] sm:$0xff] %v8168_v25  ;;  %v6057_v48 = vld [vmem:[%s10120_s11 + $0x30] sm:$0xff] }
 0x344   :  { %v2846_v14 = vpop.f32.mrf.mxu1  ;;  %v2312_v62 = vadd.f32 %v6057_v48, %v10415_v23  ;;  %v6061_v48 = vld [vmem:[%s10120_s11 + $0x40] sm:$0xff]  ;;  %v10420_v23 = vld [vmem:[#allocation55_spill] sm:$0xff] }
 0x345   :  { %v8182_v17 = vadd.f32 %v2846_v14, %v2310_v57  ;;  %5297 = vmatpush3.bf16.msra.mxu0 %v7273_v54  ;;  %v6056_v54 = vld [vmem:[%s10113_s4 + $0xc8] ss:$12 sps:$4 sm:$0xff]  }
 0x346   :  { %5298 = vmatprep.subr.bf16.mxu0 %v7389_v7  ;;  %v2848_v52 = vpop.f32.mrf.mxu1 }
 0x347   :  { %10412 = vst [vmem:[#allocation45_spill] sm:$0xff] %v8182_v17  ;;  %3728 = vst [vmem:[#allocation3 + $0x20] sm:$0xff] %v8182_v17 }
 0x348   :  { %5607 = vmatmul.mubr.bf16.gmra.mxu0 %v6055_v63  ;;  %v2849_v30 = vpop.f32.mrf.mxu1  ;;  %v6059_v63 = vld [vmem:[%s10113_s4 + $0xe0] ss:$12 sps:$4 sm:$0xff]  }
 0x349   :  { %v8194_v32 = vadd.f32 %v2849_v30, %v2311_v19  ;;  %5299 = vmatpush3.bf16.msra.mxu0 %v7249_v60  ;;  %5610 = vmatprep.mubr.bf16.mxu0 %v6056_v54 }
 0x34a   :  { %5300 = vmatprep.subr.bf16.mxu0 %v7381_v51  ;;  %v2851_v7 = vpop.f32.mrf.mxu1  ;;  %v6058_v51 = vld [vmem:[%s10120_s11 + $0x38] sm:$0xff] }
 0x34b   :  { %10414 = vst [vmem:[#allocation48_spill] sm:$0xff] %v8194_v32  ;;  %3729 = vst [vmem:[#allocation3 + $0x28] sm:$0xff] %v8194_v32  ;;  %v2313_v19 = vadd.f32 %v6058_v51, %v10418_v38 }
 0x34c   :  { %v2854_v60 = vpop.f32.mrf.mxu1 }
 0x34d   :  { %v8208_v14 = vadd.f32 %v2854_v60, %v2312_v62  ;;  %5301 = vmatpush3.bf16.msra.mxu0 %v7225_v34  ;;  %v6060_v34 = vld [vmem:[%s10113_s4 + $0xf8] ss:$12 sps:$4 sm:$0xff]   ;;  %v2314_v62 = vadd.f32 %v6061_v48, %v10420_v23  ;;  %v6064_v23 = vld [vmem:[%s10113_s4 + $0x128] ss:$12 sps:$4 sm:$0xff]  }
 0x34e   :  { %v2856_v52 = vpop.f32.mrf.mxu1  ;;  %5626 = vmatprep.subr.bf16.mxu0 %v10417_v35 }
 0x34f   :  { %10416 = vst [vmem:[#allocation50_spill] sm:$0xff] %v8208_v14  ;;  %3730 = vst [vmem:[#allocation3 + $0x30] sm:$0xff] %v8208_v14 }
 0x350   :  { %5611 = vmatmul.mubr.bf16.gmra.mxu0 %v6059_v63  ;;  %v2857_v30 = vpop.f32.mrf.mxu1  ;;  %v10422_v63 = vld [vmem:[#allocation58_spill] sm:$0xff] }
 0x351   :  { %v8220_v54 = vadd.f32 %v2857_v30, %v2313_v19  ;;  %5614 = vmatprep.mubr.bf16.mxu0 %v6060_v34  ;;  %v6062_v19 = vld [vmem:[%s10120_s11 + $0x48] sm:$0xff]  ;;  %v6063_v34 = vld [vmem:[%s10113_s4 + $0x110] ss:$12 sps:$4 sm:$0xff]  }
 0x352   :  { %v2859_v7 = vpop.f32.mrf.mxu1  ;;  %v2315_v30 = vadd.f32 %v6062_v19, %v10422_v63 }
 0x353   :  { %10419 = vst [vmem:[#allocation53_spill] sm:$0xff] %v8220_v54  ;;  %3731 = vst [vmem:[#allocation3 + $0x38] sm:$0xff] %v8220_v54  ;;  %v10543_v54 = vld [vmem:[#allocation124_spill] sm:$0xff] }
 0x354   :  { %v2862_v52 = vpop.f32.mrf.mxu1 }
 0x355   :  { %v8232_v51 = vadd.f32 %v2862_v52, %v2314_v62  ;;  %v6065_v52 = vld [vmem:[%s10120_s11 + $0x50] sm:$0xff] }
 0x356   :  { %v2864_v38 = vpop.f32.mrf.mxu1 }
 0x357   :  { %10421 = vst [vmem:[#allocation55_spill] sm:$0xff] %v8232_v51  ;;  %3732 = vst [vmem:[#allocation3 + $0x40] sm:$0xff] %v8232_v51  ;;  %v10424_v38 = vld [vmem:[#allocation60_spill] sm:$0xff] }
 0x358   :  { %5615 = vmatmul.mubr.bf16.gmra.mxu0 %v6063_v34  ;;  %v2865_v7 = vpop.f32.mrf.mxu1  ;;  %v2316_v19 = vadd.f32 %v6065_v52, %v10424_v38  ;;  %v6067_v52 = vld [vmem:[%s10113_s4 + $0x140] ss:$12 sps:$4 sm:$0xff]  }
 0x359   :  { %v8242_v48 = vadd.f32 %v2865_v7, %v2315_v30  ;;  %5618 = vmatprep.mubr.bf16.mxu0 %v6064_v23  ;;  %v6066_v23 = vld [vmem:[%s10120_s11 + $0x58] sm:$0xff] }
 0x35a   :  { %v2867_v62 = vpop.f32.mrf.mxu1 }
 0x35b   :  { %10423 = vst [vmem:[#allocation58_spill] sm:$0xff] %v8242_v48  ;;  %3733 = vst [vmem:[#allocation3 + $0x48] sm:$0xff] %v8242_v48  ;;  %v10426_v62 = vld [vmem:[#allocation63_spill] sm:$0xff] }
 0x35c   :  { %v2870_v34 = vpop.f32.mrf.mxu1  ;;  %v2317_v58 = vadd.f32 %v6066_v23, %v10426_v62  ;;  %v10428_v23 = vld [vmem:[#allocation65_spill] sm:$0xff] }
 0x35d   :  { %v8254_v30 = vadd.f32 %v2870_v34, %v2316_v19  ;;  %v6068_v19 = vld [vmem:[%s10113_s4 + $0x158] ss:$12 sps:$4 sm:$0xff]  }
 0x35e   :  { %v2872_v7 = vpop.f32.mrf.mxu1 }
 0x35f   :  { %10425 = vst [vmem:[#allocation60_spill] sm:$0xff] %v8254_v30  ;;  %3734 = vst [vmem:[#allocation3 + $0x50] sm:$0xff] %v8254_v30  ;;  %v6069_v7 = vld [vmem:[%s10120_s11 + $0x60] sm:$0xff] }
 0x360   :  { %5619 = vmatmul.mubr.bf16.gmra.mxu0 %v6067_v52  ;;  %v2873_v38 = vpop.f32.mrf.mxu1  ;;  %v2318_v62 = vadd.f32 %v6069_v7, %v10428_v23  ;;  %v6071_v7 = vld [vmem:[%s10113_s4 + $0x170] ss:$12 sps:$4 sm:$0xff]   ;;  %s3868_s4 = scalar_lea.vmem [#allocation4], %s9237_s26 }
 0x361   :  { %v8264_v55 = vadd.f32 %v2873_v38, %v2317_v58  ;;  %5622 = vmatprep.mubr.bf16.mxu0 %v6068_v19  ;;  %v6070_v19 = vld [vmem:[%s10120_s11 + $0x68] sm:$0xff] }
 0x362   :  { %v2875_v34 = vpop.f32.mrf.mxu1 }
 0x363   :  { %10427 = vst [vmem:[#allocation63_spill] sm:$0xff] %v8264_v55  ;;  %3735 = vst [vmem:[#allocation3 + $0x58] sm:$0xff] %v8264_v55  ;;  %v10430_v34 = vld [vmem:[#allocation68_spill] sm:$0xff] }
 0x364   :  { %v2878_v57 = vpop.f32.mrf.mxu1  ;;  %v2319_v60 = vadd.f32 %v6070_v19, %v10430_v34  ;;  %v10432_v19 = vld [vmem:[#allocation70_spill] sm:$0xff] }
 0x365   :  { %v8276_v58 = vadd.f32 %v2878_v57, %v2318_v62  ;;  %v6072_v57 = vld [vmem:[%s10115_s6 + $0x4] ss:$12 sps:$4 sm:$0xff]  }
 0x366   :  { %v2880_v38 = vpop.f32.mrf.mxu1 }
 0x367   :  { %10429 = vst [vmem:[#allocation65_spill] sm:$0xff] %v8276_v58  ;;  %3736 = vst [vmem:[#allocation3 + $0x60] sm:$0xff] %v8276_v58  ;;  %v6073_v38 = vld [vmem:[%s10120_s11 + $0x70] sm:$0xff] }
 0x368   :  { %5623 = vmatmul.mubr.bf16.gmra.mxu0 %v6071_v7  ;;  %v2881_v23 = vpop.f32.mrf.mxu1  ;;  %v2320_v34 = vadd.f32 %v6073_v38, %v10432_v19  ;;  %v6075_v38 = vld [vmem:[%s10115_s6] ss:$12 sps:$4 sm:$0xff]  }
 0x369   :  { %v8286_v63 = vadd.f32 %v2881_v23, %v2319_v60  ;;  %3053 = vmatprep.mubr.bf16.mxu0 %v6072_v57  ;;  %v6074_v57 = vld [vmem:[%s10120_s11 + $0x78] sm:$0xff] }
 0x36a   :  { %v2883_v62 = vpop.f32.mrf.mxu1 }
 0x36b   :  { %10431 = vst [vmem:[#allocation68_spill] sm:$0xff] %v8286_v63  ;;  %3737 = vst [vmem:[#allocation3 + $0x68] sm:$0xff] %v8286_v63  ;;  %v10434_v62 = vld [vmem:[#allocation72_spill] sm:$0xff]  ;;  %v10564_v63 = vld [vmem:[#allocation130_spill] sm:$0xff] }
 0x36c   :  { %v2886_v52 = vpop.f32.mrf.mxu1  ;;  %v2321_v49 = vadd.f32 %v6074_v57, %v10434_v62 }
 0x36d   :  { %v8298_v60 = vadd.f32 %v2886_v52, %v2320_v34  ;;  %v6076_v34 = vld [vmem:[%s10120_s11 + $0x80] sm:$0xff] }
 0x36e   :  { %v2888_v23 = vpop.f32.mrf.mxu1 }
 0x36f   :  { %10433 = vst [vmem:[#allocation70_spill] sm:$0xff] %v8298_v60  ;;  %3738 = vst [vmem:[#allocation3 + $0x70] sm:$0xff] %v8298_v60  ;;  %v10436_v23 = vld [vmem:[#allocation75_spill] sm:$0xff] }
 0x370   :  { %v2889_v0 = vpop.f32.mrf.mxu1  ;;  %3054 = vmatmul.mubr.bf16.vlgmr.msra.gmra.mxu0 %v6075_v38  ;;  %v2322_v57 = vadd.f32 %v6076_v34, %v10436_v23  ;;  %v6077_v38 = vld [vmem:[%s10120_s11 + $0x88] sm:$0xff]  ;;  %v10574_v60 = vld [vmem:[#allocation139_spill] sm:$0xff] }
 0x371   :  { %v8308_v19 = vadd.f32 %v2889_v0, %v2321_v49  ;;  %5627 = vmatpush3.bf16.msra.mxu0 %v7679_v29  ;;  %5642 = vmatprep.mubr.msk.bf16.mxu0 %vm6319_vm0, %v10417_v35 }
 0x372   :  { %v2891_v52 = vpop.f32.mrf.mxu1  ;;  %5628 = vmatprep.subr.bf16.mxu0 %v10417_v35 }
 0x373   :  { %10435 = vst [vmem:[#allocation72_spill] sm:$0xff] %v8308_v19  ;;  %3739 = vst [vmem:[#allocation3 + $0x78] sm:$0xff] %v8308_v19  ;;  %v10438_v52 = vld [vmem:[#allocation77_spill] sm:$0xff] }
 0x374   :  { %v2894_v0 = vpop.f32.mrf.mxu1  ;;  %v2323_v7 = vadd.f32 %v6077_v38, %v10438_v52 }
 0x375   :  { %v8321_v62 = vadd.f32 %v2894_v0, %v2322_v57  ;;  %5629 = vmatpush3.bf16.msra.mxu0 %v7661_v39  ;;  %v6078_v39 = vld [vmem:[%s10120_s11 + $0x90] sm:$0xff] }
 0x376   :  { %v2896_v29 = vpop.f32.mrf.mxu1  ;;  %5630 = vmatprep.subr.bf16.mxu0 %v10417_v35  ;;  %v10440_v0 = vld [vmem:[#allocation78_spill] sm:$0xff] }
 0x377   :  { %10437 = vst [vmem:[#allocation75_spill] sm:$0xff] %v8321_v62  ;;  %3740 = vst [vmem:[#allocation3 + $0x80] sm:$0xff] %v8321_v62  ;;  %v2324_v29 = vadd.f32 %v6078_v39, %v10440_v0 }
 0x378   :  { %v2897_v34 = vpop.f32.mrf.mxu1 }
 0x379   :  { %v8330_v23 = vadd.f32 %v2897_v34, %v2323_v7  ;;  %5631 = vmatpush3.bf16.msra.mxu0 %v7643_v37  ;;  %v6079_v7 = vld [vmem:[%s10120_s11 + $0x98] sm:$0xff] }
 0x37a   :  { %v2899_v57 = vpop.f32.mrf.mxu1  ;;  %5632 = vmatprep.subr.bf16.mxu0 %v10417_v35  ;;  %v10442_v34 = vld [vmem:[#allocation79_spill] sm:$0xff] }
 0x37b   :  { %10439 = vst [vmem:[#allocation77_spill] sm:$0xff] %v8330_v23  ;;  %3741 = vst [vmem:[#allocation3 + $0x88] sm:$0xff] %v8330_v23  ;;  %v2325_v57 = vadd.f32 %v6079_v7, %v10442_v34 }
 0x37c   :  { %v2902_v52 = vpop.f32.mrf.mxu1 }
 0x37d   :  { %v8341_v49 = vadd.f32 %v2902_v52, %v2324_v29  ;;  %5633 = vmatpush3.bf16.msra.mxu0 %v7625_v18  ;;  %v6080_v18 = vld [vmem:[%s10120_s11 + $0xa0] sm:$0xff] }
 0x37e   :  { %v2904_v37 = vpop.f32.mrf.mxu1  ;;  %5634 = vmatprep.subr.bf16.mxu0 %v10417_v35  ;;  %v2326_v52 = vadd.f32 %v6080_v18, %v7391_v24 }
 0x37f   :  { %10441 = vst [vmem:[#allocation78_spill] sm:$0xff] %v8341_v49  ;;  %3742 = vst [vmem:[#allocation3 + $0x90] sm:$0xff] %v8341_v49 }
 0x380   :  { %v2905_v39 = vpop.f32.mrf.mxu1 }
 0x381   :  { %v8350_v0 = vadd.f32 %v2905_v39, %v2325_v57  ;;  %5635 = vmatpush3.bf16.msra.mxu0 %v7607_v45  ;;  %v6081_v57 = vld [vmem:[%s10120_s11 + $0xa8] sm:$0xff] }
 0x382   :  { %v2907_v29 = vpop.f32.mrf.mxu1  ;;  %5636 = vmatprep.subr.bf16.mxu0 %v10417_v35  ;;  %v2327_v39 = vadd.f32 %v6081_v57, %v7393_v50  ;;  %v6083_v57 = vld [vmem:[%s10120_s11 + $0xb8] sm:$0xff] }
 0x383   :  { %10443 = vst [vmem:[#allocation79_spill] sm:$0xff] %v8350_v0  ;;  %3743 = vst [vmem:[#allocation3 + $0x98] sm:$0xff] %v8350_v0 }
 0x384   :  { %v2910_v7 = vpop.f32.mrf.mxu1 }
 0x385   :  { %v8361_v34 = vadd.f32 %v2910_v7, %v2326_v52  ;;  %5637 = vmatpush3.bf16.msra.mxu0 %v7589_v8  ;;  %v6082_v8 = vld [vmem:[%s10120_s11 + $0xb0] sm:$0xff] }
 0x386   :  { %v2912_v45 = vpop.f32.mrf.mxu1  ;;  %5638 = vmatprep.subr.bf16.mxu0 %v10417_v35  ;;  %v2328_v52 = vadd.f32 %v6082_v8, %v7395_v36  ;;  %v6084_v36 = vld [vmem:[%s10115_s6 + $0x8] ss:$12 sps:$4 sm:$0xff]   ;;  %s9777_s6 = sld [smem:[#allocation8 + $0x1]] }
 0x387   :  { %10444 = vst [vmem:[#allocation142_spill] sm:$0xff] %v8361_v34  ;;  %3744 = vst [vmem:[#allocation3 + $0xa0] sm:$0xff] %v8361_v34 }
 0x388   :  { %v2913_v24 = vpop.f32.mrf.mxu1 }
 0x389   :  { %v8370_v29 = vadd.f32 %v2913_v24, %v2327_v39  ;;  %5639 = vmatpush3.bf16.msra.mxu0 %v7571_v46  ;;  %v2329_v39 = vadd.f32 %v6083_v57, %v7397_v11 }
 0x38a   :  { %v2915_v18 = vpop.f32.mrf.mxu1  ;;  %5640 = vmatprep.subr.bf16.mxu0 %v10417_v35 }
 0x38b   :  { %10445 = vst [vmem:[#allocation143_spill] sm:$0xff] %v8370_v29  ;;  %3745 = vst [vmem:[#allocation3 + $0xa8] sm:$0xff] %v8370_v29 }
 0x38c   :  { %v2918_v7 = vpop.f32.mrf.mxu1  ;;  %s3915_s1 = scalar_lea.vmem [#allocation5], %s9777_s6 }
 0x38d   :  { %v8381_v45 = vadd.f32 %v2918_v7, %v2328_v52  ;;  %5641 = vmatpush3.bf16.msra.mxu0 %v7550_v4  ;;  %v6085_v4 = vld [vmem:[%s10116_s7] sm:$0xff]  }
 0x38e   :  { %v2920_v46 = vpop.f32.mrf.mxu1  ;;  %v6086_v7 = vld [vmem:[%s10120_s11 + $0xc0] sm:$0xff] }
 0x38f   :  { %10446 = vst [vmem:[#allocation144_spill] sm:$0xff] %v8381_v45  ;;  %3746 = vst [vmem:[#allocation3 + $0xb0] sm:$0xff] %v8381_v45  ;;  %v2330_v46 = vadd.f32 %v6086_v7, %v7399_v2 }
 0x390   :  { %5643 = vmatmul.mubr.bf16.vlgmr.msra.gmra.mxu0 %v6084_v36  ;;  %v8392_v24 = vpop.f32.mrf.mxu0  ;;  %v2921_v18 = vpop.f32.mrf.mxu1 }
 0x391   :  { %10447 = vst [vmem:[#allocation145_spill] sm:$0xff] %v8392_v24  ;;  %v8394_v8 = vadd.f32 %v2921_v18, %v2329_v39  ;;  %5648 = vmatprep.mubr.msk.bf16.mxu0 %vm1595_vm1, %v6085_v4 }
 0x392   :  { %v8400_v52 = vpop.f32.mrf.mxu0  ;;  %v2923_v11 = vpop.f32.mrf.mxu1 }
 0x393   :  { %10448 = vst [vmem:[#allocation146_spill] sm:$0xff] %v8394_v8  ;;  %10449 = vst [vmem:[#allocation147_spill] sm:$0xff] %v8400_v52  ;;  %v6087_v11 = vld [vmem:[%s10120_s11 + $0xc8] sm:$0xff] }
 0x394   :  { %3747 = vst [vmem:[#allocation3 + $0xb8] sm:$0xff] %v8394_v8  ;;  %v8409_v39 = vpop.f32.mrf.mxu0  ;;  %v2926_v36 = vpop.f32.mrf.mxu1  ;;  %v2331_v37 = vadd.f32 %v6087_v11, %v7401_v31 }
 0x395   :  { %10450 = vst [vmem:[#allocation148_spill] sm:$0xff] %v8409_v39  ;;  %v8411_v18 = vadd.f32 %v2926_v36, %v2330_v46 }
 0x396   :  { %v8413_v4 = vpop.f32.mrf.mxu0  ;;  %v2928_v38 = vpop.f32.mrf.mxu1 }
 0x397   :  { %10451 = vst [vmem:[#allocation149_spill] sm:$0xff] %v8411_v18  ;;  %10452 = vst [vmem:[#allocation150_spill] sm:$0xff] %v8413_v4  ;;  %v6088_v38 = vld [vmem:[%s10120_s11 + $0xd0] sm:$0xff] }
 0x398   :  { %3748 = vst [vmem:[#allocation3 + $0xc0] sm:$0xff] %v8411_v18  ;;  %v8420_v2 = vpop.f32.mrf.mxu0  ;;  %v2929_v7 = vpop.f32.mrf.mxu1  ;;  %v2332_v36 = vadd.f32 %v6088_v38, %v7403_v21 }
 0x399   :  { %10453 = vst [vmem:[#allocation151_spill] sm:$0xff] %v8420_v2  ;;  %v8422_v50 = vadd.f32 %v2929_v7, %v2331_v37 }
 0x39a   :  { %v8424_v57 = vpop.f32.mrf.mxu0  ;;  %v2931_v46 = vpop.f32.mrf.mxu1 }
 0x39b   :  { %10454 = vst [vmem:[#allocation152_spill] sm:$0xff] %v8422_v50  ;;  %10455 = vst [vmem:[#allocation153_spill] sm:$0xff] %v8424_v57  ;;  %v6089_v46 = vld [vmem:[%s10120_s11 + $0xd8] sm:$0xff] }
 0x39c   :  { %3749 = vst [vmem:[#allocation3 + $0xc8] sm:$0xff] %v8422_v50  ;;  %v8433_v11 = vpop.f32.mrf.mxu0  ;;  %v2934_v2 = vpop.f32.mrf.mxu1  ;;  %v2333_v57 = vadd.f32 %v6089_v46, %v7412_v43  ;;  %v10553_v50 = vld [vmem:[#allocation126_spill] sm:$0xff] }
 0x39d   :  { %10456 = vst [vmem:[#allocation154_spill] sm:$0xff] %v8433_v11  ;;  %v8435_v4 = vadd.f32 %v2934_v2, %v2332_v36  ;;  %v6090_v36 = vld [vmem:[%s10120_s11 + $0xe0] sm:$0xff] }
 0x39e   :  { %v8437_v37 = vpop.f32.mrf.mxu0  ;;  %v2936_v7 = vpop.f32.mrf.mxu1 }
 0x39f   :  { %10457 = vst [vmem:[#allocation155_spill] sm:$0xff] %v8435_v4  ;;  %10458 = vst [vmem:[#allocation156_spill] sm:$0xff] %v8437_v37  ;;  %v2334_v7 = vadd.f32 %v6090_v36, %v7418_v13 }
 0x3a0   :  { %3750 = vst [vmem:[#allocation3 + $0xd0] sm:$0xff] %v8435_v4  ;;  %v8444_v21 = vpop.f32.mrf.mxu0  ;;  %v2937_v38 = vpop.f32.mrf.mxu1 }
 0x3a1   :  { %10459 = vst [vmem:[#allocation157_spill] sm:$0xff] %v8444_v21  ;;  %v8446_v31 = vadd.f32 %v2937_v38, %v2333_v57 }
 0x3a2   :  { %v8448_v11 = vpop.f32.mrf.mxu0  ;;  %v2939_v2 = vpop.f32.mrf.mxu1 }
 0x3a3   :  { %10460 = vst [vmem:[#allocation158_spill] sm:$0xff] %v8446_v31  ;;  %10461 = vst [vmem:[#allocation159_spill] sm:$0xff] %v8448_v11  ;;  %v6091_v2 = vld [vmem:[%s10120_s11 + $0xe8] sm:$0xff] }
 0x3a4   :  { %3751 = vst [vmem:[#allocation3 + $0xd8] sm:$0xff] %v8446_v31  ;;  %v8457_v46 = vpop.f32.mrf.mxu0  ;;  %v2942_v21 = vpop.f32.mrf.mxu1  ;;  %v2335_v11 = vadd.f32 %v6091_v2, %v7428_v20 }
 0x3a5   :  { %10462 = vst [vmem:[#allocation160_spill] sm:$0xff] %v8457_v46  ;;  %v8459_v37 = vadd.f32 %v2942_v21, %v2334_v7  ;;  %v6092_v7 = vld [vmem:[%s10120_s11 + $0xf0] sm:$0xff] }
 0x3a6   :  { %v8461_v57 = vpop.f32.mrf.mxu0  ;;  %v2944_v38 = vpop.f32.mrf.mxu1 }
 0x3a7   :  { %10463 = vst [vmem:[#allocation161_spill] sm:$0xff] %v8459_v37  ;;  %10464 = vst [vmem:[#allocation162_spill] sm:$0xff] %v8461_v57  ;;  %v2336_v38 = vadd.f32 %v6092_v7, %v7434_v40 }
 0x3a8   :  { %3752 = vst [vmem:[#allocation3 + $0xe0] sm:$0xff] %v8459_v37  ;;  %v8468_v13 = vpop.f32.mrf.mxu0  ;;  %v2945_v36 = vpop.f32.mrf.mxu1 }
 0x3a9   :  { %10465 = vst [vmem:[#allocation163_spill] sm:$0xff] %v8468_v13  ;;  %v8470_v43 = vadd.f32 %v2945_v36, %v2335_v11 }
 0x3aa   :  { %v8472_v46 = vpop.f32.mrf.mxu0  ;;  %v2947_v21 = vpop.f32.mrf.mxu1 }
 0x3ab   :  { %10466 = vst [vmem:[#allocation164_spill] sm:$0xff] %v8470_v43  ;;  %10467 = vst [vmem:[#allocation165_spill] sm:$0xff] %v8472_v46  ;;  %v6093_v21 = vld [vmem:[%s10120_s11 + $0xf8] sm:$0xff] }
 0x3ac   :  { %3753 = vst [vmem:[#allocation3 + $0xe8] sm:$0xff] %v8470_v43  ;;  %v8481_v2 = vpop.f32.mrf.mxu0  ;;  %v2950_v13 = vpop.f32.mrf.mxu1  ;;  %v2337_v46 = vadd.f32 %v6093_v21, %v7444_v44 }
 0x3ad   :  { %10468 = vst [vmem:[#allocation166_spill] sm:$0xff] %v8481_v2  ;;  %v8483_v57 = vadd.f32 %v2950_v13, %v2336_v38  ;;  %v6094_v38 = vld [vmem:[%s10120_s11 + $0x100] sm:$0xff] }
 0x3ae   :  { %v8485_v11 = vpop.f32.mrf.mxu0  ;;  %v2952_v36 = vpop.f32.mrf.mxu1 }
 0x3af   :  { %10469 = vst [vmem:[#allocation167_spill] sm:$0xff] %v8483_v57  ;;  %10470 = vst [vmem:[#allocation168_spill] sm:$0xff] %v8485_v11  ;;  %v2338_v36 = vadd.f32 %v6094_v38, %v7531_v26 }
 0x3b0   :  { %3754 = vst [vmem:[#allocation3 + $0xf0] sm:$0xff] %v8483_v57  ;;  %v8492_v40 = vpop.f32.mrf.mxu0  ;;  %v2953_v7 = vpop.f32.mrf.mxu1 }
 0x3b1   :  { %10471 = vst [vmem:[#allocation169_spill] sm:$0xff] %v8492_v40  ;;  %v8494_v20 = vadd.f32 %v2953_v7, %v2337_v46 }
 0x3b2   :  { %v8496_v2 = vpop.f32.mrf.mxu0  ;;  %v2955_v13 = vpop.f32.mrf.mxu1 }
 0x3b3   :  { %10472 = vst [vmem:[#allocation170_spill] sm:$0xff] %v8494_v20  ;;  %10473 = vst [vmem:[#allocation171_spill] sm:$0xff] %v8496_v2  ;;  %v6095_v13 = vld [vmem:[%s10120_s11 + $0x108] sm:$0xff] }
 0x3b4   :  { %3755 = vst [vmem:[#allocation3 + $0xf8] sm:$0xff] %v8494_v20  ;;  %v8505_v21 = vpop.f32.mrf.mxu0  ;;  %v2958_v40 = vpop.f32.mrf.mxu1  ;;  %v2339_v2 = vadd.f32 %v6095_v13, %v7544_v9  ;;  %v10575_v20 = vld [vmem:[#allocation137_spill] sm:$0xff] }
 0x3b5   :  { %10474 = vst [vmem:[#allocation172_spill] sm:$0xff] %v8505_v21  ;;  %v8507_v11 = vadd.f32 %v2958_v40, %v2338_v36  ;;  %v6096_v36 = vld [vmem:[%s10120_s11 + $0x110] sm:$0xff] }
 0x3b6   :  { %v8509_v46 = vpop.f32.mrf.mxu0  ;;  %v2960_v7 = vpop.f32.mrf.mxu1 }
 0x3b7   :  { %10475 = vst [vmem:[#allocation173_spill] sm:$0xff] %v8507_v11  ;;  %10476 = vst [vmem:[#allocation174_spill] sm:$0xff] %v8509_v46  ;;  %v2340_v7 = vadd.f32 %v6096_v36, %v7556_v22 }
 0x3b8   :  { %3756 = vst [vmem:[#allocation3 + $0x100] sm:$0xff] %v8507_v11  ;;  %v8516_v26 = vpop.f32.mrf.mxu0  ;;  %v2961_v38 = vpop.f32.mrf.mxu1 }
 0x3b9   :  { %10477 = vst [vmem:[#allocation175_spill] sm:$0xff] %v8516_v26  ;;  %v8518_v44 = vadd.f32 %v2961_v38, %v2339_v2 }
 0x3ba   :  { %v8520_v21 = vpop.f32.mrf.mxu0  ;;  %v2963_v40 = vpop.f32.mrf.mxu1 }
 0x3bb   :  { %10478 = vst [vmem:[#allocation176_spill] sm:$0xff] %v8518_v44  ;;  %10479 = vst [vmem:[#allocation177_spill] sm:$0xff] %v8520_v21  ;;  %v6097_v40 = vld [vmem:[%s10120_s11 + $0x118] sm:$0xff] }
 0x3bc   :  { %3757 = vst [vmem:[#allocation3 + $0x108] sm:$0xff] %v8518_v44  ;;  %v8529_v13 = vpop.f32.mrf.mxu0  ;;  %v2966_v26 = vpop.f32.mrf.mxu1  ;;  %v2341_v21 = vadd.f32 %v6097_v40, %v7566_v47 }
 0x3bd   :  { %10480 = vst [vmem:[#allocation178_spill] sm:$0xff] %v8529_v13  ;;  %v8531_v46 = vadd.f32 %v2966_v26, %v2340_v7  ;;  %v6098_v7 = vld [vmem:[%s10120_s11 + $0x120] sm:$0xff] }
 0x3be   :  { %v8533_v2 = vpop.f32.mrf.mxu0  ;;  %v2968_v38 = vpop.f32.mrf.mxu1 }
 0x3bf   :  { %10481 = vst [vmem:[#allocation179_spill] sm:$0xff] %v8531_v46  ;;  %10482 = vst [vmem:[#allocation180_spill] sm:$0xff] %v8533_v2  ;;  %v2342_v38 = vadd.f32 %v6098_v7, %v7577_v59 }
 0x3c0   :  { %3758 = vst [vmem:[#allocation3 + $0x110] sm:$0xff] %v8531_v46  ;;  %v8540_v22 = vpop.f32.mrf.mxu0  ;;  %v2969_v36 = vpop.f32.mrf.mxu1 }
 0x3c1   :  { %10483 = vst [vmem:[#allocation181_spill] sm:$0xff] %v8540_v22  ;;  %v8542_v9 = vadd.f32 %v2969_v36, %v2341_v21 }
 0x3c2   :  { %v8544_v13 = vpop.f32.mrf.mxu0  ;;  %v2971_v26 = vpop.f32.mrf.mxu1 }
 0x3c3   :  { %10484 = vst [vmem:[#allocation182_spill] sm:$0xff] %v8542_v9  ;;  %10485 = vst [vmem:[#allocation183_spill] sm:$0xff] %v8544_v13  ;;  %v6099_v26 = vld [vmem:[%s10120_s11 + $0x128] sm:$0xff] }
 0x3c4   :  { %3759 = vst [vmem:[#allocation3 + $0x118] sm:$0xff] %v8542_v9  ;;  %v8553_v40 = vpop.f32.mrf.mxu0  ;;  %v2974_v22 = vpop.f32.mrf.mxu1  ;;  %v2343_v13 = vadd.f32 %v6099_v26, %v7584_v41 }
 0x3c5   :  { %10486 = vst [vmem:[#allocation184_spill] sm:$0xff] %v8553_v40  ;;  %v8555_v2 = vadd.f32 %v2974_v22, %v2342_v38  ;;  %v6100_v38 = vld [vmem:[%s10120_s11 + $0x130] sm:$0xff] }
 0x3c6   :  { %v8557_v21 = vpop.f32.mrf.mxu0  ;;  %v2976_v36 = vpop.f32.mrf.mxu1 }
 0x3c7   :  { %10487 = vst [vmem:[#allocation185_spill] sm:$0xff] %v8555_v2  ;;  %10488 = vst [vmem:[#allocation186_spill] sm:$0xff] %v8557_v21  ;;  %v2344_v36 = vadd.f32 %v6100_v38, %v7595_v3 }
 0x3c8   :  { %3760 = vst [vmem:[#allocation3 + $0x120] sm:$0xff] %v8555_v2  ;;  %v8564_v59 = vpop.f32.mrf.mxu0  ;;  %v2977_v7 = vpop.f32.mrf.mxu1 }
 0x3c9   :  { %10489 = vst [vmem:[#allocation187_spill] sm:$0xff] %v8564_v59  ;;  %v8566_v47 = vadd.f32 %v2977_v7, %v2343_v13 }
 0x3ca   :  { %v8568_v40 = vpop.f32.mrf.mxu0  ;;  %v2979_v22 = vpop.f32.mrf.mxu1 }
 0x3cb   :  { %10490 = vst [vmem:[#allocation188_spill] sm:$0xff] %v8566_v47  ;;  %10491 = vst [vmem:[#allocation189_spill] sm:$0xff] %v8568_v40  ;;  %v6101_v22 = vld [vmem:[%s10120_s11 + $0x138] sm:$0xff] }
 0x3cc   :  { %3761 = vst [vmem:[#allocation3 + $0x128] sm:$0xff] %v8566_v47  ;;  %v8577_v26 = vpop.f32.mrf.mxu0  ;;  %v2982_v59 = vpop.f32.mrf.mxu1  ;;  %v2345_v40 = vadd.f32 %v6101_v22, %v7602_v33 }
 0x3cd   :  { %10492 = vst [vmem:[#allocation190_spill] sm:$0xff] %v8577_v26  ;;  %v8579_v21 = vadd.f32 %v2982_v59, %v2344_v36  ;;  %v6102_v36 = vld [vmem:[%s10120_s11 + $0x140] sm:$0xff] }
 0x3ce   :  { %v8581_v13 = vpop.f32.mrf.mxu0  ;;  %v2984_v7 = vpop.f32.mrf.mxu1 }
 0x3cf   :  { %10493 = vst [vmem:[#allocation191_spill] sm:$0xff] %v8579_v21  ;;  %10494 = vst [vmem:[#allocation192_spill] sm:$0xff] %v8581_v13  ;;  %v2346_v7 = vadd.f32 %v6102_v36, %v7613_v61 }
 0x3d0   :  { %3762 = vst [vmem:[#allocation3 + $0x130] sm:$0xff] %v8579_v21  ;;  %v8588_v3 = vpop.f32.mrf.mxu0  ;;  %v2985_v38 = vpop.f32.mrf.mxu1 }
 0x3d1   :  { %10495 = vst [vmem:[#allocation193_spill] sm:$0xff] %v8588_v3  ;;  %v8590_v41 = vadd.f32 %v2985_v38, %v2345_v40 }
 0x3d2   :  { %v8592_v26 = vpop.f32.mrf.mxu0  ;;  %v2987_v59 = vpop.f32.mrf.mxu1 }
 0x3d3   :  { %10496 = vst [vmem:[#allocation194_spill] sm:$0xff] %v8590_v41  ;;  %10497 = vst [vmem:[#allocation195_spill] sm:$0xff] %v8592_v26  ;;  %v6103_v59 = vld [vmem:[%s10120_s11 + $0x148] sm:$0xff] }
 0x3d4   :  { %3763 = vst [vmem:[#allocation3 + $0x138] sm:$0xff] %v8590_v41  ;;  %v8601_v22 = vpop.f32.mrf.mxu0  ;;  %v2990_v3 = vpop.f32.mrf.mxu1  ;;  %v2347_v26 = vadd.f32 %v6103_v59, %v7620_v1 }
 0x3d5   :  { %10498 = vst [vmem:[#allocation196_spill] sm:$0xff] %v8601_v22  ;;  %v8603_v13 = vadd.f32 %v2990_v3, %v2346_v7  ;;  %v6104_v7 = vld [vmem:[%s10120_s11 + $0x150] sm:$0xff] }
 0x3d6   :  { %v8605_v40 = vpop.f32.mrf.mxu0  ;;  %v2992_v38 = vpop.f32.mrf.mxu1 }
 0x3d7   :  { %10499 = vst [vmem:[#allocation197_spill] sm:$0xff] %v8603_v13  ;;  %10500 = vst [vmem:[#allocation198_spill] sm:$0xff] %v8605_v40  ;;  %v2348_v38 = vadd.f32 %v6104_v7, %v7631_v53 }
 0x3d8   :  { %3764 = vst [vmem:[#allocation3 + $0x140] sm:$0xff] %v8603_v13  ;;  %v8612_v61 = vpop.f32.mrf.mxu0  ;;  %v2993_v36 = vpop.f32.mrf.mxu1 }
 0x3d9   :  { %10501 = vst [vmem:[#allocation199_spill] sm:$0xff] %v8612_v61  ;;  %v8614_v33 = vadd.f32 %v2993_v36, %v2347_v26 }
 0x3da   :  { %v8616_v22 = vpop.f32.mrf.mxu0  ;;  %v2995_v3 = vpop.f32.mrf.mxu1 }
 0x3db   :  { %10502 = vst [vmem:[#allocation200_spill] sm:$0xff] %v8614_v33  ;;  %10503 = vst [vmem:[#allocation201_spill] sm:$0xff] %v8616_v22  ;;  %v6105_v3 = vld [vmem:[%s10120_s11 + $0x158] sm:$0xff] }
 0x3dc   :  { %3765 = vst [vmem:[#allocation3 + $0x148] sm:$0xff] %v8614_v33  ;;  %v8625_v59 = vpop.f32.mrf.mxu0  ;;  %v2998_v61 = vpop.f32.mrf.mxu1  ;;  %v2349_v22 = vadd.f32 %v6105_v3, %v7638_v15  ;;  %v10545_v33 = vld [vmem:[#allocation122_spill] sm:$0xff] }
 0x3dd   :  { %10504 = vst [vmem:[#allocation202_spill] sm:$0xff] %v8625_v59  ;;  %v8627_v40 = vadd.f32 %v2998_v61, %v2348_v38  ;;  %v6106_v38 = vld [vmem:[%s10120_s11 + $0x160] sm:$0xff] }
 0x3de   :  { %v8629_v26 = vpop.f32.mrf.mxu0  ;;  %v3000_v36 = vpop.f32.mrf.mxu1 }
 0x3df   :  { %10505 = vst [vmem:[#allocation203_spill] sm:$0xff] %v8627_v40  ;;  %10506 = vst [vmem:[#allocation204_spill] sm:$0xff] %v8629_v26  ;;  %v10510_v36 = vld [vmem:[#allocation80_spill] sm:$0xff] }
 0x3e0   :  { %3766 = vst [vmem:[#allocation3 + $0x150] sm:$0xff] %v8627_v40  ;;  %v8636_v53 = vpop.f32.mrf.mxu0  ;;  %v3001_v7 = vpop.f32.mrf.mxu1  ;;  %v2350_v26 = vadd.f32 %v6106_v38, %v10510_v36 }
 0x3e1   :  { %10507 = vst [vmem:[#allocation205_spill] sm:$0xff] %v8636_v53  ;;  %v8638_v1 = vadd.f32 %v3001_v7, %v2349_v22 }
 0x3e2   :  { %v8640_v59 = vpop.f32.mrf.mxu0  ;;  %v3003_v61 = vpop.f32.mrf.mxu1 }
 0x3e3   :  { %10508 = vst [vmem:[#allocation206_spill] sm:$0xff] %v8638_v1  ;;  %10509 = vst [vmem:[#allocation207_spill] sm:$0xff] %v8640_v59  ;;  %v6107_v61 = vld [vmem:[%s10120_s11 + $0x168] sm:$0xff] }
 0x3e4   :  { %3767 = vst [vmem:[#allocation3 + $0x158] sm:$0xff] %v8638_v1  ;;  %v8649_v3 = vpop.f32.mrf.mxu0  ;;  %v3006_v53 = vpop.f32.mrf.mxu1  ;;  %v10514_v59 = vld [vmem:[#allocation81_spill] sm:$0xff]  ;;  %v10551_v1 = vld [vmem:[#allocation128_spill] sm:$0xff] }
 0x3e5   :  { %10511 = vst [vmem:[#allocation80_spill] sm:$0xff] %v8649_v3  ;;  %v8651_v39 = vadd.f32 %v3006_v53, %v2350_v26  ;;  %v2351_v52 = vadd.f32 %v6107_v61, %v10514_v59  ;;  %v6108_v53 = vld [vmem:[%s10120_s11 + $0x170] sm:$0xff] }
 0x3e6   :  { %v8653_v22 = vpop.f32.mrf.mxu0  ;;  %v3008_v7 = vpop.f32.mrf.mxu1  ;;  %v8687_v59 = vld [vmem:[%s10119_s10 + $0x10] sm:$0xff] }
 0x3e7   :  { %10512 = vst [vmem:[#allocation208_spill] sm:$0xff] %v8651_v39  ;;  %10513 = vst [vmem:[#allocation209_spill] sm:$0xff] %v8653_v22  ;;  %v10518_v7 = vld [vmem:[#allocation82_spill] sm:$0xff] }
 0x3e8   :  { %3768 = vst [vmem:[#allocation3 + $0x160] sm:$0xff] %v8651_v39  ;;  %v8660_v38 = vpop.f32.mrf.mxu0  ;;  %v3009_v36 = vpop.f32.mrf.mxu1  ;;  %v2352_v22 = vadd.f32 %v6108_v53, %v10518_v7 }
 0x3e9   :  { %10515 = vst [vmem:[#allocation81_spill] sm:$0xff] %v8660_v38  ;;  %v8662_v15 = vadd.f32 %v3009_v36, %v2351_v52 }
 0x3ea   :  { %v8664_v3 = vpop.f32.mrf.mxu0  ;;  %v3011_v26 = vpop.f32.mrf.mxu1 }
 0x3eb   :  { %10516 = vst [vmem:[#allocation210_spill] sm:$0xff] %v8662_v15  ;;  %10517 = vst [vmem:[#allocation211_spill] sm:$0xff] %v8664_v3  ;;  %v6109_v26 = vld [vmem:[%s10120_s11 + $0x178] sm:$0xff] }
 0x3ec   :  { %3769 = vst [vmem:[#allocation3 + $0x168] sm:$0xff] %v8662_v15  ;;  %v8673_v61 = vpop.f32.mrf.mxu0  ;;  %v3014_v38 = vpop.f32.mrf.mxu1  ;;  %v10522_v3 = vld [vmem:[#allocation83_spill] sm:$0xff] }
 0x3ed   :  { %10519 = vst [vmem:[#allocation82_spill] sm:$0xff] %v8673_v61  ;;  %v8675_v24 = vadd.f32 %v3014_v38, %v2352_v22  ;;  %v2353_v11 = vadd.f32 %v6109_v26, %v10522_v3  ;;  %v10523_v22 = vld [vmem:[#allocation15_spill] sm:$0xff]  ;;  %v8697_v3 = vld [vmem:[%s10119_s10] sm:$0xff] }
 0x3ee   :  { %v8677_v52 = vpop.f32.mrf.mxu0  ;;  %v3016_v36 = vpop.f32.mrf.mxu1  ;;  %v2276_v38 = vadd.f32 %v8687_v59, %v10523_v22  ;;  %v10526_v26 = vld [vmem:[#allocation12_spill] sm:$0xff]  ;;  %v10531_v22 = vld [vmem:[#allocation114_spill] sm:$0xff] }
 0x3ef   :  { %10520 = vst [vmem:[#allocation212_spill] sm:$0xff] %v8675_v24  ;;  %10521 = vst [vmem:[#allocation213_spill] sm:$0xff] %v8677_v52  ;;  %v10524_v52 = vld [vmem:[#allocation117_spill] sm:$0xff]  ;;  %v2274_v9 = vadd.f32 %v8697_v3, %v10526_v26  ;;  %v10528_v26 = vld [vmem:[#allocation16_spill] sm:$0xff] }
 0x3f0   :  { %3770 = vst [vmem:[#allocation3 + $0x170] sm:$0xff] %v8675_v24  ;;  %v5596_v53 = vpop.f32.mrf.mxu0  ;;  %v3017_v7 = vpop.f32.mrf.mxu1 }
 0x3f1   :  { %v2678_v36 = vadd.f32 %v5596_v53, %v10524_v52  ;;  %v8692_v61 = vadd.f32 %v3017_v7, %v2353_v11  ;;  %v10527_v52 = vld [vmem:[#allocation111_spill] sm:$0xff] }
 0x3f2   :  { %v2669_v44 = vpop.f32.mrf.mxu0  ;;  %v3019_v46 = vpop.f32.mrf.mxu1  ;;  %v8713_v7 = vld [vmem:[%s10119_s10 + $0x18] sm:$0xff] }
 0x3f3   :  { %10525 = vst [vmem:[#allocation83_spill] sm:$0xff] %v8692_v61  ;;  %v8701_v62 = vadd.f32 %v2678_v36, %v2276_v38  ;;  %3771 = vst [vmem:[#allocation3 + $0x178] sm:$0xff] %v8692_v61  ;;  %v2670_v11 = vadd.f32 %v10527_v52, %v2669_v44  ;;  %v2277_v38 = vadd.f32 %v8713_v7, %v10528_v26  ;;  %v10529_v36 = vld [vmem:[#allocation119_spill] sm:$0xff]  ;;  %v8721_v44 = vld [vmem:[%s10119_s10 + $0x8] sm:$0xff] }
 0x3f4   :  { %v5597_v53 = vpop.f32.mrf.mxu0  ;;  %v10530_v52 = vld [vmem:[#allocation13_spill] sm:$0xff] }
 0x3f5   :  { %3694 = vst [vmem:[#allocation2 + $0x10] sm:$0xff] %v8701_v62  ;;  %v8708_v46 = vadd.f32 %v2670_v11, %v2274_v9  ;;  %v2681_v23 = vadd.f32 %v5597_v53, %v10529_v36  ;;  %v2275_v9 = vadd.f32 %v8721_v44, %v10530_v52  ;;  %v8737_v36 = vld [vmem:[%s10119_s10 + $0x30] sm:$0xff]  ;;  %v10532_v52 = vld [vmem:[#allocation21_spill] sm:$0xff] }
 0x3f6   :  { %v2672_v56 = vpop.f32.mrf.mxu0  ;;  %v2280_v47 = vadd.f32 %v8737_v36, %v10532_v52  ;;  %v10567_v61 = vld [vmem:[#allocation133_spill] sm:$0xff] }
 0x3f7   :  { %3692 = vst [vmem:[#allocation2] sm:$0xff] %v8708_v46  ;;  %v8726_v11 = vadd.f32 %v2681_v23, %v2277_v38  ;;  %v2673_v25 = vadd.f32 %v10531_v22, %v2672_v56 }
 0x3f8   :  { %v5600_v2 = vpop.f32.mrf.mxu0 }
 0x3f9   :  { %3695 = vst [vmem:[#allocation2 + $0x18] sm:$0xff] %v8726_v11  ;;  %v8732_v26 = vadd.f32 %v2673_v25, %v2275_v9  ;;  %v2694_v23 = vadd.f32 %v5600_v2, %v7888_v42  ;;  %v8750_v25 = vld [vmem:[%s10119_s10 + $0x20] sm:$0xff]  ;;  %v10533_v9 = vld [vmem:[#allocation18_spill] sm:$0xff]  ;;  %v8761_v2 = vld [vmem:[%s10119_s10 + $0x38] sm:$0xff] }
 0x3fa   :  { %v2685_v38 = vpop.f32.mrf.mxu0  ;;  %v2278_v53 = vadd.f32 %v8750_v25, %v10533_v9 }
 0x3fb   :  { %3693 = vst [vmem:[#allocation2 + $0x8] sm:$0xff] %v8732_v26  ;;  %v8745_v22 = vadd.f32 %v2694_v23, %v2280_v47  ;;  %v2686_v52 = vadd.f32 %v7871_v5, %v2685_v38  ;;  %v10534_v47 = vld [vmem:[#allocation22_spill] sm:$0xff]  ;;  %v8772_v5 = vld [vmem:[%s10119_s10 + $0x28] sm:$0xff] }
 0x3fc   :  { %v5601_v49 = vpop.f32.mrf.mxu0  ;;  %v2281_v23 = vadd.f32 %v8761_v2, %v10534_v47  ;;  %v10536_v47 = vld [vmem:[#allocation27_spill] sm:$0xff] }
 0x3fd   :  { %3698 = vst [vmem:[#allocation2 + $0x30] sm:$0xff] %v8745_v22  ;;  %v8756_v42 = vadd.f32 %v2686_v52, %v2278_v53  ;;  %v2697_v56 = vadd.f32 %v5601_v49, %v7894_v28  ;;  %v10535_v53 = vld [vmem:[#allocation19_spill] sm:$0xff] }
 0x3fe   :  { %v2688_v0 = vpop.f32.mrf.mxu0  ;;  %v2279_v38 = vadd.f32 %v8772_v5, %v10535_v53 }
 0x3ff   :  { %3696 = vst [vmem:[#allocation2 + $0x20] sm:$0xff] %v8756_v42  ;;  %v8767_v9 = vadd.f32 %v2697_v56, %v2281_v23  ;;  %v2689_v52 = vadd.f32 %v7873_v6, %v2688_v0  ;;  %v8785_v56 = vld [vmem:[%s10119_s10 + $0x50] sm:$0xff]  ;;  %v10539_v6 = vld [vmem:[#allocation121_spill] sm:$0xff] }
 0x400   :  { %v5604_v17 = vpop.f32.mrf.mxu0  ;;  %v2284_v23 = vadd.f32 %v8785_v56, %v10536_v47 }
 0x401   :  { %3699 = vst [vmem:[#allocation2 + $0x38] sm:$0xff] %v8767_v9  ;;  %v8780_v49 = vadd.f32 %v2689_v52, %v2279_v38  ;;  %v2710_v53 = vadd.f32 %v5604_v17, %v7932_v27  ;;  %v8798_v38 = vld [vmem:[%s10119_s10 + $0x40] sm:$0xff]  ;;  %v8809_v17 = vld [vmem:[%s10119_s10 + $0x58] sm:$0xff] }
 0x402   :  { %v2701_v32 = vpop.f32.mrf.mxu0  ;;  %v10537_v52 = vld [vmem:[#allocation24_spill] sm:$0xff] }
 0x403   :  { %3697 = vst [vmem:[#allocation2 + $0x28] sm:$0xff] %v8780_v49  ;;  %v8793_v0 = vadd.f32 %v2710_v53, %v2284_v23  ;;  %v2282_v28 = vadd.f32 %v8798_v38, %v10537_v52  ;;  %v2702_v47 = vadd.f32 %v7910_v16, %v2701_v32  ;;  %v10538_v23 = vld [vmem:[#allocation28_spill] sm:$0xff]  ;;  %v8820_v16 = vld [vmem:[%s10119_s10 + $0x48] sm:$0xff] }
 0x404   :  { %v5605_v21 = vpop.f32.mrf.mxu0  ;;  %v2285_v53 = vadd.f32 %v8809_v17, %v10538_v23  ;;  %v10540_v32 = vld [vmem:[#allocation25_spill] sm:$0xff] }
 0x405   :  { %3702 = vst [vmem:[#allocation2 + $0x50] sm:$0xff] %v8793_v0  ;;  %v8804_v27 = vadd.f32 %v2702_v47, %v2282_v28  ;;  %v2713_v41 = vadd.f32 %v5605_v21, %v10539_v6  ;;  %v2283_v28 = vadd.f32 %v8820_v16, %v10540_v32  ;;  %v10541_v47 = vld [vmem:[#allocation120_spill] sm:$0xff]  ;;  %v10542_v23 = vld [vmem:[#allocation33_spill] sm:$0xff] }
 0x406   :  { %v2704_v34 = vpop.f32.mrf.mxu0 }
 0x407   :  { %3700 = vst [vmem:[#allocation2 + $0x40] sm:$0xff] %v8804_v27  ;;  %v8815_v52 = vadd.f32 %v2713_v41, %v2285_v53  ;;  %v2705_v29 = vadd.f32 %v10541_v47, %v2704_v34  ;;  %v8833_v41 = vld [vmem:[%s10119_s10 + $0x70] sm:$0xff]  ;;  %v10547_v34 = vld [vmem:[#allocation125_spill] sm:$0xff] }
 0x408   :  { %v5608_v14 = vpop.f32.mrf.mxu0  ;;  %v2288_v53 = vadd.f32 %v8833_v41, %v10542_v23 }
 0x409   :  { %3703 = vst [vmem:[#allocation2 + $0x58] sm:$0xff] %v8815_v52  ;;  %v8828_v6 = vadd.f32 %v2705_v29, %v2283_v28  ;;  %v2726_v32 = vadd.f32 %v5608_v14, %v10543_v54  ;;  %v8846_v29 = vld [vmem:[%s10119_s10 + $0x60] sm:$0xff]  ;;  %v10544_v28 = vld [vmem:[#allocation30_spill] sm:$0xff]  ;;  %v8857_v54 = vld [vmem:[%s10119_s10 + $0x78] sm:$0xff] }
 0x40a   :  { %v2717_v13 = vpop.f32.mrf.mxu0  ;;  %v2286_v21 = vadd.f32 %v8846_v29, %v10544_v28 }
 0x40b   :  { %3701 = vst [vmem:[#allocation2 + $0x48] sm:$0xff] %v8828_v6  ;;  %v8841_v47 = vadd.f32 %v2726_v32, %v2288_v53  ;;  %v2718_v23 = vadd.f32 %v10545_v33, %v2717_v13  ;;  %v10546_v53 = vld [vmem:[#allocation34_spill] sm:$0xff]  ;;  %v8868_v13 = vld [vmem:[%s10119_s10 + $0x68] sm:$0xff]  ;;  %v10548_v33 = vld [vmem:[#allocation31_spill] sm:$0xff] }
 0x40c   :  { %v5609_v45 = vpop.f32.mrf.mxu0  ;;  %v2289_v32 = vadd.f32 %v8857_v54, %v10546_v53  ;;  %v10550_v53 = vld [vmem:[#allocation42_spill] sm:$0xff] }
 0x40d   :  { %3706 = vst [vmem:[#allocation2 + $0x70] sm:$0xff] %v8841_v47  ;;  %v8852_v14 = vadd.f32 %v2718_v23, %v2286_v21  ;;  %v2729_v8 = vadd.f32 %v5609_v45, %v10547_v34  ;;  %v2287_v21 = vadd.f32 %v8868_v13, %v10548_v33  ;;  %v10549_v23 = vld [vmem:[#allocation123_spill] sm:$0xff] }
 0x40e   :  { %v2720_v51 = vpop.f32.mrf.mxu0 }
 0x40f   :  { %3704 = vst [vmem:[#allocation2 + $0x60] sm:$0xff] %v8852_v14  ;;  %v8863_v28 = vadd.f32 %v2729_v8, %v2289_v32  ;;  %v2721_v48 = vadd.f32 %v10549_v23, %v2720_v51  ;;  %v8881_v8 = vld [vmem:[%s10119_s10 + $0x90] sm:$0xff]  ;;  %v10555_v51 = vld [vmem:[#allocation129_spill] sm:$0xff] }
 0x410   :  { %v5612_v40 = vpop.f32.mrf.mxu0  ;;  %v2292_v32 = vadd.f32 %v8881_v8, %v10550_v53 }
 0x411   :  { %3707 = vst [vmem:[#allocation2 + $0x78] sm:$0xff] %v8863_v28  ;;  %v8876_v34 = vadd.f32 %v2721_v48, %v2287_v21  ;;  %v2742_v33 = vadd.f32 %v5612_v40, %v10551_v1  ;;  %v8894_v48 = vld [vmem:[%s10119_s10 + $0x80] sm:$0xff]  ;;  %v10552_v21 = vld [vmem:[#allocation37_spill] sm:$0xff]  ;;  %v8905_v1 = vld [vmem:[%s10119_s10 + $0x98] sm:$0xff] }
 0x412   :  { %v2733_v18 = vpop.f32.mrf.mxu0  ;;  %v2290_v45 = vadd.f32 %v8894_v48, %v10552_v21 }
 0x413   :  { %3705 = vst [vmem:[#allocation2 + $0x68] sm:$0xff] %v8876_v34  ;;  %v8889_v23 = vadd.f32 %v2742_v33, %v2292_v32  ;;  %v2734_v53 = vadd.f32 %v10553_v50, %v2733_v18  ;;  %v10554_v32 = vld [vmem:[#allocation44_spill] sm:$0xff]  ;;  %v8916_v50 = vld [vmem:[%s10119_s10 + $0x88] sm:$0xff]  ;;  %v10557_v18 = vld [vmem:[#allocation39_spill] sm:$0xff] }
 0x414   :  { %v5613_v30 = vpop.f32.mrf.mxu0  ;;  %v2293_v33 = vadd.f32 %v8905_v1, %v10554_v32  ;;  %10556 = vst [vmem:[#allocation15_spill] sm:$0xff] %v8916_v50 }
 0x415   :  { %3710 = vst [vmem:[#allocation2 + $0x90] sm:$0xff] %v8889_v23  ;;  %v8900_v40 = vadd.f32 %v2734_v53, %v2290_v45  ;;  %v2745_v55 = vadd.f32 %v5613_v30, %v10555_v51  ;;  %v2291_v45 = vadd.f32 %v8916_v50, %v10557_v18  ;;  %v10558_v53 = vld [vmem:[#allocation127_spill] sm:$0xff]  ;;  %v10560_v30 = vld [vmem:[#allocation52_spill] sm:$0xff] }
 0x416   :  { %v2736_v39 = vpop.f32.mrf.mxu0 }
 0x417   :  { %3708 = vst [vmem:[#allocation2 + $0x80] sm:$0xff] %v8900_v40  ;;  %v8911_v21 = vadd.f32 %v2745_v55, %v2293_v33  ;;  %v2737_v15 = vadd.f32 %v10558_v53, %v2736_v39  ;;  %v8927_v55 = vld [vmem:[%s10119_s10 + $0xb0] sm:$0xff]  ;;  %v10561_v33 = vld [vmem:[#allocation132_spill] sm:$0xff] }
 0x418   :  { %v5616_v4 = vpop.f32.mrf.mxu0  ;;  %10559 = vst [vmem:[#allocation117_spill] sm:$0xff] %v8927_v55  ;;  %v2296_v51 = vadd.f32 %v8927_v55, %v10560_v30 }
 0x419   :  { %3711 = vst [vmem:[#allocation2 + $0x98] sm:$0xff] %v8911_v21  ;;  %v8922_v32 = vadd.f32 %v2737_v15, %v2291_v45  ;;  %v2758_v31 = vadd.f32 %v5616_v4, %v10561_v33  ;;  %v8940_v15 = vld [vmem:[%s10119_s10 + $0xa0] sm:$0xff]  ;;  %v10563_v45 = vld [vmem:[#allocation47_spill] sm:$0xff] }
 0x41a   :  { %v2749_v58 = vpop.f32.mrf.mxu0  ;;  %10562 = vst [vmem:[#allocation12_spill] sm:$0xff] %v8940_v15  ;;  %v2294_v53 = vadd.f32 %v8940_v15, %v10563_v45  ;;  %v10570_v4 = vld [vmem:[#allocation131_spill] sm:$0xff] }
 0x41b   :  { %3709 = vst [vmem:[#allocation2 + $0x88] sm:$0xff] %v8922_v32  ;;  %v8935_v39 = vadd.f32 %v2758_v31, %v2296_v51  ;;  %v2750_v30 = vadd.f32 %v10564_v63, %v2749_v58  ;;  %v8953_v31 = vld [vmem:[%s10119_s10 + $0xb8] sm:$0xff]  ;;  %v10566_v51 = vld [vmem:[#allocation54_spill] sm:$0xff]  ;;  %v8964_v58 = vld [vmem:[%s10119_s10 + $0xa8] sm:$0xff] }
 0x41c   :  { %v5617_v33 = vpop.f32.mrf.mxu0  ;;  %10565 = vst [vmem:[#allocation111_spill] sm:$0xff] %v8953_v31  ;;  %v2297_v24 = vadd.f32 %v8953_v31, %v10566_v51  ;;  %10568 = vst [vmem:[#allocation16_spill] sm:$0xff] %v8964_v58  ;;  %v8972_v51 = vld [vmem:[%s10119_s10 + $0xd0] sm:$0xff]  ;;  %v10578_v31 = vld [vmem:[#allocation135_spill] sm:$0xff] }
 0x41d   :  { %3714 = vst [vmem:[#allocation2 + $0xb0] sm:$0xff] %v8935_v39  ;;  %v8948_v18 = vadd.f32 %v2750_v30, %v2294_v53  ;;  %v2761_v45 = vadd.f32 %v5617_v33, %v10567_v61  ;;  %v10569_v53 = vld [vmem:[#allocation49_spill] sm:$0xff]  ;;  %10571 = vst [vmem:[#allocation119_spill] sm:$0xff] %v8972_v51  ;;  %v10572_v61 = vld [vmem:[#allocation62_spill] sm:$0xff] }
 0x41e   :  { %v2752_v37 = vpop.f32.mrf.mxu0  ;;  %v2295_v30 = vadd.f32 %v8964_v58, %v10569_v53  ;;  %v2300_v33 = vadd.f32 %v8972_v51, %v10572_v61  ;;  %v10577_v58 = vld [vmem:[#allocation57_spill] sm:$0xff]  ;;  %v9000_v15 = vld [vmem:[%s10119_s10 + $0xd8] sm:$0xff] }
 0x41f   :  { %3712 = vst [vmem:[#allocation2 + $0xa0] sm:$0xff] %v8948_v18  ;;  %v8959_v63 = vadd.f32 %v2761_v45, %v2297_v24  ;;  %v2753_v43 = vadd.f32 %v10570_v4, %v2752_v37  ;;  %v10573_v45 = vld [vmem:[#allocation138_spill] sm:$0xff]  ;;  %v8987_v4 = vld [vmem:[%s10119_s10 + $0xc0] sm:$0xff]  ;;  %10581 = vst [vmem:[#allocation114_spill] sm:$0xff] %v9000_v15 }
 0x420   :  { %v5620_v24 = vpop.f32.mrf.mxu0  ;;  %v5249_v19 = vadd.f32 %v10574_v60, %v10573_v45  ;;  %10576 = vst [vmem:[#allocation13_spill] sm:$0xff] %v8987_v4  ;;  %v2298_v61 = vadd.f32 %v8987_v4, %v10577_v58  ;;  %v10579_v60 = vld [vmem:[#allocation136_spill] sm:$0xff] }
 0x421   :  { %3715 = vst [vmem:[#allocation2 + $0xb8] sm:$0xff] %v8959_v63  ;;  %v8979_v57 = vadd.f32 %v2753_v43, %v2295_v30  ;;  %v2774_v53 = vadd.f32 %v5620_v24, %v10575_v20  ;;  %v4167_v37 = vpack.c.bf16 %v8959_v63, %v8935_v39  ;;  %v5243_v45 = vadd.f32 %v10579_v60, %v10578_v31  ;;  %v10580_v30 = vld [vmem:[#allocation134_spill] sm:$0xff]  ;;  %v10582_v58 = vld [vmem:[#allocation64_spill] sm:$0xff] }
 0x422   :  { %v2765_v51 = vpop.f32.mrf.mxu0  ;;  %v2301_v4 = vadd.f32 %v9000_v15, %v10582_v58  ;;  %v9014_v58 = vld [vmem:[%s10119_s10 + $0xf0] sm:$0xff] }
 0x423   :  { %3713 = vst [vmem:[#allocation2 + $0xa8] sm:$0xff] %v8979_v57  ;;  %v3558_v43 = vadd.f32 %v2774_v53, %v2300_v33  ;;  %v2766_v20 = vadd.f32 %v10580_v30, %v2765_v51  ;;  %v9007_v51 = vld [vmem:[%s10119_s10 + $0xc8] sm:$0xff]  ;;  %v10584_v53 = vld [vmem:[#allocation59_spill] sm:$0xff] }
 0x424   :  { %v5621_v63 = vpop.f32.mrf.mxu0  ;;  %10583 = vst [vmem:[#allocation21_spill] sm:$0xff] %v9007_v51 }
 0x425   :  { %3718 = vst [vmem:[#allocation2 + $0xd0] sm:$0xff] %v3558_v43  ;;  %v3556_v24 = vadd.f32 %v2766_v20, %v2298_v61  ;;  %v2777_v31 = vadd.f32 %v5621_v63, %v5249_v19  ;;  %v2299_v61 = vadd.f32 %v9007_v51, %v10584_v53  ;;  %v10585_v19 = vld [vmem:[#allocation73_spill] sm:$0xff] }
 0x426   :  { %v2768_v60 = vpop.f32.mrf.mxu0 }
 0x427   :  { %3716 = vst [vmem:[#allocation2 + $0xc0] sm:$0xff] %v3556_v24  ;;  %v3559_v33 = vadd.f32 %v2777_v31, %v2301_v4  ;;  %v2769_v30 = vadd.f32 %v5243_v45, %v2768_v60  ;;  %v2304_v4 = vadd.f32 %v9014_v58, %v10585_v19  ;;  %v9022_v45 = vld [vmem:[%s10119_s10 + $0xe0] sm:$0xff]  ;;  %v10586_v60 = vld [vmem:[#allocation67_spill] sm:$0xff] }
 0x428   :  { %v5624_v20 = vpop.f32.mrf.mxu0  ;;  %v2302_v53 = vadd.f32 %v9022_v45, %v10586_v60  ;;  %v10590_v60 = vld [vmem:[#allocation141_spill] sm:$0xff] }
 0x429   :  { %3719 = vst [vmem:[#allocation2 + $0xd8] sm:$0xff] %v3559_v33  ;;  %v3557_v39 = vadd.f32 %v2769_v30, %v2299_v61  ;;  %v2790_v63 = vadd.f32 %v5624_v20, %v8114_v10  ;;  %v4169_v31 = vpack.c.bf16 %v3559_v33, %v3558_v43  ;;  %v10587_v61 = vld [vmem:[#allocation140_spill] sm:$0xff]  ;;  %v9030_v10 = vld [vmem:[%s10119_s10 + $0xf8] sm:$0xff]  ;;  %v10588_v43 = vld [vmem:[#allocation74_spill] sm:$0xff] }
 0x42a   :  { %v2781_v15 = vpop.f32.mrf.mxu0  ;;  %v2305_v33 = vadd.f32 %v9030_v10, %v10588_v43 }
 0x42b   :  { %3717 = vst [vmem:[#allocation2 + $0xc8] sm:$0xff] %v3557_v39  ;;  %v3562_v55 = vadd.f32 %v2790_v63, %v2304_v4  ;;  %v2782_v30 = vadd.f32 %v10587_v61, %v2781_v15  ;;  %v4168_v51 = vpack.c.bf16 %v3557_v39, %v3556_v24  ;;  %v9038_v15 = vld [vmem:[%s10119_s10 + $0xe8] sm:$0xff] }
 0x42c   :  { %v5625_v50 = vpop.f32.mrf.mxu0  ;;  %v10589_v39 = vld [vmem:[#allocation69_spill] sm:$0xff] }
 0x42d   :  { %3722 = vst [vmem:[#allocation2 + $0xf0] sm:$0xff] %v3562_v55  ;;  %v3560_v19 = vadd.f32 %v2782_v30, %v2302_v53  ;;  %v2793_v20 = vadd.f32 %v5625_v50, %v8128_v12  ;;  %v2303_v24 = vadd.f32 %v9038_v15, %v10589_v39  ;;  %v10591_v12 = vpack.c.bf16 %v8863_v28, %v8841_v47 }
 0x42e   :  { %v2784_v4 = vpop.f32.mrf.mxu0  ;;  %v10592_v50 = vpack.c.bf16 %v8876_v34, %v8852_v14 }
 0x42f   :  { %3720 = vst [vmem:[#allocation2 + $0xe0] sm:$0xff] %v3560_v19  ;;  %v3563_v63 = vadd.f32 %v2793_v20, %v2305_v33  ;;  %v2785_v53 = vadd.f32 %v10590_v60, %v2784_v4  ;;  %v10593_v20 = vpack.c.bf16 %v8815_v52, %v8793_v0  ;;  %v10603_v60 = vld [vmem:[#allocation66_spill] sm:$0xff] }
 0x430   :  { %v5302_v33 = vpop.f32.mrf.mxu0 }
 0x431   :  { %3723 = vst [vmem:[#allocation2 + $0xf8] sm:$0xff] %v3563_v63  ;;  %v3561_v61 = vadd.f32 %v2785_v53, %v2303_v24  ;;  %v4171_v30 = vpack.c.bf16 %v3563_v63, %v3562_v55  ;;  %v10604_v53 = vpack.c.bf16 %v8726_v11, %v8701_v62  ;;  %v10607_v62 = vld [vmem:[#allocation61_spill] sm:$0xff]  ;;  %v10608_v11 = vld [vmem:[#allocation26_spill] sm:$0xff] }
 0x432   :  { %v5303_v55 = vpop.f32.mrf.mxu0 }
 0x433   :  { %3721 = vst [vmem:[#allocation2 + $0xe8] sm:$0xff] %v3561_v61  ;;  %5381 = vmatprep.subr.bf16.mxu1 %v4171_v30  ;;  %v4170_v43 = vpack.c.bf16 %v3561_v61, %v3560_v19  ;;  %v10594_v19 = vpack.c.bf16 %v8828_v6, %v8804_v27  ;;  %v5304_v39 = vadd.f32 %v5303_v55, %v5302_v33  ;;  %v10597_v6 = vld [vmem:[#allocation76_spill] sm:$0xff]  ;;  %v10606_v61 = vld [vmem:[#allocation29_spill] sm:$0xff]  ;;  %v10612_v33 = vld [vmem:[#allocation51_spill] sm:$0xff] }
 0x434   :  { %5382 = vmatpush3.bf16.xpose.msra.mxu1 %v10591_v12  ;;  %v5305_v4 = vpop.f32.mrf.mxu0  ;;  %v6145_v30 = vld [vmem:[%s10116_s7 + $0x20] sm:$0xff]   ;;  %v10610_v12 = vpack.c.bf16 %v8732_v26, %v8708_v46  ;;  %v10614_v26 = vld [vmem:[#allocation46_spill] sm:$0xff]  ;;  %v10615_v55 = vld [vmem:[#allocation17_spill] sm:$0xff] }
 0x435   :  { %5383 = vmatprep.subr.bf16.mxu1 %v4170_v43  ;;  %v10609_v43 = vld [vmem:[#allocation56_spill] sm:$0xff] }
 0x436   :  { %v5306_v47 = vpop.f32.mrf.mxu0  ;;  %v10613_v46 = vld [vmem:[#allocation20_spill] sm:$0xff] }
 0x437   :  { %v5307_v14 = vadd.f32 %v5306_v47, %v5305_v4  ;;  %v6149_v4 = vld [vmem:[%s10116_s7 + $0x40] sm:$0xff]   ;;  %v10617_v47 = vld [vmem:[#allocation14_spill] sm:$0xff] }
 0x43c   :  { %5384 = vmatpush3.bf16.xpose.msra.mxu1 %v10592_v50  ;;  %v6147_v50 = vld [vmem:[%s10116_s7 + $0x30] sm:$0xff]  }
 0x43d   :  { %5385 = vmatprep.subr.bf16.mxu1 %v4169_v31  ;;  %v10595_v31 = vpack.c.bf16 %v8767_v9, %v8745_v22  ;;  %v6142_v22 = vld [vmem:[%s10116_s7 + $0x8] sm:$0xff]   ;;  %v10600_v9 = vld [vmem:[#allocation36_spill] sm:$0xff] }
 0x444   :  { %5386 = vmatpush3.bf16.xpose.msra.mxu1 %v10593_v20  ;;  %v6148_v20 = vld [vmem:[%s10116_s7 + $0x38] sm:$0xff]  }
 0x445   :  { %5387 = vmatprep.subr.bf16.mxu1 %v4168_v51  ;;  %v10596_v51 = vpack.c.bf16 %v8979_v57, %v8948_v18  ;;  %v10599_v57 = vpack.c.bf16 %v8911_v21, %v8889_v23  ;;  %v6143_v18 = vld [vmem:[%s10116_s7 + $0x10] sm:$0xff]   ;;  %v6144_v23 = vld [vmem:[%s10116_s7 + $0x18] sm:$0xff]   ;;  %v10605_v21 = vpack.c.bf16 %v8922_v32, %v8900_v40  ;;  %v6146_v40 = vld [vmem:[%s10116_s7 + $0x28] sm:$0xff]  }
 0x446   :  { %v10611_v32 = vld [vmem:[#allocation23_spill] sm:$0xff] }
 0x44c   :  { %5388 = vmatpush3.bf16.xpose.msra.mxu1 %v10594_v19  ;;  %v10616_v19 = vld [vmem:[#allocation41_spill] sm:$0xff] }
 0x44d   :  { %5389 = vmatprep.subr.bf16.mxu1 %v4167_v37  ;;  %v10598_v37 = vpack.c.bf16 %v8780_v49, %v8756_v42  ;;  %v10601_v42 = vld [vmem:[#allocation71_spill] sm:$0xff]  ;;  %v10602_v49 = vld [vmem:[#allocation32_spill] sm:$0xff] }
 0x450   :  { %v3096_v28 = vpop.f32.mrf.mxu0 }
 0x451   :  { %v3097_v0 = vadd.f32 %v5304_v39, %v3096_v28  ;;  %v6150_v28 = vld [vmem:[%s10116_s7 + $0x48] sm:$0xff]   ;;  %v6152_v39 = vld [vmem:[%s10116_s7 + $0x58] sm:$0xff]  }
 0x452   :  { %v5644_v63 = vpop.f32.mrf.mxu0 }
 0x453   :  { %v6151_v63 = vld [vmem:[%s10116_s7 + $0x50] sm:$0xff]  }
 0x454   :  { %v3099_v34 = vpop.f32.mrf.mxu0  ;;  %5390 = vmatpush3.bf16.xpose.msra.mxu1 %v10595_v31  ;;  %v6155_v31 = vld [vmem:[%s10116_s7 + $0x70] sm:$0xff]  }
 0x455   :  { %v3100_v52 = vadd.f32 %v5307_v14, %v3099_v34  ;;  %5391 = vmatprep.subr.bf16.mxu1 %v10596_v51  ;;  %v6153_v14 = vld [vmem:[%s10116_s7 + $0x60] sm:$0xff]   ;;  %v6154_v34 = vld [vmem:[%s10116_s7 + $0x68] sm:$0xff]  }
 0x456   :  { %v5645_v24 = vpop.f32.mrf.mxu0  ;;  %v6158_v51 = vld [vmem:[%s10117_s8] ss:$8 sps:$4 sm:$0xff]  }
 0x457   :  { %v3103_v27 = vpack.c.bf16 %v3100_v52, %v3097_v0  ;;  %v6156_v0 = vld [vmem:[%s10116_s7 + $0x78] sm:$0xff]   ;;  %v6157_v52 = vld [vmem:[%s10117_s8 + $0x4] ss:$8 sps:$4 sm:$0xff]   ;;  %s9227_s7 = sld [smem:[#allocation7]] }
 0x458   :  { %v6159_v24 = vld [vmem:[%s10118_s9] sm:$0xff]   ;;  %s9229_s8 = sld [smem:[#allocation7 + $0x1]] }
 0x459   :  { %5646 = vmatprep.subr.bf16.mxu0 %v3103_v27 }
 0x45a   :  { %5647 = vmatpush3.bf16.msra.mxu0 %v3103_v27  ;;  %v10618_v27 = vld [vmem:[#allocation84_spill] sm:$0xff] }
 0x45b   :  { %5334 = vmatprep.subr.bf16.mxu0 %v10597_v6  ;;  %v2356_v6 = vadd.f32 %v8687_v59, %v10618_v27 }
 0x45c   :  { %5392 = vmatpush3.bf16.xpose.msra.mxu1 %v10598_v37 }
 0x45d   :  { %5649 = vmatmul.mubr.msk.bf16.vlgmr.msra.gmra.mxu0 %vm1595_vm1, %v6142_v22  ;;  %5393 = vmatprep.subr.bf16.mxu1 %v10599_v57  ;;  %v10619_v22 = vld [vmem:[#allocation85_spill] sm:$0xff]  ;;  %s3853_s15 = scalar_lea.vmem [#allocation4], %s9227_s7 }
 0x45e   :  { %5335 = vmatpush3.bf16.msra.mxu0 %v10600_v9  ;;  %5652 = vmatprep.mubr.msk.bf16.mxu0 %vm1595_vm1, %v6143_v18  ;;  %v2354_v57 = vadd.f32 %v8697_v3, %v10619_v22  ;;  %s3856_s29 = scalar_lea.vmem [#allocation4], %s9229_s8 }
 0x45f   :  { %5336 = vmatprep.subr.bf16.mxu0 %v10601_v42  ;;  %v10620_v42 = vld [vmem:[#allocation86_spill] sm:$0xff] }
 0x462   :  { %5337 = vmatpush3.bf16.msra.mxu0 %v10602_v49  ;;  %v2357_v49 = vadd.f32 %v8713_v7, %v10620_v42  ;;  %v10633_v42 = vld [vmem:[#allocation99_spill] sm:$0xff] }
 0x463   :  { %5338 = vmatprep.subr.bf16.mxu0 %v10603_v60 }
 0x464   :  { %5394 = vmatpush3.bf16.xpose.msra.mxu1 %v10604_v53 }
 0x465   :  { %5653 = vmatmul.mubr.msk.bf16.gmra.mxu0 %vm1595_vm1, %v6144_v23  ;;  %5395 = vmatprep.subr.bf16.mxu1 %v10605_v21  ;;  %v10621_v23 = vld [vmem:[#allocation87_spill] sm:$0xff] }
 0x466   :  { %5339 = vmatpush3.bf16.msra.mxu0 %v10606_v61  ;;  %5656 = vmatprep.mubr.msk.bf16.mxu0 %vm1595_vm1, %v6145_v30  ;;  %v2355_v21 = vadd.f32 %v8721_v44, %v10621_v23 }
 0x467   :  { %5340 = vmatprep.subr.bf16.mxu0 %v10607_v62  ;;  %v10622_v62 = vld [vmem:[#allocation88_spill] sm:$0xff] }
 0x468   :  { %v2360_v59 = vadd.f32 %v8737_v36, %v10622_v62 }
 0x46a   :  { %5341 = vmatpush3.bf16.msra.mxu0 %v10608_v11 }
 0x46b   :  { %5342 = vmatprep.subr.bf16.mxu0 %v10609_v43  ;;  %v10623_v43 = vld [vmem:[#allocation89_spill] sm:$0xff] }
 0x46c   :  { %5396 = vmatpush3.bf16.xpose.msra.mxu1 %v10610_v12  ;;  %v2358_v12 = vadd.f32 %v8750_v25, %v10623_v43  ;;  %v10637_v43 = vld [vmem:[#allocation103_spill] sm:$0xff] }
 0x46d   :  { %5657 = vmatmul.mubr.msk.bf16.gmra.mxu0 %vm1595_vm1, %v6146_v40  ;;  %5730 = vmatprep.subr.bf16.mxu1 %v10417_v35 }
 0x46e   :  { %5343 = vmatpush3.bf16.msra.mxu0 %v10611_v32  ;;  %5660 = vmatprep.mubr.msk.bf16.mxu0 %vm1595_vm1, %v6147_v50  ;;  %v10624_v32 = vld [vmem:[#allocation90_spill] sm:$0xff] }
 0x46f   :  { %5344 = vmatprep.subr.bf16.mxu0 %v10612_v33  ;;  %v2361_v50 = vadd.f32 %v8761_v2, %v10624_v32  ;;  %v10639_v32 = vld [vmem:[#allocation104_spill] sm:$0xff] }
 0x472   :  { %5345 = vmatpush3.bf16.msra.mxu0 %v10613_v46  ;;  %v10625_v46 = vld [vmem:[#allocation91_spill] sm:$0xff] }
 0x473   :  { %5346 = vmatprep.subr.bf16.mxu0 %v10614_v26  ;;  %v2359_v26 = vadd.f32 %v8772_v5, %v10625_v46  ;;  %v10641_v46 = vld [vmem:[#allocation105_spill] sm:$0xff] }
 0x475   :  { %5661 = vmatmul.mubr.msk.bf16.gmra.mxu0 %vm1595_vm1, %v6148_v20 }
 0x476   :  { %5347 = vmatpush3.bf16.msra.mxu0 %v10615_v55  ;;  %5664 = vmatprep.mubr.msk.bf16.mxu0 %vm1595_vm1, %v6149_v4  ;;  %v10626_v55 = vld [vmem:[#allocation92_spill] sm:$0xff] }
 0x477   :  { %5348 = vmatprep.subr.bf16.mxu0 %v10616_v19  ;;  %v2364_v4 = vadd.f32 %v8785_v56, %v10626_v55  ;;  %v10643_v55 = vld [vmem:[#allocation106_spill] sm:$0xff] }
 0x47a   :  { %5349 = vmatpush3.bf16.msra.mxu0 %v10617_v47  ;;  %v10627_v47 = vld [vmem:[#allocation93_spill] sm:$0xff] }
 0x47d   :  { %5665 = vmatmul.mubr.msk.bf16.gmra.mxu0 %vm1595_vm1, %v6150_v28  ;;  %v2362_v28 = vadd.f32 %v8798_v38, %v10627_v47 }
 0x47e   :  { %5668 = vmatprep.mubr.msk.bf16.mxu0 %vm1595_vm1, %v6151_v63 }
 0x485   :  { %5669 = vmatmul.mubr.msk.bf16.gmra.mxu0 %vm1595_vm1, %v6152_v39  ;;  %v10628_v39 = vld [vmem:[#allocation94_spill] sm:$0xff] }
 0x486   :  { %5672 = vmatprep.mubr.msk.bf16.mxu0 %vm1595_vm1, %v6153_v14  ;;  %v2365_v14 = vadd.f32 %v8809_v17, %v10628_v39 }
 0x48d   :  { %5673 = vmatmul.mubr.msk.bf16.gmra.mxu0 %vm1595_vm1, %v6154_v34 }
 0x48e   :  { %5676 = vmatprep.mubr.msk.bf16.mxu0 %vm1595_vm1, %v6155_v31  ;;  %v10629_v31 = vld [vmem:[#allocation95_spill] sm:$0xff] }
 0x495   :  { %5677 = vmatmul.mubr.msk.bf16.gmra.mxu0 %vm1595_vm1, %v6156_v0  ;;  %v2363_v0 = vadd.f32 %v8820_v16, %v10629_v31 }
 0x496   :  { %3297 = vmatprep.mubr.bf16.mxu0 %v6157_v52 }
 0x49d   :  { %3298 = vmatmul.mubr.bf16.vlgmr.msra.gmra.mxu0 %v6158_v51  ;;  %v10630_v51 = vld [vmem:[#allocation96_spill] sm:$0xff] }
 0x49e   :  { %5682 = vmatprep.mubr.msk.bf16.mxu0 %vm1595_vm1, %v6159_v24  ;;  %v2368_v24 = vadd.f32 %v8833_v41, %v10630_v51  ;;  %v10650_v51 = vld [vmem:[#allocation13_spill] sm:$0xff] }
 0x51d   :  { %v5650_v37 = vpop.f32.mrf.mxu0 }
 0x51e   :  { %v3614_v9 = vadd.f32 %v5650_v37, %v2356_v6  ;;  %v10631_v6 = vld [vmem:[#allocation97_spill] sm:$0xff] }
 0x51f   :  { %v3138_v18 = vpop.f32.mrf.mxu0  ;;  %v2366_v37 = vadd.f32 %v8846_v29, %v10631_v6  ;;  %v10651_v6 = vld [vmem:[#allocation110_spill] sm:$0xff] }
 0x520   :  { %3774 = vst [vmem:[#allocation4 + $0x10] sm:$0xff] %v3614_v9  ;;  %v3612_v60 = vadd.f32 %v3138_v18, %v2354_v57  ;;  %v10632_v57 = vld [vmem:[#allocation98_spill] sm:$0xff] }
 0x521   :  { %v5651_v53 = vpop.f32.mrf.mxu0  ;;  %v2369_v9 = vadd.f32 %v8857_v54, %v10632_v57 }
 0x522   :  { %3772 = vst [vmem:[#allocation4] sm:$0xff] %v3612_v60  ;;  %v3615_v61 = vadd.f32 %v5651_v53, %v2357_v49  ;;  %v2367_v49 = vadd.f32 %v8868_v13, %v10633_v42  ;;  %v10634_v53 = vld [vmem:[#allocation100_spill] sm:$0xff] }
 0x523   :  { %v3141_v30 = vpop.f32.mrf.mxu0  ;;  %v2372_v23 = vadd.f32 %v8881_v8, %v10634_v53 }
 0x524   :  { %3775 = vst [vmem:[#allocation4 + $0x18] sm:$0xff] %v3615_v61  ;;  %v3613_v11 = vadd.f32 %v3141_v30, %v2355_v21  ;;  %v10635_v61 = vld [vmem:[#allocation101_spill] sm:$0xff] }
 0x525   :  { %v5654_v3 = vpop.f32.mrf.mxu0  ;;  %v2370_v30 = vadd.f32 %v8894_v48, %v10635_v61 }
 0x526   :  { %3773 = vst [vmem:[#allocation4 + $0x8] sm:$0xff] %v3613_v11  ;;  %v3618_v7 = vadd.f32 %v5654_v3, %v2360_v59  ;;  %v10636_v59 = vld [vmem:[#allocation102_spill] sm:$0xff] }
 0x527   :  { %v3154_v40 = vpop.f32.mrf.mxu0  ;;  %v2373_v11 = vadd.f32 %v8905_v1, %v10636_v59 }
 0x528   :  { %3778 = vst [vmem:[#allocation4 + $0x30] sm:$0xff] %v3618_v7  ;;  %v3616_v44 = vadd.f32 %v3154_v40, %v2358_v12  ;;  %v10638_v12 = vld [vmem:[#allocation15_spill] sm:$0xff] }
 0x529   :  { %v5655_v33 = vpop.f32.mrf.mxu0  ;;  %v2371_v7 = vadd.f32 %v10638_v12, %v10637_v43 }
 0x52a   :  { %3776 = vst [vmem:[#allocation4 + $0x20] sm:$0xff] %v3616_v44  ;;  %v3619_v36 = vadd.f32 %v5655_v33, %v2361_v50  ;;  %v10640_v50 = vld [vmem:[#allocation117_spill] sm:$0xff] }
 0x52b   :  { %v3157_v20 = vpop.f32.mrf.mxu0  ;;  %v2376_v44 = vadd.f32 %v10640_v50, %v10639_v32 }
 0x52c   :  { %3779 = vst [vmem:[#allocation4 + $0x38] sm:$0xff] %v3619_v36  ;;  %v3617_v25 = vadd.f32 %v3157_v20, %v2359_v26  ;;  %v10642_v26 = vld [vmem:[#allocation12_spill] sm:$0xff] }
 0x52d   :  { %v5658_v19 = vpop.f32.mrf.mxu0  ;;  %v2374_v36 = vadd.f32 %v10642_v26, %v10641_v46 }
 0x52e   :  { %3777 = vst [vmem:[#allocation4 + $0x28] sm:$0xff] %v3617_v25  ;;  %v3622_v2 = vadd.f32 %v5658_v19, %v2364_v4  ;;  %v10644_v4 = vld [vmem:[#allocation111_spill] sm:$0xff] }
 0x52f   :  { %v3170_v63 = vpop.f32.mrf.mxu0  ;;  %v2377_v25 = vadd.f32 %v10644_v4, %v10643_v55 }
 0x530   :  { %3782 = vst [vmem:[#allocation4 + $0x50] sm:$0xff] %v3622_v2  ;;  %v3620_v5 = vadd.f32 %v3170_v63, %v2362_v28  ;;  %v10645_v28 = vld [vmem:[#allocation107_spill] sm:$0xff]  ;;  %v10646_v2 = vld [vmem:[#allocation16_spill] sm:$0xff] }
 0x531   :  { %v5659_v34 = vpop.f32.mrf.mxu0  ;;  %v2375_v63 = vadd.f32 %v10646_v2, %v10645_v28 }
 0x532   :  { %3780 = vst [vmem:[#allocation4 + $0x40] sm:$0xff] %v3620_v5  ;;  %v3623_v56 = vadd.f32 %v5659_v34, %v2365_v14  ;;  %v10647_v5 = vld [vmem:[#allocation108_spill] sm:$0xff]  ;;  %v10648_v34 = vld [vmem:[#allocation119_spill] sm:$0xff] }
 0x533   :  { %v3173_v52 = vpop.f32.mrf.mxu0  ;;  %v2380_v31 = vadd.f32 %v10648_v34, %v10647_v5  ;;  %v6160_v5 = vld [vmem:[%s10118_s9 + $0x8] sm:$0xff]  }
 0x534   :  { %3783 = vst [vmem:[#allocation4 + $0x58] sm:$0xff] %v3623_v56  ;;  %v3621_v38 = vadd.f32 %v3173_v52, %v2363_v0  ;;  %v10649_v52 = vld [vmem:[#allocation109_spill] sm:$0xff] }
 0x535   :  { %v5662_v27 = vpop.f32.mrf.mxu0 }
 0x536   :  { %3781 = vst [vmem:[#allocation4 + $0x48] sm:$0xff] %v3621_v38  ;;  %v3626_v17 = vadd.f32 %v5662_v27, %v2368_v24  ;;  %v2378_v24 = vadd.f32 %v10650_v51, %v10649_v52 }
 0x537   :  { %v3186_v22 = vpop.f32.mrf.mxu0 }
 0x538   :  { %3786 = vst [vmem:[#allocation4 + $0x70] sm:$0xff] %v3626_v17  ;;  %v3624_v16 = vadd.f32 %v3186_v22, %v2366_v37  ;;  %v10652_v37 = vld [vmem:[#allocation114_spill] sm:$0xff] }
 0x539   :  { %v5663_v18 = vpop.f32.mrf.mxu0  ;;  %v2381_v17 = vadd.f32 %v10652_v37, %v10651_v6  ;;  %v10666_v6 = vld [vmem:[#allocation161_spill] sm:$0xff] }
 0x53a   :  { %3784 = vst [vmem:[#allocation4 + $0x60] sm:$0xff] %v3624_v16  ;;  %v3627_v41 = vadd.f32 %v5663_v18, %v2369_v9  ;;  %v10653_v9 = vld [vmem:[#allocation112_spill] sm:$0xff]  ;;  %v10654_v16 = vld [vmem:[#allocation21_spill] sm:$0xff] }
 0x53b   :  { %v3189_v60 = vpop.f32.mrf.mxu0  ;;  %v2379_v18 = vadd.f32 %v10654_v16, %v10653_v9  ;;  %v10669_v9 = vld [vmem:[#allocation83_spill] sm:$0xff]  ;;  %v10670_v16 = vld [vmem:[#allocation212_spill] sm:$0xff] }
 0x53c   :  { %3787 = vst [vmem:[#allocation4 + $0x78] sm:$0xff] %v3627_v41  ;;  %v3625_v29 = vadd.f32 %v3189_v60, %v2367_v49  ;;  %v10655_v41 = vld [vmem:[#allocation113_spill] sm:$0xff] }
 0x53d   :  { %v5666_v21 = vpop.f32.mrf.mxu0  ;;  %v2384_v60 = vadd.f32 %v9014_v58, %v10655_v41  ;;  %v10673_v41 = vld [vmem:[#allocation65_spill] sm:$0xff] }
 0x53e   :  { %3785 = vst [vmem:[#allocation4 + $0x68] sm:$0xff] %v3625_v29  ;;  %v3630_v54 = vadd.f32 %v5666_v21, %v2372_v23  ;;  %v10656_v29 = vld [vmem:[#allocation115_spill] sm:$0xff] }
 0x53f   :  { %v3202_v62 = vpop.f32.mrf.mxu0  ;;  %v2382_v21 = vadd.f32 %v9022_v45, %v10656_v29 }
 0x540   :  { %3790 = vst [vmem:[#allocation4 + $0x90] sm:$0xff] %v3630_v54  ;;  %v3628_v13 = vadd.f32 %v3202_v62, %v2370_v30  ;;  %v10657_v54 = vld [vmem:[#allocation116_spill] sm:$0xff] }
 0x541   :  { %v5667_v3 = vpop.f32.mrf.mxu0  ;;  %v2385_v62 = vadd.f32 %v9030_v10, %v10657_v54 }
 0x542   :  { %3788 = vst [vmem:[#allocation4 + $0x80] sm:$0xff] %v3628_v13  ;;  %v3631_v8 = vadd.f32 %v5667_v3, %v2373_v11  ;;  %v10658_v13 = vld [vmem:[#allocation118_spill] sm:$0xff] }
 0x543   :  { %v3205_v40 = vpop.f32.mrf.mxu0  ;;  %v2383_v3 = vadd.f32 %v9038_v15, %v10658_v13 }
 0x544   :  { %3791 = vst [vmem:[#allocation4 + $0x98] sm:$0xff] %v3631_v8  ;;  %v3629_v48 = vadd.f32 %v3205_v40, %v2371_v7 }
 0x545   :  { %v5670_v33 = vpop.f32.mrf.mxu0 }
 0x546   :  { %3789 = vst [vmem:[#allocation4 + $0x88] sm:$0xff] %v3629_v48  ;;  %v3634_v1 = vadd.f32 %v5670_v33, %v2376_v44 }
 0x547   :  { %v3218_v20 = vpop.f32.mrf.mxu0 }
 0x548   :  { %3794 = vst [vmem:[#allocation4 + $0xb0] sm:$0xff] %v3634_v1  ;;  %v3632_v19 = vadd.f32 %v3218_v20, %v2374_v36 }
 0x549   :  { %v5671_v47 = vpop.f32.mrf.mxu0 }
 0x54a   :  { %3792 = vst [vmem:[#allocation4 + $0xa0] sm:$0xff] %v3632_v19  ;;  %v3635_v39 = vadd.f32 %v5671_v47, %v2377_v25  ;;  %v10659_v25 = vld [vmem:[#allocation170_spill] sm:$0xff]  ;;  %v10660_v19 = vld [vmem:[#allocation167_spill] sm:$0xff] }
 0x54b   :  { %v3221_v14 = vpop.f32.mrf.mxu0  ;;  %v10661_v47 = vpack.c.bf16 %v10659_v25, %v10660_v19  ;;  %v10702_v25 = vld [vmem:[#allocation143_spill] sm:$0xff]  ;;  %v10703_v19 = vld [vmem:[#allocation142_spill] sm:$0xff] }
 0x54c   :  { %3795 = vst [vmem:[#allocation4 + $0xb8] sm:$0xff] %v3635_v39  ;;  %v3633_v0 = vadd.f32 %v3221_v14, %v2375_v63 }
 0x54d   :  { %v5674_v56 = vpop.f32.mrf.mxu0 }
 0x54e   :  { %3793 = vst [vmem:[#allocation4 + $0xa8] sm:$0xff] %v3633_v0  ;;  %v3638_v38 = vadd.f32 %v5674_v56, %v2380_v31  ;;  %v10662_v0 = vld [vmem:[#allocation72_spill] sm:$0xff]  ;;  %v10663_v56 = vld [vmem:[#allocation70_spill] sm:$0xff] }
 0x54f   :  { %v3234_v27 = vpop.f32.mrf.mxu0  ;;  %v10664_v52 = vpack.c.bf16 %v10662_v0, %v10663_v56  ;;  %v10711_v0 = vld [vmem:[#allocation79_spill] sm:$0xff]  ;;  %v10712_v56 = vld [vmem:[#allocation78_spill] sm:$0xff] }
 0x550   :  { %3798 = vst [vmem:[#allocation4 + $0xd0] sm:$0xff] %v3638_v38  ;;  %v3636_v22 = vadd.f32 %v3234_v27, %v2378_v24  ;;  %v6161_v38 = vld [vmem:[%s10118_s9 + $0x10] sm:$0xff]   ;;  %v10665_v27 = vld [vmem:[#allocation164_spill] sm:$0xff] }
 0x551   :  { %v5675_v57 = vpop.f32.mrf.mxu0  ;;  %v10667_v37 = vpack.c.bf16 %v10665_v27, %v10666_v6  ;;  %v6172_v6 = vld [vmem:[%s10118_s9 + $0x68] sm:$0xff]  }
 0x552   :  { %3796 = vst [vmem:[#allocation4 + $0xc0] sm:$0xff] %v3636_v22  ;;  %v3639_v42 = vadd.f32 %v5675_v57, %v2381_v17 }
 0x553   :  { %v3237_v49 = vpop.f32.mrf.mxu0 }
 0x554   :  { %3799 = vst [vmem:[#allocation4 + $0xd8] sm:$0xff] %v3639_v42  ;;  %v3637_v53 = vadd.f32 %v3237_v49, %v2379_v18  ;;  %v10671_v18 = vpack.c.bf16 %v10669_v9, %v10670_v16  ;;  %v6162_v42 = vld [vmem:[%s10118_s9 + $0x18] sm:$0xff]   ;;  %v10672_v49 = vld [vmem:[#allocation68_spill] sm:$0xff]  ;;  %v10720_v9 = vld [vmem:[#allocation77_spill] sm:$0xff] }
 0x555   :  { %v5678_v23 = vpop.f32.mrf.mxu0  ;;  %v10721_v16 = vld [vmem:[#allocation75_spill] sm:$0xff] }
 0x556   :  { %3797 = vst [vmem:[#allocation4 + $0xc8] sm:$0xff] %v3637_v53  ;;  %v3642_v61 = vadd.f32 %v5678_v23, %v2384_v60  ;;  %v10674_v60 = vpack.c.bf16 %v10672_v49, %v10673_v41  ;;  %v10675_v53 = vld [vmem:[#allocation158_spill] sm:$0xff]  ;;  %v10676_v23 = vld [vmem:[#allocation155_spill] sm:$0xff] }
 0x557   :  { %v3250_v30 = vpop.f32.mrf.mxu0  ;;  %v10677_v29 = vpack.c.bf16 %v10675_v53, %v10676_v23  ;;  %v10723_v49 = vld [vmem:[#allocation182_spill] sm:$0xff]  ;;  %v10724_v41 = vld [vmem:[#allocation179_spill] sm:$0xff] }
 0x558   :  { %3802 = vst [vmem:[#allocation4 + $0xf0] sm:$0xff] %v3642_v61  ;;  %v3640_v59 = vadd.f32 %v3250_v30, %v2382_v21  ;;  %v6163_v21 = vld [vmem:[%s10118_s9 + $0x20] sm:$0xff]   ;;  %v10678_v61 = vld [vmem:[#allocation210_spill] sm:$0xff]  ;;  %v6174_v53 = vld [vmem:[%s10118_s9 + $0x78] sm:$0xff]  }
 0x559   :  { %v5679_v11 = vpop.f32.mrf.mxu0  ;;  %v10679_v30 = vld [vmem:[#allocation208_spill] sm:$0xff]  ;;  %v10726_v23 = vld [vmem:[#allocation38_spill] sm:$0xff] }
 0x55a   :  { %3800 = vst [vmem:[#allocation4 + $0xe0] sm:$0xff] %v3640_v59  ;;  %v3643_v58 = vadd.f32 %v5679_v11, %v2385_v62  ;;  %v10680_v54 = vpack.c.bf16 %v10678_v61, %v10679_v30  ;;  %v6164_v62 = vld [vmem:[%s10118_s9 + $0x28] sm:$0xff]   ;;  %v10681_v59 = vld [vmem:[#allocation63_spill] sm:$0xff]  ;;  %v10682_v11 = vld [vmem:[#allocation60_spill] sm:$0xff] }
 0x55b   :  { %v3253_v43 = vpop.f32.mrf.mxu0  ;;  %v10683_v13 = vpack.c.bf16 %v10681_v59, %v10682_v11  ;;  %v6175_v61 = vld [vmem:[%s10118_s9 + $0x80] sm:$0xff]   ;;  %v6176_v59 = vld [vmem:[%s10118_s9 + $0x88] sm:$0xff]   ;;  %v6178_v11 = vld [vmem:[%s10118_s9 + $0x98] sm:$0xff]  }
 0x55c   :  { %3803 = vst [vmem:[#allocation4 + $0xf8] sm:$0xff] %v3643_v58  ;;  %v3641_v45 = vadd.f32 %v3253_v43, %v2383_v3  ;;  %v10684_v3 = vld [vmem:[#allocation152_spill] sm:$0xff]  ;;  %v10685_v58 = vld [vmem:[#allocation149_spill] sm:$0xff] }
 0x55d   :  { %v5350_v10 = vpop.f32.mrf.mxu0  ;;  %v10686_v43 = vpack.c.bf16 %v10684_v3, %v10685_v58  ;;  %v10729_v30 = vld [vmem:[#allocation176_spill] sm:$0xff]  ;;  %v6180_v3 = vld [vmem:[%s10118_s9 + $0xa8] sm:$0xff]   ;;  %v6181_v58 = vld [vmem:[%s10118_s9 + $0xb0] sm:$0xff]  }
 0x55e   :  { %3801 = vst [vmem:[#allocation4 + $0xe8] sm:$0xff] %v3641_v45  ;;  %v6165_v45 = vld [vmem:[%s10118_s9 + $0x30] sm:$0xff]  }
 0x55f   :  { %v5351_v15 = vpop.f32.mrf.mxu0 }
 0x560   :  { %v5352_v8 = vadd.f32 %v5351_v15, %v5350_v10  ;;  %v10687_v10 = vld [vmem:[#allocation206_spill] sm:$0xff]  ;;  %v10688_v15 = vld [vmem:[#allocation203_spill] sm:$0xff] }
 0x561   :  { %v5353_v12 = vpop.f32.mrf.mxu0 }
 0x563   :  { %v5354_v7 = vpop.f32.mrf.mxu0 }
 0x564   :  { %v5355_v40 = vadd.f32 %v5354_v7, %v5353_v12  ;;  %v10689_v12 = vpack.c.bf16 %v10687_v10, %v10688_v15  ;;  %v6166_v7 = vld [vmem:[%s10118_s9 + $0x38] sm:$0xff]   ;;  %v10732_v10 = vld [vmem:[#allocation145_spill] sm:$0xff] }
 0x565   :  { %v3857_v32 = vld [vmem:[%s3856_s29] sm:$0x1]  ;;  %s3921_s29 = scalar_lea.vmem [#allocation5], %s9781_s20 }
 0x566   :  { %v3860_v50 = vld [vmem:[%s3859_s2] sm:$0x1]  ;;  %v3306_v44 = vpack.c.bf16 %v5355_v40, %v5352_v8  ;;  %v3877_v46 = vrot.slane %v3857_v32, 7  ;;  %v10690_v8 = vld [vmem:[#allocation58_spill] sm:$0xff]  ;;  %v10691_v40 = vld [vmem:[#allocation55_spill] sm:$0xff] }
 0x567   :  { %v3863_v48 = vld [vmem:[%s3862_s3] sm:$0x1]  ;;  %v3880_v26 = vrot.slane %v3860_v50, 6  ;;  %v10692_v32 = vpack.c.bf16 %v10690_v8, %v10691_v40  ;;  %v10693_v50 = vld [vmem:[#allocation146_spill] sm:$0xff]  ;;  %v10733_v8 = vld [vmem:[#allocation147_spill] sm:$0xff]  ;;  %s3912_s3 = scalar_lea.vmem [#allocation5], %s9775_s18 }
 0x568   :  { %v3866_v33 = vld [vmem:[%s3865_s30] sm:$0x1]  ;;  %5680 = vmatprep.subr.bf16.mxu0 %v3306_v44  ;;  %v3883_v55 = vrot.slane %v3863_v48, 5  ;;  %s3927_s30 = scalar_lea.vmem [#allocation5], %s9785_s5 }
 0x569   :  { %v3854_v36 = vld [vmem:[%s3853_s15] sm:$0x1]  ;;  %5681 = vmatpush3.bf16.msra.mxu0 %v3306_v44  ;;  %v3886_v2 = vrot.slane %v3866_v33, 4  ;;  %s3930_s15 = scalar_lea.vmem [#allocation5], %s9787_s21 }
 0x56a   :  { %v3869_v1 = vld [vmem:[%s3868_s4] sm:$0x1]  ;;  %v3898_v4 = vsel %vm3897_vm2, %v3854_v36, %v3877_v46  ;;  %5399 = vmatprep.subr.bf16.mxu0 %v10661_v47  ;;  %v10704_v47 = vpack.c.bf16 %v10702_v25, %v10703_v19  ;;  %v9466_v25 = vld [vmem:[%s10120_s11 + $0x30] sm:$0xff]  ;;  %v10736_v19 = vld [vmem:[#allocation151_spill] sm:$0xff]  ;;  %s3933_s4 = scalar_lea.vmem [#allocation5], %s9789_s0  ;;  %s3965_s0 = scalar_lea.vmem [#allocation2], %s9229_s8 }
 0x56b   :  { %v3872_v20 = vld [vmem:[%s3871_s16] sm:$0x1]  ;;  %v3900_v63 = vsel %vm3899_vm3, %v3898_v4, %v3880_v26  ;;  %v3889_v39 = vrot.slane %v3869_v1, 3  ;;  %v10697_v26 = vld [vmem:[#allocation197_spill] sm:$0xff]  ;;  %s4904_s16 = sld [smem:[#allocation9 + $0x2]] }
 0x56c   :  { %v3875_v28 = vld [vmem:[%s3874_s17] sm:$0x1]  ;;  %v3902_v14 = vsel %vm3901_vm4, %v3900_v63, %v3883_v55  ;;  %5683 = vmatmul.mubr.msk.bf16.vlgmr.msra.gmra.mxu0 %vm1595_vm1, %v6160_v5  ;;  %v3892_v34 = vrot.slane %v3872_v20, 2  ;;  %v6168_v1 = vld [vmem:[%s10118_s9 + $0x48] sm:$0xff]   ;;  %v10700_v55 = vld [vmem:[#allocation50_spill] sm:$0xff]  ;;  %s10002_s17 = sld [smem:[#allocation9 + $0x3]] }
 0x56d   :  { %v3904_v31 = vsel %vm3903_vm5, %v3902_v14, %v3886_v2  ;;  %5400 = vmatpush3.bf16.xpose.msra.mxu0 %v10664_v52  ;;  %v3895_v51 = vrot.slane %v3875_v28, 1  ;;  %5686 = vmatprep.mubr.msk.bf16.mxu0 %vm1595_vm1, %v6161_v38  ;;  %v10694_v44 = vld [vmem:[#allocation144_spill] sm:$0xff]  ;;  %v10699_v20 = vld [vmem:[#allocation53_spill] sm:$0xff]  ;;  %v6169_v28 = vld [vmem:[%s10118_s9 + $0x50] sm:$0xff]   ;;  %v10713_v52 = vpack.c.bf16 %v10711_v0, %v10712_v56 }
 0x56e   :  { %v3906_v24 = vsel %vm3905_vm6, %v3904_v31, %v3889_v39  ;;  %5401 = vmatprep.subr.bf16.mxu0 %v10667_v37  ;;  %v10695_v48 = vpack.c.bf16 %v10693_v50, %v10694_v44  ;;  %v6167_v33 = vld [vmem:[%s10118_s9 + $0x40] sm:$0xff]   ;;  %v10701_v4 = vpack.c.bf16 %v10699_v20, %v10700_v55  ;;  %v10705_v2 = vld [vmem:[#allocation194_spill] sm:$0xff]  ;;  %v10706_v63 = vld [vmem:[#allocation191_spill] sm:$0xff] }
 0x56f   :  { %v3908_v17 = vsel %vm3907_vm7, %v3906_v24, %v3892_v34  ;;  %v10696_v46 = vld [vmem:[#allocation200_spill] sm:$0xff]  ;;  %v10707_v39 = vpack.c.bf16 %v10705_v2, %v10706_v63  ;;  %v6170_v14 = vld [vmem:[%s10118_s9 + $0x58] sm:$0xff]   ;;  %v10709_v34 = vld [vmem:[#allocation45_spill] sm:$0xff] }
 0x570   :  { %v9275_v22 = vsel %vm3909_vm8, %v3908_v17, %v3895_v51  ;;  %v10698_v36 = vpack.c.bf16 %v10696_v46, %v10697_v26  ;;  %v10708_v5 = vld [vmem:[#allocation48_spill] sm:$0xff]  ;;  %v10715_v38 = vld [vmem:[#allocation185_spill] sm:$0xff]  ;;  %v10717_v37 = vld [vmem:[#allocation43_spill] sm:$0xff] }
 0x571   :  { %10668 = vst [vmem:[#allocation18_spill] sm:$0xff] %v9275_v22  ;;  %v4155_v57 = vpack.c.bf16 %v9275_v22, %v9275_v22  ;;  %v10710_v31 = vpack.c.bf16 %v10708_v5, %v10709_v34  ;;  %v6171_v51 = vld [vmem:[%s10118_s9 + $0x60] sm:$0xff]   ;;  %v9452_v44 = vld [vmem:[%s10120_s11 + $0x18] sm:$0xff]  ;;  %s4058_s21 = scalar_lea.vmem [#allocation3], %s4904_s16 }
 0x572   :  { %v10714_v24 = vld [vmem:[#allocation188_spill] sm:$0xff]  ;;  %v9484_v56 = vld [vmem:[%s10120_s11 + $0x38] sm:$0xff] }
 0x573   :  { %5397 = vmatprep.mubr.bf16.mxu1 %v4155_v57  ;;  %v10716_v27 = vpack.c.bf16 %v10714_v24, %v10715_v38  ;;  %v10718_v17 = vld [vmem:[#allocation40_spill] sm:$0xff] }
 0x574   :  { %5398 = vmatmul.mubr.bf16.vlgmr.msra.gmra.mxu1 %v4155_v57  ;;  %5687 = vmatmul.mubr.msk.bf16.gmra.mxu0 %vm1595_vm1, %v6162_v42  ;;  %v10719_v57 = vpack.c.bf16 %v10717_v37, %v10718_v17  ;;  %v6173_v42 = vld [vmem:[%s10118_s9 + $0x70] sm:$0xff]   ;;  %v10741_v37 = vld [vmem:[#allocation156_spill] sm:$0xff] }
 0x575   :  { %5731 = vmatpush3.bf16.xpose.msra.mxu1 %v10671_v18  ;;  %5402 = vmatpush3.bf16.xpose.msra.mxu0 %v10674_v60  ;;  %v10722_v18 = vpack.c.bf16 %v10720_v9, %v10721_v16  ;;  %v10725_v60 = vpack.c.bf16 %v10723_v49, %v10724_v41 }
 0x576   :  { %5732 = vmatprep.subr.bf16.mxu1 %v10417_v35  ;;  %5403 = vmatprep.subr.bf16.mxu0 %v10677_v29  ;;  %v10727_v29 = vld [vmem:[#allocation35_spill] sm:$0xff] }
 0x577   :  { %5690 = vmatprep.mubr.msk.bf16.mxu0 %vm1595_vm1, %v6163_v21  ;;  %5746 = vmatprep.mubr.msk.bf16.mxu1 %vm6319_vm0, %v10417_v35  ;;  %v10728_v21 = vpack.c.bf16 %v10726_v23, %v10727_v29  ;;  %v10743_v23 = vld [vmem:[#allocation159_spill] sm:$0xff] }
 0x57c   :  { %5691 = vmatmul.mubr.msk.bf16.gmra.mxu0 %vm1595_vm1, %v6164_v62 }
 0x57d   :  { %5733 = vmatpush3.bf16.xpose.msra.mxu1 %v10680_v54  ;;  %5404 = vmatpush3.bf16.xpose.msra.mxu0 %v10683_v13  ;;  %v10730_v54 = vld [vmem:[#allocation173_spill] sm:$0xff]  ;;  %v6179_v13 = vld [vmem:[%s10118_s9 + $0xa0] sm:$0xff]  }
 0x57e   :  { %5734 = vmatprep.subr.bf16.mxu1 %v10417_v35  ;;  %5405 = vmatprep.subr.bf16.mxu0 %v10686_v43  ;;  %v10731_v62 = vpack.c.bf16 %v10729_v30, %v10730_v54  ;;  %v6182_v43 = vld [vmem:[%s10118_s9 + $0xb8] sm:$0xff]   ;;  %v10744_v54 = vld [vmem:[#allocation160_spill] sm:$0xff] }
 0x57f   :  { %5694 = vmatprep.mubr.msk.bf16.mxu0 %vm1595_vm1, %v6165_v45  ;;  %v9438_v45 = vld [vmem:[%s10120_s11 + $0x10] sm:$0xff]  ;;  %v9512_v30 = vld [vmem:[%s10120_s11 + $0x58] sm:$0xff] }
 0x580   :  { %v2388_v15 = vadd.f32 %v9438_v45, %v10732_v10  ;;  %v9526_v10 = vld [vmem:[%s10120_s11 + $0x70] sm:$0xff] }
 0x584   :  { %5695 = vmatmul.mubr.msk.bf16.gmra.mxu0 %vm1595_vm1, %v6166_v7  ;;  %v9445_v7 = vld [vmem:[%s10120_s11] sm:$0xff] }
 0x585   :  { %5735 = vmatpush3.bf16.xpose.msra.mxu1 %v10689_v12  ;;  %5406 = vmatpush3.bf16.xpose.msra.mxu0 %v10692_v32  ;;  %v2386_v40 = vadd.f32 %v9445_v7, %v10733_v8 }
 0x586   :  { %5736 = vmatprep.subr.bf16.mxu1 %v10417_v35  ;;  %5407 = vmatprep.subr.bf16.mxu0 %v10695_v48  ;;  %v10734_v48 = vld [vmem:[#allocation148_spill] sm:$0xff] }
 0x587   :  { %5698 = vmatprep.mubr.msk.bf16.mxu0 %vm1595_vm1, %v6167_v33  ;;  %v2389_v33 = vadd.f32 %v9452_v44, %v10734_v48 }
 0x58c   :  { %5699 = vmatmul.mubr.msk.bf16.gmra.mxu0 %vm1595_vm1, %v6168_v1  ;;  %v10735_v1 = vld [vmem:[#allocation150_spill] sm:$0xff] }
 0x58d   :  { %5737 = vmatpush3.bf16.xpose.msra.mxu1 %v10698_v36  ;;  %5408 = vmatpush3.bf16.xpose.msra.mxu0 %v10701_v4  ;;  %v9459_v36 = vld [vmem:[%s10120_s11 + $0x8] sm:$0xff] }
 0x58e   :  { %5738 = vmatprep.subr.bf16.mxu1 %v10417_v35  ;;  %5409 = vmatprep.subr.bf16.mxu0 %v10704_v47  ;;  %v2387_v20 = vadd.f32 %v9459_v36, %v10735_v1  ;;  %v2392_v47 = vadd.f32 %v9466_v25, %v10736_v19  ;;  %v10748_v1 = vld [vmem:[#allocation166_spill] sm:$0xff]  ;;  %v9547_v19 = vld [vmem:[%s10120_s11 + $0x68] sm:$0xff] }
 0x58f   :  { %5702 = vmatprep.mubr.msk.bf16.mxu0 %vm1595_vm1, %v6169_v28 }
 0x594   :  { %5703 = vmatmul.mubr.msk.bf16.gmra.mxu0 %vm1595_vm1, %v6170_v14  ;;  %v10738_v14 = vld [vmem:[#allocation153_spill] sm:$0xff] }
 0x595   :  { %5739 = vmatpush3.bf16.xpose.msra.mxu1 %v10707_v39  ;;  %5410 = vmatpush3.bf16.xpose.msra.mxu0 %v10710_v31  ;;  %v9475_v39 = vld [vmem:[%s10120_s11 + $0x20] sm:$0xff] }
 0x596   :  { %5740 = vmatprep.subr.bf16.mxu1 %v10417_v35  ;;  %5411 = vmatprep.subr.bf16.mxu0 %v10713_v52  ;;  %v2390_v5 = vadd.f32 %v9475_v39, %v10738_v14  ;;  %v10740_v52 = vld [vmem:[#allocation154_spill] sm:$0xff] }
 0x597   :  { %5706 = vmatprep.mubr.msk.bf16.mxu0 %vm1595_vm1, %v6171_v51  ;;  %v2393_v51 = vadd.f32 %v9484_v56, %v10740_v52 }
 0x59c   :  { %5707 = vmatmul.mubr.msk.bf16.gmra.mxu0 %vm1595_vm1, %v6172_v6  ;;  %v9491_v6 = vld [vmem:[%s10120_s11 + $0x28] sm:$0xff] }
 0x59d   :  { %5741 = vmatpush3.bf16.xpose.msra.mxu1 %v10716_v27  ;;  %5412 = vmatpush3.bf16.xpose.msra.mxu0 %v10719_v57  ;;  %v2391_v17 = vadd.f32 %v9491_v6, %v10741_v37 }
 0x59e   :  { %5742 = vmatprep.subr.bf16.mxu1 %v10417_v35  ;;  %5413 = vmatprep.subr.bf16.mxu0 %v10722_v18  ;;  %v9498_v18 = vld [vmem:[%s10120_s11 + $0x50] sm:$0xff] }
 0x59f   :  { %5710 = vmatprep.mubr.msk.bf16.mxu0 %vm1595_vm1, %v6173_v42  ;;  %v10742_v42 = vld [vmem:[#allocation157_spill] sm:$0xff] }
 0x5a0   :  { %v2396_v49 = vadd.f32 %v9498_v18, %v10742_v42 }
 0x5a4   :  { %5711 = vmatmul.mubr.msk.bf16.gmra.mxu0 %vm1595_vm1, %v6174_v53  ;;  %v9505_v53 = vld [vmem:[%s10120_s11 + $0x40] sm:$0xff] }
 0x5a5   :  { %5743 = vmatpush3.bf16.xpose.msra.mxu1 %v10725_v60  ;;  %5414 = vmatpush3.bf16.xpose.msra.mxu0 %v10728_v21  ;;  %v2394_v29 = vadd.f32 %v9505_v53, %v10743_v23 }
 0x5a6   :  { %5744 = vmatprep.subr.bf16.mxu1 %v10417_v35  ;;  %5714 = vmatprep.mubr.msk.bf16.mxu0 %vm1595_vm1, %v6175_v61  ;;  %v6177_v35 = vld [vmem:[%s10118_s9 + $0x90] sm:$0xff]   ;;  %s4911_s9 = sld [smem:[#allocation10 + $0x2]] }
 0x5ac   :  { %5715 = vmatmul.mubr.msk.bf16.gmra.mxu0 %vm1595_vm1, %v6176_v59  ;;  %s4110_s5 = scalar_lea.vmem [#allocation3], %s4911_s9  ;;  %s3971_s9 = scalar_lea.vmem [#allocation2], %s9235_s25 }
 0x5ad   :  { %5745 = vmatpush3.bf16.xpose.msra.mxu1 %v10731_v62  ;;  %5718 = vmatprep.mubr.msk.bf16.mxu0 %vm1595_vm1, %v6177_v35  ;;  %v2397_v62 = vadd.f32 %v9512_v30, %v10744_v54  ;;  %v10754_v54 = vld [vmem:[#allocation175_spill] sm:$0xff] }
 0x5b4   :  { %5719 = vmatmul.mubr.msk.bf16.gmra.mxu0 %vm1595_vm1, %v6178_v11  ;;  %v9519_v11 = vld [vmem:[%s10120_s11 + $0x48] sm:$0xff] }
 0x5b5   :  { %5722 = vmatprep.mubr.msk.bf16.mxu0 %vm1595_vm1, %v6179_v13  ;;  %v10745_v13 = vld [vmem:[#allocation162_spill] sm:$0xff] }
 0x5bc   :  { %5723 = vmatmul.mubr.msk.bf16.gmra.mxu0 %vm1595_vm1, %v6180_v3  ;;  %v2395_v3 = vadd.f32 %v9519_v11, %v10745_v13  ;;  %v9589_v13 = vld [vmem:[%s10120_s11 + $0xa0] sm:$0xff] }
 0x5bd   :  { %5726 = vmatprep.mubr.msk.bf16.mxu0 %vm1595_vm1, %v6181_v58 }
 0x5c4   :  { %5727 = vmatmul.mubr.msk.bf16.gmra.mxu0 %vm1595_vm1, %v6182_v43 }
 0x62c   :  { %v5684_v12 = vpop.f32.mrf.mxu0 }
 0x62d   :  { %v3646_v32 = vadd.f32 %v5684_v12, %v2388_v15  ;;  %v10746_v15 = vld [vmem:[#allocation163_spill] sm:$0xff] }
 0x62e   :  { %v3341_v50 = vpop.f32.mrf.mxu0  ;;  %v2400_v12 = vadd.f32 %v9526_v10, %v10746_v15 }
 0x62f   :  { %3806 = vst [vmem:[#allocation5 + $0x10] sm:$0xff] %v3646_v32  ;;  %v3644_v46 = vadd.f32 %v3341_v50, %v2386_v40  ;;  %v9533_v32 = vld [vmem:[%s10120_s11 + $0x60] sm:$0xff]  ;;  %v10747_v50 = vld [vmem:[#allocation165_spill] sm:$0xff] }
 0x630   :  { %v5685_v26 = vpop.f32.mrf.mxu0  ;;  %v2398_v48 = vadd.f32 %v9533_v32, %v10747_v50 }
 0x631   :  { %3804 = vst [vmem:[#allocation5] sm:$0xff] %v3644_v46  ;;  %v3647_v55 = vadd.f32 %v5685_v26, %v2389_v33  ;;  %v9540_v26 = vld [vmem:[%s10120_s11 + $0x78] sm:$0xff] }
 0x632   :  { %v3344_v4 = vpop.f32.mrf.mxu0 }
 0x633   :  { %3807 = vst [vmem:[#allocation5 + $0x18] sm:$0xff] %v3647_v55  ;;  %v3645_v28 = vadd.f32 %v3344_v4, %v2387_v20  ;;  %v2401_v20 = vadd.f32 %v9540_v26, %v10748_v1 }
 0x634   :  { %v9470_v2 = vpop.f32.mrf.mxu1  ;;  %v5688_v63 = vpop.f32.mrf.mxu0 }
 0x635   :  { %10737 = vst [vmem:[#allocation22_spill] sm:$0xff] %v9470_v2  ;;  %3805 = vst [vmem:[#allocation5 + $0x8] sm:$0xff] %v3645_v28  ;;  %v3650_v34 = vadd.f32 %v5688_v63, %v2392_v47  ;;  %v10749_v47 = vld [vmem:[#allocation168_spill] sm:$0xff] }
 0x636   :  { %v9479_v31 = vpop.f32.mrf.mxu1  ;;  %v3357_v0 = vpop.f32.mrf.mxu0  ;;  %v2399_v28 = vadd.f32 %v9547_v19, %v10749_v47  ;;  %v10758_v47 = vld [vmem:[#allocation181_spill] sm:$0xff] }
 0x637   :  { %10739 = vst [vmem:[#allocation19_spill] sm:$0xff] %v9479_v31  ;;  %3810 = vst [vmem:[#allocation5 + $0x30] sm:$0xff] %v3650_v34  ;;  %v3648_v24 = vadd.f32 %v3357_v0, %v2390_v5  ;;  %v9554_v5 = vld [vmem:[%s10120_s11 + $0x90] sm:$0xff]  ;;  %v10750_v34 = vld [vmem:[#allocation169_spill] sm:$0xff] }
 0x638   :  { %v4210_v38 = vpop.f32.mrf.mxu1  ;;  %v5689_v27 = vpop.f32.mrf.mxu0  ;;  %v2404_v0 = vadd.f32 %v9554_v5, %v10750_v34  ;;  %v9617_v34 = vld [vmem:[%s10120_s11 + $0xc0] sm:$0xff] }
 0x639   :  { %3808 = vst [vmem:[#allocation5 + $0x20] sm:$0xff] %v3648_v24  ;;  %v3651_v57 = vadd.f32 %v5689_v27, %v2393_v51  ;;  %v9561_v24 = vld [vmem:[%s10120_s11 + $0x80] sm:$0xff]  ;;  %v10751_v38 = vld [vmem:[#allocation171_spill] sm:$0xff] }
 0x63a   :  { %v4211_v9 = vpop.f32.mrf.mxu1  ;;  %v3360_v16 = vpop.f32.mrf.mxu0  ;;  %v2402_v27 = vadd.f32 %v9561_v24, %v10751_v38 }
 0x63b   :  { %3811 = vst [vmem:[#allocation5 + $0x38] sm:$0xff] %v3651_v57  ;;  %v3649_v41 = vadd.f32 %v3360_v16, %v2391_v17  ;;  %v9568_v57 = vld [vmem:[%s10120_s11 + $0x98] sm:$0xff]  ;;  %v10752_v9 = vld [vmem:[#allocation172_spill] sm:$0xff] }
 0x63c   :  { %v5692_v60 = vpop.f32.mrf.mxu0  ;;  %v2405_v16 = vadd.f32 %v9568_v57, %v10752_v9 }
 0x63d   :  { %3809 = vst [vmem:[#allocation5 + $0x28] sm:$0xff] %v3649_v41  ;;  %v3654_v21 = vadd.f32 %v5692_v60, %v2396_v49  ;;  %v9575_v41 = vld [vmem:[%s10120_s11 + $0x88] sm:$0xff]  ;;  %v10753_v60 = vld [vmem:[#allocation174_spill] sm:$0xff] }
 0x63e   :  { %v3373_v61 = vpop.f32.mrf.mxu0  ;;  %v2403_v23 = vadd.f32 %v9575_v41, %v10753_v60 }
 0x63f   :  { %3814 = vst [vmem:[#allocation5 + $0x50] sm:$0xff] %v3654_v21  ;;  %v3652_v59 = vadd.f32 %v3373_v61, %v2394_v29  ;;  %v9582_v61 = vld [vmem:[%s10120_s11 + $0xb0] sm:$0xff] }
 0x640   :  { %v5693_v35 = vpop.f32.mrf.mxu0 }
 0x641   :  { %3812 = vst [vmem:[#allocation5 + $0x40] sm:$0xff] %v3652_v59  ;;  %v3655_v58 = vadd.f32 %v5693_v35, %v2397_v62  ;;  %v2408_v62 = vadd.f32 %v9582_v61, %v10754_v54  ;;  %v10762_v54 = vld [vmem:[#allocation187_spill] sm:$0xff] }
 0x642   :  { %v3376_v43 = vpop.f32.mrf.mxu0 }
 0x643   :  { %3815 = vst [vmem:[#allocation5 + $0x58] sm:$0xff] %v3655_v58  ;;  %v3653_v8 = vadd.f32 %v3376_v43, %v2395_v3  ;;  %v10755_v3 = vld [vmem:[#allocation177_spill] sm:$0xff] }
 0x644   :  { %v5696_v40 = vpop.f32.mrf.mxu0  ;;  %v2406_v58 = vadd.f32 %v9589_v13, %v10755_v3  ;;  %v9645_v3 = vld [vmem:[%s10120_s11 + $0xe0] sm:$0xff] }
 0x645   :  { %3813 = vst [vmem:[#allocation5 + $0x48] sm:$0xff] %v3653_v8  ;;  %v3658_v33 = vadd.f32 %v5696_v40, %v2400_v12  ;;  %v9596_v12 = vld [vmem:[%s10120_s11 + $0xb8] sm:$0xff]  ;;  %v10756_v8 = vld [vmem:[#allocation178_spill] sm:$0xff] }
 0x646   :  { %v3389_v46 = vpop.f32.mrf.mxu0  ;;  %v2409_v40 = vadd.f32 %v9596_v12, %v10756_v8 }
 0x647   :  { %3818 = vst [vmem:[#allocation5 + $0x70] sm:$0xff] %v3658_v33  ;;  %v3656_v55 = vadd.f32 %v3389_v46, %v2398_v48  ;;  %v9603_v33 = vld [vmem:[%s10120_s11 + $0xa8] sm:$0xff]  ;;  %v10757_v46 = vld [vmem:[#allocation180_spill] sm:$0xff] }
 0x648   :  { %v5697_v4 = vpop.f32.mrf.mxu0  ;;  %v2407_v1 = vadd.f32 %v9603_v33, %v10757_v46 }
 0x649   :  { %3816 = vst [vmem:[#allocation5 + $0x60] sm:$0xff] %v3656_v55  ;;  %v3659_v63 = vadd.f32 %v5697_v4, %v2401_v20  ;;  %v9610_v4 = vld [vmem:[%s10120_s11 + $0xd0] sm:$0xff] }
 0x64a   :  { %v3392_v14 = vpop.f32.mrf.mxu0 }
 0x64b   :  { %3819 = vst [vmem:[#allocation5 + $0x78] sm:$0xff] %v3659_v63  ;;  %v3657_v52 = vadd.f32 %v3392_v14, %v2399_v28  ;;  %v2412_v28 = vadd.f32 %v9610_v4, %v10758_v47 }
 0x64c   :  { %v5700_v51 = vpop.f32.mrf.mxu0 }
 0x64d   :  { %3817 = vst [vmem:[#allocation5 + $0x68] sm:$0xff] %v3657_v52  ;;  %v3662_v37 = vadd.f32 %v5700_v51, %v2404_v0  ;;  %v10759_v0 = vld [vmem:[#allocation183_spill] sm:$0xff] }
 0x64e   :  { %v3405_v17 = vpop.f32.mrf.mxu0  ;;  %v2410_v52 = vadd.f32 %v9617_v34, %v10759_v0  ;;  %v10766_v0 = vld [vmem:[#allocation193_spill] sm:$0xff] }
 0x64f   :  { %3822 = vst [vmem:[#allocation5 + $0x90] sm:$0xff] %v3662_v37  ;;  %v3660_v42 = vadd.f32 %v3405_v17, %v2402_v27  ;;  %v9624_v27 = vld [vmem:[%s10120_s11 + $0xd8] sm:$0xff]  ;;  %v10760_v37 = vld [vmem:[#allocation184_spill] sm:$0xff] }
 0x650   :  { %v5701_v49 = vpop.f32.mrf.mxu0  ;;  %v2413_v17 = vadd.f32 %v9624_v27, %v10760_v37  ;;  %v9673_v37 = vld [vmem:[%s10120_s11 + $0x100] sm:$0xff] }
 0x651   :  { %3820 = vst [vmem:[#allocation5 + $0x80] sm:$0xff] %v3660_v42  ;;  %v3663_v29 = vadd.f32 %v5701_v49, %v2405_v16  ;;  %v9631_v42 = vld [vmem:[%s10120_s11 + $0xc8] sm:$0xff]  ;;  %v10761_v49 = vld [vmem:[#allocation186_spill] sm:$0xff] }
 0x652   :  { %v3408_v21 = vpop.f32.mrf.mxu0  ;;  %v2411_v60 = vadd.f32 %v9631_v42, %v10761_v49 }
 0x653   :  { %3823 = vst [vmem:[#allocation5 + $0x98] sm:$0xff] %v3663_v29  ;;  %v3661_v59 = vadd.f32 %v3408_v21, %v2403_v23  ;;  %v9638_v21 = vld [vmem:[%s10120_s11 + $0xf0] sm:$0xff] }
 0x654   :  { %v5704_v35 = vpop.f32.mrf.mxu0 }
 0x655   :  { %3821 = vst [vmem:[#allocation5 + $0x88] sm:$0xff] %v3661_v59  ;;  %v3666_v43 = vadd.f32 %v5704_v35, %v2408_v62  ;;  %v2416_v62 = vadd.f32 %v9638_v21, %v10762_v54 }
 0x656   :  { %v3421_v15 = vpop.f32.mrf.mxu0 }
 0x657   :  { %3826 = vst [vmem:[#allocation5 + $0xb0] sm:$0xff] %v3666_v43  ;;  %v3664_v50 = vadd.f32 %v3421_v15, %v2406_v58  ;;  %v10763_v58 = vld [vmem:[#allocation189_spill] sm:$0xff] }
 0x658   :  { %v5705_v48 = vpop.f32.mrf.mxu0  ;;  %v2414_v43 = vadd.f32 %v9645_v3, %v10763_v58 }
 0x659   :  { %3824 = vst [vmem:[#allocation5 + $0xa0] sm:$0xff] %v3664_v50  ;;  %v3667_v20 = vadd.f32 %v5705_v48, %v2409_v40  ;;  %v9652_v40 = vld [vmem:[%s10120_s11 + $0xf8] sm:$0xff]  ;;  %v10764_v50 = vld [vmem:[#allocation190_spill] sm:$0xff] }
 0x65a   :  { %v3424_v55 = vpop.f32.mrf.mxu0  ;;  %v2417_v48 = vadd.f32 %v9652_v40, %v10764_v50  ;;  %v10770_v50 = vld [vmem:[#allocation199_spill] sm:$0xff] }
 0x65b   :  { %3827 = vst [vmem:[#allocation5 + $0xb8] sm:$0xff] %v3667_v20  ;;  %v3665_v63 = vadd.f32 %v3424_v55, %v2407_v1  ;;  %v9659_v20 = vld [vmem:[%s10120_s11 + $0xe8] sm:$0xff]  ;;  %v10765_v55 = vld [vmem:[#allocation192_spill] sm:$0xff] }
 0x65c   :  { %v5708_v14 = vpop.f32.mrf.mxu0  ;;  %v2415_v47 = vadd.f32 %v9659_v20, %v10765_v55  ;;  %v9701_v55 = vld [vmem:[%s10120_s11 + $0x120] sm:$0xff] }
 0x65d   :  { %3825 = vst [vmem:[#allocation5 + $0xa8] sm:$0xff] %v3665_v63  ;;  %v3670_v51 = vadd.f32 %v5708_v14, %v2412_v28  ;;  %v9666_v14 = vld [vmem:[%s10120_s11 + $0x110] sm:$0xff] }
 0x65e   :  { %v3437_v38 = vpop.f32.mrf.mxu0 }
 0x65f   :  { %3830 = vst [vmem:[#allocation5 + $0xd0] sm:$0xff] %v3670_v51  ;;  %v3668_v9 = vadd.f32 %v3437_v38, %v2410_v52  ;;  %v2420_v52 = vadd.f32 %v9666_v14, %v10766_v0 }
 0x660   :  { %v5709_v16 = vpop.f32.mrf.mxu0 }
 0x661   :  { %3828 = vst [vmem:[#allocation5 + $0xc0] sm:$0xff] %v3668_v9  ;;  %v3671_v23 = vadd.f32 %v5709_v16, %v2413_v17  ;;  %v10767_v17 = vld [vmem:[#allocation195_spill] sm:$0xff] }
 0x662   :  { %v3440_v29 = vpop.f32.mrf.mxu0  ;;  %v2418_v9 = vadd.f32 %v9673_v37, %v10767_v17 }
 0x663   :  { %3831 = vst [vmem:[#allocation5 + $0xd8] sm:$0xff] %v3671_v23  ;;  %v3669_v59 = vadd.f32 %v3440_v29, %v2411_v60  ;;  %v9680_v60 = vld [vmem:[%s10120_s11 + $0x118] sm:$0xff]  ;;  %v10768_v23 = vld [vmem:[#allocation196_spill] sm:$0xff] }
 0x664   :  { %v5712_v35 = vpop.f32.mrf.mxu0  ;;  %v2421_v29 = vadd.f32 %v9680_v60, %v10768_v23 }
 0x665   :  { %3829 = vst [vmem:[#allocation5 + $0xc8] sm:$0xff] %v3669_v59  ;;  %v3674_v15 = vadd.f32 %v5712_v35, %v2416_v62  ;;  %v9687_v59 = vld [vmem:[%s10120_s11 + $0x108] sm:$0xff]  ;;  %v10769_v35 = vld [vmem:[#allocation198_spill] sm:$0xff] }
 0x666   :  { %v3453_v8 = vpop.f32.mrf.mxu0  ;;  %v2419_v58 = vadd.f32 %v9687_v59, %v10769_v35  ;;  %v10774_v35 = vld [vmem:[#allocation205_spill] sm:$0xff] }
 0x667   :  { %3834 = vst [vmem:[#allocation5 + $0xf0] sm:$0xff] %v3674_v15  ;;  %v3672_v46 = vadd.f32 %v3453_v8, %v2414_v43  ;;  %v9694_v8 = vld [vmem:[%s10120_s11 + $0x130] sm:$0xff] }
 0x668   :  { %v5713_v1 = vpop.f32.mrf.mxu0 }
 0x669   :  { %3832 = vst [vmem:[#allocation5 + $0xe0] sm:$0xff] %v3672_v46  ;;  %v3675_v28 = vadd.f32 %v5713_v1, %v2417_v48  ;;  %v2424_v48 = vadd.f32 %v9694_v8, %v10770_v50  ;;  %v9729_v50 = vld [vmem:[%s10120_s11 + $0x140] sm:$0xff] }
 0x66a   :  { %v3456_v63 = vpop.f32.mrf.mxu0 }
 0x66b   :  { %3835 = vst [vmem:[#allocation5 + $0xf8] sm:$0xff] %v3675_v28  ;;  %v3673_v51 = vadd.f32 %v3456_v63, %v2415_v47  ;;  %v10771_v47 = vld [vmem:[#allocation201_spill] sm:$0xff] }
 0x66c   :  { %v5716_v38 = vpop.f32.mrf.mxu0  ;;  %v2422_v28 = vadd.f32 %v9701_v55, %v10771_v47 }
 0x66d   :  { %3833 = vst [vmem:[#allocation5 + $0xe8] sm:$0xff] %v3673_v51  ;;  %v3678_v16 = vadd.f32 %v5716_v38, %v2420_v52  ;;  %v9708_v52 = vld [vmem:[%s10120_s11 + $0x138] sm:$0xff]  ;;  %v10772_v51 = vld [vmem:[#allocation202_spill] sm:$0xff] }
 0x66e   :  { %v3469_v49 = vpop.f32.mrf.mxu0  ;;  %v2425_v38 = vadd.f32 %v9708_v52, %v10772_v51 }
 0x66f   :  { %3838 = vst [vmem:[#allocation5 + $0x110] sm:$0xff] %v3678_v16  ;;  %v3676_v54 = vadd.f32 %v3469_v49, %v2418_v9  ;;  %v9715_v16 = vld [vmem:[%s10120_s11 + $0x128] sm:$0xff]  ;;  %v10773_v49 = vld [vmem:[#allocation204_spill] sm:$0xff] }
 0x670   :  { %v5717_v62 = vpop.f32.mrf.mxu0  ;;  %v2423_v23 = vadd.f32 %v9715_v16, %v10773_v49 }
 0x671   :  { %3836 = vst [vmem:[#allocation5 + $0x100] sm:$0xff] %v3676_v54  ;;  %v3679_v43 = vadd.f32 %v5717_v62, %v2421_v29  ;;  %v9722_v62 = vld [vmem:[%s10120_s11 + $0x150] sm:$0xff] }
 0x672   :  { %v3472_v15 = vpop.f32.mrf.mxu0 }
 0x673   :  { %3839 = vst [vmem:[#allocation5 + $0x118] sm:$0xff] %v3679_v43  ;;  %v3677_v46 = vadd.f32 %v3472_v15, %v2419_v58  ;;  %v2428_v58 = vadd.f32 %v9722_v62, %v10774_v35  ;;  %v10779_v35 = vld [vmem:[#allocation81_spill] sm:$0xff] }
 0x674   :  { %v5720_v1 = vpop.f32.mrf.mxu0 }
 0x675   :  { %3837 = vst [vmem:[#allocation5 + $0x108] sm:$0xff] %v3677_v46  ;;  %v3682_v63 = vadd.f32 %v5720_v1, %v2424_v48  ;;  %v10775_v48 = vld [vmem:[#allocation207_spill] sm:$0xff] }
 0x676   :  { %v3485_v0 = vpop.f32.mrf.mxu0  ;;  %v2426_v46 = vadd.f32 %v9729_v50, %v10775_v48  ;;  %v9757_v48 = vld [vmem:[%s10120_s11 + $0x160] sm:$0xff] }
 0x677   :  { %3842 = vst [vmem:[#allocation5 + $0x130] sm:$0xff] %v3682_v63  ;;  %v3680_v17 = vadd.f32 %v3485_v0, %v2422_v28  ;;  %v9736_v28 = vld [vmem:[%s10120_s11 + $0x158] sm:$0xff]  ;;  %v10776_v63 = vld [vmem:[#allocation80_spill] sm:$0xff] }
 0x678   :  { %v5721_v9 = vpop.f32.mrf.mxu0  ;;  %v2429_v0 = vadd.f32 %v9736_v28, %v10776_v63 }
 0x679   :  { %3840 = vst [vmem:[#allocation5 + $0x120] sm:$0xff] %v3680_v17  ;;  %v3683_v29 = vadd.f32 %v5721_v9, %v2425_v38  ;;  %v9743_v17 = vld [vmem:[%s10120_s11 + $0x148] sm:$0xff] }
 0x67a   :  { %v3488_v54 = vpop.f32.mrf.mxu0  ;;  %v10777_v9 = vld [vmem:[#allocation209_spill] sm:$0xff] }
 0x67b   :  { %3843 = vst [vmem:[#allocation5 + $0x138] sm:$0xff] %v3683_v29  ;;  %v3681_v43 = vadd.f32 %v3488_v54, %v2423_v23  ;;  %v2427_v49 = vadd.f32 %v9743_v17, %v10777_v9  ;;  %v9750_v54 = vld [vmem:[%s10120_s11 + $0x170] sm:$0xff] }
 0x67c   :  { %v5724_v15 = vpop.f32.mrf.mxu0  ;;  %10778 = vst [vmem:[#allocation27_spill] sm:$0xff] %v9750_v54 }
 0x67d   :  { %3841 = vst [vmem:[#allocation5 + $0x128] sm:$0xff] %v3681_v43  ;;  %v3686_v1 = vadd.f32 %v5724_v15, %v2428_v58  ;;  %v2432_v58 = vadd.f32 %v9750_v54, %v10779_v35 }
 0x67e   :  { %v3501_v47 = vpop.f32.mrf.mxu0 }
 0x67f   :  { %3846 = vst [vmem:[#allocation5 + $0x150] sm:$0xff] %v3686_v1  ;;  %v3684_v51 = vadd.f32 %v3501_v47, %v2426_v46  ;;  %v10780_v46 = vld [vmem:[#allocation211_spill] sm:$0xff] }
 0x680   :  { %v5725_v38 = vpop.f32.mrf.mxu0  ;;  %v2430_v1 = vadd.f32 %v9757_v48, %v10780_v46 }
 0x681   :  { %3844 = vst [vmem:[#allocation5 + $0x140] sm:$0xff] %v3684_v51  ;;  %v3687_v23 = vadd.f32 %v5725_v38, %v2429_v0  ;;  %v9764_v0 = vld [vmem:[%s10120_s11 + $0x178] sm:$0xff]  ;;  %v10782_v51 = vld [vmem:[#allocation82_spill] sm:$0xff] }
 0x682   :  { %v3504_v29 = vpop.f32.mrf.mxu0  ;;  %10781 = vst [vmem:[#allocation24_spill] sm:$0xff] %v9764_v0  ;;  %v2433_v38 = vadd.f32 %v9764_v0, %v10782_v51 }
 0x683   :  { %3847 = vst [vmem:[#allocation5 + $0x158] sm:$0xff] %v3687_v23  ;;  %v3685_v43 = vadd.f32 %v3504_v29, %v2427_v49  ;;  %v9771_v23 = vld [vmem:[%s10120_s11 + $0x168] sm:$0xff]  ;;  %s9783_s11 = sld [smem:[#allocation8 + $0x4]] }
 0x684   :  { %v5728_v15 = vpop.f32.mrf.mxu0  ;;  %10783 = vst [vmem:[#allocation28_spill] sm:$0xff] %v9771_v23  ;;  %v10784_v29 = vld [vmem:[#allocation213_spill] sm:$0xff] }
 0x685   :  { %3845 = vst [vmem:[#allocation5 + $0x148] sm:$0xff] %v3685_v43  ;;  %v3690_v47 = vadd.f32 %v5728_v15, %v2432_v58  ;;  %v2431_v35 = vadd.f32 %v9771_v23, %v10784_v29 }
 0x686   :  { %v3517_v63 = vpop.f32.mrf.mxu0 }
 0x687   :  { %3850 = vst [vmem:[#allocation5 + $0x170] sm:$0xff] %v3690_v47  ;;  %v3688_v9 = vadd.f32 %v3517_v63, %v2430_v1 }
 0x688   :  { %v5729_v49 = vpop.f32.mrf.mxu0 }
 0x689   :  { %3848 = vst [vmem:[#allocation5 + $0x160] sm:$0xff] %v3688_v9  ;;  %v3691_v58 = vadd.f32 %v5729_v49, %v2433_v38  ;;  %10785 = sst [smem:[#allocation214_spill]] %s9783_s11  ;;  %s3924_s2 = scalar_lea.vmem [#allocation5], %s9783_s11 }
 0x68a   :  { %v3520_v43 = vpop.f32.mrf.mxu0  ;;  %s10017_s11 = sld [smem:[#allocation10 + $0x5]] }
 0x68b   :  { %3851 = vst [vmem:[#allocation5 + $0x178] sm:$0xff] %v3691_v58  ;;  %v3689_v15 = vadd.f32 %v3520_v43, %v2431_v35 }
 0x68d   :  { %3849 = vst [vmem:[#allocation5 + $0x168] sm:$0xff] %v3689_v15 }
 0x694   :  { %v3916_v46 = vld [vmem:[%s3915_s1] sm:$0x1]  ;;  %s10004_s1 = sld [smem:[#allocation9 + $0x4]] }
 0x695   :  { %v3919_v1 = vld [vmem:[%s3918_s22] sm:$0x1]  ;;  %v3936_v51 = vrot.slane %v3916_v46, 7  ;;  %s4103_s22 = sld [smem:[#allocation10]] }
 0x696   :  { %v3922_v47 = vld [vmem:[%s3921_s29] sm:$0x1]  ;;  %v3939_v38 = vrot.slane %v3919_v1, 6  ;;  %s10006_s29 = sld [smem:[#allocation10 + $0x3]] }
 0x697   :  { %v3925_v63 = vld [vmem:[%s3924_s2] sm:$0x1]  ;;  %v3942_v35 = vrot.slane %v3922_v47, 5  ;;  %s10008_s2 = sld [smem:[#allocation9 + $0x5]] }
 0x698   :  { %v3913_v9 = vld [vmem:[%s3912_s3] sm:$0x1]  ;;  %v3945_v15 = vrot.slane %v3925_v63, 4  ;;  %v4499_v63 = vmul.f32 %v9445_v7, %v9445_v7  ;;  %v6233_v7 = vld [vmem:[%s10119_s10 + $0x10] sm:$0xff]  ;;  %s10010_s3 = sld [smem:[#allocation9 + $0x6]] }
 0x699   :  { %v3928_v49 = vld [vmem:[%s3927_s30] sm:$0x1]  ;;  %v3956_v58 = vsel %vm3897_vm2, %v3913_v9, %v3936_v51 }
 0x69a   :  { %v3931_v29 = vld [vmem:[%s3930_s15] sm:$0x1]  ;;  %v3957_v22 = vsel %vm3899_vm3, %v3956_v58, %v3939_v38  ;;  %v3948_v2 = vrot.slane %v3928_v49, 3  ;;  %v4502_v49 = vmul.f32 %v9452_v44, %v9452_v44  ;;  %v4504_v44 = vmul.f32 %v9491_v6, %v9491_v6  ;;  %s4910_s15 = sld [smem:[#allocation10 + $0x1]]  ;;  %s4064_s16 = scalar_lea.vmem [#allocation3], %s10004_s1 }
 0x69b   :  { %v3934_v43 = vld [vmem:[%s3933_s4] sm:$0x1]  ;;  %v3958_v31 = vsel %vm3901_vm4, %v3957_v22, %v3942_v35  ;;  %v3951_v0 = vrot.slane %v3931_v29, 2  ;;  %v4500_v22 = vmul.f32 %v9459_v36, %v9459_v36  ;;  %v4428_v36 = vmul.f32 %v6233_v7, %v6233_v7  ;;  %v6234_v35 = vld [vmem:[%s10119_s10 + $0x18] sm:$0xff]  ;;  %s4051_s4 = sld [smem:[#allocation9]]  ;;  %s4104_s8 = scalar_lea.vmem [#allocation3], %s4103_s22 }
 0x69c   :  { %v3959_v46 = vsel %vm3903_vm5, %v3958_v31, %v3945_v15  ;;  %v3954_v1 = vrot.slane %v3934_v43, 1  ;;  %v4429_v58 = vmul.f32 %v6234_v35, %v6234_v35  ;;  %v4506_v6 = vmul.f32 %v9484_v56, %v9484_v56  ;;  %v6239_v35 = vld [vmem:[%s10119_s10 + $0x40] sm:$0xff] }
 0x69d   :  { %v3960_v54 = vsel %vm3905_vm6, %v3959_v46, %v3948_v2  ;;  %v6231_v2 = vld [vmem:[%s10119_s10] sm:$0xff]  ;;  %v4547_v38 = vadd.f32 %v4500_v22, %v4499_v63  ;;  %v6236_v22 = vld [vmem:[%s10119_s10 + $0x28] sm:$0xff]  ;;  %v4508_v56 = vmul.f32 %v9519_v11, %v9519_v11  ;;  %v4510_v11 = vmul.f32 %v9512_v30, %v9512_v30 }
 0x69e   :  { %v3961_v23 = vsel %vm3907_vm7, %v3960_v54, %v3951_v0  ;;  %v4426_v31 = vmul.f32 %v6231_v2, %v6231_v2  ;;  %v6232_v54 = vld [vmem:[%s10119_s10 + $0x8] sm:$0xff]  ;;  %v6235_v46 = vld [vmem:[%s10119_s10 + $0x20] sm:$0xff]  ;;  %v4431_v2 = vmul.f32 %v6236_v22, %v6236_v22  ;;  %v4512_v30 = vmul.f32 %v9547_v19, %v9547_v19  ;;  %s4070_s25 = scalar_lea.vmem [#allocation3], %s10010_s3  ;;  %s10796_s3 = sld [smem:[#allocation216_spill]] }
 0x69f   :  { %v9806_v47 = vsel %vm3909_vm8, %v3961_v23, %v3954_v1  ;;  %v4427_v0 = vmul.f32 %v6232_v54, %v6232_v54  ;;  %v4501_v23 = vmul.f32 %v9438_v45, %v9438_v45  ;;  %v4503_v45 = vmul.f32 %v9475_v39, %v9475_v39 }
 0x6a0   :  { %v4251_v51 = vpack.c.bf16 %v9806_v47, %v9806_v47  ;;  %v4430_v1 = vmul.f32 %v6235_v46, %v6235_v46  ;;  %v4505_v39 = vmul.f32 %v9466_v25, %v9466_v25  ;;  %v4507_v25 = vmul.f32 %v9505_v53, %v9505_v53  ;;  %s4107_s12 = scalar_lea.vmem [#allocation3], %s4910_s15  ;;  %s10029_s15 = sld [smem:[#allocation10 + $0x7]] }
 0x6a1   :  { %v4458_v9 = vadd.f32 %v4427_v0, %v4426_v31  ;;  %v4548_v29 = vadd.f32 %v4547_v38, %v4501_v23  ;;  %v6237_v0 = vld [vmem:[%s10119_s10 + $0x30] sm:$0xff]  ;;  %v4509_v53 = vmul.f32 %v9498_v18, %v9498_v18  ;;  %v4511_v18 = vmul.f32 %v9533_v32, %v9533_v32 }
 0x6a2   :  { %5415 = vmatprep.mubr.bf16.mxu0 %v4251_v51  ;;  %5747 = vmatmul.mubr.bf16.vlgmr.msra.gmra.mxu1 %v4251_v51  ;;  %v4432_v23 = vmul.f32 %v6237_v0, %v6237_v0  ;;  %v4513_v32 = vmul.f32 %v9526_v10, %v9526_v10  ;;  %v4514_v19 = vmul.f32 %v9540_v26, %v9540_v26 }
 0x6a3   :  { %5416 = vmatmul.mubr.bf16.vlgmr.msra.gmra.mxu0 %v4251_v51  ;;  %v4459_v43 = vadd.f32 %v4458_v9, %v4428_v36  ;;  %v4549_v15 = vadd.f32 %v4548_v29, %v4502_v49  ;;  %v6238_v36 = vld [vmem:[%s10119_s10 + $0x38] sm:$0xff]  ;;  %v4515_v10 = vmul.f32 %v9561_v24, %v9561_v24  ;;  %v4516_v26 = vmul.f32 %v9575_v41, %v9575_v41 }
 0x6a4   :  { %v4433_v9 = vmul.f32 %v6238_v36, %v6238_v36  ;;  %v6244_v36 = vld [vmem:[%s10119_s10 + $0x68] sm:$0xff]  ;;  %v4517_v24 = vmul.f32 %v9554_v5, %v9554_v5  ;;  %v4518_v41 = vmul.f32 %v9568_v57, %v9568_v57  ;;  %v4519_v5 = vmul.f32 %v9589_v13, %v9589_v13  ;;  %v6253_v13 = vld [vmem:[%s10119_s10 + $0xb0] sm:$0xff] }
 0x6a5   :  { %v4460_v51 = vadd.f32 %v4459_v43, %v4429_v58  ;;  %v4550_v63 = vadd.f32 %v4549_v15, %v4503_v45  ;;  %v4434_v58 = vmul.f32 %v6239_v35, %v6239_v35  ;;  %v6240_v15 = vld [vmem:[%s10119_s10 + $0x48] sm:$0xff]  ;;  %v4520_v57 = vmul.f32 %v9603_v33, %v9603_v33  ;;  %v6254_v33 = vld [vmem:[%s10119_s10 + $0xb8] sm:$0xff] }
 0x6a6   :  { %v4435_v46 = vmul.f32 %v6240_v15, %v6240_v15  ;;  %s4125_s22 = scalar_lea.vmem [#allocation3], %s10029_s15 }
 0x6a7   :  { %v4461_v31 = vadd.f32 %v4460_v51, %v4430_v1  ;;  %v4551_v54 = vadd.f32 %v4550_v63, %v4504_v44  ;;  %v6241_v44 = vld [vmem:[%s10119_s10 + $0x50] sm:$0xff] }
 0x6a8   :  { %v4436_v63 = vmul.f32 %v6241_v44, %v6241_v44 }
 0x6a9   :  { %v4462_v38 = vadd.f32 %v4461_v31, %v4431_v2  ;;  %v4552_v7 = vadd.f32 %v4551_v54, %v4505_v39  ;;  %v6242_v31 = vld [vmem:[%s10119_s10 + $0x58] sm:$0xff] }
 0x6aa   :  { %v4437_v39 = vmul.f32 %v6242_v31, %v6242_v31  ;;  %v6249_v31 = vld [vmem:[%s10119_s10 + $0x90] sm:$0xff] }
 0x6ab   :  { %v4463_v49 = vadd.f32 %v4462_v38, %v4432_v23  ;;  %v4553_v29 = vadd.f32 %v4552_v7, %v4506_v6  ;;  %v6243_v23 = vld [vmem:[%s10119_s10 + $0x60] sm:$0xff] }
 0x6ac   :  { %v4438_v38 = vmul.f32 %v6243_v23, %v6243_v23 }
 0x6ad   :  { %v4464_v43 = vadd.f32 %v4463_v49, %v4433_v9  ;;  %v4554_v45 = vadd.f32 %v4553_v29, %v4507_v25  ;;  %v4439_v9 = vmul.f32 %v6244_v36, %v6244_v36  ;;  %v6245_v29 = vld [vmem:[%s10119_s10 + $0x70] sm:$0xff] }
 0x6ae   :  { %v4440_v35 = vmul.f32 %v6245_v29, %v6245_v29  ;;  %v4448_v29 = vmul.f32 %v6253_v13, %v6253_v13 }
 0x6af   :  { %v4465_v1 = vadd.f32 %v4464_v43, %v4434_v58  ;;  %v4555_v51 = vadd.f32 %v4554_v45, %v4508_v56  ;;  %v6246_v56 = vld [vmem:[%s10119_s10 + $0x78] sm:$0xff] }
 0x6b0   :  { %v4441_v45 = vmul.f32 %v6246_v56, %v6246_v56 }
 0x6b1   :  { %v4466_v22 = vadd.f32 %v4465_v1, %v4435_v46  ;;  %v4556_v2 = vadd.f32 %v4555_v51, %v4509_v53  ;;  %v6247_v1 = vld [vmem:[%s10119_s10 + $0x80] sm:$0xff] }
 0x6b2   :  { %v4442_v53 = vmul.f32 %v6247_v1, %v6247_v1  ;;  %v6256_v1 = vld [vmem:[%s10119_s10 + $0xc8] sm:$0xff] }
 0x6b3   :  { %v4467_v54 = vadd.f32 %v4466_v22, %v4436_v63  ;;  %v4557_v0 = vadd.f32 %v4556_v2, %v4510_v11  ;;  %v6248_v63 = vld [vmem:[%s10119_s10 + $0x88] sm:$0xff] }
 0x6b4   :  { %v4443_v22 = vmul.f32 %v6248_v63, %v6248_v63 }
 0x6b5   :  { %v4468_v6 = vadd.f32 %v4467_v54, %v4437_v39  ;;  %v4558_v7 = vadd.f32 %v4557_v0, %v4511_v18  ;;  %v4444_v39 = vmul.f32 %v6249_v31, %v6249_v31  ;;  %v6250_v0 = vld [vmem:[%s10119_s10 + $0x98] sm:$0xff] }
 0x6b6   :  { %v4445_v23 = vmul.f32 %v6250_v0, %v6250_v0 }
 0x6b7   :  { %v4469_v49 = vadd.f32 %v4468_v6, %v4438_v38  ;;  %v4559_v25 = vadd.f32 %v4558_v7, %v4512_v30  ;;  %v6251_v30 = vld [vmem:[%s10119_s10 + $0xa0] sm:$0xff] }
 0x6b8   :  { %v4446_v7 = vmul.f32 %v6251_v30, %v6251_v30  ;;  %v6261_v30 = vld [vmem:[%s10119_s10 + $0xf0] sm:$0xff] }
 0x6b9   :  { %v4470_v58 = vadd.f32 %v4469_v49, %v4439_v9  ;;  %v4560_v43 = vadd.f32 %v4559_v25, %v4513_v32  ;;  %v6252_v49 = vld [vmem:[%s10119_s10 + $0xa8] sm:$0xff]  ;;  %v4521_v25 = vmul.f32 %v9582_v61, %v9582_v61  ;;  %v6255_v61 = vld [vmem:[%s10119_s10 + $0xc0] sm:$0xff] }
 0x6ba   :  { %v4447_v32 = vmul.f32 %v6252_v49, %v6252_v49 }
 0x6bb   :  { %v4471_v15 = vadd.f32 %v4470_v58, %v4440_v35  ;;  %v4561_v46 = vadd.f32 %v4560_v43, %v4514_v19  ;;  %v4522_v58 = vmul.f32 %v9596_v12, %v9596_v12  ;;  %v4449_v19 = vmul.f32 %v6254_v33, %v6254_v33 }
 0x6bc   :  { %v4524_v12 = vmul.f32 %v9631_v42, %v9631_v42  ;;  %v4526_v42 = vmul.f32 %v9624_v27, %v9624_v27  ;;  %v4528_v27 = vmul.f32 %v9659_v20, %v9659_v20  ;;  %v4530_v20 = vmul.f32 %v9652_v40, %v9652_v40 }
 0x6bd   :  { %v4472_v51 = vadd.f32 %v4471_v15, %v4441_v45  ;;  %v4562_v44 = vadd.f32 %v4561_v46, %v4515_v10  ;;  %v4523_v45 = vmul.f32 %v9617_v34, %v9617_v34  ;;  %v4450_v15 = vmul.f32 %v6255_v61, %v6255_v61 }
 0x6be   :  { %v4525_v34 = vmul.f32 %v9610_v4, %v9610_v4  ;;  %v4527_v4 = vmul.f32 %v9645_v3, %v9645_v3  ;;  %v4529_v3 = vmul.f32 %v9638_v21, %v9638_v21  ;;  %v4531_v21 = vmul.f32 %v9673_v37, %v9673_v37 }
 0x6bf   :  { %v4473_v11 = vadd.f32 %v4472_v51, %v4442_v53  ;;  %v4563_v2 = vadd.f32 %v4562_v44, %v4516_v26  ;;  %v4451_v53 = vmul.f32 %v6256_v1, %v6256_v1  ;;  %v6257_v44 = vld [vmem:[%s10119_s10 + $0xd0] sm:$0xff]  ;;  %v4533_v40 = vmul.f32 %v9666_v14, %v9666_v14 }
 0x6c0   :  { %v4452_v63 = vmul.f32 %v6257_v44, %v6257_v44  ;;  %v4536_v61 = vmul.f32 %v9715_v16, %v9715_v16  ;;  %v4538_v14 = vmul.f32 %v9708_v52, %v9708_v52  ;;  %v4541_v16 = vmul.f32 %v9722_v62, %v9722_v62 }
 0x6c1   :  { %v4474_v54 = vadd.f32 %v4473_v11, %v4443_v22  ;;  %v4564_v18 = vadd.f32 %v4563_v2, %v4517_v24  ;;  %v6258_v24 = vld [vmem:[%s10119_s10 + $0xd8] sm:$0xff]  ;;  %v4543_v52 = vmul.f32 %v9757_v48, %v9757_v48  ;;  %v4108_v48 = vld [vmem:[%s4107_s12] sm:$0x1]  ;;  %s4052_s12 = scalar_lea.vmem [#allocation3], %s4051_s4  ;;  %s3969_s4 = scalar_lea.vmem [#allocation2], %s9233_s24 }
 0x6c2   :  { %v4453_v2 = vmul.f32 %v6258_v24, %v6258_v24  ;;  %s4067_s24 = scalar_lea.vmem [#allocation3], %s10008_s2  ;;  %s4013_s2 = scalar_lea.vmem [#allocation3], %s9781_s20 }
 0x6c3   :  { %v4475_v38 = vadd.f32 %v4474_v54, %v4444_v39  ;;  %v4565_v6 = vadd.f32 %v4564_v18, %v4518_v41  ;;  %v6259_v54 = vld [vmem:[%s10119_s10 + $0xe0] sm:$0xff]  ;;  %s4019_s20 = scalar_lea.vmem [#allocation3], %s10796_s3 }
 0x6c4   :  { %v4454_v41 = vmul.f32 %v6259_v54, %v6259_v54  ;;  %v4111_v54 = vld [vmem:[%s4110_s5] sm:$0x1]  ;;  %s4061_s5 = scalar_lea.vmem [#allocation3], %s10002_s17  ;;  %s4119_s17 = scalar_lea.vmem [#allocation3], %s10017_s11 }
 0x6c5   :  { %v4476_v36 = vadd.f32 %v4475_v38, %v4445_v23  ;;  %v4566_v9 = vadd.f32 %v4565_v6, %v4519_v5  ;;  %v6260_v23 = vld [vmem:[%s10119_s10 + $0xe8] sm:$0xff]  ;;  %s4073_s11 = scalar_lea.vmem [#allocation3], %s10014_s13  ;;  %s4009_s13 = scalar_lea.vmem [#allocation3], %s9777_s6 }
 0x6c6   :  { %v4455_v38 = vmul.f32 %v6260_v23, %v6260_v23  ;;  %s10794_s6 = sld [smem:[#allocation214_spill]] }
 0x6c7   :  { %v4477_v35 = vadd.f32 %v4476_v36, %v4446_v7  ;;  %v4567_v56 = vadd.f32 %v4566_v9, %v4520_v57  ;;  %v4456_v7 = vmul.f32 %v6261_v30, %v6261_v30  ;;  %v6262_v9 = vld [vmem:[%s10119_s10 + $0xf8] sm:$0xff]  ;;  %s4903_s10 = sld [smem:[#allocation9 + $0x1]] }
 0x6c8   :  { %v4457_v49 = vmul.f32 %v6262_v9, %v6262_v9 }
 0x6c9   :  { %v4478_v43 = vadd.f32 %v4477_v35, %v4447_v32  ;;  %v4568_v46 = vadd.f32 %v4567_v56, %v4521_v25  ;;  %v4532_v35 = vmul.f32 %v9687_v59, %v9687_v59  ;;  %v4537_v59 = vmul.f32 %v9694_v8, %v9694_v8 }
 0x6ca   :  { %v4542_v8 = vmul.f32 %v9736_v28, %v9736_v28 }
 0x6cb   :  { %v4479_v10 = vadd.f32 %v4478_v43, %v4448_v29  ;;  %v4569_v26 = vadd.f32 %v4568_v46, %v4522_v58  ;;  %v4534_v43 = vmul.f32 %v9680_v60, %v9680_v60  ;;  %v4539_v60 = vmul.f32 %v9729_v50, %v9729_v50 }
 0x6cd   :  { %v4480_v51 = vadd.f32 %v4479_v10, %v4449_v19  ;;  %v4570_v11 = vadd.f32 %v4569_v26, %v4523_v45  ;;  %v4535_v45 = vmul.f32 %v9701_v55, %v9701_v55  ;;  %v4540_v55 = vmul.f32 %v9743_v17, %v9743_v17  ;;  %s4055_s30 = scalar_lea.vmem [#allocation3], %s4903_s10  ;;  %s3967_s10 = scalar_lea.vmem [#allocation2], %s9231_s23 }
 0x6ce   :  { %v4056_v28 = vld [vmem:[%s4055_s30] sm:$0x1]  ;;  %s3963_s23 = scalar_lea.vmem [#allocation2], %s9227_s7  ;;  %s4116_s7 = scalar_lea.vmem [#allocation3], %s10012_s14 }
 0x6cf   :  { %v4481_v22 = vadd.f32 %v4480_v51, %v4450_v15  ;;  %v4571_v39 = vadd.f32 %v4570_v11, %v4524_v12  ;;  %v10791_v11 = vld [vmem:[#allocation24_spill] sm:$0xff]  ;;  %s3973_s14 = scalar_lea.vmem [#allocation2], %s9237_s26  ;;  %s3975_s26 = scalar_lea.vmem [#allocation2], %s9239_s27 }
 0x6d0   :  { %v4546_v62 = vmul.f32 %v10791_v11, %v10791_v11  ;;  %s3977_s27 = scalar_lea.vmem [#allocation2], %s9241_s28  ;;  %s4011_s28 = scalar_lea.vmem [#allocation3], %s9779_s19 }
 0x6d1   :  { %v4482_v31 = vadd.f32 %v4481_v22, %v4451_v53  ;;  %v4572_v0 = vadd.f32 %v4571_v39, %v4525_v34  ;;  %v10789_v34 = vld [vmem:[#allocation28_spill] sm:$0xff]  ;;  %s10795_s19 = sld [smem:[#allocation215_spill]]  ;;  %s4015_s30 = scalar_lea.vmem [#allocation3], %s10794_s6 }
 0x6d2   :  { %v4544_v50 = vmul.f32 %v10789_v34, %v10789_v34  ;;  %v4059_v39 = vld [vmem:[%s4058_s21] sm:$0x1]  ;;  %s10021_s21 = sld [smem:[#allocation10 + $0x6]] }
 0x6d3   :  { %v4483_v18 = vadd.f32 %v4482_v31, %v4452_v63  ;;  %v4573_v6 = vadd.f32 %v4572_v0, %v4526_v42  ;;  %v10790_v63 = vld [vmem:[#allocation27_spill] sm:$0xff]  ;;  %v3966_v31 = vld [vmem:[%s3965_s0] sm:$0x1]  ;;  %v4079_v23 = vrot.slane %v4059_v39, 6  ;;  %s4113_s0 = scalar_lea.vmem [#allocation3], %s10006_s29  ;;  %s4007_s29 = scalar_lea.vmem [#allocation3], %s9775_s18 }
 0x6d4   :  { %v4545_v17 = vmul.f32 %v10790_v63, %v10790_v63  ;;  %v3980_v0 = vrot.slane %v3966_v31, 7  ;;  %v3976_v63 = vld [vmem:[%s3975_s26] sm:$0x1]  ;;  %s10797_s18 = sld [smem:[#allocation217_spill]] }
 0x6d5   :  { %v4484_v5 = vadd.f32 %v4483_v18, %v4453_v2  ;;  %v4574_v57 = vadd.f32 %v4573_v6, %v4527_v4  ;;  %v4076_v4 = vrot.slane %v4056_v28, 7  ;;  %v3968_v18 = vld [vmem:[%s3967_s10] sm:$0x1]  ;;  %v4131_v6 = vrot.slane %v4111_v54, 6  ;;  %v10792_v54 = vld [vmem:[#allocation19_spill] sm:$0xff] }
 0x6d6   :  { %v4126_v28 = vld [vmem:[%s4125_s22] sm:$0x1] }
 0x6d7   :  { %v4485_v36 = vadd.f32 %v4484_v5, %v4454_v41  ;;  %v4575_v25 = vadd.f32 %v4574_v57, %v4528_v27  ;;  %v4128_v41 = vrot.slane %v4108_v48, 7  ;;  %v4053_v27 = vld [vmem:[%s4052_s12] sm:$0x1]  ;;  %s4017_s10 = scalar_lea.vmem [#allocation3], %s10795_s19 }
 0x6d8   :  { %v4105_v5 = vld [vmem:[%s4104_s8] sm:$0x1]  ;;  %s4122_s1 = scalar_lea.vmem [#allocation3], %s10021_s21 }
 0x6d9   :  { %v4486_v32 = vadd.f32 %v4485_v36, %v4455_v38  ;;  %v4576_v29 = vadd.f32 %v4575_v25, %v4529_v3  ;;  %v4096_v38 = vsel %vm3897_vm2, %v4053_v27, %v4076_v4  ;;  %v4062_v3 = vld [vmem:[%s4061_s5] sm:$0x1]  ;;  %v4148_v30 = vsel %vm3897_vm2, %v4105_v5, %v4128_v41  ;;  %s10799_s5 = sld [smem:[#allocation219_spill]] }
 0x6da   :  { %v3983_v36 = vrot.slane %v3968_v18, 6  ;;  %v4114_v57 = vld [vmem:[%s4113_s0] sm:$0x1]  ;;  %v4097_v9 = vsel %vm3899_vm3, %v4096_v38, %v4079_v23  ;;  %v4082_v25 = vrot.slane %v4062_v3, 5  ;;  %v4214_v41 = vmul.f32 5.0, %v10792_v54  ;;  %s4021_s12 = scalar_lea.vmem [#allocation3], %s10797_s18 }
 0x6db   :  { %v4487_v13 = vadd.f32 %v4486_v32, %v4456_v7  ;;  %v4577_v33 = vadd.f32 %v4576_v29, %v4530_v20  ;;  %v3964_v7 = vld [vmem:[%s3963_s23] sm:$0x1]  ;;  %v4134_v29 = vrot.slane %v4114_v57, 5  ;;  %v3995_v27 = vrot.slane %v3976_v63, 2 }
 0x6dc   :  { %v4000_v20 = vsel %vm3897_vm2, %v3964_v7, %v3980_v0  ;;  %v4065_v32 = vld [vmem:[%s4064_s16] sm:$0x1]  ;;  %v4146_v5 = vrot.slane %v4126_v28, 1  ;;  %s10800_s16 = sld [smem:[#allocation220_spill]] }
 0x6dd   :  { %v4488_v58 = vadd.f32 %v4487_v13, %v4457_v49  ;;  %v4578_v19 = vadd.f32 %v4577_v33, %v4531_v21  ;;  %v3970_v49 = vld [vmem:[%s3969_s4] sm:$0x1]  ;;  %v4149_v21 = vsel %vm3899_vm3, %v4148_v30, %v4131_v6  ;;  %v10793_v6 = vld [vmem:[#allocation22_spill] sm:$0xff] }
 0x6de   :  { %v4117_v13 = vld [vmem:[%s4116_s7] sm:$0x1]  ;;  %v4213_v3 = vmul.f32 5.0, %v10793_v6 }
 0x6df   :  { %4489 = vadd.xlane.f32.xlu1 %v4488_v58  ;;  %v4579_v56 = vadd.f32 %v4578_v19, %v4532_v35  ;;  %v4001_v35 = vsel %vm3899_vm3, %v4000_v20, %v3983_v36  ;;  %v4098_v58 = vsel %vm3901_vm4, %v4097_v9, %v4082_v25  ;;  %v3972_v33 = vld [vmem:[%s3971_s9] sm:$0x1] }
 0x6e0   :  { %v4068_v19 = vld [vmem:[%s4067_s24] sm:$0x1]  ;;  %v4215_v20 = vmax.f32 %v4213_v3, %v4214_v41  ;;  %s10801_s24 = sld [smem:[#allocation218_spill]] }
 0x6e1   :  { %v4580_v37 = vadd.f32 %v4579_v56, %v4533_v40  ;;  %v3986_v40 = vrot.slane %v3970_v49, 5  ;;  %v4150_v56 = vsel %vm3901_vm4, %v4149_v21, %v4134_v29  ;;  %v3978_v0 = vld [vmem:[%s3977_s27] sm:$0x1] }
 0x6e2   :  { %v3998_v7 = vrot.slane %v3978_v0, 1 }
 0x6e3   :  { %v4581_v15 = vadd.f32 %v4580_v37, %v4534_v43  ;;  %v4085_v43 = vrot.slane %v4065_v32, 4  ;;  %v4120_v37 = vld [vmem:[%s4119_s17] sm:$0x1] }
 0x6e5   :  { %v4582_v10 = vadd.f32 %v4581_v15, %v4535_v45 }
 0x6e7   :  { %v4583_v46 = vadd.f32 %v4582_v10, %v4536_v61  ;;  %v4137_v61 = vrot.slane %v4117_v13, 4  ;;  %v4099_v10 = vsel %vm3903_vm5, %v4098_v58, %v4085_v43 }
 0x6e9   :  { %v4584_v12 = vadd.f32 %v4583_v46, %v4537_v59  ;;  %v4002_v59 = vsel %vm3901_vm4, %v4001_v35, %v3986_v40  ;;  %v3974_v46 = vld [vmem:[%s3973_s14] sm:$0x1] }
 0x6eb   :  { %v4585_v1 = vadd.f32 %v4584_v12, %v4538_v14  ;;  %v4071_v12 = vld [vmem:[%s4070_s25] sm:$0x1] }
 0x6ed   :  { %v4586_v53 = vadd.f32 %v4585_v1, %v4539_v60  ;;  %v3989_v60 = vrot.slane %v3972_v33, 4  ;;  %v4151_v1 = vsel %vm3903_vm5, %v4150_v56, %v4137_v61 }
 0x6ef   :  { %v4587_v51 = vadd.f32 %v4586_v53, %v4540_v55  ;;  %v4088_v55 = vrot.slane %v4068_v19, 3  ;;  %v4123_v53 = vld [vmem:[%s4122_s1] sm:$0x1]  ;;  %v4003_v34 = vsel %vm3903_vm5, %v4002_v59, %v3989_v60 }
 0x6f0   :  { %v4143_v48 = vrot.slane %v4123_v53, 2  ;;  %v4010_v59 = vld [vmem:[%s4009_s13] sm:$0x1] }
 0x6f1   :  { %v4588_v26 = vadd.f32 %v4587_v51, %v4541_v16  ;;  %v4012_v60 = vld [vmem:[%s4011_s28] sm:$0x1] }
 0x6f3   :  { %v4589_v44 = vadd.f32 %v4588_v26, %v4542_v8  ;;  %v4140_v8 = vrot.slane %v4120_v37, 3 }
 0x6f5   :  { %v4590_v22 = vadd.f32 %v4589_v44, %v4543_v52  ;;  %v4152_v11 = vsel %vm3905_vm6, %v4151_v1, %v4140_v8  ;;  %v4024_v1 = vrot.slane %v4010_v59, 7 }
 0x6f6   :  { %v4153_v23 = vsel %vm3907_vm7, %v4152_v11, %v4143_v48  ;;  %v4018_v48 = vld [vmem:[%s4017_s10] sm:$0x1] }
 0x6f7   :  { %v4591_v42 = vadd.f32 %v4590_v22, %v4544_v50  ;;  %v4100_v50 = vsel %vm3905_vm6, %v4099_v10, %v4088_v55  ;;  %v4091_v22 = vrot.slane %v4071_v12, 2  ;;  %v4154_v57 = vsel %vm3909_vm8, %v4153_v23, %v4146_v5  ;;  %v4022_v23 = vld [vmem:[%s4021_s12] sm:$0x1] }
 0x6f8   :  { %v4036_v54 = vrot.slane %v4018_v48, 3 }
 0x6f9   :  { %v4592_v24 = vadd.f32 %v4591_v42, %v4545_v17  ;;  %v3992_v17 = vrot.slane %v3974_v46, 3  ;;  %v4101_v4 = vsel %vm3907_vm7, %v4100_v50, %v4091_v22 }
 0x6fb   :  { %v4593_v2 = vadd.f32 %v4592_v24, %v4546_v62  ;;  %v4004_v39 = vsel %vm3905_vm6, %v4003_v34, %v3992_v17  ;;  %v4014_v17 = vld [vmem:[%s4013_s2] sm:$0x1] }
 0x6fc   :  { %v4005_v30 = vsel %vm3907_vm7, %v4004_v39, %v3995_v27 }
 0x6fd   :  { %4594 = vadd.xlane.f32.xlu1 %v4593_v2  ;;  %v4074_v2 = vld [vmem:[%s4073_s11] sm:$0x1]  ;;  %v10069_v9 = vsel %vm3909_vm8, %v4005_v30, %v3998_v7 }
 0x6fe   :  { %v4094_v38 = vrot.slane %v4074_v2, 1 }
 0x700   :  { %v4102_v36 = vsel %vm3909_vm8, %v4101_v4, %v4094_v38  ;;  %v4020_v4 = vld [vmem:[%s4019_s20] sm:$0x1] }
 0x701   :  { %v4405_v49 = vsub.f32 %v4102_v36, %v4154_v57  ;;  %v4039_v38 = vrot.slane %v4020_v4, 2  ;;  %v4042_v36 = vrot.slane %v4022_v23, 1 }
 0x703   :  { %v4406_v32 = vmul.f32 %v4405_v49, %v10069_v9 }
 0x762   :  { %v4351_v45 = vpop.f32.mrf.mxu1 }
 0x763   :  { %v4310_v15 = vpop.f32.mrf.mxu0  ;;  %v4359_v62 = vmul.f32 5.0, %v4351_v45 }
 0x764   :  { %v5748_v14 = vpop.f32.mrf.mxu1  ;;  %v10047_v51 = vmul.f32 5.0, %v4310_v15 }
 0x765   :  { %v4312_v16 = vpop.f32.mrf.mxu0 }
 0x766   :  { %v10049_v52 = vmul.f32 5.0, %v4312_v16  ;;  %v4354_v26 = vpop.f32.mrf.mxu1 }
 0x767   :  { %v4314_v44 = vpop.f32.mrf.mxu0 }
 0x768   :  { %v5749_v42 = vpop.f32.mrf.mxu1  ;;  %v4360_v24 = vmax.f32 %v10047_v51, %v10049_v52  ;;  %v4490_v25 = vpop.xlane.xlu1 %4489 }
 0x769   :  { %v4315_v31 = vpop.f32.mrf.mxu0  ;;  %v4491_v21 = vrot.slane %v4490_v25, 4  ;;  %v4016_v42 = vld [vmem:[%s4015_s30] sm:$0x1] }
 0x76a   :  { %v4361_v18 = vmax.f32 %v4360_v24, %v4359_v62  ;;  %v4030_v24 = vrot.slane %v4014_v17, 5  ;;  %v4033_v31 = vrot.slane %v4016_v42, 4 }
 0x76b   :  { %v4492_v13 = vadd.f32 %v4491_v21, %v4490_v25  ;;  %v10798_v25 = vld [vmem:[#allocation18_spill] sm:$0xff] }
 0x76c   :  { %4362 = vmax.xlane.f32.xlu0 %v4361_v18  ;;  %v4238_v21 = vmul.f32 %v10069_v9, %v10798_v25 }
 0x76d   :  { %v4493_v35 = vrot.slane %v4492_v13, 2 }
 0x76f   :  { %v4494_v40 = vadd.f32 %v4493_v35, %v4492_v13 }
 0x770   :  { %4216 = vmax.xlane.f32.xlu0 %v4215_v20 }
 0x771   :  { %v4495_v43 = vrot.slane %v4494_v40, 1 }
 0x773   :  { %v4496_v56 = vadd.f32 %v4495_v43, %v4494_v40 }
 0x774   :  { %4407 = vadd.xlane.f32.xlu0 %v4406_v32 }
 0x775   :  { %5750 = vpush %v4496_v56 }
 0x786   :  { %v4595_v29 = vpop.xlane.xlu1 %4594 }
 0x787   :  { %v4596_v58 = vrot.slane %v4595_v29, 4 }
 0x789   :  { %v4597_v33 = vadd.f32 %v4596_v58, %v4595_v29 }
 0x78b   :  { %v4598_v19 = vrot.slane %v4597_v33, 2 }
 0x78d   :  { %v4599_v45 = vadd.f32 %v4598_v19, %v4597_v33 }
 0x78f   :  { %v4600_v37 = vrot.slane %v4599_v45, 1 }
 0x791   :  { %v4601_v61 = vadd.f32 %v4600_v37, %v4599_v45 }
 0x793   :  { %5752 = vpush %v4601_v61 }
 0x7a6   :  { %s5751_s23 = spop %5750 }
 0x7a7   :  { %v4498_v9 = vstv %s5751_s23 }
 0x7c4   :  { %s5753_s0 = spop %5752 }
 0x7c5   :  { %v4603_v59 = vstv %s5753_s0 }
 0x7f5   :  { %v10072_v15 = vpop.xlane.xlu0 %4362 }
 0x7f6   :  { %v4364_v10 = vsub.f32 %v10047_v51, %v10072_v15  ;;  %v4365_v14 = vsub.f32 %v10049_v52, %v10072_v15  ;;  %v4366_v46 = vsub.f32 %v4359_v62, %v10072_v15  ;;  %v4008_v51 = vld [vmem:[%s4007_s29] sm:$0x1]  ;;  %v4027_v52 = vrot.slane %v4012_v60, 6 }
 0x7f7   :  { %v4044_v44 = vsel %vm3897_vm2, %v4008_v51, %v4024_v1 }
 0x7f8   :  { %v4367_v12 = vmul.f32 1.442695, %v4364_v10  ;;  %v4369_v55 = vmul.f32 1.442695, %v4365_v14  ;;  %v4371_v16 = vmul.f32 1.442695, %v4366_v46  ;;  %v4045_v11 = vsel %vm3899_vm3, %v4044_v44, %v4027_v52 }
 0x7f9   :  { %v10081_v53 = vpop.xlane.xlu0 %4216  ;;  %v4046_v28 = vsel %vm3901_vm4, %v4045_v11, %v4030_v24  ;;  %v4604_v10 = vadd.f32 %v4603_v59, %v4498_v9 }
 0x7fa   :  { %5944 = vpow2.f32 %v4367_v12  ;;  %v4218_v8 = vsub.f32 %v4213_v3, %v10081_v53  ;;  %v4219_v26 = vsub.f32 %v4214_v41, %v10081_v53  ;;  %v4047_v39 = vsel %vm3903_vm5, %v4046_v28, %v4033_v31 }
 0x7fb   :  { %5946 = vpow2.f32 %v4369_v55  ;;  %v4048_v0 = vsel %vm3905_vm6, %v4047_v39, %v4036_v54  ;;  %4607 = vst [vmem:[%s10800_s16] sm:$0x1] %v4604_v10 }
 0x7fc   :  { %v4220_v34 = vmul.f32 1.442695, %v4218_v8  ;;  %v4222_v50 = vmul.f32 1.442695, %v4219_v26  ;;  %5948 = vpow2.f32 %v4371_v16  ;;  %v4049_v30 = vsel %vm3907_vm7, %v4048_v0, %v4039_v38 }
 0x7fd   :  { %v4408_v63 = vpop.xlane.xlu0 %4407  ;;  %v4050_v20 = vsel %vm3909_vm8, %v4049_v30, %v4042_v36 }
 0x7fe   :  { %5950 = vpow2.f32 %v4220_v34  ;;  %v4410_v22 = vand.u32 2147483647, %v4408_v63  ;;  %v4388_v49 = vmul.f32 %v4050_v20, %v9806_v47  ;;  %v4409_v35 = vmin.f32 %v4408_v63, 0.0 }
 0x7ff   :  { %5952 = vpow2.f32 %v4222_v50 }
 0x800   :  { %v4411_v62 = vsub.f32 0.0, %v4410_v22 }
 0x802   :  { %v4412_v2 = vmul.f32 1.442695, %v4411_v62 }
 0x804   :  { %5954 = vpow2.f32 %v4412_v2 }
 0x807   :  { %v5945_v41 = vpop.eup %5944 }
 0x808   :  { %v5947_v18 = vpop.eup %5946 }
 0x809   :  { %v4373_v27 = vadd.f32 %v5947_v18, %v5945_v41  ;;  %v5949_v5 = vpop.eup %5948 }
 0x80b   :  { %v5951_v6 = vpop.eup %5950  ;;  %v4374_v3 = vadd.f32 %v5949_v5, %v4373_v27 }
 0x80c   :  { %v5953_v7 = vpop.eup %5952 }
 0x80d   :  { %4375 = vadd.xlane.f32.xlu0 %v4374_v3  ;;  %v4224_v57 = vadd.f32 %v5953_v7, %v5951_v6 }
 0x80f   :  { %4225 = vadd.xlane.f32.xlu1 %v4224_v57 }
 0x811   :  { %v5955_v32 = vpop.eup %5954  ;;  %4389 = vadd.xlane.f32.xlu0 %v4388_v49 }
 0x812   :  { %v4414_v13 = vadd.f32 1.0, %v5955_v32 }
 0x813   :  { %4239 = vadd.xlane.f32.xlu1 %v4238_v21 }
 0x814   :  { %5956 = vlog2.f32 %v4414_v13 }
 0x821   :  { %v5957_v29 = vpop.eup %5956 }
 0x822   :  { %v4416_v58 = vmul.f32 0.6931472, %v5957_v29 }
 0x824   :  { %v4417_v33 = vsub.f32 %v4409_v35, %v4416_v58 }
 0x826   :  { %v4418_v40 = vrot.slane %v4417_v33, 4 }
 0x828   :  { %v4419_v19 = vadd.f32 %v4418_v40, %v4417_v33 }
 0x82a   :  { %v4420_v43 = vrot.slane %v4419_v19, 2 }
 0x82c   :  { %v4421_v56 = vadd.f32 %v4420_v43, %v4419_v19 }
 0x82e   :  { %v4422_v45 = vrot.slane %v4421_v56, 1 }
 0x830   :  { %v4423_v37 = vadd.f32 %v4422_v45, %v4421_v56 }
 0x832   :  { %v4424_v61 = vsub.f32 0.0, %v4423_v37 }
 0x834   :  { %v4425_v47 = vmul.f32 0.125, %v4424_v61 }
 0x836   :  { %4606 = vst [vmem:[%s10799_s5] sm:$0x1] %v4425_v47 }
 0x896   :  { %v4376_v14 = vpop.xlane.xlu0 %4375 }
 0x897   :  { %v4377_v46 = vadd.f32 1e-08, %v4376_v14 }
 0x898   :  { %v4226_v60 = vpop.xlane.xlu1 %4225 }
 0x899   :  { %5958 = vlog2.f32 %v4377_v46  ;;  %v4227_v12 = vadd.f32 1e-08, %v4226_v60 }
 0x89a   :  { %v4390_v55 = vpop.xlane.xlu0 %4389 }
 0x89b   :  { %5960 = vlog2.f32 %v4227_v12  ;;  %v4391_v1 = vmul.f32 5.0, %v4390_v55 }
 0x89c   :  { %v4240_v16 = vpop.xlane.xlu1 %4239 }
 0x89d   :  { %v4918_v8 = vclamps-f32 %v4391_v1, 5.0  ;;  %v4241_v26 = vmul.f32 5.0, %v4240_v16 }
 0x89f   :  { %v4394_v51 = vrot.slane %v4918_v8, 4  ;;  %v4917_v52 = vclamps-f32 %v4241_v26, 5.0 }
 0x8a1   :  { %v4395_v34 = vadd.f32 %v4918_v8, %v4394_v51  ;;  %v4244_v50 = vrot.slane %v4917_v52, 4 }
 0x8a3   :  { %v4245_v44 = vadd.f32 %v4917_v52, %v4244_v50  ;;  %v4396_v63 = vrot.slane %v4395_v34, 2 }
 0x8a5   :  { %v4246_v17 = vrot.slane %v4245_v44, 2  ;;  %v4397_v28 = vadd.f32 %v4396_v63, %v4395_v34 }
 0x8a6   :  { %v5959_v22 = vpop.eup %5958 }
 0x8a7   :  { %v4379_v11 = vmul.f32 0.6931472, %v5959_v22  ;;  %v4247_v62 = vadd.f32 %v4246_v17, %v4245_v44  ;;  %v4398_v41 = vrot.slane %v4397_v28, 1 }
 0x8a8   :  { %v5961_v42 = vpop.eup %5960 }
 0x8a9   :  { %v4380_v24 = vadd.f32 %v4379_v11, %v10072_v15  ;;  %v4229_v2 = vmul.f32 0.6931472, %v5961_v42  ;;  %v4248_v39 = vrot.slane %v4247_v62, 1  ;;  %v4399_v5 = vadd.f32 %v4398_v41, %v4397_v28 }
 0x8ab   :  { %v4381_v48 = vrot.slane %v4380_v24, 4  ;;  %v4230_v31 = vadd.f32 %v4229_v2, %v10081_v53  ;;  %v4249_v27 = vadd.f32 %v4248_v39, %v4247_v62  ;;  %v4400_v36 = vmul.f32 0.125, %v4399_v5 }
 0x8ad   :  { %v4382_v4 = vadd.f32 %v4381_v48, %v4380_v24  ;;  %v4231_v54 = vrot.slane %v4230_v31, 4  ;;  %v4250_v30 = vmul.f32 0.125, %v4249_v27 }
 0x8af   :  { %v4383_v18 = vrot.slane %v4382_v4, 2  ;;  %v4232_v0 = vadd.f32 %v4231_v54, %v4230_v31  ;;  %v4401_v20 = vadd.f32 %v4400_v36, %v4250_v30 }
 0x8b1   :  { %v4384_v23 = vadd.f32 %v4383_v18, %v4382_v4  ;;  %v4233_v38 = vrot.slane %v4232_v0, 2  ;;  %v4402_v25 = vsub.f32 0.0, %v4401_v20 }
 0x8b3   :  { %v4385_v6 = vrot.slane %v4384_v23, 1  ;;  %v4234_v3 = vadd.f32 %v4233_v38, %v4232_v0 }
 0x8b5   :  { %v4386_v7 = vadd.f32 %v4385_v6, %v4384_v23  ;;  %v4235_v15 = vrot.slane %v4234_v3, 1 }
 0x8b7   :  { %v4236_v57 = vadd.f32 %v4235_v15, %v4234_v3  ;;  %v4387_v49 = vmul.f32 0.125, %v4386_v7 }
 0x8b9   :  { %v4237_v53 = vmul.f32 0.125, %v4236_v57 }
 0x8bb   :  { %v4403_v32 = vadd.f32 %v4387_v49, %v4237_v53 }
 0x8bd   :  { %v4404_v21 = vadd.f32 %v4403_v32, %v4402_v25 }
 0x8bf   :  { %4605 = vst [vmem:[%s10801_s24] sm:$0x1] %v4404_v21 }

</bundles_post_ra>
